<compile_context>
chip_gen: v7x
topology: tpu7x:2x2x1
jax: 0.10.0
libtpu: 0.0.40
codegen_flags: <defaults>
</compile_context>

<pallas_src>
import functools

import jax
import jax.numpy as jnp
from jax.experimental import pallas as pl
from jax.experimental.pallas import tpu as pltpu


_VMEM_LIMIT = 48 * 1024 * 1024  # fits v7x (64 MiB phys) with headroom


def _cp(sem):
    return pltpu.CompilerParams(dimension_semantics=sem,
                                vmem_limit_bytes=_VMEM_LIMIT)


# ----------------------------------------------------------------------------
# Tiling helpers
# ----------------------------------------------------------------------------

def _row_tile(n, cap=512):
    """Largest divisor of n that is a multiple of 8 and <= cap; else n."""
    if n % 8 != 0:
        return n
    best, t = 8, 8
    while t <= min(n, cap):
        if n % t == 0:
            best = t
        t += 8
    return best


def _div8_tile(n, cap):
    if n % 8 != 0:
        return n
    best, t = 8, 8
    while t <= min(n, cap):
        if n % t == 0:
            best = t
        t += 8
    return best


def _tile128(n, cap=512):
    """Largest divisor of n that is a multiple of 128 and <= cap; else n (full)."""
    if n % 128 != 0:
        return n
    best, t = 128, 128
    while t <= min(n, cap):
        if n % t == 0:
            best = t
        t += 128
    return best


def _pick_group(g, cap=8):
    best = 1
    for c in range(1, min(g, cap) + 1):
        if g % c == 0:
            best = c
    return best


def _ln(x, g, b):
    x = x.astype(jnp.float32)
    mu = jnp.mean(x, axis=-1, keepdims=True)
    var = jnp.mean(jnp.square(x - mu), axis=-1, keepdims=True)
    return (x - mu) * jax.lax.rsqrt(var + 1e-5) * g + b


# ----------------------------------------------------------------------------
# Kernels
# ----------------------------------------------------------------------------

def _ln_proj_kernel(x_ref, g_ref, b_ref, w_ref, bias_ref, o_ref):
    # o = LN(x) @ W + bias   (bf16 operands, f32 accumulation, bf16 output)
    ln = _ln(x_ref[...], g_ref[...], b_ref[...])
    o_ref[...] = (jnp.dot(ln.astype(jnp.bfloat16), w_ref[...],
                          preferred_element_type=jnp.float32)
                  + bias_ref[...]).astype(o_ref.dtype)


def _linear_res_kernel(x_ref, res_ref, w_ref, b_ref, o_ref):
    # o = res + x @ W + b  (residual stream stays f32)
    o_ref[...] = (res_ref[...]
                  + jnp.dot(x_ref[...], w_ref[...],
                            preferred_element_type=jnp.float32)
                  + b_ref[...])


def _tm_proj_kernel(x_ref, g_ref, b_ref, mask_ref, wab_ref, bab_ref,
                    wg_ref, bg_ref, a_ref, bb_ref, gate_ref, *, d_hidden):
    # Fused LN -> {a,b} channels-first projections (transposed weights, so the
    # [dh, tm] stores are lane-dense) + gate projection (channels-last).
    ln = _ln(x_ref[0], g_ref[...], b_ref[...])
    lnb = ln.astype(jnp.bfloat16)
    dh = d_hidden
    pt = (jnp.einsum("cd,td->ct", wab_ref[...], lnb,
                     preferred_element_type=jnp.float32) + bab_ref[...])
    mrow = mask_ref[0]                                   # [1, tm]
    ga, pa = pt[0 * dh:1 * dh], pt[1 * dh:2 * dh]
    gb, pb = pt[2 * dh:3 * dh], pt[3 * dh:4 * dh]
    a_ref[0] = (mrow * jax.nn.sigmoid(ga) * pa).astype(a_ref.dtype)
    bb_ref[0] = (mrow * jax.nn.sigmoid(gb) * pb).astype(bb_ref.dtype)
    gate = (jnp.dot(lnb, wg_ref[...], preferred_element_type=jnp.float32)
            + bg_ref[...])
    gate_ref[0] = jax.nn.sigmoid(gate).astype(gate_ref.dtype)


def _tri_out_kernel(a_ref, b_ref, o_ref):
    # out[g, i, j] = sum_k a[g, i, k] * b[g, j, k]
    o_ref[...] = jnp.einsum("gik,gjk->gij", a_ref[...], b_ref[...],
                            preferred_element_type=jnp.float32
                            ).astype(o_ref.dtype)


def _tri_in_kernel(a_ref, b_ref, o_ref):
    # out[g, i, j] = sum_k a[g, k, i] * b[g, k, j]
    o_ref[...] = jnp.einsum("gki,gkj->gij", a_ref[...], b_ref[...],
                            preferred_element_type=jnp.float32
                            ).astype(o_ref.dtype)


def _tm_out_kernel(z_ref, lg_ref, lb_ref, gate_ref, res_ref, w_ref, bias_ref,
                   o_ref):
    # z is channels-first [dh, tm]: LN over channel axis, transposed-LHS matmul
    # back to channels-last, fused sigmoid-gate multiply + residual add.
    z = z_ref[0].astype(jnp.float32)
    mu = jnp.mean(z, axis=0, keepdims=True)
    var = jnp.mean(jnp.square(z - mu), axis=0, keepdims=True)
    ln = (z - mu) * jax.lax.rsqrt(var + 1e-5) * lg_ref[...] + lb_ref[...]
    proj = (jnp.einsum("ct,cd->td", ln.astype(jnp.bfloat16), w_ref[...],
                       preferred_element_type=jnp.float32) + bias_ref[...])
    o_ref[0] = res_ref[0] + gate_ref[0].astype(jnp.float32) * proj


def _ta_proj_kernel(x_ref, g_ref, b_ref, wqg_ref, bqg_ref, wkv_ref, wtbt_ref,
                    qg_ref, kv_ref, tb_ref):
    # Single pass over the pair tensor: LN once, emit [q|g], [k|v] slabs (bf16)
    # and the triangle bias channels-first [H, tm] (lane-dense bf16 store).
    ln = _ln(x_ref[0], g_ref[...], b_ref[...])
    lnb = ln.astype(jnp.bfloat16)
    qg_ref[0] = (jnp.dot(lnb, wqg_ref[...], preferred_element_type=jnp.float32)
                 + bqg_ref[...]).astype(qg_ref.dtype)
    kv_ref[0] = jnp.dot(lnb, wkv_ref[...],
                        preferred_element_type=jnp.float32).astype(kv_ref.dtype)
    tb_ref[0] = jnp.einsum("hd,td->ht", wtbt_ref[...], lnb,
                           preferred_element_type=jnp.float32
                           ).astype(tb_ref.dtype)


def _pair_bias_kernel(x_ref, g_ref, b_ref, wt_ref, o_ref):
    # pb[h, t] = (LN(pair_t) @ W_pb)[h]  -- written channels-first (lane-dense)
    ln = _ln(x_ref[0], g_ref[...], b_ref[...])
    o_ref[0] = jnp.einsum("hd,td->ht", wt_ref[...], ln.astype(jnp.bfloat16),
                          preferred_element_type=jnp.float32
                          ).astype(o_ref.dtype)


def _transition_kernel(x_ref, g_ref, b_ref, wab_ref, wo_ref, o_ref, *, d_ff):
    # Fused LN -> [a|b] wide matmul -> silu(a)*b -> out matmul -> residual.
    x = x_ref[...]
    ln = _ln(x, g_ref[...], b_ref[...])
    h = jnp.dot(ln.astype(jnp.bfloat16), wab_ref[...],
                preferred_element_type=jnp.float32)
    act = jax.nn.silu(h[:, :d_ff]) * h[:, d_ff:]
    o_ref[...] = x + jnp.dot(act.astype(jnp.bfloat16), wo_ref[...],
                             preferred_element_type=jnp.float32)


def _tri_attn_kernel(qg_ref, kv_ref, tb_ref, mask_ref, o_ref, *,
                     n_head, d_head, scale):
    # qg: [1, ti, tj, 2HD] ([q|g]); kv: [1, ti, J, 2HD] ([k|v]);
    # tb: [1, H, tj, J]; mask: [1, ti, J]; out: [1, ti, tj, HD] (bf16).
    HD = n_head * d_head
    qg = qg_ref[0]
    kv = kv_ref[0]
    tb = tb_ref[0]
    mbias = (mask_ref[0].astype(jnp.float32) - 1.0) * 1e9        # [ti, J]
    outs = []
    for h in range(n_head):
        sl = slice(h * d_head, (h + 1) * d_head)
        sl_v = slice(HD + h * d_head, HD + (h + 1) * d_head)
        s = jnp.einsum("tjd,tkd->tjk", qg[:, :, sl], kv[:, :, sl],
                       preferred_element_type=jnp.float32) * scale
        s = s + tb[h].astype(jnp.float32)[None, :, :] + mbias[:, None, :]
        mx = jnp.max(s, axis=-1, keepdims=True)
        e = jnp.exp(s - mx)
        r = pl.reciprocal(jnp.sum(e, axis=-1, keepdims=True), approx=True)
        p = (e * r).astype(jnp.bfloat16)
        outs.append(jnp.einsum("tjk,tkd->tjd", p, kv[:, :, sl_v],
                               preferred_element_type=jnp.float32))
    o = jnp.concatenate(outs, axis=-1)                           # [ti, tj, HD]
    gate = jax.nn.sigmoid(qg[:, :, HD:].astype(jnp.float32))
    o_ref[0] = (o * gate).astype(o_ref.dtype)


def _single_attn_kernel(q_ref, k_ref, v_ref, g_ref, pb_ref, mask_ref, o_ref, *,
                        n_head, d_head, scale):
    # q/g: [1, tq, Ds]; k/v: [1, L, Ds]; pb: [1, H, tq, L]; mask: [1, 1, L].
    q = q_ref[0]
    k = k_ref[0]
    v = v_ref[0]
    pb = pb_ref[0]
    mbias = (mask_ref[0].astype(jnp.float32) - 1.0) * 1e9        # [1, L]
    outs = []
    for h in range(n_head):
        sl = slice(h * d_head, (h + 1) * d_head)
        s = jnp.einsum("qd,kd->qk", q[:, sl], k[:, sl],
                       preferred_element_type=jnp.float32) * scale
        s = s + pb[h].astype(jnp.float32) + mbias
        mx = jnp.max(s, axis=-1, keepdims=True)
        e = jnp.exp(s - mx)
        r = pl.reciprocal(jnp.sum(e, axis=-1, keepdims=True), approx=True)
        p = (e * r).astype(jnp.bfloat16)
        outs.append(jnp.dot(p, v[:, sl], preferred_element_type=jnp.float32))
    o = jnp.concatenate(outs, axis=-1)
    o_ref[0] = (o * jax.nn.sigmoid(g_ref[0].astype(jnp.float32))
                ).astype(o_ref.dtype)


# ----------------------------------------------------------------------------
# Kernel wrappers
# ----------------------------------------------------------------------------

def ln_proj(x, ln_g, ln_b, w, bias):
    """LN(x) @ W + bias -> bf16; x: [..., D], W: [D, Dout] bf16."""
    d = x.shape[-1]
    dout = w.shape[1]
    lead = x.shape[:-1]
    x2 = x.reshape(-1, d).astype(jnp.float32)
    n = x2.shape[0]
    tm = _row_tile(n)
    out = pl.pallas_call(
        _ln_proj_kernel,
        grid=(n // tm,),
        in_specs=[
            pl.BlockSpec((tm, d), lambda i: (i, 0)),
            pl.BlockSpec((1, d), lambda i: (0, 0)),
            pl.BlockSpec((1, d), lambda i: (0, 0)),
            pl.BlockSpec((d, dout), lambda i: (0, 0)),
            pl.BlockSpec((1, dout), lambda i: (0, 0)),
        ],
        out_specs=pl.BlockSpec((tm, dout), lambda i: (i, 0)),
        out_shape=jax.ShapeDtypeStruct((n, dout), jnp.bfloat16),
        compiler_params=_cp(("parallel",)),
    )(x2, ln_g, ln_b, w, bias)
    return out.reshape(*lead, dout)


def linear_residual(x, res, w, b):
    """res + x @ W + b (f32 residual stream, bf16 matmul operands)."""
    din = x.shape[-1]
    dout = w.shape[1]
    lead = x.shape[:-1]
    x2 = x.reshape(-1, din).astype(jnp.bfloat16)
    r2 = res.reshape(-1, dout).astype(jnp.float32)
    n = x2.shape[0]
    tm = _row_tile(n)
    out = pl.pallas_call(
        _linear_res_kernel,
        grid=(n // tm,),
        in_specs=[
            pl.BlockSpec((tm, din), lambda i: (i, 0)),
            pl.BlockSpec((tm, dout), lambda i: (i, 0)),
            pl.BlockSpec((din, dout), lambda i: (0, 0)),
            pl.BlockSpec((1, dout), lambda i: (0, 0)),
        ],
        out_specs=pl.BlockSpec((tm, dout), lambda i: (i, 0)),
        out_shape=jax.ShapeDtypeStruct((n, dout), jnp.float32),
        compiler_params=_cp(("parallel",)),
    )(x2, r2, w, b)
    return out.reshape(*lead, dout)


def tm_proj(pair, pair_mask, pp, *, d_hidden):
    B, L, _, D = pair.shape
    dh = d_hidden
    n = L * L
    x3 = pair.reshape(B, n, D).astype(jnp.float32)
    m3 = pair_mask.reshape(B, 1, n).astype(jnp.float32)
    tm = _tile128(n, 512)
    a_cf, b_cf, gate = pl.pallas_call(
        functools.partial(_tm_proj_kernel, d_hidden=dh),
        grid=(B, n // tm),
        in_specs=[
            pl.BlockSpec((1, tm, D), lambda b, r: (b, r, 0)),
            pl.BlockSpec((1, D), lambda b, r: (0, 0)),
            pl.BlockSpec((1, D), lambda b, r: (0, 0)),
            pl.BlockSpec((1, 1, tm), lambda b, r: (b, 0, r)),
            pl.BlockSpec((4 * dh, D), lambda b, r: (0, 0)),
            pl.BlockSpec((4 * dh, 1), lambda b, r: (0, 0)),
            pl.BlockSpec((D, D), lambda b, r: (0, 0)),
            pl.BlockSpec((1, D), lambda b, r: (0, 0)),
        ],
        out_specs=[
            pl.BlockSpec((1, dh, tm), lambda b, r: (b, 0, r)),
            pl.BlockSpec((1, dh, tm), lambda b, r: (b, 0, r)),
            pl.BlockSpec((1, tm, D), lambda b, r: (b, r, 0)),
        ],
        out_shape=[
            jax.ShapeDtypeStruct((B, dh, n), jnp.bfloat16),
            jax.ShapeDtypeStruct((B, dh, n), jnp.bfloat16),
            jax.ShapeDtypeStruct((B, n, D), jnp.bfloat16),
        ],
        compiler_params=_cp(("parallel", "parallel")),
    )(x3, pp["ln_in_g"], pp["ln_in_b"], m3,
      pp["w_abT"], pp["b_abT"], pp["w_g"], pp["b_g"])
    return a_cf, b_cf, gate


def tri_mult_core(a_cf, b_cf, L, outgoing):
    """a_cf, b_cf: [B, dh, L*L] bf16 (channels-first) -> z_cf [B, dh, L*L]."""
    B, dh, _ = a_cf.shape
    G = B * dh
    a3 = a_cf.reshape(G, L, L)
    b3 = b_cf.reshape(G, L, L)
    cb = _pick_group(G, 8)
    ti = _tile128(L, 128)
    tj = _tile128(L, 128)
    if outgoing:
        kern = _tri_out_kernel
        a_spec = pl.BlockSpec((cb, ti, L), lambda g, i, j: (g, i, 0))
        b_spec = pl.BlockSpec((cb, tj, L), lambda g, i, j: (g, j, 0))
    else:
        kern = _tri_in_kernel
        a_spec = pl.BlockSpec((cb, L, ti), lambda g, i, j: (g, 0, i))
        b_spec = pl.BlockSpec((cb, L, tj), lambda g, i, j: (g, 0, j))
    out = pl.pallas_call(
        kern,
        grid=(G // cb, L // ti, L // tj),
        in_specs=[a_spec, b_spec],
        out_specs=pl.BlockSpec((cb, ti, tj), lambda g, i, j: (g, i, j)),
        out_shape=jax.ShapeDtypeStruct((G, L, L), jnp.bfloat16),
        compiler_params=_cp(("parallel", "parallel", "parallel")),
    )(a3, b3)
    return out.reshape(B, dh, L * L)


def tm_out(z_cf, gate, residual, pp, *, L):
    B, dh, n = z_cf.shape
    D = residual.shape[-1]
    res3 = residual.reshape(B, n, D).astype(jnp.float32)
    tm = _tile128(n, 512)
    out = pl.pallas_call(
        _tm_out_kernel,
        grid=(B, n // tm),
        in_specs=[
            pl.BlockSpec((1, dh, tm), lambda b, r: (b, 0, r)),
            pl.BlockSpec((dh, 1), lambda b, r: (0, 0)),
            pl.BlockSpec((dh, 1), lambda b, r: (0, 0)),
            pl.BlockSpec((1, tm, D), lambda b, r: (b, r, 0)),
            pl.BlockSpec((1, tm, D), lambda b, r: (b, r, 0)),
            pl.BlockSpec((dh, D), lambda b, r: (0, 0)),
            pl.BlockSpec((1, D), lambda b, r: (0, 0)),
        ],
        out_specs=pl.BlockSpec((1, tm, D), lambda b, r: (b, r, 0)),
        out_shape=jax.ShapeDtypeStruct((B, n, D), jnp.float32),
        compiler_params=_cp(("parallel", "parallel")),
    )(z_cf, pp["ln_out_g"], pp["ln_out_b"], gate, res3, pp["w_o"], pp["b_o"])
    return out.reshape(B, L, L, D)


def ta_proj(pair, pp, *, n_head, hd_total):
    B, L, _, D = pair.shape
    n = L * L
    HD2 = 2 * hd_total
    tm = _tile128(n, 512)
    qg, kv, tb_cf = pl.pallas_call(
        _ta_proj_kernel,
        grid=(B, n // tm),
        in_specs=[
            pl.BlockSpec((1, tm, D), lambda b, r: (b, r, 0)),
            pl.BlockSpec((1, D), lambda b, r: (0, 0)),
            pl.BlockSpec((1, D), lambda b, r: (0, 0)),
            pl.BlockSpec((D, HD2), lambda b, r: (0, 0)),
            pl.BlockSpec((1, HD2), lambda b, r: (0, 0)),
            pl.BlockSpec((D, HD2), lambda b, r: (0, 0)),
            pl.BlockSpec((n_head, D), lambda b, r: (0, 0)),
        ],
        out_specs=[
            pl.BlockSpec((1, tm, HD2), lambda b, r: (b, r, 0)),
            pl.BlockSpec((1, tm, HD2), lambda b, r: (b, r, 0)),
            pl.BlockSpec((1, n_head, tm), lambda b, r: (b, 0, r)),
        ],
        out_shape=[
            jax.ShapeDtypeStruct((B, n, HD2), jnp.bfloat16),
            jax.ShapeDtypeStruct((B, n, HD2), jnp.bfloat16),
            jax.ShapeDtypeStruct((B, n_head, n), jnp.bfloat16),
        ],
        compiler_params=_cp(("parallel", "parallel")),
    )(pair.reshape(B, n, D).astype(jnp.float32),
      pp["ln_g"], pp["ln_b"], pp["w_qg"], pp["b_qg"], pp["w_kv"], pp["w_tbT"])
    return qg, kv, tb_cf


def tri_attention_core(qg, kv, tb, mask, *, n_head, d_head):
    B, I, J, HD2 = qg.shape
    HD = HD2 // 2
    ti = _div8_tile(I, 16)
    tj = _div8_tile(J, 128)
    scale = 1.0 / float(d_head) ** 0.5
    out = pl.pallas_call(
        functools.partial(_tri_attn_kernel, n_head=n_head, d_head=d_head,
                          scale=scale),
        grid=(B, I // ti, J // tj),
        in_specs=[
            pl.BlockSpec((1, ti, tj, HD2), lambda b, i, j: (b, i, j, 0)),
            pl.BlockSpec((1, ti, J, HD2), lambda b, i, j: (b, i, 0, 0)),
            pl.BlockSpec((1, n_head, tj, J), lambda b, i, j: (b, 0, j, 0)),
            pl.BlockSpec((1, ti, J), lambda b, i, j: (b, i, 0)),
        ],
        out_specs=pl.BlockSpec((1, ti, tj, HD), lambda b, i, j: (b, i, j, 0)),
        out_shape=jax.ShapeDtypeStruct((B, I, J, HD), jnp.bfloat16),
        compiler_params=_cp(("parallel", "parallel", "parallel")),
    )(qg, kv, tb, mask.astype(jnp.float32))
    return out


def pair_bias_proj(pair, ln_g, ln_b, w_t):
    B, L, _, D = pair.shape
    H = w_t.shape[0]
    n = L * L
    tm = _tile128(n, 512)
    out = pl.pallas_call(
        _pair_bias_kernel,
        grid=(B, n // tm),
        in_specs=[
            pl.BlockSpec((1, tm, D), lambda b, r: (b, r, 0)),
            pl.BlockSpec((1, D), lambda b, r: (0, 0)),
            pl.BlockSpec((1, D), lambda b, r: (0, 0)),
            pl.BlockSpec((H, D), lambda b, r: (0, 0)),
        ],
        out_specs=pl.BlockSpec((1, H, tm), lambda b, r: (b, 0, r)),
        out_shape=jax.ShapeDtypeStruct((B, H, n), jnp.bfloat16),
        compiler_params=_cp(("parallel", "parallel")),
    )(pair.reshape(B, n, D).astype(jnp.float32), ln_g, ln_b, w_t)
    return out.reshape(B, H, L, L)


def single_attention_core(q, k, v, g, pb, mask, *, n_head, d_head):
    B, L, Ds = q.shape
    tq = _div8_tile(L, 256)
    m3 = mask.reshape(B, 1, L).astype(jnp.float32)
    scale = 1.0 / float(d_head) ** 0.5
    out = pl.pallas_call(
        functools.partial(_single_attn_kernel, n_head=n_head, d_head=d_head,
                          scale=scale),
        grid=(B, L // tq),
        in_specs=[
            pl.BlockSpec((1, tq, Ds), lambda b, i: (b, i, 0)),
            pl.BlockSpec((1, L, Ds), lambda b, i: (b, 0, 0)),
            pl.BlockSpec((1, L, Ds), lambda b, i: (b, 0, 0)),
            pl.BlockSpec((1, tq, Ds), lambda b, i: (b, i, 0)),
            pl.BlockSpec((1, n_head, tq, L), lambda b, i: (b, 0, i, 0)),
            pl.BlockSpec((1, 1, L), lambda b, i: (b, 0, 0)),
        ],
        out_specs=pl.BlockSpec((1, tq, Ds), lambda b, i: (b, i, 0)),
        out_shape=jax.ShapeDtypeStruct((B, L, Ds), jnp.bfloat16),
        compiler_params=_cp(("parallel", "parallel")),
    )(q, k, v, g, pb, m3)
    return out


def transition(pp, x):
    D = x.shape[-1]
    d_ff = pp["w_ab"].shape[1] // 2
    lead = x.shape[:-1]
    x2 = x.reshape(-1, D).astype(jnp.float32)
    n = x2.shape[0]
    tm = _row_tile(n)
    out = pl.pallas_call(
        functools.partial(_transition_kernel, d_ff=d_ff),
        grid=(n // tm,),
        in_specs=[
            pl.BlockSpec((tm, D), lambda i: (i, 0)),
            pl.BlockSpec((1, D), lambda i: (0, 0)),
            pl.BlockSpec((1, D), lambda i: (0, 0)),
            pl.BlockSpec((D, 2 * d_ff), lambda i: (0, 0)),
            pl.BlockSpec((d_ff, D), lambda i: (0, 0)),
        ],
        out_specs=pl.BlockSpec((tm, D), lambda i: (i, 0)),
        out_shape=jax.ShapeDtypeStruct((n, D), jnp.float32),
        compiler_params=_cp(("parallel",)),
    )(x2, pp["ln_g"], pp["ln_b"], pp["w_ab"], pp["w_o"])
    return out.reshape(*lead, D)


# ----------------------------------------------------------------------------
# Submodule forwards
# ----------------------------------------------------------------------------

def triangle_multiplication(pp, pair, pair_mask, *, outgoing, d_hidden):
    B, L = pair.shape[0], pair.shape[1]
    a_cf, b_cf, gate = tm_proj(pair, pair_mask, pp, d_hidden=d_hidden)
    z_cf = tri_mult_core(a_cf, b_cf, L, outgoing)
    return tm_out(z_cf, gate, pair, pp, L=L)


def triangle_attention(pp, pair, pair_mask, *, starting, n_head, d_hidden):
    if not starting:
        pair = jnp.swapaxes(pair, 1, 2)
        pair_mask = jnp.swapaxes(pair_mask, 1, 2)
    B, I, J, _ = pair.shape
    HD = n_head * d_hidden
    qg, kv, tb_cf = ta_proj(pair, pp, n_head=n_head, hd_total=HD)
    qg = qg.reshape(B, I, J, 2 * HD)
    kv = kv.reshape(B, I, J, 2 * HD)
    tb = tb_cf.reshape(B, n_head, I, J)        # bias[b, h, query_j, key_k]
    o = tri_attention_core(qg, kv, tb, pair_mask, n_head=n_head,
                           d_head=d_hidden)
    out = linear_residual(o, pair, pp["w_o"], pp["b_o"])
    if not starting:
        out = jnp.swapaxes(out, 1, 2)
    return out


def attention_pair_bias(pp, single, pair, single_mask, *, n_head):
    B, L, Ds = single.shape
    H = n_head
    dh = Ds // H
    slab = ln_proj(single, pp["ln_s_g"], pp["ln_s_b"], pp["w_qkvg"],
                   pp["b_qkvg"])               # [B, L, 4*Ds] bf16
    q = slab[..., 0 * Ds:1 * Ds]
    k = slab[..., 1 * Ds:2 * Ds]
    v = slab[..., 2 * Ds:3 * Ds]
    g = slab[..., 3 * Ds:4 * Ds]
    pb = pair_bias_proj(pair, pp["ln_z_g"], pp["ln_z_b"], pp["w_pbT"])
    o = single_attention_core(q, k, v, g, pb, single_mask, n_head=H, d_head=dh)
    return linear_residual(o, single, pp["w_o"], pp["b_o"])


def pairformer_block(params, pair, single, single_mask, *,
                     n_head_tri, d_hidden_tri, d_hidden_tm, n_head_apb):
    pair_mask = single_mask[:, :, None] * single_mask[:, None, :]

    # drop_row / drop_col are identity at inference; residual adds are fused
    # into each submodule's output kernel.
    pair = triangle_multiplication(params["tri_out"], pair, pair_mask,
                                   outgoing=True, d_hidden=d_hidden_tm)
    pair = triangle_multiplication(params["tri_in"], pair, pair_mask,
                                   outgoing=False, d_hidden=d_hidden_tm)
    pair = triangle_attention(params["ta_start"], pair, pair_mask,
                              starting=True, n_head=n_head_tri,
                              d_hidden=d_hidden_tri)
    pair = triangle_attention(params["ta_end"], pair, pair_mask,
                              starting=False, n_head=n_head_tri,
                              d_hidden=d_hidden_tri)
    pair = transition(params["trans_pair"], pair)

    single = attention_pair_bias(params["apb"], single, pair, single_mask,
                                 n_head=n_head_apb)
    single = transition(params["trans_single"], single)
    return single, pair


# ----------------------------------------------------------------------------
# Parameter init + one-time prep (concat + bf16 cast done outside the jit)
# ----------------------------------------------------------------------------

def init_ln(d):
    return {"g": jnp.ones((d,), jnp.float32), "b": jnp.zeros((d,), jnp.float32)}


def init_lin(key, din, dout, bias=True, scale=0.1):
    kw, kb = jax.random.split(key)
    p = {"w": jax.random.normal(kw, (din, dout), jnp.float32) * scale}
    p["b"] = jax.random.normal(kb, (dout,), jnp.float32) * scale if bias else None
    return p


def init_params(key, d_single, d_pair, d_hid_tm, d_hid_ta, h_ta, h_apb,
                n_trans=4):
    keys = iter(jax.random.split(key, 64))

    def tm():
        return {
            "ln_in": init_ln(d_pair),
            "pa": init_lin(next(keys), d_pair, d_hid_tm),
            "ga": init_lin(next(keys), d_pair, d_hid_tm),
            "pb": init_lin(next(keys), d_pair, d_hid_tm),
            "gb": init_lin(next(keys), d_pair, d_hid_tm),
            "ln_out": init_ln(d_hid_tm),
            "g": init_lin(next(keys), d_pair, d_pair),
            "o": init_lin(next(keys), d_hid_tm, d_pair),
        }

    def ta():
        return {
            "ln": init_ln(d_pair),
            "q": init_lin(next(keys), d_pair, h_ta * d_hid_ta, bias=False),
            "k": init_lin(next(keys), d_pair, h_ta * d_hid_ta, bias=False),
            "v": init_lin(next(keys), d_pair, h_ta * d_hid_ta, bias=False),
            "tb": init_lin(next(keys), d_pair, h_ta, bias=False),
            "g": init_lin(next(keys), d_pair, h_ta * d_hid_ta),
            "o": init_lin(next(keys), h_ta * d_hid_ta, d_pair),
        }

    def trans(d):
        return {
            "ln": init_ln(d),
            "a": init_lin(next(keys), d, n_trans * d, bias=False),
            "b": init_lin(next(keys), d, n_trans * d, bias=False),
            "o": init_lin(next(keys), n_trans * d, d, bias=False),
        }

    apb = {
        "ln_s": init_ln(d_single),
        "ln_z": init_ln(d_pair),
        "q": init_lin(next(keys), d_single, d_single),
        "k": init_lin(next(keys), d_single, d_single, bias=False),
        "v": init_lin(next(keys), d_single, d_single, bias=False),
        "pb": init_lin(next(keys), d_pair, h_apb, bias=False),
        "g": init_lin(next(keys), d_single, d_single, bias=False),
        "o": init_lin(next(keys), d_single, d_single, bias=False),
    }

    return {
        "tri_out": tm(),
        "tri_in": tm(),
        "ta_start": ta(),
        "ta_end": ta(),
        "trans_pair": trans(d_pair),
        "apb": apb,
        "trans_single": trans(d_single),
    }


def prepare_params(p, *, d_single, d_hid_tm, d_hid_ta, h_ta, h_apb):
    """One-time weight concatenation / transposition / bf16 cast."""
    f32, bf16 = jnp.float32, jnp.bfloat16
    del d_hid_ta  # shapes inferred from the raw weights

    def prep_tm(q):
        dh = d_hid_tm
        w_abT = jnp.concatenate([q["ga"]["w"].T, q["pa"]["w"].T,
                                 q["gb"]["w"].T, q["pb"]["w"].T], axis=0)
        b_abT = jnp.concatenate([q["ga"]["b"], q["pa"]["b"],
                                 q["gb"]["b"], q["pb"]["b"]],
                                axis=0).reshape(4 * dh, 1)
        return {
            "ln_in_g": q["ln_in"]["g"].reshape(1, -1).astype(f32),
            "ln_in_b": q["ln_in"]["b"].reshape(1, -1).astype(f32),
            "w_abT": w_abT.astype(bf16),
            "b_abT": b_abT.astype(f32),
            "w_g": q["g"]["w"].astype(bf16),
            "b_g": q["g"]["b"].reshape(1, -1).astype(f32),
            "ln_out_g": q["ln_out"]["g"].reshape(-1, 1).astype(f32),
            "ln_out_b": q["ln_out"]["b"].reshape(-1, 1).astype(f32),
            "w_o": q["o"]["w"].astype(bf16),
            "b_o": q["o"]["b"].reshape(1, -1).astype(f32),
        }

    def prep_ta(q):
        HD = q["q"]["w"].shape[1]
        return {
            "ln_g": q["ln"]["g"].reshape(1, -1).astype(f32),
            "ln_b": q["ln"]["b"].reshape(1, -1).astype(f32),
            "w_qg": jnp.concatenate([q["q"]["w"], q["g"]["w"]],
                                    axis=1).astype(bf16),
            "b_qg": jnp.concatenate([jnp.zeros((HD,), f32), q["g"]["b"]],
                                    axis=0).reshape(1, 2 * HD).astype(f32),
            "w_kv": jnp.concatenate([q["k"]["w"], q["v"]["w"]],
                                    axis=1).astype(bf16),
            "w_tbT": q["tb"]["w"].T.astype(bf16),
            "w_o": q["o"]["w"].astype(bf16),
            "b_o": q["o"]["b"].reshape(1, -1).astype(f32),
        }

    def prep_trans(q):
        return {
            "ln_g": q["ln"]["g"].reshape(1, -1).astype(f32),
            "ln_b": q["ln"]["b"].reshape(1, -1).astype(f32),
            "w_ab": jnp.concatenate([q["a"]["w"], q["b"]["w"]],
                                    axis=1).astype(bf16),
            "w_o": q["o"]["w"].astype(bf16),
        }

    apb = p["apb"]
    Ds = d_single
    prep_apb = {
        "ln_s_g": apb["ln_s"]["g"].reshape(1, -1).astype(f32),
        "ln_s_b": apb["ln_s"]["b"].reshape(1, -1).astype(f32),
        "w_qkvg": jnp.concatenate([apb["q"]["w"], apb["k"]["w"],
                                   apb["v"]["w"], apb["g"]["w"]],
                                  axis=1).astype(bf16),
        "b_qkvg": jnp.concatenate([apb["q"]["b"], jnp.zeros((3 * Ds,), f32)],
                                  axis=0).reshape(1, 4 * Ds).astype(f32),
        "ln_z_g": apb["ln_z"]["g"].reshape(1, -1).astype(f32),
        "ln_z_b": apb["ln_z"]["b"].reshape(1, -1).astype(f32),
        "w_pbT": apb["pb"]["w"].T.astype(bf16),
        "w_o": apb["o"]["w"].astype(bf16),
        "b_o": jnp.zeros((1, Ds), f32),
    }
    del h_ta, h_apb

    return {
        "tri_out": prep_tm(p["tri_out"]),
        "tri_in": prep_tm(p["tri_in"]),
        "ta_start": prep_ta(p["ta_start"]),
        "ta_end": prep_ta(p["ta_end"]),
        "trans_pair": prep_trans(p["trans_pair"]),
        "apb": prep_apb,
        "trans_single": prep_trans(p["trans_single"]),
    }


# ----------------------------------------------------------------------------
# Main
# ----------------------------------------------------------------------------

if __name__ == "__main__":
    # Small shapes consistent with the module (scaled-down dims).
    B, L = 2, 8
    d_single, d_pair = 32, 32
    d_hid_tm, d_hid_ta = 16, 8
    h_ta, h_apb = 2, 4

    key = jax.random.PRNGKey(0)
    kp, kpair, ksingle = jax.random.split(key, 3)

    raw_params = init_params(kp, d_single, d_pair, d_hid_tm, d_hid_ta,
                             h_ta, h_apb)
    params = prepare_params(raw_params, d_single=d_single,
                            d_hid_tm=d_hid_tm, d_hid_ta=d_hid_ta,
                            h_ta=h_ta, h_apb=h_apb)

    pair = jax.random.normal(kpair, (B, L, L, d_pair), jnp.float32)
    single = jax.random.normal(ksingle, (B, L, d_single), jnp.float32)
    single_mask = jnp.ones((B, L), jnp.float32).at[1, -2:].set(0.0)

    fwd = jax.jit(functools.partial(
        pairformer_block,
        n_head_tri=h_ta, d_hidden_tri=d_hid_ta, d_hidden_tm=d_hid_tm,
        n_head_apb=h_apb))

    single_out, pair_out = fwd(params, pair, single, single_mask)
    jax.block_until_ready((single_out, pair_out))

    assert single_out.shape == (B, L, d_single)
    assert pair_out.shape == (B, L, L, d_pair)
    assert bool(jnp.isfinite(single_out).all())
    assert bool(jnp.isfinite(pair_out).all())
    print("KERNEL_OK")
</pallas_src>

<mosaic_0001>
module attributes {stable_mosaic.version = 11 : i64} {
  func.func @_tri_out_kernel(%arg0: i32, %arg1: i32, %arg2: i32, %arg3: memref<8x8x8xbf16, #tpu.memory_space<vmem>>, %arg4: memref<8x8x8xbf16, #tpu.memory_space<vmem>>, %arg5: memref<8x8x8xbf16, #tpu.memory_space<vmem>>) attributes {dimension_semantics = [#tpu.dimension_semantics<parallel>, #tpu.dimension_semantics<parallel>, #tpu.dimension_semantics<parallel>], iteration_bounds = array<i64: 4, 1, 1>, scalar_prefetch = 0 : i64, scratch_operands = 0 : i64, tpu.core_type = #tpu.core_type<tc>, window_params = [{transform_indices = @transform_0, window_bounds = array<i64: 8, 8, 8>}, {transform_indices = @transform_1, window_bounds = array<i64: 8, 8, 8>}, {transform_indices = @transform_2, window_bounds = array<i64: 8, 8, 8>}]} {
    %c0 = arith.constant 0 : index
    %c0_0 = arith.constant 0 : index
    %c0_1 = arith.constant 0 : index
    %0 = vector.load %arg3[%c0, %c0_0, %c0_1] : memref<8x8x8xbf16, #tpu.memory_space<vmem>>, vector<8x8x8xbf16>
    %c0_2 = arith.constant 0 : index
    %c0_3 = arith.constant 0 : index
    %c0_4 = arith.constant 0 : index
    %1 = vector.load %arg4[%c0_2, %c0_3, %c0_4] : memref<8x8x8xbf16, #tpu.memory_space<vmem>>, vector<8x8x8xbf16>
    "tpu.trace_start"() <{level = 10 : i32, message = "gik,gjk->gij"}> : () -> ()
    %cst = arith.constant dense<0.000000e+00> : vector<8x8x8xf32>
    %2 = tpu.matmul %0, %1, %cst {dimension_numbers = #tpu.dot_dimension_numbers<[2], [2], [1], [1], [0, 0, 0, 1, 1, 1], [0], [0]>} : vector<8x8x8xbf16>, vector<8x8x8xbf16>, vector<8x8x8xf32> -> vector<8x8x8xf32>
    "tpu.trace_stop"() : () -> ()
    %3 = arith.truncf %2 : vector<8x8x8xf32> to vector<8x8x8xbf16>
    %c0_5 = arith.constant 0 : index
    %c0_6 = arith.constant 0 : index
    %c0_7 = arith.constant 0 : index
    %4 = vector.load %arg5[%c0_5, %c0_6, %c0_7] : memref<8x8x8xbf16, #tpu.memory_space<vmem>>, vector<8x8x8xbf16>
    tpu.vector_store %arg5[%c0_5, %c0_6, %c0_7], %3 {strides = array<i32>} : memref<8x8x8xbf16, #tpu.memory_space<vmem>>, vector<8x8x8xbf16>,
    return
  }
  func.func @transform_0(%arg0: i32, %arg1: i32, %arg2: i32) -> (i32, i32, i32) {
    %c0_i32 = arith.constant 0 : i32
    %c0_i32_0 = arith.constant 0 : i32
    return %arg0, %arg1, %c0_i32 : i32, i32, i32
  }
  func.func @transform_1(%arg0: i32, %arg1: i32, %arg2: i32) -> (i32, i32, i32) {
    %c0_i32 = arith.constant 0 : i32
    %c0_i32_0 = arith.constant 0 : i32
    return %arg0, %arg2, %c0_i32 : i32, i32, i32
  }
  func.func @transform_2(%arg0: i32, %arg1: i32, %arg2: i32) -> (i32, i32, i32) {
    %c0_i32 = arith.constant 0 : i32
    return %arg0, %arg1, %arg2 : i32, i32, i32
  }
}

module attributes {stable_mosaic.version = 11 : i64} {
  func.func @_tm_proj_kernel(%arg0: i32, %arg1: i32, %arg2: memref<1x64x32xf32, #tpu.memory_space<vmem>>, %arg3: memref<1x32xf32, #tpu.memory_space<vmem>>, %arg4: memref<1x32xf32, #tpu.memory_space<vmem>>, %arg5: memref<1x1x64xf32, #tpu.memory_space<vmem>>, %arg6: memref<64x32xbf16, #tpu.memory_space<vmem>>, %arg7: memref<64x1xf32, #tpu.memory_space<vmem>>, %arg8: memref<32x32xbf16, #tpu.memory_space<vmem>>, %arg9: memref<1x32xf32, #tpu.memory_space<vmem>>, %arg10: memref<1x16x64xbf16, #tpu.memory_space<vmem>>, %arg11: memref<1x16x64xbf16, #tpu.memory_space<vmem>>, %arg12: memref<1x64x32xbf16, #tpu.memory_space<vmem>>) attributes {dimension_semantics = [#tpu.dimension_semantics<parallel>, #tpu.dimension_semantics<parallel>], iteration_bounds = array<i64: 2, 1>, scalar_prefetch = 0 : i64, scratch_operands = 0 : i64, tpu.core_type = #tpu.core_type<tc>, window_params = [{transform_indices = @transform_0, window_bounds = array<i64: 1, 64, 32>}, {pipeline_mode = #tpu.pipeline_mode<synchronous>, transform_indices = @transform_1, window_bounds = array<i64: 1, 32>}, {pipeline_mode = #tpu.pipeline_mode<synchronous>, transform_indices = @transform_2, window_bounds = array<i64: 1, 32>}, {transform_indices = @transform_3, window_bounds = array<i64: 1, 1, 64>}, {pipeline_mode = #tpu.pipeline_mode<synchronous>, transform_indices = @transform_4, window_bounds = array<i64: 64, 32>}, {pipeline_mode = #tpu.pipeline_mode<synchronous>, transform_indices = @transform_5, window_bounds = array<i64: 64, 1>}, {pipeline_mode = #tpu.pipeline_mode<synchronous>, transform_indices = @transform_6, window_bounds = array<i64: 32, 32>}, {pipeline_mode = #tpu.pipeline_mode<synchronous>, transform_indices = @transform_7, window_bounds = array<i64: 1, 32>}, {transform_indices = @transform_8, window_bounds = array<i64: 1, 16, 64>}, {transform_indices = @transform_9, window_bounds = array<i64: 1, 16, 64>}, {transform_indices = @transform_10, window_bounds = array<i64: 1, 64, 32>}]} {
    %c0 = arith.constant 0 : index
    %c0_0 = arith.constant 0 : index
    %c0_1 = arith.constant 0 : index
    %0 = vector.load %arg2[%c0, %c0_0, %c0_1] : memref<1x64x32xf32, #tpu.memory_space<vmem>>, vector<1x64x32xf32>
    %1 = vector.shape_cast %0 : vector<1x64x32xf32> to vector<64x32xf32>
    %c0_2 = arith.constant 0 : index
    %c0_3 = arith.constant 0 : index
    %2 = vector.load %arg3[%c0_2, %c0_3] : memref<1x32xf32, #tpu.memory_space<vmem>>, vector<1x32xf32>
    %c0_4 = arith.constant 0 : index
    %c0_5 = arith.constant 0 : index
    %3 = vector.load %arg4[%c0_4, %c0_5] : memref<1x32xf32, #tpu.memory_space<vmem>>, vector<1x32xf32>
    %cst = arith.constant dense<0.000000e+00> : vector<64xf32>
    %4 = vector.multi_reduction <add>, %1, %cst [1] : vector<64x32xf32> to vector<64xf32>
    %5 = vector.shape_cast %4 : vector<64xf32> to vector<64x1xf32>
    %cst_6 = arith.constant 3.200000e+01 : f32
    %6 = vector.broadcast %cst_6 : f32 to vector<64x1xf32>
    %7 = arith.divf %5, %6 : vector<64x1xf32>
    %8 = vector.broadcast %7 : vector<64x1xf32> to vector<64x32xf32>
    %9 = arith.subf %1, %8 : vector<64x32xf32>
    %10 = arith.mulf %9, %9 : vector<64x32xf32>
    %cst_7 = arith.constant dense<0.000000e+00> : vector<64xf32>
    %11 = vector.multi_reduction <add>, %10, %cst_7 [1] : vector<64x32xf32> to vector<64xf32>
    %12 = vector.shape_cast %11 : vector<64xf32> to vector<64x1xf32>
    %cst_8 = arith.constant 3.200000e+01 : f32
    %13 = vector.broadcast %cst_8 : f32 to vector<64x1xf32>
    %14 = arith.divf %12, %13 : vector<64x1xf32>
    %15 = vector.broadcast %7 : vector<64x1xf32> to vector<64x32xf32>
    %16 = arith.subf %1, %15 : vector<64x32xf32>
    %cst_9 = arith.constant 9.99999974E-6 : f32
    %17 = vector.broadcast %cst_9 : f32 to vector<64x1xf32>
    %18 = arith.addf %14, %17 : vector<64x1xf32>
    %19 = math.rsqrt %18 : vector<64x1xf32>
    %20 = vector.broadcast %19 : vector<64x1xf32> to vector<64x32xf32>
    %21 = arith.mulf %16, %20 : vector<64x32xf32>
    %22 = vector.broadcast %2 : vector<1x32xf32> to vector<64x32xf32>
    %23 = arith.mulf %21, %22 : vector<64x32xf32>
    %24 = vector.broadcast %3 : vector<1x32xf32> to vector<64x32xf32>
    %25 = arith.addf %23, %24 : vector<64x32xf32>
    %26 = arith.truncf %25 : vector<64x32xf32> to vector<64x32xbf16>
    %c0_10 = arith.constant 0 : index
    %c0_11 = arith.constant 0 : index
    %27 = vector.load %arg6[%c0_10, %c0_11] : memref<64x32xbf16, #tpu.memory_space<vmem>>, vector<64x32xbf16>
    "tpu.trace_start"() <{level = 10 : i32, message = "cd,td->ct"}> : () -> ()
    %cst_12 = arith.constant dense<0.000000e+00> : vector<64x64xf32>
    %28 = tpu.matmul %27, %26, %cst_12 {dimension_numbers = #tpu.dot_dimension_numbers<[1], [1], [0], [0], [0, 0, 1, 0], [], []>} : vector<64x32xbf16>, vector<64x32xbf16>, vector<64x64xf32> -> vector<64x64xf32>
    "tpu.trace_stop"() : () -> ()
    %c0_13 = arith.constant 0 : index
    %c0_14 = arith.constant 0 : index
    %29 = vector.load %arg7[%c0_13, %c0_14] : memref<64x1xf32, #tpu.memory_space<vmem>>, vector<64x1xf32>
    %30 = vector.broadcast %29 : vector<64x1xf32> to vector<64x64xf32>
    %31 = arith.addf %28, %30 : vector<64x64xf32>
    %c0_15 = arith.constant 0 : index
    %c0_16 = arith.constant 0 : index
    %c0_17 = arith.constant 0 : index
    %32 = vector.load %arg5[%c0_15, %c0_16, %c0_17] : memref<1x1x64xf32, #tpu.memory_space<vmem>>, vector<1x1x64xf32>
    %33 = vector.shape_cast %32 : vector<1x1x64xf32> to vector<1x64xf32>
    %34 = vector.extract_strided_slice %31 {offsets = [0, 0], sizes = [16, 64], strides = [1, 1]} : vector<64x64xf32> to vector<16x64xf32>
    %35 = vector.extract_strided_slice %31 {offsets = [16, 0], sizes = [16, 64], strides = [1, 1]} : vector<64x64xf32> to vector<16x64xf32>
    %36 = vector.extract_strided_slice %31 {offsets = [32, 0], sizes = [16, 64], strides = [1, 1]} : vector<64x64xf32> to vector<16x64xf32>
    %37 = vector.extract_strided_slice %31 {offsets = [48, 0], sizes = [16, 64], strides = [1, 1]} : vector<64x64xf32> to vector<16x64xf32>
    %38 = arith.negf %34 : vector<16x64xf32>
    %39 = math.exp %38 : vector<16x64xf32>
    %cst_18 = arith.constant 1.000000e+00 : f32
    %40 = vector.broadcast %cst_18 : f32 to vector<16x64xf32>
    %41 = arith.addf %40, %39 : vector<16x64xf32>
    %42 = arith.divf %40, %41 : vector<16x64xf32>
    %43 = vector.broadcast %33 : vector<1x64xf32> to vector<16x64xf32>
    %44 = arith.mulf %43, %42 : vector<16x64xf32>
    %45 = arith.mulf %44, %35 : vector<16x64xf32>
    %46 = arith.truncf %45 : vector<16x64xf32> to vector<16x64xbf16>
    %c0_19 = arith.constant 0 : index
    %c0_20 = arith.constant 0 : index
    %c0_21 = arith.constant 0 : index
    %47 = vector.load %arg10[%c0_19, %c0_20, %c0_21] : memref<1x16x64xbf16, #tpu.memory_space<vmem>>, vector<1x16x64xbf16>
    %48 = vector.shape_cast %47 : vector<1x16x64xbf16> to vector<16x64xbf16>
    %49 = vector.shape_cast %46 : vector<16x64xbf16> to vector<1x16x64xbf16>
    tpu.vector_store %arg10[%c0_19, %c0_20, %c0_21], %49 {strides = array<i32>} : memref<1x16x64xbf16, #tpu.memory_space<vmem>>, vector<1x16x64xbf16>,
    %50 = arith.negf %36 : vector<16x64xf32>
    %51 = math.exp %50 : vector<16x64xf32>
    %cst_22 = arith.constant 1.000000e+00 : f32
    %52 = vector.broadcast %cst_22 : f32 to vector<16x64xf32>
    %53 = arith.addf %52, %51 : vector<16x64xf32>
    %54 = arith.divf %52, %53 : vector<16x64xf32>
    %55 = vector.broadcast %33 : vector<1x64xf32> to vector<16x64xf32>
    %56 = arith.mulf %55, %54 : vector<16x64xf32>
    %57 = arith.mulf %56, %37 : vector<16x64xf32>
    %58 = arith.truncf %57 : vector<16x64xf32> to vector<16x64xbf16>
    %c0_23 = arith.constant 0 : index
    %c0_24 = arith.constant 0 : index
    %c0_25 = arith.constant 0 : index
    %59 = vector.load %arg11[%c0_23, %c0_24, %c0_25] : memref<1x16x64xbf16, #tpu.memory_space<vmem>>, vector<1x16x64xbf16>
    %60 = vector.shape_cast %59 : vector<1x16x64xbf16> to vector<16x64xbf16>
    %61 = vector.shape_cast %58 : vector<16x64xbf16> to vector<1x16x64xbf16>
    tpu.vector_store %arg11[%c0_23, %c0_24, %c0_25], %61 {strides = array<i32>} : memref<1x16x64xbf16, #tpu.memory_space<vmem>>, vector<1x16x64xbf16>,
    %c0_26 = arith.constant 0 : index
    %c0_27 = arith.constant 0 : index
    %62 = vector.load %arg8[%c0_26, %c0_27] : memref<32x32xbf16, #tpu.memory_space<vmem>>, vector<32x32xbf16>
    %cst_28 = arith.constant dense<0.000000e+00> : vector<64x32xf32>
    %63 = tpu.matmul %26, %62, %cst_28 {dimension_numbers = #tpu.dot_dimension_numbers<[1], [0], [0], [1], [0, 0, 1, 1], [], []>} : vector<64x32xbf16>, vector<32x32xbf16>, vector<64x32xf32> -> vector<64x32xf32>
    %c0_29 = arith.constant 0 : index
    %c0_30 = arith.constant 0 : index
    %64 = vector.load %arg9[%c0_29, %c0_30] : memref<1x32xf32, #tpu.memory_space<vmem>>, vector<1x32xf32>
    %65 = vector.broadcast %64 : vector<1x32xf32> to vector<64x32xf32>
    %66 = arith.addf %63, %65 : vector<64x32xf32>
    %67 = arith.negf %66 : vector<64x32xf32>
    %68 = math.exp %67 : vector<64x32xf32>
    %cst_31 = arith.constant 1.000000e+00 : f32
    %69 = vector.broadcast %cst_31 : f32 to vector<64x32xf32>
    %70 = arith.addf %69, %68 : vector<64x32xf32>
    %71 = arith.divf %69, %70 : vector<64x32xf32>
    %72 = arith.truncf %71 : vector<64x32xf32> to vector<64x32xbf16>
    %c0_32 = arith.constant 0 : index
    %c0_33 = arith.constant 0 : index
    %c0_34 = arith.constant 0 : index
    %73 = vector.load %arg12[%c0_32, %c0_33, %c0_34] : memref<1x64x32xbf16, #tpu.memory_space<vmem>>, vector<1x64x32xbf16>
    %74 = vector.shape_cast %73 : vector<1x64x32xbf16> to vector<64x32xbf16>
    %75 = vector.shape_cast %72 : vector<64x32xbf16> to vector<1x64x32xbf16>
    tpu.vector_store %arg12[%c0_32, %c0_33, %c0_34], %75 {strides = array<i32>} : memref<1x64x32xbf16, #tpu.memory_space<vmem>>, vector<1x64x32xbf16>,
    return
  }
  func.func @transform_0(%arg0: i32, %arg1: i32) -> (i32, i32, i32) {
    %c0_i32 = arith.constant 0 : i32
    %c0_i32_0 = arith.constant 0 : i32
    return %arg0, %arg1, %c0_i32 : i32, i32, i32
  }
  func.func @transform_1(%arg0: i32, %arg1: i32) -> (i32, i32) {
    %c0_i32 = arith.constant 0 : i32
    %c0_i32_0 = arith.constant 0 : i32
    %c0_i32_1 = arith.constant 0 : i32
    return %c0_i32, %c0_i32_0 : i32, i32
  }
  func.func @transform_2(%arg0: i32, %arg1: i32) -> (i32, i32) {
    %c0_i32 = arith.constant 0 : i32
    %c0_i32_0 = arith.constant 0 : i32
    %c0_i32_1 = arith.constant 0 : i32
    return %c0_i32, %c0_i32_0 : i32, i32
  }
  func.func @transform_3(%arg0: i32, %arg1: i32) -> (i32, i32, i32) {
    %c0_i32 = arith.constant 0 : i32
    %c0_i32_0 = arith.constant 0 : i32
    return %arg0, %c0_i32, %arg1 : i32, i32, i32
  }
  func.func @transform_4(%arg0: i32, %arg1: i32) -> (i32, i32) {
    %c0_i32 = arith.constant 0 : i32
    %c0_i32_0 = arith.constant 0 : i32
    %c0_i32_1 = arith.constant 0 : i32
    return %c0_i32, %c0_i32_0 : i32, i32
  }
  func.func @transform_5(%arg0: i32, %arg1: i32) -> (i32, i32) {
    %c0_i32 = arith.constant 0 : i32
    %c0_i32_0 = arith.constant 0 : i32
    %c0_i32_1 = arith.constant 0 : i32
    return %c0_i32, %c0_i32_0 : i32, i32
  }
  func.func @transform_6(%arg0: i32, %arg1: i32) -> (i32, i32) {
    %c0_i32 = arith.constant 0 : i32
    %c0_i32_0 = arith.constant 0 : i32
    %c0_i32_1 = arith.constant 0 : i32
    return %c0_i32, %c0_i32_0 : i32, i32
  }
  func.func @transform_7(%arg0: i32, %arg1: i32) -> (i32, i32) {
    %c0_i32 = arith.constant 0 : i32
    %c0_i32_0 = arith.constant 0 : i32
    %c0_i32_1 = arith.constant 0 : i32
    return %c0_i32, %c0_i32_0 : i32, i32
  }
  func.func @transform_8(%arg0: i32, %arg1: i32) -> (i32, i32, i32) {
    %c0_i32 = arith.constant 0 : i32
    %c0_i32_0 = arith.constant 0 : i32
    return %arg0, %c0_i32, %arg1 : i32, i32, i32
  }
  func.func @transform_9(%arg0: i32, %arg1: i32) -> (i32, i32, i32) {
    %c0_i32 = arith.constant 0 : i32
    %c0_i32_0 = arith.constant 0 : i32
    return %arg0, %c0_i32, %arg1 : i32, i32, i32
  }
  func.func @transform_10(%arg0: i32, %arg1: i32) -> (i32, i32, i32) {
    %c0_i32 = arith.constant 0 : i32
    %c0_i32_0 = arith.constant 0 : i32
    return %arg0, %arg1, %c0_i32 : i32, i32, i32
  }
}

module attributes {stable_mosaic.version = 11 : i64} {
  func.func @_tm_out_kernel(%arg0: i32, %arg1: i32, %arg2: memref<1x16x64xbf16, #tpu.memory_space<vmem>>, %arg3: memref<16x1xf32, #tpu.memory_space<vmem>>, %arg4: memref<16x1xf32, #tpu.memory_space<vmem>>, %arg5: memref<1x64x32xbf16, #tpu.memory_space<vmem>>, %arg6: memref<1x64x32xf32, #tpu.memory_space<vmem>>, %arg7: memref<16x32xbf16, #tpu.memory_space<vmem>>, %arg8: memref<1x32xf32, #tpu.memory_space<vmem>>, %arg9: memref<1x64x32xf32, #tpu.memory_space<vmem>>) attributes {dimension_semantics = [#tpu.dimension_semantics<parallel>, #tpu.dimension_semantics<parallel>], iteration_bounds = array<i64: 2, 1>, scalar_prefetch = 0 : i64, scratch_operands = 0 : i64, tpu.core_type = #tpu.core_type<tc>, window_params = [{transform_indices = @transform_0, window_bounds = array<i64: 1, 16, 64>}, {pipeline_mode = #tpu.pipeline_mode<synchronous>, transform_indices = @transform_1, window_bounds = array<i64: 16, 1>}, {pipeline_mode = #tpu.pipeline_mode<synchronous>, transform_indices = @transform_2, window_bounds = array<i64: 16, 1>}, {transform_indices = @transform_3, window_bounds = array<i64: 1, 64, 32>}, {transform_indices = @transform_4, window_bounds = array<i64: 1, 64, 32>}, {pipeline_mode = #tpu.pipeline_mode<synchronous>, transform_indices = @transform_5, window_bounds = array<i64: 16, 32>}, {pipeline_mode = #tpu.pipeline_mode<synchronous>, transform_indices = @transform_6, window_bounds = array<i64: 1, 32>}, {transform_indices = @transform_7, window_bounds = array<i64: 1, 64, 32>}]} {
    %c0 = arith.constant 0 : index
    %c0_0 = arith.constant 0 : index
    %c0_1 = arith.constant 0 : index
    %0 = vector.load %arg2[%c0, %c0_0, %c0_1] : memref<1x16x64xbf16, #tpu.memory_space<vmem>>, vector<1x16x64xbf16>
    %1 = vector.shape_cast %0 : vector<1x16x64xbf16> to vector<16x64xbf16>
    %2 = arith.extf %1 : vector<16x64xbf16> to vector<16x64xf32>
    %cst = arith.constant dense<0.000000e+00> : vector<64xf32>
    %3 = vector.multi_reduction <add>, %2, %cst [0] : vector<16x64xf32> to vector<64xf32>
    %4 = vector.shape_cast %3 : vector<64xf32> to vector<1x64xf32>
    %cst_2 = arith.constant 1.600000e+01 : f32
    %5 = vector.broadcast %cst_2 : f32 to vector<1x64xf32>
    %6 = arith.divf %4, %5 : vector<1x64xf32>
    %7 = vector.broadcast %6 : vector<1x64xf32> to vector<16x64xf32>
    %8 = arith.subf %2, %7 : vector<16x64xf32>
    %9 = arith.mulf %8, %8 : vector<16x64xf32>
    %cst_3 = arith.constant dense<0.000000e+00> : vector<64xf32>
    %10 = vector.multi_reduction <add>, %9, %cst_3 [0] : vector<16x64xf32> to vector<64xf32>
    %11 = vector.shape_cast %10 : vector<64xf32> to vector<1x64xf32>
    %cst_4 = arith.constant 1.600000e+01 : f32
    %12 = vector.broadcast %cst_4 : f32 to vector<1x64xf32>
    %13 = arith.divf %11, %12 : vector<1x64xf32>
    %14 = vector.broadcast %6 : vector<1x64xf32> to vector<16x64xf32>
    %15 = arith.subf %2, %14 : vector<16x64xf32>
    %cst_5 = arith.constant 9.99999974E-6 : f32
    %16 = vector.broadcast %cst_5 : f32 to vector<1x64xf32>
    %17 = arith.addf %13, %16 : vector<1x64xf32>
    %18 = math.rsqrt %17 : vector<1x64xf32>
    %19 = vector.broadcast %18 : vector<1x64xf32> to vector<16x64xf32>
    %20 = arith.mulf %15, %19 : vector<16x64xf32>
    %c0_6 = arith.constant 0 : index
    %c0_7 = arith.constant 0 : index
    %21 = vector.load %arg3[%c0_6, %c0_7] : memref<16x1xf32, #tpu.memory_space<vmem>>, vector<16x1xf32>
    %22 = vector.broadcast %21 : vector<16x1xf32> to vector<16x64xf32>
    %23 = arith.mulf %20, %22 : vector<16x64xf32>
    %c0_8 = arith.constant 0 : index
    %c0_9 = arith.constant 0 : index
    %24 = vector.load %arg4[%c0_8, %c0_9] : memref<16x1xf32, #tpu.memory_space<vmem>>, vector<16x1xf32>
    %25 = vector.broadcast %24 : vector<16x1xf32> to vector<16x64xf32>
    %26 = arith.addf %23, %25 : vector<16x64xf32>
    %27 = arith.truncf %26 : vector<16x64xf32> to vector<16x64xbf16>
    %c0_10 = arith.constant 0 : index
    %c0_11 = arith.constant 0 : index
    %28 = vector.load %arg7[%c0_10, %c0_11] : memref<16x32xbf16, #tpu.memory_space<vmem>>, vector<16x32xbf16>
    "tpu.trace_start"() <{level = 10 : i32, message = "ct,cd->td"}> : () -> ()
    %cst_12 = arith.constant dense<0.000000e+00> : vector<64x32xf32>
    %29 = tpu.matmul %27, %28, %cst_12 {dimension_numbers = #tpu.dot_dimension_numbers<[0], [0], [1], [1], [0, 1, 1, 1], [], []>} : vector<16x64xbf16>, vector<16x32xbf16>, vector<64x32xf32> -> vector<64x32xf32>
    "tpu.trace_stop"() : () -> ()
    %c0_13 = arith.constant 0 : index
    %c0_14 = arith.constant 0 : index
    %30 = vector.load %arg8[%c0_13, %c0_14] : memref<1x32xf32, #tpu.memory_space<vmem>>, vector<1x32xf32>
    %31 = vector.broadcast %30 : vector<1x32xf32> to vector<64x32xf32>
    %32 = arith.addf %29, %31 : vector<64x32xf32>
    %c0_15 = arith.constant 0 : index
    %c0_16 = arith.constant 0 : index
    %c0_17 = arith.constant 0 : index
    %33 = vector.load %arg6[%c0_15, %c0_16, %c0_17] : memref<1x64x32xf32, #tpu.memory_space<vmem>>, vector<1x64x32xf32>
    %34 = vector.shape_cast %33 : vector<1x64x32xf32> to vector<64x32xf32>
    %c0_18 = arith.constant 0 : index
    %c0_19 = arith.constant 0 : index
    %c0_20 = arith.constant 0 : index
    %35 = vector.load %arg5[%c0_18, %c0_19, %c0_20] : memref<1x64x32xbf16, #tpu.memory_space<vmem>>, vector<1x64x32xbf16>
    %36 = vector.shape_cast %35 : vector<1x64x32xbf16> to vector<64x32xbf16>
    %37 = arith.extf %36 : vector<64x32xbf16> to vector<64x32xf32>
    %38 = arith.mulf %37, %32 : vector<64x32xf32>
    %39 = arith.addf %34, %38 : vector<64x32xf32>
    %c0_21 = arith.constant 0 : index
    %c0_22 = arith.constant 0 : index
    %c0_23 = arith.constant 0 : index
    %40 = vector.load %arg9[%c0_21, %c0_22, %c0_23] : memref<1x64x32xf32, #tpu.memory_space<vmem>>, vector<1x64x32xf32>
    %41 = vector.shape_cast %40 : vector<1x64x32xf32> to vector<64x32xf32>
    %42 = vector.shape_cast %39 : vector<64x32xf32> to vector<1x64x32xf32>
    tpu.vector_store %arg9[%c0_21, %c0_22, %c0_23], %42 {strides = array<i32>} : memref<1x64x32xf32, #tpu.memory_space<vmem>>, vector<1x64x32xf32>,
    return
  }
  func.func @transform_0(%arg0: i32, %arg1: i32) -> (i32, i32, i32) {
    %c0_i32 = arith.constant 0 : i32
    %c0_i32_0 = arith.constant 0 : i32
    return %arg0, %c0_i32, %arg1 : i32, i32, i32
  }
  func.func @transform_1(%arg0: i32, %arg1: i32) -> (i32, i32) {
    %c0_i32 = arith.constant 0 : i32
    %c0_i32_0 = arith.constant 0 : i32
    %c0_i32_1 = arith.constant 0 : i32
    return %c0_i32, %c0_i32_0 : i32, i32
  }
  func.func @transform_2(%arg0: i32, %arg1: i32) -> (i32, i32) {
    %c0_i32 = arith.constant 0 : i32
    %c0_i32_0 = arith.constant 0 : i32
    %c0_i32_1 = arith.constant 0 : i32
    return %c0_i32, %c0_i32_0 : i32, i32
  }
  func.func @transform_3(%arg0: i32, %arg1: i32) -> (i32, i32, i32) {
    %c0_i32 = arith.constant 0 : i32
    %c0_i32_0 = arith.constant 0 : i32
    return %arg0, %arg1, %c0_i32 : i32, i32, i32
  }
  func.func @transform_4(%arg0: i32, %arg1: i32) -> (i32, i32, i32) {
    %c0_i32 = arith.constant 0 : i32
    %c0_i32_0 = arith.constant 0 : i32
    return %arg0, %arg1, %c0_i32 : i32, i32, i32
  }
  func.func @transform_5(%arg0: i32, %arg1: i32) -> (i32, i32) {
    %c0_i32 = arith.constant 0 : i32
    %c0_i32_0 = arith.constant 0 : i32
    %c0_i32_1 = arith.constant 0 : i32
    return %c0_i32, %c0_i32_0 : i32, i32
  }
  func.func @transform_6(%arg0: i32, %arg1: i32) -> (i32, i32) {
    %c0_i32 = arith.constant 0 : i32
    %c0_i32_0 = arith.constant 0 : i32
    %c0_i32_1 = arith.constant 0 : i32
    return %c0_i32, %c0_i32_0 : i32, i32
  }
  func.func @transform_7(%arg0: i32, %arg1: i32) -> (i32, i32, i32) {
    %c0_i32 = arith.constant 0 : i32
    %c0_i32_0 = arith.constant 0 : i32
    return %arg0, %arg1, %c0_i32 : i32, i32, i32
  }
}

module attributes {stable_mosaic.version = 11 : i64} {
  func.func @_tri_in_kernel(%arg0: i32, %arg1: i32, %arg2: i32, %arg3: memref<8x8x8xbf16, #tpu.memory_space<vmem>>, %arg4: memref<8x8x8xbf16, #tpu.memory_space<vmem>>, %arg5: memref<8x8x8xbf16, #tpu.memory_space<vmem>>) attributes {dimension_semantics = [#tpu.dimension_semantics<parallel>, #tpu.dimension_semantics<parallel>, #tpu.dimension_semantics<parallel>], iteration_bounds = array<i64: 4, 1, 1>, scalar_prefetch = 0 : i64, scratch_operands = 0 : i64, tpu.core_type = #tpu.core_type<tc>, window_params = [{transform_indices = @transform_0, window_bounds = array<i64: 8, 8, 8>}, {transform_indices = @transform_1, window_bounds = array<i64: 8, 8, 8>}, {transform_indices = @transform_2, window_bounds = array<i64: 8, 8, 8>}]} {
    %c0 = arith.constant 0 : index
    %c0_0 = arith.constant 0 : index
    %c0_1 = arith.constant 0 : index
    %0 = vector.load %arg3[%c0, %c0_0, %c0_1] : memref<8x8x8xbf16, #tpu.memory_space<vmem>>, vector<8x8x8xbf16>
    %c0_2 = arith.constant 0 : index
    %c0_3 = arith.constant 0 : index
    %c0_4 = arith.constant 0 : index
    %1 = vector.load %arg4[%c0_2, %c0_3, %c0_4] : memref<8x8x8xbf16, #tpu.memory_space<vmem>>, vector<8x8x8xbf16>
    "tpu.trace_start"() <{level = 10 : i32, message = "gki,gkj->gij"}> : () -> ()
    %cst = arith.constant dense<0.000000e+00> : vector<8x8x8xf32>
    %2 = tpu.matmul %0, %1, %cst {dimension_numbers = #tpu.dot_dimension_numbers<[1], [1], [2], [2], [0, 0, 0, 2, 1, 2], [0], [0]>} : vector<8x8x8xbf16>, vector<8x8x8xbf16>, vector<8x8x8xf32> -> vector<8x8x8xf32>
    "tpu.trace_stop"() : () -> ()
    %3 = arith.truncf %2 : vector<8x8x8xf32> to vector<8x8x8xbf16>
    %c0_5 = arith.constant 0 : index
    %c0_6 = arith.constant 0 : index
    %c0_7 = arith.constant 0 : index
    %4 = vector.load %arg5[%c0_5, %c0_6, %c0_7] : memref<8x8x8xbf16, #tpu.memory_space<vmem>>, vector<8x8x8xbf16>
    tpu.vector_store %arg5[%c0_5, %c0_6, %c0_7], %3 {strides = array<i32>} : memref<8x8x8xbf16, #tpu.memory_space<vmem>>, vector<8x8x8xbf16>,
    return
  }
  func.func @transform_0(%arg0: i32, %arg1: i32, %arg2: i32) -> (i32, i32, i32) {
    %c0_i32 = arith.constant 0 : i32
    %c0_i32_0 = arith.constant 0 : i32
    return %arg0, %c0_i32, %arg1 : i32, i32, i32
  }
  func.func @transform_1(%arg0: i32, %arg1: i32, %arg2: i32) -> (i32, i32, i32) {
    %c0_i32 = arith.constant 0 : i32
    %c0_i32_0 = arith.constant 0 : i32
    return %arg0, %c0_i32, %arg2 : i32, i32, i32
  }
  func.func @transform_2(%arg0: i32, %arg1: i32, %arg2: i32) -> (i32, i32, i32) {
    %c0_i32 = arith.constant 0 : i32
    return %arg0, %arg1, %arg2 : i32, i32, i32
  }
}

module attributes {stable_mosaic.version = 11 : i64} {
  func.func @_ta_proj_kernel(%arg0: i32, %arg1: i32, %arg2: memref<1x64x32xf32, #tpu.memory_space<vmem>>, %arg3: memref<1x32xf32, #tpu.memory_space<vmem>>, %arg4: memref<1x32xf32, #tpu.memory_space<vmem>>, %arg5: memref<32x32xbf16, #tpu.memory_space<vmem>>, %arg6: memref<1x32xf32, #tpu.memory_space<vmem>>, %arg7: memref<32x32xbf16, #tpu.memory_space<vmem>>, %arg8: memref<2x32xbf16, #tpu.memory_space<vmem>>, %arg9: memref<1x64x32xbf16, #tpu.memory_space<vmem>>, %arg10: memref<1x64x32xbf16, #tpu.memory_space<vmem>>, %arg11: memref<1x2x64xbf16, #tpu.memory_space<vmem>>) attributes {dimension_semantics = [#tpu.dimension_semantics<parallel>, #tpu.dimension_semantics<parallel>], iteration_bounds = array<i64: 2, 1>, scalar_prefetch = 0 : i64, scratch_operands = 0 : i64, tpu.core_type = #tpu.core_type<tc>, window_params = [{transform_indices = @transform_0, window_bounds = array<i64: 1, 64, 32>}, {pipeline_mode = #tpu.pipeline_mode<synchronous>, transform_indices = @transform_1, window_bounds = array<i64: 1, 32>}, {pipeline_mode = #tpu.pipeline_mode<synchronous>, transform_indices = @transform_2, window_bounds = array<i64: 1, 32>}, {pipeline_mode = #tpu.pipeline_mode<synchronous>, transform_indices = @transform_3, window_bounds = array<i64: 32, 32>}, {pipeline_mode = #tpu.pipeline_mode<synchronous>, transform_indices = @transform_4, window_bounds = array<i64: 1, 32>}, {pipeline_mode = #tpu.pipeline_mode<synchronous>, transform_indices = @transform_5, window_bounds = array<i64: 32, 32>}, {pipeline_mode = #tpu.pipeline_mode<synchronous>, transform_indices = @transform_6, window_bounds = array<i64: 2, 32>}, {transform_indices = @transform_7, window_bounds = array<i64: 1, 64, 32>}, {transform_indices = @transform_8, window_bounds = array<i64: 1, 64, 32>}, {transform_indices = @transform_9, window_bounds = array<i64: 1, 2, 64>}]} {
    %c0 = arith.constant 0 : index
    %c0_0 = arith.constant 0 : index
    %c0_1 = arith.constant 0 : index
    %0 = vector.load %arg2[%c0, %c0_0, %c0_1] : memref<1x64x32xf32, #tpu.memory_space<vmem>>, vector<1x64x32xf32>
    %1 = vector.shape_cast %0 : vector<1x64x32xf32> to vector<64x32xf32>
    %c0_2 = arith.constant 0 : index
    %c0_3 = arith.constant 0 : index
    %2 = vector.load %arg3[%c0_2, %c0_3] : memref<1x32xf32, #tpu.memory_space<vmem>>, vector<1x32xf32>
    %c0_4 = arith.constant 0 : index
    %c0_5 = arith.constant 0 : index
    %3 = vector.load %arg4[%c0_4, %c0_5] : memref<1x32xf32, #tpu.memory_space<vmem>>, vector<1x32xf32>
    %cst = arith.constant dense<0.000000e+00> : vector<64xf32>
    %4 = vector.multi_reduction <add>, %1, %cst [1] : vector<64x32xf32> to vector<64xf32>
    %5 = vector.shape_cast %4 : vector<64xf32> to vector<64x1xf32>
    %cst_6 = arith.constant 3.200000e+01 : f32
    %6 = vector.broadcast %cst_6 : f32 to vector<64x1xf32>
    %7 = arith.divf %5, %6 : vector<64x1xf32>
    %8 = vector.broadcast %7 : vector<64x1xf32> to vector<64x32xf32>
    %9 = arith.subf %1, %8 : vector<64x32xf32>
    %10 = arith.mulf %9, %9 : vector<64x32xf32>
    %cst_7 = arith.constant dense<0.000000e+00> : vector<64xf32>
    %11 = vector.multi_reduction <add>, %10, %cst_7 [1] : vector<64x32xf32> to vector<64xf32>
    %12 = vector.shape_cast %11 : vector<64xf32> to vector<64x1xf32>
    %cst_8 = arith.constant 3.200000e+01 : f32
    %13 = vector.broadcast %cst_8 : f32 to vector<64x1xf32>
    %14 = arith.divf %12, %13 : vector<64x1xf32>
    %15 = vector.broadcast %7 : vector<64x1xf32> to vector<64x32xf32>
    %16 = arith.subf %1, %15 : vector<64x32xf32>
    %cst_9 = arith.constant 9.99999974E-6 : f32
    %17 = vector.broadcast %cst_9 : f32 to vector<64x1xf32>
    %18 = arith.addf %14, %17 : vector<64x1xf32>
    %19 = math.rsqrt %18 : vector<64x1xf32>
    %20 = vector.broadcast %19 : vector<64x1xf32> to vector<64x32xf32>
    %21 = arith.mulf %16, %20 : vector<64x32xf32>
    %22 = vector.broadcast %2 : vector<1x32xf32> to vector<64x32xf32>
    %23 = arith.mulf %21, %22 : vector<64x32xf32>
    %24 = vector.broadcast %3 : vector<1x32xf32> to vector<64x32xf32>
    %25 = arith.addf %23, %24 : vector<64x32xf32>
    %26 = arith.truncf %25 : vector<64x32xf32> to vector<64x32xbf16>
    %c0_10 = arith.constant 0 : index
    %c0_11 = arith.constant 0 : index
    %27 = vector.load %arg5[%c0_10, %c0_11] : memref<32x32xbf16, #tpu.memory_space<vmem>>, vector<32x32xbf16>
    %cst_12 = arith.constant dense<0.000000e+00> : vector<64x32xf32>
    %28 = tpu.matmul %26, %27, %cst_12 {dimension_numbers = #tpu.dot_dimension_numbers<[1], [0], [0], [1], [0, 0, 1, 1], [], []>} : vector<64x32xbf16>, vector<32x32xbf16>, vector<64x32xf32> -> vector<64x32xf32>
    %c0_13 = arith.constant 0 : index
    %c0_14 = arith.constant 0 : index
    %29 = vector.load %arg6[%c0_13, %c0_14] : memref<1x32xf32, #tpu.memory_space<vmem>>, vector<1x32xf32>
    %30 = vector.broadcast %29 : vector<1x32xf32> to vector<64x32xf32>
    %31 = arith.addf %28, %30 : vector<64x32xf32>
    %32 = arith.truncf %31 : vector<64x32xf32> to vector<64x32xbf16>
    %c0_15 = arith.constant 0 : index
    %c0_16 = arith.constant 0 : index
    %c0_17 = arith.constant 0 : index
    %33 = vector.load %arg9[%c0_15, %c0_16, %c0_17] : memref<1x64x32xbf16, #tpu.memory_space<vmem>>, vector<1x64x32xbf16>
    %34 = vector.shape_cast %33 : vector<1x64x32xbf16> to vector<64x32xbf16>
    %35 = vector.shape_cast %32 : vector<64x32xbf16> to vector<1x64x32xbf16>
    tpu.vector_store %arg9[%c0_15, %c0_16, %c0_17], %35 {strides = array<i32>} : memref<1x64x32xbf16, #tpu.memory_space<vmem>>, vector<1x64x32xbf16>,
    %c0_18 = arith.constant 0 : index
    %c0_19 = arith.constant 0 : index
    %36 = vector.load %arg7[%c0_18, %c0_19] : memref<32x32xbf16, #tpu.memory_space<vmem>>, vector<32x32xbf16>
    %cst_20 = arith.constant dense<0.000000e+00> : vector<64x32xf32>
    %37 = tpu.matmul %26, %36, %cst_20 {dimension_numbers = #tpu.dot_dimension_numbers<[1], [0], [0], [1], [0, 0, 1, 1], [], []>} : vector<64x32xbf16>, vector<32x32xbf16>, vector<64x32xf32> -> vector<64x32xf32>
    %38 = arith.truncf %37 : vector<64x32xf32> to vector<64x32xbf16>
    %c0_21 = arith.constant 0 : index
    %c0_22 = arith.constant 0 : index
    %c0_23 = arith.constant 0 : index
    %39 = vector.load %arg10[%c0_21, %c0_22, %c0_23] : memref<1x64x32xbf16, #tpu.memory_space<vmem>>, vector<1x64x32xbf16>
    %40 = vector.shape_cast %39 : vector<1x64x32xbf16> to vector<64x32xbf16>
    %41 = vector.shape_cast %38 : vector<64x32xbf16> to vector<1x64x32xbf16>
    tpu.vector_store %arg10[%c0_21, %c0_22, %c0_23], %41 {strides = array<i32>} : memref<1x64x32xbf16, #tpu.memory_space<vmem>>, vector<1x64x32xbf16>,
    %c0_24 = arith.constant 0 : index
    %c0_25 = arith.constant 0 : index
    %42 = vector.load %arg8[%c0_24, %c0_25] : memref<2x32xbf16, #tpu.memory_space<vmem>>, vector<2x32xbf16>
    "tpu.trace_start"() <{level = 10 : i32, message = "hd,td->ht"}> : () -> ()
    %cst_26 = arith.constant dense<0.000000e+00> : vector<2x64xf32>
    %43 = tpu.matmul %42, %26, %cst_26 {dimension_numbers = #tpu.dot_dimension_numbers<[1], [1], [0], [0], [0, 0, 1, 0], [], []>} : vector<2x32xbf16>, vector<64x32xbf16>, vector<2x64xf32> -> vector<2x64xf32>
    "tpu.trace_stop"() : () -> ()
    %44 = arith.truncf %43 : vector<2x64xf32> to vector<2x64xbf16>
    %c0_27 = arith.constant 0 : index
    %c0_28 = arith.constant 0 : index
    %c0_29 = arith.constant 0 : index
    %45 = vector.load %arg11[%c0_27, %c0_28, %c0_29] : memref<1x2x64xbf16, #tpu.memory_space<vmem>>, vector<1x2x64xbf16>
    %46 = vector.shape_cast %45 : vector<1x2x64xbf16> to vector<2x64xbf16>
    %47 = vector.shape_cast %44 : vector<2x64xbf16> to vector<1x2x64xbf16>
    tpu.vector_store %arg11[%c0_27, %c0_28, %c0_29], %47 {strides = array<i32>} : memref<1x2x64xbf16, #tpu.memory_space<vmem>>, vector<1x2x64xbf16>,
    return
  }
  func.func @transform_0(%arg0: i32, %arg1: i32) -> (i32, i32, i32) {
    %c0_i32 = arith.constant 0 : i32
    %c0_i32_0 = arith.constant 0 : i32
    return %arg0, %arg1, %c0_i32 : i32, i32, i32
  }
  func.func @transform_1(%arg0: i32, %arg1: i32) -> (i32, i32) {
    %c0_i32 = arith.constant 0 : i32
    %c0_i32_0 = arith.constant 0 : i32
    %c0_i32_1 = arith.constant 0 : i32
    return %c0_i32, %c0_i32_0 : i32, i32
  }
  func.func @transform_2(%arg0: i32, %arg1: i32) -> (i32, i32) {
    %c0_i32 = arith.constant 0 : i32
    %c0_i32_0 = arith.constant 0 : i32
    %c0_i32_1 = arith.constant 0 : i32
    return %c0_i32, %c0_i32_0 : i32, i32
  }
  func.func @transform_3(%arg0: i32, %arg1: i32) -> (i32, i32) {
    %c0_i32 = arith.constant 0 : i32
    %c0_i32_0 = arith.constant 0 : i32
    %c0_i32_1 = arith.constant 0 : i32
    return %c0_i32, %c0_i32_0 : i32, i32
  }
  func.func @transform_4(%arg0: i32, %arg1: i32) -> (i32, i32) {
    %c0_i32 = arith.constant 0 : i32
    %c0_i32_0 = arith.constant 0 : i32
    %c0_i32_1 = arith.constant 0 : i32
    return %c0_i32, %c0_i32_0 : i32, i32
  }
  func.func @transform_5(%arg0: i32, %arg1: i32) -> (i32, i32) {
    %c0_i32 = arith.constant 0 : i32
    %c0_i32_0 = arith.constant 0 : i32
    %c0_i32_1 = arith.constant 0 : i32
    return %c0_i32, %c0_i32_0 : i32, i32
  }
  func.func @transform_6(%arg0: i32, %arg1: i32) -> (i32, i32) {
    %c0_i32 = arith.constant 0 : i32
    %c0_i32_0 = arith.constant 0 : i32
    %c0_i32_1 = arith.constant 0 : i32
    return %c0_i32, %c0_i32_0 : i32, i32
  }
  func.func @transform_7(%arg0: i32, %arg1: i32) -> (i32, i32, i32) {
    %c0_i32 = arith.constant 0 : i32
    %c0_i32_0 = arith.constant 0 : i32
    return %arg0, %arg1, %c0_i32 : i32, i32, i32
  }
  func.func @transform_8(%arg0: i32, %arg1: i32) -> (i32, i32, i32) {
    %c0_i32 = arith.constant 0 : i32
    %c0_i32_0 = arith.constant 0 : i32
    return %arg0, %arg1, %c0_i32 : i32, i32, i32
  }
  func.func @transform_9(%arg0: i32, %arg1: i32) -> (i32, i32, i32) {
    %c0_i32 = arith.constant 0 : i32
    %c0_i32_0 = arith.constant 0 : i32
    return %arg0, %c0_i32, %arg1 : i32, i32, i32
  }
}

module attributes {stable_mosaic.version = 11 : i64} {
  func.func @_tri_attn_kernel(%arg0: i32, %arg1: i32, %arg2: i32, %arg3: memref<1x8x8x32xbf16, #tpu.memory_space<vmem>>, %arg4: memref<1x8x8x32xbf16, #tpu.memory_space<vmem>>, %arg5: memref<1x2x8x8xbf16, #tpu.memory_space<vmem>>, %arg6: memref<1x8x8xf32, #tpu.memory_space<vmem>>, %arg7: memref<1x8x8x16xbf16, #tpu.memory_space<vmem>>) attributes {dimension_semantics = [#tpu.dimension_semantics<parallel>, #tpu.dimension_semantics<parallel>, #tpu.dimension_semantics<parallel>], iteration_bounds = array<i64: 2, 1, 1>, scalar_prefetch = 0 : i64, scratch_operands = 0 : i64, tpu.core_type = #tpu.core_type<tc>, window_params = [{transform_indices = @transform_0, window_bounds = array<i64: 1, 8, 8, 32>}, {transform_indices = @transform_1, window_bounds = array<i64: 1, 8, 8, 32>}, {transform_indices = @transform_2, window_bounds = array<i64: 1, 2, 8, 8>}, {transform_indices = @transform_3, window_bounds = array<i64: 1, 8, 8>}, {transform_indices = @transform_4, window_bounds = array<i64: 1, 8, 8, 16>}]} {
    %c0 = arith.constant 0 : index
    %c0_0 = arith.constant 0 : index
    %c0_1 = arith.constant 0 : index
    %c0_2 = arith.constant 0 : index
    %0 = vector.load %arg3[%c0, %c0_0, %c0_1, %c0_2] : memref<1x8x8x32xbf16, #tpu.memory_space<vmem>>, vector<1x8x8x32xbf16>
    %1 = vector.shape_cast %0 : vector<1x8x8x32xbf16> to vector<8x8x32xbf16>
    %c0_3 = arith.constant 0 : index
    %c0_4 = arith.constant 0 : index
    %c0_5 = arith.constant 0 : index
    %c0_6 = arith.constant 0 : index
    %2 = vector.load %arg4[%c0_3, %c0_4, %c0_5, %c0_6] : memref<1x8x8x32xbf16, #tpu.memory_space<vmem>>, vector<1x8x8x32xbf16>
    %3 = vector.shape_cast %2 : vector<1x8x8x32xbf16> to vector<8x8x32xbf16>
    %c0_7 = arith.constant 0 : index
    %c0_8 = arith.constant 0 : index
    %c0_9 = arith.constant 0 : index
    %c0_10 = arith.constant 0 : index
    %4 = vector.load %arg5[%c0_7, %c0_8, %c0_9, %c0_10] : memref<1x2x8x8xbf16, #tpu.memory_space<vmem>>, vector<1x2x8x8xbf16>
    %5 = vector.shape_cast %4 : vector<1x2x8x8xbf16> to vector<2x8x8xbf16>
    %c0_11 = arith.constant 0 : index
    %c0_12 = arith.constant 0 : index
    %c0_13 = arith.constant 0 : index
    %6 = vector.load %arg6[%c0_11, %c0_12, %c0_13] : memref<1x8x8xf32, #tpu.memory_space<vmem>>, vector<1x8x8xf32>
    %7 = vector.shape_cast %6 : vector<1x8x8xf32> to vector<8x8xf32>
    %cst = arith.constant 1.000000e+00 : f32
    %8 = vector.broadcast %cst : f32 to vector<8x8xf32>
    %9 = arith.subf %7, %8 : vector<8x8xf32>
    %cst_14 = arith.constant 1.000000e+09 : f32
    %10 = vector.broadcast %cst_14 : f32 to vector<8x8xf32>
    %11 = arith.mulf %9, %10 : vector<8x8xf32>
    %12 = vector.extract_strided_slice %1 {offsets = [0, 0, 0], sizes = [8, 8, 8], strides = [1, 1, 1]} : vector<8x8x32xbf16> to vector<8x8x8xbf16>
    %13 = vector.extract_strided_slice %3 {offsets = [0, 0, 0], sizes = [8, 8, 8], strides = [1, 1, 1]} : vector<8x8x32xbf16> to vector<8x8x8xbf16>
    "tpu.trace_start"() <{level = 10 : i32, message = "tjd,tkd->tjk"}> : () -> ()
    %cst_15 = arith.constant dense<0.000000e+00> : vector<8x8x8xf32>
    %14 = tpu.matmul %12, %13, %cst_15 {dimension_numbers = #tpu.dot_dimension_numbers<[2], [2], [1], [1], [0, 0, 0, 1, 1, 1], [0], [0]>} : vector<8x8x8xbf16>, vector<8x8x8xbf16>, vector<8x8x8xf32> -> vector<8x8x8xf32>
    "tpu.trace_stop"() : () -> ()
    %cst_16 = arith.constant 0.353553385 : f32
    %15 = vector.broadcast %cst_16 : f32 to vector<8x8x8xf32>
    %16 = arith.mulf %14, %15 : vector<8x8x8xf32>
    %17 = vector.extract_strided_slice %5 {offsets = [0, 0, 0], sizes = [1, 8, 8], strides = [1, 1, 1]} : vector<2x8x8xbf16> to vector<1x8x8xbf16>
    %18 = vector.shape_cast %17 : vector<1x8x8xbf16> to vector<8x8xbf16>
    %19 = arith.extf %18 : vector<8x8xbf16> to vector<8x8xf32>
    %20 = vector.shape_cast %19 : vector<8x8xf32> to vector<1x8x8xf32>
    %21 = vector.broadcast %20 : vector<1x8x8xf32> to vector<8x8x8xf32>
    %22 = arith.addf %16, %21 : vector<8x8x8xf32>
    %23 = vector.shape_cast %11 : vector<8x8xf32> to vector<8x1x8xf32>
    %24 = vector.broadcast %23 : vector<8x1x8xf32> to vector<8x8x8xf32>
    %25 = arith.addf %22, %24 : vector<8x8x8xf32>
    %cst_17 = arith.constant dense<0xFF800000> : vector<8x8xf32>
    %26 = vector.multi_reduction <maximumf>, %25, %cst_17 [2] : vector<8x8x8xf32> to vector<8x8xf32>
    %27 = vector.shape_cast %26 : vector<8x8xf32> to vector<8x8x1xf32>
    %28 = vector.broadcast %27 : vector<8x8x1xf32> to vector<8x8x8xf32>
    %29 = arith.subf %25, %28 : vector<8x8x8xf32>
    %30 = math.exp %29 : vector<8x8x8xf32>
    %cst_18 = arith.constant dense<0.000000e+00> : vector<8x8xf32>
    %31 = vector.multi_reduction <add>, %30, %cst_18 [2] : vector<8x8x8xf32> to vector<8x8xf32>
    %32 = vector.shape_cast %31 : vector<8x8xf32> to vector<8x8x1xf32>
    %33 = tpu.reciprocal %32 {approx = true} : vector<8x8x1xf32> -> vector<8x8x1xf32>
    %34 = vector.broadcast %33 : vector<8x8x1xf32> to vector<8x8x8xf32>
    %35 = arith.mulf %30, %34 : vector<8x8x8xf32>
    %36 = arith.truncf %35 : vector<8x8x8xf32> to vector<8x8x8xbf16>
    %37 = vector.extract_strided_slice %3 {offsets = [0, 0, 16], sizes = [8, 8, 8], strides = [1, 1, 1]} : vector<8x8x32xbf16> to vector<8x8x8xbf16>
    "tpu.trace_start"() <{level = 10 : i32, message = "tjk,tkd->tjd"}> : () -> ()
    %cst_19 = arith.constant dense<0.000000e+00> : vector<8x8x8xf32>
    %38 = tpu.matmul %36, %37, %cst_19 {dimension_numbers = #tpu.dot_dimension_numbers<[2], [1], [1], [2], [0, 0, 0, 1, 1, 2], [0], [0]>} : vector<8x8x8xbf16>, vector<8x8x8xbf16>, vector<8x8x8xf32> -> vector<8x8x8xf32>
    "tpu.trace_stop"() : () -> ()
    %39 = vector.extract_strided_slice %1 {offsets = [0, 0, 8], sizes = [8, 8, 8], strides = [1, 1, 1]} : vector<8x8x32xbf16> to vector<8x8x8xbf16>
    %40 = vector.extract_strided_slice %3 {offsets = [0, 0, 8], sizes = [8, 8, 8], strides = [1, 1, 1]} : vector<8x8x32xbf16> to vector<8x8x8xbf16>
    "tpu.trace_start"() <{level = 10 : i32, message = "tjd,tkd->tjk"}> : () -> ()
    %cst_20 = arith.constant dense<0.000000e+00> : vector<8x8x8xf32>
    %41 = tpu.matmul %39, %40, %cst_20 {dimension_numbers = #tpu.dot_dimension_numbers<[2], [2], [1], [1], [0, 0, 0, 1, 1, 1], [0], [0]>} : vector<8x8x8xbf16>, vector<8x8x8xbf16>, vector<8x8x8xf32> -> vector<8x8x8xf32>
    "tpu.trace_stop"() : () -> ()
    %cst_21 = arith.constant 0.353553385 : f32
    %42 = vector.broadcast %cst_21 : f32 to vector<8x8x8xf32>
    %43 = arith.mulf %41, %42 : vector<8x8x8xf32>
    %44 = vector.extract_strided_slice %5 {offsets = [1, 0, 0], sizes = [1, 8, 8], strides = [1, 1, 1]} : vector<2x8x8xbf16> to vector<1x8x8xbf16>
    %45 = vector.shape_cast %44 : vector<1x8x8xbf16> to vector<8x8xbf16>
    %46 = arith.extf %45 : vector<8x8xbf16> to vector<8x8xf32>
    %47 = vector.shape_cast %46 : vector<8x8xf32> to vector<1x8x8xf32>
    %48 = vector.broadcast %47 : vector<1x8x8xf32> to vector<8x8x8xf32>
    %49 = arith.addf %43, %48 : vector<8x8x8xf32>
    %50 = vector.shape_cast %11 : vector<8x8xf32> to vector<8x1x8xf32>
    %51 = vector.broadcast %50 : vector<8x1x8xf32> to vector<8x8x8xf32>
    %52 = arith.addf %49, %51 : vector<8x8x8xf32>
    %cst_22 = arith.constant dense<0xFF800000> : vector<8x8xf32>
    %53 = vector.multi_reduction <maximumf>, %52, %cst_22 [2] : vector<8x8x8xf32> to vector<8x8xf32>
    %54 = vector.shape_cast %53 : vector<8x8xf32> to vector<8x8x1xf32>
    %55 = vector.broadcast %54 : vector<8x8x1xf32> to vector<8x8x8xf32>
    %56 = arith.subf %52, %55 : vector<8x8x8xf32>
    %57 = math.exp %56 : vector<8x8x8xf32>
    %cst_23 = arith.constant dense<0.000000e+00> : vector<8x8xf32>
    %58 = vector.multi_reduction <add>, %57, %cst_23 [2] : vector<8x8x8xf32> to vector<8x8xf32>
    %59 = vector.shape_cast %58 : vector<8x8xf32> to vector<8x8x1xf32>
    %60 = tpu.reciprocal %59 {approx = true} : vector<8x8x1xf32> -> vector<8x8x1xf32>
    %61 = vector.broadcast %60 : vector<8x8x1xf32> to vector<8x8x8xf32>
    %62 = arith.mulf %57, %61 : vector<8x8x8xf32>
    %63 = arith.truncf %62 : vector<8x8x8xf32> to vector<8x8x8xbf16>
    %64 = vector.extract_strided_slice %3 {offsets = [0, 0, 24], sizes = [8, 8, 8], strides = [1, 1, 1]} : vector<8x8x32xbf16> to vector<8x8x8xbf16>
    "tpu.trace_start"() <{level = 10 : i32, message = "tjk,tkd->tjd"}> : () -> ()
    %cst_24 = arith.constant dense<0.000000e+00> : vector<8x8x8xf32>
    %65 = tpu.matmul %63, %64, %cst_24 {dimension_numbers = #tpu.dot_dimension_numbers<[2], [1], [1], [2], [0, 0, 0, 1, 1, 2], [0], [0]>} : vector<8x8x8xbf16>, vector<8x8x8xbf16>, vector<8x8x8xf32> -> vector<8x8x8xf32>
    "tpu.trace_stop"() : () -> ()
    %66 = tpu.concatenate %38, %65 in 2 : vector<8x8x8xf32>, vector<8x8x8xf32> -> vector<8x8x16xf32>
    %67 = vector.extract_strided_slice %1 {offsets = [0, 0, 16], sizes = [8, 8, 16], strides = [1, 1, 1]} : vector<8x8x32xbf16> to vector<8x8x16xbf16>
    %68 = arith.extf %67 : vector<8x8x16xbf16> to vector<8x8x16xf32>
    %69 = arith.negf %68 : vector<8x8x16xf32>
    %70 = math.exp %69 : vector<8x8x16xf32>
    %cst_25 = arith.constant 1.000000e+00 : f32
    %71 = vector.broadcast %cst_25 : f32 to vector<8x8x16xf32>
    %72 = arith.addf %71, %70 : vector<8x8x16xf32>
    %73 = arith.divf %71, %72 : vector<8x8x16xf32>
    %74 = arith.mulf %66, %73 : vector<8x8x16xf32>
    %75 = arith.truncf %74 : vector<8x8x16xf32> to vector<8x8x16xbf16>
    %c0_26 = arith.constant 0 : index
    %c0_27 = arith.constant 0 : index
    %c0_28 = arith.constant 0 : index
    %c0_29 = arith.constant 0 : index
    %76 = vector.load %arg7[%c0_26, %c0_27, %c0_28, %c0_29] : memref<1x8x8x16xbf16, #tpu.memory_space<vmem>>, vector<1x8x8x16xbf16>
    %77 = vector.shape_cast %76 : vector<1x8x8x16xbf16> to vector<8x8x16xbf16>
    %78 = vector.shape_cast %75 : vector<8x8x16xbf16> to vector<1x8x8x16xbf16>
    tpu.vector_store %arg7[%c0_26, %c0_27, %c0_28, %c0_29], %78 {strides = array<i32>} : memref<1x8x8x16xbf16, #tpu.memory_space<vmem>>, vector<1x8x8x16xbf16>,
    return
  }
  func.func @transform_0(%arg0: i32, %arg1: i32, %arg2: i32) -> (i32, i32, i32, i32) {
    %c0_i32 = arith.constant 0 : i32
    %c0_i32_0 = arith.constant 0 : i32
    return %arg0, %arg1, %arg2, %c0_i32 : i32, i32, i32, i32
  }
  func.func @transform_1(%arg0: i32, %arg1: i32, %arg2: i32) -> (i32, i32, i32, i32) {
    %c0_i32 = arith.constant 0 : i32
    %c0_i32_0 = arith.constant 0 : i32
    %c0_i32_1 = arith.constant 0 : i32
    return %arg0, %arg1, %c0_i32, %c0_i32_0 : i32, i32, i32, i32
  }
  func.func @transform_2(%arg0: i32, %arg1: i32, %arg2: i32) -> (i32, i32, i32, i32) {
    %c0_i32 = arith.constant 0 : i32
    %c0_i32_0 = arith.constant 0 : i32
    %c0_i32_1 = arith.constant 0 : i32
    return %arg0, %c0_i32, %arg2, %c0_i32_0 : i32, i32, i32, i32
  }
  func.func @transform_3(%arg0: i32, %arg1: i32, %arg2: i32) -> (i32, i32, i32) {
    %c0_i32 = arith.constant 0 : i32
    %c0_i32_0 = arith.constant 0 : i32
    return %arg0, %arg1, %c0_i32 : i32, i32, i32
  }
  func.func @transform_4(%arg0: i32, %arg1: i32, %arg2: i32) -> (i32, i32, i32, i32) {
    %c0_i32 = arith.constant 0 : i32
    %c0_i32_0 = arith.constant 0 : i32
    return %arg0, %arg1, %arg2, %c0_i32 : i32, i32, i32, i32
  }
}

module attributes {stable_mosaic.version = 11 : i64} {
  func.func @_linear_res_kernel(%arg0: i32, %arg1: memref<128x16xbf16, #tpu.memory_space<vmem>>, %arg2: memref<128x32xf32, #tpu.memory_space<vmem>>, %arg3: memref<16x32xbf16, #tpu.memory_space<vmem>>, %arg4: memref<1x32xf32, #tpu.memory_space<vmem>>, %arg5: memref<128x32xf32, #tpu.memory_space<vmem>>) attributes {dimension_semantics = [#tpu.dimension_semantics<parallel>], iteration_bounds = array<i64: 1>, scalar_prefetch = 0 : i64, scratch_operands = 0 : i64, tpu.core_type = #tpu.core_type<tc>, window_params = [{transform_indices = @transform_0, window_bounds = array<i64: 128, 16>}, {transform_indices = @transform_1, window_bounds = array<i64: 128, 32>}, {pipeline_mode = #tpu.pipeline_mode<synchronous>, transform_indices = @transform_2, window_bounds = array<i64: 16, 32>}, {pipeline_mode = #tpu.pipeline_mode<synchronous>, transform_indices = @transform_3, window_bounds = array<i64: 1, 32>}, {transform_indices = @transform_4, window_bounds = array<i64: 128, 32>}]} {
    %c0 = arith.constant 0 : index
    %c0_0 = arith.constant 0 : index
    %0 = vector.load %arg2[%c0, %c0_0] : memref<128x32xf32, #tpu.memory_space<vmem>>, vector<128x32xf32>
    %c0_1 = arith.constant 0 : index
    %c0_2 = arith.constant 0 : index
    %1 = vector.load %arg1[%c0_1, %c0_2] : memref<128x16xbf16, #tpu.memory_space<vmem>>, vector<128x16xbf16>
    %c0_3 = arith.constant 0 : index
    %c0_4 = arith.constant 0 : index
    %2 = vector.load %arg3[%c0_3, %c0_4] : memref<16x32xbf16, #tpu.memory_space<vmem>>, vector<16x32xbf16>
    %cst = arith.constant dense<0.000000e+00> : vector<128x32xf32>
    %3 = tpu.matmul %1, %2, %cst {dimension_numbers = #tpu.dot_dimension_numbers<[1], [0], [0], [1], [0, 0, 1, 1], [], []>} : vector<128x16xbf16>, vector<16x32xbf16>, vector<128x32xf32> -> vector<128x32xf32>
    %4 = arith.addf %0, %3 : vector<128x32xf32>
    %c0_5 = arith.constant 0 : index
    %c0_6 = arith.constant 0 : index
    %5 = vector.load %arg4[%c0_5, %c0_6] : memref<1x32xf32, #tpu.memory_space<vmem>>, vector<1x32xf32>
    %6 = vector.broadcast %5 : vector<1x32xf32> to vector<128x32xf32>
    %7 = arith.addf %4, %6 : vector<128x32xf32>
    %c0_7 = arith.constant 0 : index
    %c0_8 = arith.constant 0 : index
    %8 = vector.load %arg5[%c0_7, %c0_8] : memref<128x32xf32, #tpu.memory_space<vmem>>, vector<128x32xf32>
    tpu.vector_store %arg5[%c0_7, %c0_8], %7 {strides = array<i32>} : memref<128x32xf32, #tpu.memory_space<vmem>>, vector<128x32xf32>,
    return
  }
  func.func @transform_0(%arg0: i32) -> (i32, i32) {
    %c0_i32 = arith.constant 0 : i32
    %c0_i32_0 = arith.constant 0 : i32
    return %arg0, %c0_i32 : i32, i32
  }
  func.func @transform_1(%arg0: i32) -> (i32, i32) {
    %c0_i32 = arith.constant 0 : i32
    %c0_i32_0 = arith.constant 0 : i32
    return %arg0, %c0_i32 : i32, i32
  }
  func.func @transform_2(%arg0: i32) -> (i32, i32) {
    %c0_i32 = arith.constant 0 : i32
    %c0_i32_0 = arith.constant 0 : i32
    %c0_i32_1 = arith.constant 0 : i32
    return %c0_i32, %c0_i32_0 : i32, i32
  }
  func.func @transform_3(%arg0: i32) -> (i32, i32) {
    %c0_i32 = arith.constant 0 : i32
    %c0_i32_0 = arith.constant 0 : i32
    %c0_i32_1 = arith.constant 0 : i32
    return %c0_i32, %c0_i32_0 : i32, i32
  }
  func.func @transform_4(%arg0: i32) -> (i32, i32) {
    %c0_i32 = arith.constant 0 : i32
    %c0_i32_0 = arith.constant 0 : i32
    return %arg0, %c0_i32 : i32, i32
  }
}

module attributes {stable_mosaic.version = 11 : i64} {
  func.func @_pair_bias_kernel(%arg0: i32, %arg1: i32, %arg2: memref<1x64x32xf32, #tpu.memory_space<vmem>>, %arg3: memref<1x32xf32, #tpu.memory_space<vmem>>, %arg4: memref<1x32xf32, #tpu.memory_space<vmem>>, %arg5: memref<4x32xbf16, #tpu.memory_space<vmem>>, %arg6: memref<1x4x64xbf16, #tpu.memory_space<vmem>>) attributes {dimension_semantics = [#tpu.dimension_semantics<parallel>, #tpu.dimension_semantics<parallel>], iteration_bounds = array<i64: 2, 1>, scalar_prefetch = 0 : i64, scratch_operands = 0 : i64, tpu.core_type = #tpu.core_type<tc>, window_params = [{transform_indices = @transform_0, window_bounds = array<i64: 1, 64, 32>}, {pipeline_mode = #tpu.pipeline_mode<synchronous>, transform_indices = @transform_1, window_bounds = array<i64: 1, 32>}, {pipeline_mode = #tpu.pipeline_mode<synchronous>, transform_indices = @transform_2, window_bounds = array<i64: 1, 32>}, {pipeline_mode = #tpu.pipeline_mode<synchronous>, transform_indices = @transform_3, window_bounds = array<i64: 4, 32>}, {transform_indices = @transform_4, window_bounds = array<i64: 1, 4, 64>}]} {
    %c0 = arith.constant 0 : index
    %c0_0 = arith.constant 0 : index
    %c0_1 = arith.constant 0 : index
    %0 = vector.load %arg2[%c0, %c0_0, %c0_1] : memref<1x64x32xf32, #tpu.memory_space<vmem>>, vector<1x64x32xf32>
    %1 = vector.shape_cast %0 : vector<1x64x32xf32> to vector<64x32xf32>
    %c0_2 = arith.constant 0 : index
    %c0_3 = arith.constant 0 : index
    %2 = vector.load %arg3[%c0_2, %c0_3] : memref<1x32xf32, #tpu.memory_space<vmem>>, vector<1x32xf32>
    %c0_4 = arith.constant 0 : index
    %c0_5 = arith.constant 0 : index
    %3 = vector.load %arg4[%c0_4, %c0_5] : memref<1x32xf32, #tpu.memory_space<vmem>>, vector<1x32xf32>
    %cst = arith.constant dense<0.000000e+00> : vector<64xf32>
    %4 = vector.multi_reduction <add>, %1, %cst [1] : vector<64x32xf32> to vector<64xf32>
    %5 = vector.shape_cast %4 : vector<64xf32> to vector<64x1xf32>
    %cst_6 = arith.constant 3.200000e+01 : f32
    %6 = vector.broadcast %cst_6 : f32 to vector<64x1xf32>
    %7 = arith.divf %5, %6 : vector<64x1xf32>
    %8 = vector.broadcast %7 : vector<64x1xf32> to vector<64x32xf32>
    %9 = arith.subf %1, %8 : vector<64x32xf32>
    %10 = arith.mulf %9, %9 : vector<64x32xf32>
    %cst_7 = arith.constant dense<0.000000e+00> : vector<64xf32>
    %11 = vector.multi_reduction <add>, %10, %cst_7 [1] : vector<64x32xf32> to vector<64xf32>
    %12 = vector.shape_cast %11 : vector<64xf32> to vector<64x1xf32>
    %cst_8 = arith.constant 3.200000e+01 : f32
    %13 = vector.broadcast %cst_8 : f32 to vector<64x1xf32>
    %14 = arith.divf %12, %13 : vector<64x1xf32>
    %15 = vector.broadcast %7 : vector<64x1xf32> to vector<64x32xf32>
    %16 = arith.subf %1, %15 : vector<64x32xf32>
    %cst_9 = arith.constant 9.99999974E-6 : f32
    %17 = vector.broadcast %cst_9 : f32 to vector<64x1xf32>
    %18 = arith.addf %14, %17 : vector<64x1xf32>
    %19 = math.rsqrt %18 : vector<64x1xf32>
    %20 = vector.broadcast %19 : vector<64x1xf32> to vector<64x32xf32>
    %21 = arith.mulf %16, %20 : vector<64x32xf32>
    %22 = vector.broadcast %2 : vector<1x32xf32> to vector<64x32xf32>
    %23 = arith.mulf %21, %22 : vector<64x32xf32>
    %24 = vector.broadcast %3 : vector<1x32xf32> to vector<64x32xf32>
    %25 = arith.addf %23, %24 : vector<64x32xf32>
    %c0_10 = arith.constant 0 : index
    %c0_11 = arith.constant 0 : index
    %26 = vector.load %arg5[%c0_10, %c0_11] : memref<4x32xbf16, #tpu.memory_space<vmem>>, vector<4x32xbf16>
    %27 = arith.truncf %25 : vector<64x32xf32> to vector<64x32xbf16>
    "tpu.trace_start"() <{level = 10 : i32, message = "hd,td->ht"}> : () -> ()
    %cst_12 = arith.constant dense<0.000000e+00> : vector<4x64xf32>
    %28 = tpu.matmul %26, %27, %cst_12 {dimension_numbers = #tpu.dot_dimension_numbers<[1], [1], [0], [0], [0, 0, 1, 0], [], []>} : vector<4x32xbf16>, vector<64x32xbf16>, vector<4x64xf32> -> vector<4x64xf32>
    "tpu.trace_stop"() : () -> ()
    %29 = arith.truncf %28 : vector<4x64xf32> to vector<4x64xbf16>
    %c0_13 = arith.constant 0 : index
    %c0_14 = arith.constant 0 : index
    %c0_15 = arith.constant 0 : index
    %30 = vector.load %arg6[%c0_13, %c0_14, %c0_15] : memref<1x4x64xbf16, #tpu.memory_space<vmem>>, vector<1x4x64xbf16>
    %31 = vector.shape_cast %30 : vector<1x4x64xbf16> to vector<4x64xbf16>
    %32 = vector.shape_cast %29 : vector<4x64xbf16> to vector<1x4x64xbf16>
    tpu.vector_store %arg6[%c0_13, %c0_14, %c0_15], %32 {strides = array<i32>} : memref<1x4x64xbf16, #tpu.memory_space<vmem>>, vector<1x4x64xbf16>,
    return
  }
  func.func @transform_0(%arg0: i32, %arg1: i32) -> (i32, i32, i32) {
    %c0_i32 = arith.constant 0 : i32
    %c0_i32_0 = arith.constant 0 : i32
    return %arg0, %arg1, %c0_i32 : i32, i32, i32
  }
  func.func @transform_1(%arg0: i32, %arg1: i32) -> (i32, i32) {
    %c0_i32 = arith.constant 0 : i32
    %c0_i32_0 = arith.constant 0 : i32
    %c0_i32_1 = arith.constant 0 : i32
    return %c0_i32, %c0_i32_0 : i32, i32
  }
  func.func @transform_2(%arg0: i32, %arg1: i32) -> (i32, i32) {
    %c0_i32 = arith.constant 0 : i32
    %c0_i32_0 = arith.constant 0 : i32
    %c0_i32_1 = arith.constant 0 : i32
    return %c0_i32, %c0_i32_0 : i32, i32
  }
  func.func @transform_3(%arg0: i32, %arg1: i32) -> (i32, i32) {
    %c0_i32 = arith.constant 0 : i32
    %c0_i32_0 = arith.constant 0 : i32
    %c0_i32_1 = arith.constant 0 : i32
    return %c0_i32, %c0_i32_0 : i32, i32
  }
  func.func @transform_4(%arg0: i32, %arg1: i32) -> (i32, i32, i32) {
    %c0_i32 = arith.constant 0 : i32
    %c0_i32_0 = arith.constant 0 : i32
    return %arg0, %c0_i32, %arg1 : i32, i32, i32
  }
}

module attributes {stable_mosaic.version = 11 : i64} {
  func.func @_transition_kernel(%arg0: i32, %arg1: memref<128x32xf32, #tpu.memory_space<vmem>>, %arg2: memref<1x32xf32, #tpu.memory_space<vmem>>, %arg3: memref<1x32xf32, #tpu.memory_space<vmem>>, %arg4: memref<32x256xbf16, #tpu.memory_space<vmem>>, %arg5: memref<128x32xbf16, #tpu.memory_space<vmem>>, %arg6: memref<128x32xf32, #tpu.memory_space<vmem>>) attributes {dimension_semantics = [#tpu.dimension_semantics<parallel>], iteration_bounds = array<i64: 1>, scalar_prefetch = 0 : i64, scratch_operands = 0 : i64, tpu.core_type = #tpu.core_type<tc>, window_params = [{transform_indices = @transform_0, window_bounds = array<i64: 128, 32>}, {pipeline_mode = #tpu.pipeline_mode<synchronous>, transform_indices = @transform_1, window_bounds = array<i64: 1, 32>}, {pipeline_mode = #tpu.pipeline_mode<synchronous>, transform_indices = @transform_2, window_bounds = array<i64: 1, 32>}, {pipeline_mode = #tpu.pipeline_mode<synchronous>, transform_indices = @transform_3, window_bounds = array<i64: 32, 256>}, {pipeline_mode = #tpu.pipeline_mode<synchronous>, transform_indices = @transform_4, window_bounds = array<i64: 128, 32>}, {transform_indices = @transform_5, window_bounds = array<i64: 128, 32>}]} {
    %c0 = arith.constant 0 : index
    %c0_0 = arith.constant 0 : index
    %0 = vector.load %arg1[%c0, %c0_0] : memref<128x32xf32, #tpu.memory_space<vmem>>, vector<128x32xf32>
    %c0_1 = arith.constant 0 : index
    %c0_2 = arith.constant 0 : index
    %1 = vector.load %arg2[%c0_1, %c0_2] : memref<1x32xf32, #tpu.memory_space<vmem>>, vector<1x32xf32>
    %c0_3 = arith.constant 0 : index
    %c0_4 = arith.constant 0 : index
    %2 = vector.load %arg3[%c0_3, %c0_4] : memref<1x32xf32, #tpu.memory_space<vmem>>, vector<1x32xf32>
    %cst = arith.constant dense<0.000000e+00> : vector<128xf32>
    %3 = vector.multi_reduction <add>, %0, %cst [1] : vector<128x32xf32> to vector<128xf32>
    %4 = vector.shape_cast %3 : vector<128xf32> to vector<128x1xf32>
    %cst_5 = arith.constant 3.200000e+01 : f32
    %5 = vector.broadcast %cst_5 : f32 to vector<128x1xf32>
    %6 = arith.divf %4, %5 : vector<128x1xf32>
    %7 = vector.broadcast %6 : vector<128x1xf32> to vector<128x32xf32>
    %8 = arith.subf %0, %7 : vector<128x32xf32>
    %9 = arith.mulf %8, %8 : vector<128x32xf32>
    %cst_6 = arith.constant dense<0.000000e+00> : vector<128xf32>
    %10 = vector.multi_reduction <add>, %9, %cst_6 [1] : vector<128x32xf32> to vector<128xf32>
    %11 = vector.shape_cast %10 : vector<128xf32> to vector<128x1xf32>
    %cst_7 = arith.constant 3.200000e+01 : f32
    %12 = vector.broadcast %cst_7 : f32 to vector<128x1xf32>
    %13 = arith.divf %11, %12 : vector<128x1xf32>
    %14 = vector.broadcast %6 : vector<128x1xf32> to vector<128x32xf32>
    %15 = arith.subf %0, %14 : vector<128x32xf32>
    %cst_8 = arith.constant 9.99999974E-6 : f32
    %16 = vector.broadcast %cst_8 : f32 to vector<128x1xf32>
    %17 = arith.addf %13, %16 : vector<128x1xf32>
    %18 = math.rsqrt %17 : vector<128x1xf32>
    %19 = vector.broadcast %18 : vector<128x1xf32> to vector<128x32xf32>
    %20 = arith.mulf %15, %19 : vector<128x32xf32>
    %21 = vector.broadcast %1 : vector<1x32xf32> to vector<128x32xf32>
    %22 = arith.mulf %20, %21 : vector<128x32xf32>
    %23 = vector.broadcast %2 : vector<1x32xf32> to vector<128x32xf32>
    %24 = arith.addf %22, %23 : vector<128x32xf32>
    %25 = arith.truncf %24 : vector<128x32xf32> to vector<128x32xbf16>
    %c0_9 = arith.constant 0 : index
    %c0_10 = arith.constant 0 : index
    %26 = vector.load %arg4[%c0_9, %c0_10] : memref<32x256xbf16, #tpu.memory_space<vmem>>, vector<32x256xbf16>
    %cst_11 = arith.constant dense<0.000000e+00> : vector<128x256xf32>
    %27 = tpu.matmul %25, %26, %cst_11 {dimension_numbers = #tpu.dot_dimension_numbers<[1], [0], [0], [1], [0, 0, 1, 1], [], []>} : vector<128x32xbf16>, vector<32x256xbf16>, vector<128x256xf32> -> vector<128x256xf32>
    %28 = vector.extract_strided_slice %27 {offsets = [0, 0], sizes = [128, 128], strides = [1, 1]} : vector<128x256xf32> to vector<128x128xf32>
    %29 = arith.negf %28 : vector<128x128xf32>
    %30 = math.exp %29 : vector<128x128xf32>
    %cst_12 = arith.constant 1.000000e+00 : f32
    %31 = vector.broadcast %cst_12 : f32 to vector<128x128xf32>
    %32 = arith.addf %31, %30 : vector<128x128xf32>
    %33 = arith.divf %31, %32 : vector<128x128xf32>
    %34 = arith.mulf %28, %33 : vector<128x128xf32>
    %35 = vector.extract_strided_slice %27 {offsets = [0, 128], sizes = [128, 128], strides = [1, 1]} : vector<128x256xf32> to vector<128x128xf32>
    %36 = arith.mulf %34, %35 : vector<128x128xf32>
    %37 = arith.truncf %36 : vector<128x128xf32> to vector<128x128xbf16>
    %c0_13 = arith.constant 0 : index
    %c0_14 = arith.constant 0 : index
    %38 = vector.load %arg5[%c0_13, %c0_14] : memref<128x32xbf16, #tpu.memory_space<vmem>>, vector<128x32xbf16>
    %cst_15 = arith.constant dense<0.000000e+00> : vector<128x32xf32>
    %39 = tpu.matmul %37, %38, %cst_15 {dimension_numbers = #tpu.dot_dimension_numbers<[1], [0], [0], [1], [0, 0, 1, 1], [], []>} : vector<128x128xbf16>, vector<128x32xbf16>, vector<128x32xf32> -> vector<128x32xf32>
    %40 = arith.addf %0, %39 : vector<128x32xf32>
    %c0_16 = arith.constant 0 : index
    %c0_17 = arith.constant 0 : index
    %41 = vector.load %arg6[%c0_16, %c0_17] : memref<128x32xf32, #tpu.memory_space<vmem>>, vector<128x32xf32>
    tpu.vector_store %arg6[%c0_16, %c0_17], %40 {strides = array<i32>} : memref<128x32xf32, #tpu.memory_space<vmem>>, vector<128x32xf32>,
    return
  }
  func.func @transform_0(%arg0: i32) -> (i32, i32) {
    %c0_i32 = arith.constant 0 : i32
    %c0_i32_0 = arith.constant 0 : i32
    return %arg0, %c0_i32 : i32, i32
  }
  func.func @transform_1(%arg0: i32) -> (i32, i32) {
    %c0_i32 = arith.constant 0 : i32
    %c0_i32_0 = arith.constant 0 : i32
    %c0_i32_1 = arith.constant 0 : i32
    return %c0_i32, %c0_i32_0 : i32, i32
  }
  func.func @transform_2(%arg0: i32) -> (i32, i32) {
    %c0_i32 = arith.constant 0 : i32
    %c0_i32_0 = arith.constant 0 : i32
    %c0_i32_1 = arith.constant 0 : i32
    return %c0_i32, %c0_i32_0 : i32, i32
  }
  func.func @transform_3(%arg0: i32) -> (i32, i32) {
    %c0_i32 = arith.constant 0 : i32
    %c0_i32_0 = arith.constant 0 : i32
    %c0_i32_1 = arith.constant 0 : i32
    return %c0_i32, %c0_i32_0 : i32, i32
  }
  func.func @transform_4(%arg0: i32) -> (i32, i32) {
    %c0_i32 = arith.constant 0 : i32
    %c0_i32_0 = arith.constant 0 : i32
    %c0_i32_1 = arith.constant 0 : i32
    return %c0_i32, %c0_i32_0 : i32, i32
  }
  func.func @transform_5(%arg0: i32) -> (i32, i32) {
    %c0_i32 = arith.constant 0 : i32
    %c0_i32_0 = arith.constant 0 : i32
    return %arg0, %c0_i32 : i32, i32
  }
}

module attributes {stable_mosaic.version = 11 : i64} {
  func.func @_ln_proj_kernel(%arg0: i32, %arg1: memref<16x32xf32, #tpu.memory_space<vmem>>, %arg2: memref<1x32xf32, #tpu.memory_space<vmem>>, %arg3: memref<1x32xf32, #tpu.memory_space<vmem>>, %arg4: memref<32x128xbf16, #tpu.memory_space<vmem>>, %arg5: memref<1x128xf32, #tpu.memory_space<vmem>>, %arg6: memref<16x128xbf16, #tpu.memory_space<vmem>>) attributes {dimension_semantics = [#tpu.dimension_semantics<parallel>], iteration_bounds = array<i64: 1>, scalar_prefetch = 0 : i64, scratch_operands = 0 : i64, tpu.core_type = #tpu.core_type<tc>, window_params = [{transform_indices = @transform_0, window_bounds = array<i64: 16, 32>}, {pipeline_mode = #tpu.pipeline_mode<synchronous>, transform_indices = @transform_1, window_bounds = array<i64: 1, 32>}, {pipeline_mode = #tpu.pipeline_mode<synchronous>, transform_indices = @transform_2, window_bounds = array<i64: 1, 32>}, {pipeline_mode = #tpu.pipeline_mode<synchronous>, transform_indices = @transform_3, window_bounds = array<i64: 32, 128>}, {pipeline_mode = #tpu.pipeline_mode<synchronous>, transform_indices = @transform_4, window_bounds = array<i64: 1, 128>}, {transform_indices = @transform_5, window_bounds = array<i64: 16, 128>}]} {
    %c0 = arith.constant 0 : index
    %c0_0 = arith.constant 0 : index
    %0 = vector.load %arg1[%c0, %c0_0] : memref<16x32xf32, #tpu.memory_space<vmem>>, vector<16x32xf32>
    %c0_1 = arith.constant 0 : index
    %c0_2 = arith.constant 0 : index
    %1 = vector.load %arg2[%c0_1, %c0_2] : memref<1x32xf32, #tpu.memory_space<vmem>>, vector<1x32xf32>
    %c0_3 = arith.constant 0 : index
    %c0_4 = arith.constant 0 : index
    %2 = vector.load %arg3[%c0_3, %c0_4] : memref<1x32xf32, #tpu.memory_space<vmem>>, vector<1x32xf32>
    %cst = arith.constant dense<0.000000e+00> : vector<16xf32>
    %3 = vector.multi_reduction <add>, %0, %cst [1] : vector<16x32xf32> to vector<16xf32>
    %4 = vector.shape_cast %3 : vector<16xf32> to vector<16x1xf32>
    %cst_5 = arith.constant 3.200000e+01 : f32
    %5 = vector.broadcast %cst_5 : f32 to vector<16x1xf32>
    %6 = arith.divf %4, %5 : vector<16x1xf32>
    %7 = vector.broadcast %6 : vector<16x1xf32> to vector<16x32xf32>
    %8 = arith.subf %0, %7 : vector<16x32xf32>
    %9 = arith.mulf %8, %8 : vector<16x32xf32>
    %cst_6 = arith.constant dense<0.000000e+00> : vector<16xf32>
    %10 = vector.multi_reduction <add>, %9, %cst_6 [1] : vector<16x32xf32> to vector<16xf32>
    %11 = vector.shape_cast %10 : vector<16xf32> to vector<16x1xf32>
    %cst_7 = arith.constant 3.200000e+01 : f32
    %12 = vector.broadcast %cst_7 : f32 to vector<16x1xf32>
    %13 = arith.divf %11, %12 : vector<16x1xf32>
    %14 = vector.broadcast %6 : vector<16x1xf32> to vector<16x32xf32>
    %15 = arith.subf %0, %14 : vector<16x32xf32>
    %cst_8 = arith.constant 9.99999974E-6 : f32
    %16 = vector.broadcast %cst_8 : f32 to vector<16x1xf32>
    %17 = arith.addf %13, %16 : vector<16x1xf32>
    %18 = math.rsqrt %17 : vector<16x1xf32>
    %19 = vector.broadcast %18 : vector<16x1xf32> to vector<16x32xf32>
    %20 = arith.mulf %15, %19 : vector<16x32xf32>
    %21 = vector.broadcast %1 : vector<1x32xf32> to vector<16x32xf32>
    %22 = arith.mulf %20, %21 : vector<16x32xf32>
    %23 = vector.broadcast %2 : vector<1x32xf32> to vector<16x32xf32>
    %24 = arith.addf %22, %23 : vector<16x32xf32>
    %25 = arith.truncf %24 : vector<16x32xf32> to vector<16x32xbf16>
    %c0_9 = arith.constant 0 : index
    %c0_10 = arith.constant 0 : index
    %26 = vector.load %arg4[%c0_9, %c0_10] : memref<32x128xbf16, #tpu.memory_space<vmem>>, vector<32x128xbf16>
    %cst_11 = arith.constant dense<0.000000e+00> : vector<16x128xf32>
    %27 = tpu.matmul %25, %26, %cst_11 {dimension_numbers = #tpu.dot_dimension_numbers<[1], [0], [0], [1], [0, 0, 1, 1], [], []>} : vector<16x32xbf16>, vector<32x128xbf16>, vector<16x128xf32> -> vector<16x128xf32>
    %c0_12 = arith.constant 0 : index
    %c0_13 = arith.constant 0 : index
    %28 = vector.load %arg5[%c0_12, %c0_13] : memref<1x128xf32, #tpu.memory_space<vmem>>, vector<1x128xf32>
    %29 = vector.broadcast %28 : vector<1x128xf32> to vector<16x128xf32>
    %30 = arith.addf %27, %29 : vector<16x128xf32>
    %31 = arith.truncf %30 : vector<16x128xf32> to vector<16x128xbf16>
    %c0_14 = arith.constant 0 : index
    %c0_15 = arith.constant 0 : index
    %32 = vector.load %arg6[%c0_14, %c0_15] : memref<16x128xbf16, #tpu.memory_space<vmem>>, vector<16x128xbf16>
    tpu.vector_store %arg6[%c0_14, %c0_15], %31 {strides = array<i32>} : memref<16x128xbf16, #tpu.memory_space<vmem>>, vector<16x128xbf16>,
    return
  }
  func.func @transform_0(%arg0: i32) -> (i32, i32) {
    %c0_i32 = arith.constant 0 : i32
    %c0_i32_0 = arith.constant 0 : i32
    return %arg0, %c0_i32 : i32, i32
  }
  func.func @transform_1(%arg0: i32) -> (i32, i32) {
    %c0_i32 = arith.constant 0 : i32
    %c0_i32_0 = arith.constant 0 : i32
    %c0_i32_1 = arith.constant 0 : i32
    return %c0_i32, %c0_i32_0 : i32, i32
  }
  func.func @transform_2(%arg0: i32) -> (i32, i32) {
    %c0_i32 = arith.constant 0 : i32
    %c0_i32_0 = arith.constant 0 : i32
    %c0_i32_1 = arith.constant 0 : i32
    return %c0_i32, %c0_i32_0 : i32, i32
  }
  func.func @transform_3(%arg0: i32) -> (i32, i32) {
    %c0_i32 = arith.constant 0 : i32
    %c0_i32_0 = arith.constant 0 : i32
    %c0_i32_1 = arith.constant 0 : i32
    return %c0_i32, %c0_i32_0 : i32, i32
  }
  func.func @transform_4(%arg0: i32) -> (i32, i32) {
    %c0_i32 = arith.constant 0 : i32
    %c0_i32_0 = arith.constant 0 : i32
    %c0_i32_1 = arith.constant 0 : i32
    return %c0_i32, %c0_i32_0 : i32, i32
  }
  func.func @transform_5(%arg0: i32) -> (i32, i32) {
    %c0_i32 = arith.constant 0 : i32
    %c0_i32_0 = arith.constant 0 : i32
    return %arg0, %c0_i32 : i32, i32
  }
}

module attributes {stable_mosaic.version = 11 : i64} {
  func.func @_transition_kernel(%arg0: i32, %arg1: memref<16x32xf32, #tpu.memory_space<vmem>>, %arg2: memref<1x32xf32, #tpu.memory_space<vmem>>, %arg3: memref<1x32xf32, #tpu.memory_space<vmem>>, %arg4: memref<32x256xbf16, #tpu.memory_space<vmem>>, %arg5: memref<128x32xbf16, #tpu.memory_space<vmem>>, %arg6: memref<16x32xf32, #tpu.memory_space<vmem>>) attributes {dimension_semantics = [#tpu.dimension_semantics<parallel>], iteration_bounds = array<i64: 1>, scalar_prefetch = 0 : i64, scratch_operands = 0 : i64, tpu.core_type = #tpu.core_type<tc>, window_params = [{transform_indices = @transform_0, window_bounds = array<i64: 16, 32>}, {pipeline_mode = #tpu.pipeline_mode<synchronous>, transform_indices = @transform_1, window_bounds = array<i64: 1, 32>}, {pipeline_mode = #tpu.pipeline_mode<synchronous>, transform_indices = @transform_2, window_bounds = array<i64: 1, 32>}, {pipeline_mode = #tpu.pipeline_mode<synchronous>, transform_indices = @transform_3, window_bounds = array<i64: 32, 256>}, {pipeline_mode = #tpu.pipeline_mode<synchronous>, transform_indices = @transform_4, window_bounds = array<i64: 128, 32>}, {transform_indices = @transform_5, window_bounds = array<i64: 16, 32>}]} {
    %c0 = arith.constant 0 : index
    %c0_0 = arith.constant 0 : index
    %0 = vector.load %arg1[%c0, %c0_0] : memref<16x32xf32, #tpu.memory_space<vmem>>, vector<16x32xf32>
    %c0_1 = arith.constant 0 : index
    %c0_2 = arith.constant 0 : index
    %1 = vector.load %arg2[%c0_1, %c0_2] : memref<1x32xf32, #tpu.memory_space<vmem>>, vector<1x32xf32>
    %c0_3 = arith.constant 0 : index
    %c0_4 = arith.constant 0 : index
    %2 = vector.load %arg3[%c0_3, %c0_4] : memref<1x32xf32, #tpu.memory_space<vmem>>, vector<1x32xf32>
    %cst = arith.constant dense<0.000000e+00> : vector<16xf32>
    %3 = vector.multi_reduction <add>, %0, %cst [1] : vector<16x32xf32> to vector<16xf32>
    %4 = vector.shape_cast %3 : vector<16xf32> to vector<16x1xf32>
    %cst_5 = arith.constant 3.200000e+01 : f32
    %5 = vector.broadcast %cst_5 : f32 to vector<16x1xf32>
    %6 = arith.divf %4, %5 : vector<16x1xf32>
    %7 = vector.broadcast %6 : vector<16x1xf32> to vector<16x32xf32>
    %8 = arith.subf %0, %7 : vector<16x32xf32>
    %9 = arith.mulf %8, %8 : vector<16x32xf32>
    %cst_6 = arith.constant dense<0.000000e+00> : vector<16xf32>
    %10 = vector.multi_reduction <add>, %9, %cst_6 [1] : vector<16x32xf32> to vector<16xf32>
    %11 = vector.shape_cast %10 : vector<16xf32> to vector<16x1xf32>
    %cst_7 = arith.constant 3.200000e+01 : f32
    %12 = vector.broadcast %cst_7 : f32 to vector<16x1xf32>
    %13 = arith.divf %11, %12 : vector<16x1xf32>
    %14 = vector.broadcast %6 : vector<16x1xf32> to vector<16x32xf32>
    %15 = arith.subf %0, %14 : vector<16x32xf32>
    %cst_8 = arith.constant 9.99999974E-6 : f32
    %16 = vector.broadcast %cst_8 : f32 to vector<16x1xf32>
    %17 = arith.addf %13, %16 : vector<16x1xf32>
    %18 = math.rsqrt %17 : vector<16x1xf32>
    %19 = vector.broadcast %18 : vector<16x1xf32> to vector<16x32xf32>
    %20 = arith.mulf %15, %19 : vector<16x32xf32>
    %21 = vector.broadcast %1 : vector<1x32xf32> to vector<16x32xf32>
    %22 = arith.mulf %20, %21 : vector<16x32xf32>
    %23 = vector.broadcast %2 : vector<1x32xf32> to vector<16x32xf32>
    %24 = arith.addf %22, %23 : vector<16x32xf32>
    %25 = arith.truncf %24 : vector<16x32xf32> to vector<16x32xbf16>
    %c0_9 = arith.constant 0 : index
    %c0_10 = arith.constant 0 : index
    %26 = vector.load %arg4[%c0_9, %c0_10] : memref<32x256xbf16, #tpu.memory_space<vmem>>, vector<32x256xbf16>
    %cst_11 = arith.constant dense<0.000000e+00> : vector<16x256xf32>
    %27 = tpu.matmul %25, %26, %cst_11 {dimension_numbers = #tpu.dot_dimension_numbers<[1], [0], [0], [1], [0, 0, 1, 1], [], []>} : vector<16x32xbf16>, vector<32x256xbf16>, vector<16x256xf32> -> vector<16x256xf32>
    %28 = vector.extract_strided_slice %27 {offsets = [0, 0], sizes = [16, 128], strides = [1, 1]} : vector<16x256xf32> to vector<16x128xf32>
    %29 = arith.negf %28 : vector<16x128xf32>
    %30 = math.exp %29 : vector<16x128xf32>
    %cst_12 = arith.constant 1.000000e+00 : f32
    %31 = vector.broadcast %cst_12 : f32 to vector<16x128xf32>
    %32 = arith.addf %31, %30 : vector<16x128xf32>
    %33 = arith.divf %31, %32 : vector<16x128xf32>
    %34 = arith.mulf %28, %33 : vector<16x128xf32>
    %35 = vector.extract_strided_slice %27 {offsets = [0, 128], sizes = [16, 128], strides = [1, 1]} : vector<16x256xf32> to vector<16x128xf32>
    %36 = arith.mulf %34, %35 : vector<16x128xf32>
    %37 = arith.truncf %36 : vector<16x128xf32> to vector<16x128xbf16>
    %c0_13 = arith.constant 0 : index
    %c0_14 = arith.constant 0 : index
    %38 = vector.load %arg5[%c0_13, %c0_14] : memref<128x32xbf16, #tpu.memory_space<vmem>>, vector<128x32xbf16>
    %cst_15 = arith.constant dense<0.000000e+00> : vector<16x32xf32>
    %39 = tpu.matmul %37, %38, %cst_15 {dimension_numbers = #tpu.dot_dimension_numbers<[1], [0], [0], [1], [0, 0, 1, 1], [], []>} : vector<16x128xbf16>, vector<128x32xbf16>, vector<16x32xf32> -> vector<16x32xf32>
    %40 = arith.addf %0, %39 : vector<16x32xf32>
    %c0_16 = arith.constant 0 : index
    %c0_17 = arith.constant 0 : index
    %41 = vector.load %arg6[%c0_16, %c0_17] : memref<16x32xf32, #tpu.memory_space<vmem>>, vector<16x32xf32>
    tpu.vector_store %arg6[%c0_16, %c0_17], %40 {strides = array<i32>} : memref<16x32xf32, #tpu.memory_space<vmem>>, vector<16x32xf32>,
    return
  }
  func.func @transform_0(%arg0: i32) -> (i32, i32) {
    %c0_i32 = arith.constant 0 : i32
    %c0_i32_0 = arith.constant 0 : i32
    return %arg0, %c0_i32 : i32, i32
  }
  func.func @transform_1(%arg0: i32) -> (i32, i32) {
    %c0_i32 = arith.constant 0 : i32
    %c0_i32_0 = arith.constant 0 : i32
    %c0_i32_1 = arith.constant 0 : i32
    return %c0_i32, %c0_i32_0 : i32, i32
  }
  func.func @transform_2(%arg0: i32) -> (i32, i32) {
    %c0_i32 = arith.constant 0 : i32
    %c0_i32_0 = arith.constant 0 : i32
    %c0_i32_1 = arith.constant 0 : i32
    return %c0_i32, %c0_i32_0 : i32, i32
  }
  func.func @transform_3(%arg0: i32) -> (i32, i32) {
    %c0_i32 = arith.constant 0 : i32
    %c0_i32_0 = arith.constant 0 : i32
    %c0_i32_1 = arith.constant 0 : i32
    return %c0_i32, %c0_i32_0 : i32, i32
  }
  func.func @transform_4(%arg0: i32) -> (i32, i32) {
    %c0_i32 = arith.constant 0 : i32
    %c0_i32_0 = arith.constant 0 : i32
    %c0_i32_1 = arith.constant 0 : i32
    return %c0_i32, %c0_i32_0 : i32, i32
  }
  func.func @transform_5(%arg0: i32) -> (i32, i32) {
    %c0_i32 = arith.constant 0 : i32
    %c0_i32_0 = arith.constant 0 : i32
    return %arg0, %c0_i32 : i32, i32
  }
}

module attributes {stable_mosaic.version = 11 : i64} {
  func.func @_single_attn_kernel(%arg0: i32, %arg1: i32, %arg2: memref<1x8x32xbf16, #tpu.memory_space<vmem>>, %arg3: memref<1x8x32xbf16, #tpu.memory_space<vmem>>, %arg4: memref<1x8x32xbf16, #tpu.memory_space<vmem>>, %arg5: memref<1x8x32xbf16, #tpu.memory_space<vmem>>, %arg6: memref<1x4x8x8xbf16, #tpu.memory_space<vmem>>, %arg7: memref<1x1x8xf32, #tpu.memory_space<vmem>>, %arg8: memref<1x8x32xbf16, #tpu.memory_space<vmem>>) attributes {dimension_semantics = [#tpu.dimension_semantics<parallel>, #tpu.dimension_semantics<parallel>], iteration_bounds = array<i64: 2, 1>, scalar_prefetch = 0 : i64, scratch_operands = 0 : i64, tpu.core_type = #tpu.core_type<tc>, window_params = [{transform_indices = @transform_0, window_bounds = array<i64: 1, 8, 32>}, {transform_indices = @transform_1, window_bounds = array<i64: 1, 8, 32>}, {transform_indices = @transform_2, window_bounds = array<i64: 1, 8, 32>}, {transform_indices = @transform_3, window_bounds = array<i64: 1, 8, 32>}, {transform_indices = @transform_4, window_bounds = array<i64: 1, 4, 8, 8>}, {transform_indices = @transform_5, window_bounds = array<i64: 1, 1, 8>}, {transform_indices = @transform_6, window_bounds = array<i64: 1, 8, 32>}]} {
    %c0 = arith.constant 0 : index
    %c0_0 = arith.constant 0 : index
    %c0_1 = arith.constant 0 : index
    %0 = vector.load %arg2[%c0, %c0_0, %c0_1] : memref<1x8x32xbf16, #tpu.memory_space<vmem>>, vector<1x8x32xbf16>
    %1 = vector.shape_cast %0 : vector<1x8x32xbf16> to vector<8x32xbf16>
    %c0_2 = arith.constant 0 : index
    %c0_3 = arith.constant 0 : index
    %c0_4 = arith.constant 0 : index
    %2 = vector.load %arg3[%c0_2, %c0_3, %c0_4] : memref<1x8x32xbf16, #tpu.memory_space<vmem>>, vector<1x8x32xbf16>
    %3 = vector.shape_cast %2 : vector<1x8x32xbf16> to vector<8x32xbf16>
    %c0_5 = arith.constant 0 : index
    %c0_6 = arith.constant 0 : index
    %c0_7 = arith.constant 0 : index
    %4 = vector.load %arg4[%c0_5, %c0_6, %c0_7] : memref<1x8x32xbf16, #tpu.memory_space<vmem>>, vector<1x8x32xbf16>
    %5 = vector.shape_cast %4 : vector<1x8x32xbf16> to vector<8x32xbf16>
    %c0_8 = arith.constant 0 : index
    %c0_9 = arith.constant 0 : index
    %c0_10 = arith.constant 0 : index
    %c0_11 = arith.constant 0 : index
    %6 = vector.load %arg6[%c0_8, %c0_9, %c0_10, %c0_11] : memref<1x4x8x8xbf16, #tpu.memory_space<vmem>>, vector<1x4x8x8xbf16>
    %7 = vector.shape_cast %6 : vector<1x4x8x8xbf16> to vector<4x8x8xbf16>
    %c0_12 = arith.constant 0 : index
    %c0_13 = arith.constant 0 : index
    %c0_14 = arith.constant 0 : index
    %8 = vector.load %arg7[%c0_12, %c0_13, %c0_14] : memref<1x1x8xf32, #tpu.memory_space<vmem>>, vector<1x1x8xf32>
    %9 = vector.shape_cast %8 : vector<1x1x8xf32> to vector<1x8xf32>
    %cst = arith.constant 1.000000e+00 : f32
    %10 = vector.broadcast %cst : f32 to vector<1x8xf32>
    %11 = arith.subf %9, %10 : vector<1x8xf32>
    %cst_15 = arith.constant 1.000000e+09 : f32
    %12 = vector.broadcast %cst_15 : f32 to vector<1x8xf32>
    %13 = arith.mulf %11, %12 : vector<1x8xf32>
    %14 = vector.extract_strided_slice %1 {offsets = [0, 0], sizes = [8, 8], strides = [1, 1]} : vector<8x32xbf16> to vector<8x8xbf16>
    %15 = vector.extract_strided_slice %3 {offsets = [0, 0], sizes = [8, 8], strides = [1, 1]} : vector<8x32xbf16> to vector<8x8xbf16>
    "tpu.trace_start"() <{level = 10 : i32, message = "qd,kd->qk"}> : () -> ()
    %cst_16 = arith.constant dense<0.000000e+00> : vector<8x8xf32>
    %16 = tpu.matmul %14, %15, %cst_16 {dimension_numbers = #tpu.dot_dimension_numbers<[1], [1], [0], [0], [0, 0, 1, 0], [], []>} : vector<8x8xbf16>, vector<8x8xbf16>, vector<8x8xf32> -> vector<8x8xf32>
    "tpu.trace_stop"() : () -> ()
    %cst_17 = arith.constant 0.353553385 : f32
    %17 = vector.broadcast %cst_17 : f32 to vector<8x8xf32>
    %18 = arith.mulf %16, %17 : vector<8x8xf32>
    %19 = vector.extract_strided_slice %7 {offsets = [0, 0, 0], sizes = [1, 8, 8], strides = [1, 1, 1]} : vector<4x8x8xbf16> to vector<1x8x8xbf16>
    %20 = vector.shape_cast %19 : vector<1x8x8xbf16> to vector<8x8xbf16>
    %21 = arith.extf %20 : vector<8x8xbf16> to vector<8x8xf32>
    %22 = arith.addf %18, %21 : vector<8x8xf32>
    %23 = vector.broadcast %13 : vector<1x8xf32> to vector<8x8xf32>
    %24 = arith.addf %22, %23 : vector<8x8xf32>
    %cst_18 = arith.constant dense<0xFF800000> : vector<8xf32>
    %25 = vector.multi_reduction <maximumf>, %24, %cst_18 [1] : vector<8x8xf32> to vector<8xf32>
    %26 = vector.shape_cast %25 : vector<8xf32> to vector<8x1xf32>
    %27 = vector.broadcast %26 : vector<8x1xf32> to vector<8x8xf32>
    %28 = arith.subf %24, %27 : vector<8x8xf32>
    %29 = math.exp %28 : vector<8x8xf32>
    %cst_19 = arith.constant dense<0.000000e+00> : vector<8xf32>
    %30 = vector.multi_reduction <add>, %29, %cst_19 [1] : vector<8x8xf32> to vector<8xf32>
    %31 = vector.shape_cast %30 : vector<8xf32> to vector<8x1xf32>
    %32 = tpu.reciprocal %31 {approx = true} : vector<8x1xf32> -> vector<8x1xf32>
    %33 = vector.broadcast %32 : vector<8x1xf32> to vector<8x8xf32>
    %34 = arith.mulf %29, %33 : vector<8x8xf32>
    %35 = arith.truncf %34 : vector<8x8xf32> to vector<8x8xbf16>
    %36 = vector.extract_strided_slice %5 {offsets = [0, 0], sizes = [8, 8], strides = [1, 1]} : vector<8x32xbf16> to vector<8x8xbf16>
    %cst_20 = arith.constant dense<0.000000e+00> : vector<8x8xf32>
    %37 = tpu.matmul %35, %36, %cst_20 {dimension_numbers = #tpu.dot_dimension_numbers<[1], [0], [0], [1], [0, 0, 1, 1], [], []>} : vector<8x8xbf16>, vector<8x8xbf16>, vector<8x8xf32> -> vector<8x8xf32>
    %38 = vector.extract_strided_slice %1 {offsets = [0, 8], sizes = [8, 8], strides = [1, 1]} : vector<8x32xbf16> to vector<8x8xbf16>
    %39 = vector.extract_strided_slice %3 {offsets = [0, 8], sizes = [8, 8], strides = [1, 1]} : vector<8x32xbf16> to vector<8x8xbf16>
    "tpu.trace_start"() <{level = 10 : i32, message = "qd,kd->qk"}> : () -> ()
    %cst_21 = arith.constant dense<0.000000e+00> : vector<8x8xf32>
    %40 = tpu.matmul %38, %39, %cst_21 {dimension_numbers = #tpu.dot_dimension_numbers<[1], [1], [0], [0], [0, 0, 1, 0], [], []>} : vector<8x8xbf16>, vector<8x8xbf16>, vector<8x8xf32> -> vector<8x8xf32>
    "tpu.trace_stop"() : () -> ()
    %cst_22 = arith.constant 0.353553385 : f32
    %41 = vector.broadcast %cst_22 : f32 to vector<8x8xf32>
    %42 = arith.mulf %40, %41 : vector<8x8xf32>
    %43 = vector.extract_strided_slice %7 {offsets = [1, 0, 0], sizes = [1, 8, 8], strides = [1, 1, 1]} : vector<4x8x8xbf16> to vector<1x8x8xbf16>
    %44 = vector.shape_cast %43 : vector<1x8x8xbf16> to vector<8x8xbf16>
    %45 = arith.extf %44 : vector<8x8xbf16> to vector<8x8xf32>
    %46 = arith.addf %42, %45 : vector<8x8xf32>
    %47 = vector.broadcast %13 : vector<1x8xf32> to vector<8x8xf32>
    %48 = arith.addf %46, %47 : vector<8x8xf32>
    %cst_23 = arith.constant dense<0xFF800000> : vector<8xf32>
    %49 = vector.multi_reduction <maximumf>, %48, %cst_23 [1] : vector<8x8xf32> to vector<8xf32>
    %50 = vector.shape_cast %49 : vector<8xf32> to vector<8x1xf32>
    %51 = vector.broadcast %50 : vector<8x1xf32> to vector<8x8xf32>
    %52 = arith.subf %48, %51 : vector<8x8xf32>
    %53 = math.exp %52 : vector<8x8xf32>
    %cst_24 = arith.constant dense<0.000000e+00> : vector<8xf32>
    %54 = vector.multi_reduction <add>, %53, %cst_24 [1] : vector<8x8xf32> to vector<8xf32>
    %55 = vector.shape_cast %54 : vector<8xf32> to vector<8x1xf32>
    %56 = tpu.reciprocal %55 {approx = true} : vector<8x1xf32> -> vector<8x1xf32>
    %57 = vector.broadcast %56 : vector<8x1xf32> to vector<8x8xf32>
    %58 = arith.mulf %53, %57 : vector<8x8xf32>
    %59 = arith.truncf %58 : vector<8x8xf32> to vector<8x8xbf16>
    %60 = vector.extract_strided_slice %5 {offsets = [0, 8], sizes = [8, 8], strides = [1, 1]} : vector<8x32xbf16> to vector<8x8xbf16>
    %cst_25 = arith.constant dense<0.000000e+00> : vector<8x8xf32>
    %61 = tpu.matmul %59, %60, %cst_25 {dimension_numbers = #tpu.dot_dimension_numbers<[1], [0], [0], [1], [0, 0, 1, 1], [], []>} : vector<8x8xbf16>, vector<8x8xbf16>, vector<8x8xf32> -> vector<8x8xf32>
    %62 = vector.extract_strided_slice %1 {offsets = [0, 16], sizes = [8, 8], strides = [1, 1]} : vector<8x32xbf16> to vector<8x8xbf16>
    %63 = vector.extract_strided_slice %3 {offsets = [0, 16], sizes = [8, 8], strides = [1, 1]} : vector<8x32xbf16> to vector<8x8xbf16>
    "tpu.trace_start"() <{level = 10 : i32, message = "qd,kd->qk"}> : () -> ()
    %cst_26 = arith.constant dense<0.000000e+00> : vector<8x8xf32>
    %64 = tpu.matmul %62, %63, %cst_26 {dimension_numbers = #tpu.dot_dimension_numbers<[1], [1], [0], [0], [0, 0, 1, 0], [], []>} : vector<8x8xbf16>, vector<8x8xbf16>, vector<8x8xf32> -> vector<8x8xf32>
    "tpu.trace_stop"() : () -> ()
    %cst_27 = arith.constant 0.353553385 : f32
    %65 = vector.broadcast %cst_27 : f32 to vector<8x8xf32>
    %66 = arith.mulf %64, %65 : vector<8x8xf32>
    %67 = vector.extract_strided_slice %7 {offsets = [2, 0, 0], sizes = [1, 8, 8], strides = [1, 1, 1]} : vector<4x8x8xbf16> to vector<1x8x8xbf16>
    %68 = vector.shape_cast %67 : vector<1x8x8xbf16> to vector<8x8xbf16>
    %69 = arith.extf %68 : vector<8x8xbf16> to vector<8x8xf32>
    %70 = arith.addf %66, %69 : vector<8x8xf32>
    %71 = vector.broadcast %13 : vector<1x8xf32> to vector<8x8xf32>
    %72 = arith.addf %70, %71 : vector<8x8xf32>
    %cst_28 = arith.constant dense<0xFF800000> : vector<8xf32>
    %73 = vector.multi_reduction <maximumf>, %72, %cst_28 [1] : vector<8x8xf32> to vector<8xf32>
    %74 = vector.shape_cast %73 : vector<8xf32> to vector<8x1xf32>
    %75 = vector.broadcast %74 : vector<8x1xf32> to vector<8x8xf32>
    %76 = arith.subf %72, %75 : vector<8x8xf32>
    %77 = math.exp %76 : vector<8x8xf32>
    %cst_29 = arith.constant dense<0.000000e+00> : vector<8xf32>
    %78 = vector.multi_reduction <add>, %77, %cst_29 [1] : vector<8x8xf32> to vector<8xf32>
    %79 = vector.shape_cast %78 : vector<8xf32> to vector<8x1xf32>
    %80 = tpu.reciprocal %79 {approx = true} : vector<8x1xf32> -> vector<8x1xf32>
    %81 = vector.broadcast %80 : vector<8x1xf32> to vector<8x8xf32>
    %82 = arith.mulf %77, %81 : vector<8x8xf32>
    %83 = arith.truncf %82 : vector<8x8xf32> to vector<8x8xbf16>
    %84 = vector.extract_strided_slice %5 {offsets = [0, 16], sizes = [8, 8], strides = [1, 1]} : vector<8x32xbf16> to vector<8x8xbf16>
    %cst_30 = arith.constant dense<0.000000e+00> : vector<8x8xf32>
    %85 = tpu.matmul %83, %84, %cst_30 {dimension_numbers = #tpu.dot_dimension_numbers<[1], [0], [0], [1], [0, 0, 1, 1], [], []>} : vector<8x8xbf16>, vector<8x8xbf16>, vector<8x8xf32> -> vector<8x8xf32>
    %86 = vector.extract_strided_slice %1 {offsets = [0, 24], sizes = [8, 8], strides = [1, 1]} : vector<8x32xbf16> to vector<8x8xbf16>
    %87 = vector.extract_strided_slice %3 {offsets = [0, 24], sizes = [8, 8], strides = [1, 1]} : vector<8x32xbf16> to vector<8x8xbf16>
    "tpu.trace_start"() <{level = 10 : i32, message = "qd,kd->qk"}> : () -> ()
    %cst_31 = arith.constant dense<0.000000e+00> : vector<8x8xf32>
    %88 = tpu.matmul %86, %87, %cst_31 {dimension_numbers = #tpu.dot_dimension_numbers<[1], [1], [0], [0], [0, 0, 1, 0], [], []>} : vector<8x8xbf16>, vector<8x8xbf16>, vector<8x8xf32> -> vector<8x8xf32>
    "tpu.trace_stop"() : () -> ()
    %cst_32 = arith.constant 0.353553385 : f32
    %89 = vector.broadcast %cst_32 : f32 to vector<8x8xf32>
    %90 = arith.mulf %88, %89 : vector<8x8xf32>
    %91 = vector.extract_strided_slice %7 {offsets = [3, 0, 0], sizes = [1, 8, 8], strides = [1, 1, 1]} : vector<4x8x8xbf16> to vector<1x8x8xbf16>
    %92 = vector.shape_cast %91 : vector<1x8x8xbf16> to vector<8x8xbf16>
    %93 = arith.extf %92 : vector<8x8xbf16> to vector<8x8xf32>
    %94 = arith.addf %90, %93 : vector<8x8xf32>
    %95 = vector.broadcast %13 : vector<1x8xf32> to vector<8x8xf32>
    %96 = arith.addf %94, %95 : vector<8x8xf32>
    %cst_33 = arith.constant dense<0xFF800000> : vector<8xf32>
    %97 = vector.multi_reduction <maximumf>, %96, %cst_33 [1] : vector<8x8xf32> to vector<8xf32>
    %98 = vector.shape_cast %97 : vector<8xf32> to vector<8x1xf32>
    %99 = vector.broadcast %98 : vector<8x1xf32> to vector<8x8xf32>
    %100 = arith.subf %96, %99 : vector<8x8xf32>
    %101 = math.exp %100 : vector<8x8xf32>
    %cst_34 = arith.constant dense<0.000000e+00> : vector<8xf32>
    %102 = vector.multi_reduction <add>, %101, %cst_34 [1] : vector<8x8xf32> to vector<8xf32>
    %103 = vector.shape_cast %102 : vector<8xf32> to vector<8x1xf32>
    %104 = tpu.reciprocal %103 {approx = true} : vector<8x1xf32> -> vector<8x1xf32>
    %105 = vector.broadcast %104 : vector<8x1xf32> to vector<8x8xf32>
    %106 = arith.mulf %101, %105 : vector<8x8xf32>
    %107 = arith.truncf %106 : vector<8x8xf32> to vector<8x8xbf16>
    %108 = vector.extract_strided_slice %5 {offsets = [0, 24], sizes = [8, 8], strides = [1, 1]} : vector<8x32xbf16> to vector<8x8xbf16>
    %cst_35 = arith.constant dense<0.000000e+00> : vector<8x8xf32>
    %109 = tpu.matmul %107, %108, %cst_35 {dimension_numbers = #tpu.dot_dimension_numbers<[1], [0], [0], [1], [0, 0, 1, 1], [], []>} : vector<8x8xbf16>, vector<8x8xbf16>, vector<8x8xf32> -> vector<8x8xf32>
    %110 = tpu.concatenate %37, %61, %85, %109 in 1 : vector<8x8xf32>, vector<8x8xf32>, vector<8x8xf32>, vector<8x8xf32> -> vector<8x32xf32>
    %c0_36 = arith.constant 0 : index
    %c0_37 = arith.constant 0 : index
    %c0_38 = arith.constant 0 : index
    %111 = vector.load %arg5[%c0_36, %c0_37, %c0_38] : memref<1x8x32xbf16, #tpu.memory_space<vmem>>, vector<1x8x32xbf16>
    %112 = vector.shape_cast %111 : vector<1x8x32xbf16> to vector<8x32xbf16>
    %113 = arith.extf %112 : vector<8x32xbf16> to vector<8x32xf32>
    %114 = arith.negf %113 : vector<8x32xf32>
    %115 = math.exp %114 : vector<8x32xf32>
    %cst_39 = arith.constant 1.000000e+00 : f32
    %116 = vector.broadcast %cst_39 : f32 to vector<8x32xf32>
    %117 = arith.addf %116, %115 : vector<8x32xf32>
    %118 = arith.divf %116, %117 : vector<8x32xf32>
    %119 = arith.mulf %110, %118 : vector<8x32xf32>
    %120 = arith.truncf %119 : vector<8x32xf32> to vector<8x32xbf16>
    %c0_40 = arith.constant 0 : index
    %c0_41 = arith.constant 0 : index
    %c0_42 = arith.constant 0 : index
    %121 = vector.load %arg8[%c0_40, %c0_41, %c0_42] : memref<1x8x32xbf16, #tpu.memory_space<vmem>>, vector<1x8x32xbf16>
    %122 = vector.shape_cast %121 : vector<1x8x32xbf16> to vector<8x32xbf16>
    %123 = vector.shape_cast %120 : vector<8x32xbf16> to vector<1x8x32xbf16>
    tpu.vector_store %arg8[%c0_40, %c0_41, %c0_42], %123 {strides = array<i32>} : memref<1x8x32xbf16, #tpu.memory_space<vmem>>, vector<1x8x32xbf16>,
    return
  }
  func.func @transform_0(%arg0: i32, %arg1: i32) -> (i32, i32, i32) {
    %c0_i32 = arith.constant 0 : i32
    %c0_i32_0 = arith.constant 0 : i32
    return %arg0, %arg1, %c0_i32 : i32, i32, i32
  }
  func.func @transform_1(%arg0: i32, %arg1: i32) -> (i32, i32, i32) {
    %c0_i32 = arith.constant 0 : i32
    %c0_i32_0 = arith.constant 0 : i32
    %c0_i32_1 = arith.constant 0 : i32
    return %arg0, %c0_i32, %c0_i32_0 : i32, i32, i32
  }
  func.func @transform_2(%arg0: i32, %arg1: i32) -> (i32, i32, i32) {
    %c0_i32 = arith.constant 0 : i32
    %c0_i32_0 = arith.constant 0 : i32
    %c0_i32_1 = arith.constant 0 : i32
    return %arg0, %c0_i32, %c0_i32_0 : i32, i32, i32
  }
  func.func @transform_3(%arg0: i32, %arg1: i32) -> (i32, i32, i32) {
    %c0_i32 = arith.constant 0 : i32
    %c0_i32_0 = arith.constant 0 : i32
    return %arg0, %arg1, %c0_i32 : i32, i32, i32
  }
  func.func @transform_4(%arg0: i32, %arg1: i32) -> (i32, i32, i32, i32) {
    %c0_i32 = arith.constant 0 : i32
    %c0_i32_0 = arith.constant 0 : i32
    %c0_i32_1 = arith.constant 0 : i32
    return %arg0, %c0_i32, %arg1, %c0_i32_0 : i32, i32, i32, i32
  }
  func.func @transform_5(%arg0: i32, %arg1: i32) -> (i32, i32, i32) {
    %c0_i32 = arith.constant 0 : i32
    %c0_i32_0 = arith.constant 0 : i32
    %c0_i32_1 = arith.constant 0 : i32
    return %arg0, %c0_i32, %c0_i32_0 : i32, i32, i32
  }
  func.func @transform_6(%arg0: i32, %arg1: i32) -> (i32, i32, i32) {
    %c0_i32 = arith.constant 0 : i32
    %c0_i32_0 = arith.constant 0 : i32
    return %arg0, %arg1, %c0_i32 : i32, i32, i32
  }
}

module attributes {stable_mosaic.version = 11 : i64} {
  func.func @_linear_res_kernel(%arg0: i32, %arg1: memref<16x32xbf16, #tpu.memory_space<vmem>>, %arg2: memref<16x32xf32, #tpu.memory_space<vmem>>, %arg3: memref<32x32xbf16, #tpu.memory_space<vmem>>, %arg4: memref<1x32xf32, #tpu.memory_space<vmem>>, %arg5: memref<16x32xf32, #tpu.memory_space<vmem>>) attributes {dimension_semantics = [#tpu.dimension_semantics<parallel>], iteration_bounds = array<i64: 1>, scalar_prefetch = 0 : i64, scratch_operands = 0 : i64, tpu.core_type = #tpu.core_type<tc>, window_params = [{transform_indices = @transform_0, window_bounds = array<i64: 16, 32>}, {transform_indices = @transform_1, window_bounds = array<i64: 16, 32>}, {pipeline_mode = #tpu.pipeline_mode<synchronous>, transform_indices = @transform_2, window_bounds = array<i64: 32, 32>}, {pipeline_mode = #tpu.pipeline_mode<synchronous>, transform_indices = @transform_3, window_bounds = array<i64: 1, 32>}, {transform_indices = @transform_4, window_bounds = array<i64: 16, 32>}]} {
    %c0 = arith.constant 0 : index
    %c0_0 = arith.constant 0 : index
    %0 = vector.load %arg2[%c0, %c0_0] : memref<16x32xf32, #tpu.memory_space<vmem>>, vector<16x32xf32>
    %c0_1 = arith.constant 0 : index
    %c0_2 = arith.constant 0 : index
    %1 = vector.load %arg1[%c0_1, %c0_2] : memref<16x32xbf16, #tpu.memory_space<vmem>>, vector<16x32xbf16>
    %c0_3 = arith.constant 0 : index
    %c0_4 = arith.constant 0 : index
    %2 = vector.load %arg3[%c0_3, %c0_4] : memref<32x32xbf16, #tpu.memory_space<vmem>>, vector<32x32xbf16>
    %cst = arith.constant dense<0.000000e+00> : vector<16x32xf32>
    %3 = tpu.matmul %1, %2, %cst {dimension_numbers = #tpu.dot_dimension_numbers<[1], [0], [0], [1], [0, 0, 1, 1], [], []>} : vector<16x32xbf16>, vector<32x32xbf16>, vector<16x32xf32> -> vector<16x32xf32>
    %4 = arith.addf %0, %3 : vector<16x32xf32>
    %c0_5 = arith.constant 0 : index
    %c0_6 = arith.constant 0 : index
    %5 = vector.load %arg4[%c0_5, %c0_6] : memref<1x32xf32, #tpu.memory_space<vmem>>, vector<1x32xf32>
    %6 = vector.broadcast %5 : vector<1x32xf32> to vector<16x32xf32>
    %7 = arith.addf %4, %6 : vector<16x32xf32>
    %c0_7 = arith.constant 0 : index
    %c0_8 = arith.constant 0 : index
    %8 = vector.load %arg5[%c0_7, %c0_8] : memref<16x32xf32, #tpu.memory_space<vmem>>, vector<16x32xf32>
    tpu.vector_store %arg5[%c0_7, %c0_8], %7 {strides = array<i32>} : memref<16x32xf32, #tpu.memory_space<vmem>>, vector<16x32xf32>,
    return
  }
  func.func @transform_0(%arg0: i32) -> (i32, i32) {
    %c0_i32 = arith.constant 0 : i32
    %c0_i32_0 = arith.constant 0 : i32
    return %arg0, %c0_i32 : i32, i32
  }
  func.func @transform_1(%arg0: i32) -> (i32, i32) {
    %c0_i32 = arith.constant 0 : i32
    %c0_i32_0 = arith.constant 0 : i32
    return %arg0, %c0_i32 : i32, i32
  }
  func.func @transform_2(%arg0: i32) -> (i32, i32) {
    %c0_i32 = arith.constant 0 : i32
    %c0_i32_0 = arith.constant 0 : i32
    %c0_i32_1 = arith.constant 0 : i32
    return %c0_i32, %c0_i32_0 : i32, i32
  }
  func.func @transform_3(%arg0: i32) -> (i32, i32) {
    %c0_i32 = arith.constant 0 : i32
    %c0_i32_0 = arith.constant 0 : i32
    %c0_i32_1 = arith.constant 0 : i32
    return %c0_i32, %c0_i32_0 : i32, i32
  }
  func.func @transform_4(%arg0: i32) -> (i32, i32) {
    %c0_i32 = arith.constant 0 : i32
    %c0_i32_0 = arith.constant 0 : i32
    return %arg0, %c0_i32 : i32, i32
  }
}

</mosaic_0001>

<bundles_post_ra>
// kernel: pairformer_block.19
= control target key start
LH: loop header
LB: loop body
LE: loop exit
PB: predicated region body
PF: predicated region fallthrough
CT: control target
= control target key end

     0   :  { %s887_s9 = smov 0   ;;  %s889_s10 = smov 0   ;;  %s990_s0 = inlined_call_operand.vmem [shape: bf16[32,8,8], index: 0, kind: input, shape index: {}]   ;;  %s991_s1 = inlined_call_operand.vmem [shape: bf16[32,8,8], index: 1, kind: input, shape index: {}]   ;;  %s992_s2 = inlined_call_operand.vmem [shape: bf16[32,8,8], index: 2, kind: output, shape index: {}]  }
   0x1   :  { %s891_s11 = smov 0  }
   0x2 LB: > { %s31_s12 = sadd.s32 1, %s864_s10  ;;  %p739_p0 = scmp.ge.s32.totalorder %s868_s11, 1  ;;  %s868_s11 = sphi %s891_s11, %s12_s11   ;;  %s864_s10 = sphi %s889_s10, %s994_s10   ;;  %s860_s9 = sphi %s887_s9, %s993_s9  }
   0x3   : > { %p33_p1 = scmp.ge.s32.totalorder %s31_s12, 4  ;;  %p157_p2 = scmp.lt.s32.totalorder %s868_s11, 5 }
   0x5   : > { %s996_s12 = smov (%p33_p1, %s31_s12), 0  ;;  %p158_p3 = pnand %p739_p0, %p157_p2 }
   0x6   : > { %s740_s13 = sshll.u32 (!%p158_p3), %s860_s9, 3  ;;  %v870_v0 = vmov (!%p158_p3), 0.0   ;;  %vm871_vm0 = vmmov (!%p158_p3), 0   ;;  %vm243_vm1 = vcmask (!%p158_p3), 64512   ;;  %vm620_vm2 = vcmask (!%p158_p3), 60416  }
   0x7   : > { %161 = sbr.rel (%p158_p3) target bundleno = 265 (0x109), region = 28  ;;  %772 = vmatprep.subr.bf16.mxu0 (!%p158_p3), %v870_v0  ;;  %778 = vmatprep.subr.bf16.mxu1 (!%p158_p3), %v870_v0  ;;  %p197_p4 = scmp.lt.s32.totalorder (!%p158_p3), %s740_s13, 31 }
   0x8   : > { %774 = vmatprep.mubr.msk.bf16.mxu0 (!%p158_p3), %vm871_vm0, %v870_v0  ;;  %780 = vmatprep.mubr.msk.bf16.mxu1 (!%p158_p3), %vm871_vm0, %v870_v0 }
   0xe   : > { %s998_s13 = smov (!%p197_p4, %s740_s13), 31 }
   0xf   : > { %s907_s14 = sshll.u32 %s998_s13, 2 }
  0x10   : > { %s913_s17 = scalar_lea.vmem %s991_s1, %s907_s14  ;;  %s923_s20 = scalar_lea.vmem %s990_s0, %s907_s14 }
  0x11   : > { %v235_v1 = vld [vmem:[%s913_s17] sm:$0xf]  ;;  %v236_v2 = vld [vmem:[%s913_s17 + $0x4] sm:$0xf]  ;;  %v237_v5 = vld [vmem:[%s913_s17 + $0x8] sm:$0xf]  ;;  %s963_s23 = scalar_lea.vmem %s992_s2, %s907_s14 }
  0x12   : > { %v248_v3 = vsel %vm243_vm1, %v235_v1, 0  ;;  %v294_v4 = vsel %vm243_vm1, %v236_v2, 0  ;;  %v238_v6 = vld [vmem:[%s913_s17 + $0xc] sm:$0xf]  ;;  %v227_v7 = vld [vmem:[%s923_s20] sm:$0xf] }
  0x13   : > { %773 = vmatpush3.bf16.xpose.msra.mxu0 %v248_v3  ;;  %779 = vmatpush3.bf16.xpose.msra.mxu1 %v294_v4  ;;  %v228_v8 = vld [vmem:[%s923_s20 + $0x4] sm:$0xf]  ;;  %v340_v9 = vsel %vm243_vm1, %v237_v5, 0  ;;  %v386_v10 = vsel %vm243_vm1, %v238_v6, 0  ;;  %v239_v11 = vld [vmem:[%s913_s17 + $0x10] sm:$0xf] }
  0x14   : > { %784 = vmatprep.subr.bf16.mxu0 %v870_v0  ;;  %790 = vmatprep.subr.bf16.mxu1 %v870_v0  ;;  %v240_v12 = vld [vmem:[%s913_s17 + $0x14] sm:$0xf]  ;;  %v229_v13 = vld [vmem:[%s923_s20 + $0x8] sm:$0xf]  ;;  %v230_v14 = vld [vmem:[%s923_s20 + $0xc] sm:$0xf] }
  0x15   : > { %v432_v15 = vsel %vm243_vm1, %v239_v11, 0  ;;  %v478_v16 = vsel %vm243_vm1, %v240_v12, 0  ;;  %v241_v17 = vld [vmem:[%s913_s17 + $0x18] sm:$0xf]  ;;  %v242_v18 = vld [vmem:[%s913_s17 + $0x1c] sm:$0xf] }
  0x16   : > { %v231_v19 = vld [vmem:[%s923_s20 + $0x10] sm:$0xf]  ;;  %v232_v20 = vld [vmem:[%s923_s20 + $0x14] sm:$0xf]  ;;  %v524_v21 = vsel %vm243_vm1, %v241_v17, 0  ;;  %v570_v22 = vsel %vm243_vm1, %v242_v18, 0 }
  0x17   : > { %v233_v23 = vld [vmem:[%s923_s20 + $0x18] sm:$0xf]  ;;  %v234_v24 = vld [vmem:[%s923_s20 + $0x1c] sm:$0xf] }
  0x1a   : > { %775 = vmatmul.mubr.msk.bf16.vlgmr.msra.gmra.mrb[0].mxu0 %vm243_vm1, %v227_v7  ;;  %781 = vmatmul.mubr.msk.bf16.vlgmr.msra.gmra.mrb[0].mxu1 %vm243_vm1, %v228_v8 }
  0x1b   : > { %785 = vmatpush3.bf16.xpose.msra.mxu0 %v340_v9  ;;  %791 = vmatpush3.bf16.xpose.msra.mxu1 %v386_v10 }
  0x1c   : > { %786 = vmatprep.mubr.msk.bf16.mxu0 %vm871_vm0, %v870_v0  ;;  %792 = vmatprep.mubr.msk.bf16.mxu1 %vm871_vm0, %v870_v0 }
  0x1d   : > { %796 = vmatprep.subr.bf16.mxu0 %v870_v0  ;;  %802 = vmatprep.subr.bf16.mxu1 %v870_v0 }
  0x22   : > { %787 = vmatmul.mubr.msk.bf16.vlgmr.msra.gmra.mrb[4].mxu0 %vm243_vm1, %v229_v13  ;;  %793 = vmatmul.mubr.msk.bf16.vlgmr.msra.gmra.mrb[4].mxu1 %vm243_vm1, %v230_v14 }
  0x23   : > { %797 = vmatpush3.bf16.xpose.msra.mxu0 %v432_v15  ;;  %803 = vmatpush3.bf16.xpose.msra.mxu1 %v478_v16 }
  0x24   : > { %798 = vmatprep.mubr.msk.bf16.mxu0 %vm871_vm0, %v870_v0  ;;  %804 = vmatprep.mubr.msk.bf16.mxu1 %vm871_vm0, %v870_v0 }
  0x25   : > { %808 = vmatprep.subr.bf16.mxu0 %v870_v0  ;;  %814 = vmatprep.subr.bf16.mxu1 %v870_v0 }
  0x2a   : > { %799 = vmatmul.mubr.msk.bf16.vlgmr.msra.gmra.mrb[8].mxu0 %vm243_vm1, %v231_v19  ;;  %805 = vmatmul.mubr.msk.bf16.vlgmr.msra.gmra.mrb[8].mxu1 %vm243_vm1, %v232_v20 }
  0x2b   : > { %809 = vmatpush3.bf16.xpose.msra.mxu0 %v524_v21  ;;  %815 = vmatpush3.bf16.xpose.msra.mxu1 %v570_v22 }
  0x2c   : > { %810 = vmatprep.mubr.msk.bf16.mxu0 %vm871_vm0, %v870_v0  ;;  %816 = vmatprep.mubr.msk.bf16.mxu1 %vm871_vm0, %v870_v0 }
  0x32   : > { %811 = vmatmul.mubr.msk.bf16.vlgmr.msra.gmra.mrb[12].mxu0 %vm243_vm1, %v233_v23  ;;  %817 = vmatmul.mubr.msk.bf16.vlgmr.msra.gmra.mrb[12].mxu1 %vm243_vm1, %v234_v24 }
  0xed   : > { %v284_v25 = vpop.f32.mrb[0].mxu0  ;;  %v330_v26 = vpop.f32.mrb[0].mxu1 }
  0xee   : > { %v612_v27 = vpack.c.bf16 %v284_v25, %v284_v25  ;;  %v613_v28 = vpack.c.bf16 %v330_v26, %v330_v26  ;;  %v776_v29 = vpop.f32.mrb[1].mxu0  ;;  %v782_v30 = vpop.f32.mrb[1].mxu1 }
  0xef   : > { %v287_v31 = vpop.f32.mrb[2].mxu0  ;;  %v333_v32 = vpop.f32.mrb[2].mxu1 }
  0xf0   : > { %621 = vst.msk [vmem:[%s963_s23] sm:$0xf] %vm620_vm2, %v612_v27  ;;  %622 = vst.msk [vmem:[%s963_s23 + $0x4] sm:$0xf] %vm620_vm2, %v613_v28  ;;  %v777_v33 = vpop.f32.mrb[3].mxu0  ;;  %v783_v34 = vpop.f32.mrb[3].mxu1 }
  0xf5   : > { %v376_v35 = vpop.f32.mrb[4].mxu0  ;;  %v422_v36 = vpop.f32.mrb[4].mxu1 }
  0xf6   : > { %v614_v37 = vpack.c.bf16 %v376_v35, %v376_v35  ;;  %v615_v38 = vpack.c.bf16 %v422_v36, %v422_v36  ;;  %v788_v39 = vpop.f32.mrb[5].mxu0  ;;  %v794_v40 = vpop.f32.mrb[5].mxu1 }
  0xf7   : > { %v379_v41 = vpop.f32.mrb[6].mxu0  ;;  %v425_v42 = vpop.f32.mrb[6].mxu1 }
  0xf8   : > { %623 = vst.msk [vmem:[%s963_s23 + $0x8] sm:$0xf] %vm620_vm2, %v614_v37  ;;  %624 = vst.msk [vmem:[%s963_s23 + $0xc] sm:$0xf] %vm620_vm2, %v615_v38  ;;  %v789_v43 = vpop.f32.mrb[7].mxu0  ;;  %v795_v44 = vpop.f32.mrb[7].mxu1 }
  0xfd   : > { %v468_v45 = vpop.f32.mrb[8].mxu0  ;;  %v514_v46 = vpop.f32.mrb[8].mxu1 }
  0xfe   : > { %v616_v47 = vpack.c.bf16 %v468_v45, %v468_v45  ;;  %v617_v48 = vpack.c.bf16 %v514_v46, %v514_v46  ;;  %v800_v49 = vpop.f32.mrb[9].mxu0  ;;  %v806_v50 = vpop.f32.mrb[9].mxu1 }
  0xff   : > { %v471_v51 = vpop.f32.mrb[10].mxu0  ;;  %v517_v52 = vpop.f32.mrb[10].mxu1 }
 0x100   : > { %625 = vst.msk [vmem:[%s963_s23 + $0x10] sm:$0xf] %vm620_vm2, %v616_v47  ;;  %626 = vst.msk [vmem:[%s963_s23 + $0x14] sm:$0xf] %vm620_vm2, %v617_v48  ;;  %v801_v53 = vpop.f32.mrb[11].mxu0  ;;  %v807_v54 = vpop.f32.mrb[11].mxu1 }
 0x105   : > { %v560_v55 = vpop.f32.mrb[12].mxu0  ;;  %v606_v56 = vpop.f32.mrb[12].mxu1 }
 0x106   : > { %v618_v57 = vpack.c.bf16 %v560_v55, %v560_v55  ;;  %v619_v58 = vpack.c.bf16 %v606_v56, %v606_v56  ;;  %v812_v59 = vpop.f32.mrb[13].mxu0  ;;  %v818_v60 = vpop.f32.mrb[13].mxu1 }
 0x107   : > { %v563_v61 = vpop.f32.mrb[14].mxu0  ;;  %v609_v62 = vpop.f32.mrb[14].mxu1 }
 0x108   : > { %627 = vst.msk [vmem:[%s963_s23 + $0x18] sm:$0xf] %vm620_vm2, %v618_v57  ;;  %628 = vst.msk [vmem:[%s963_s23 + $0x1c] sm:$0xf] %vm620_vm2, %v619_v58  ;;  %v813_v63 = vpop.f32.mrb[15].mxu0  ;;  %v819_v0 = vpop.f32.mrb[15].mxu1 }
 0x109 PF: > { %s12_s11 = sadd.s32 1, %s868_s11   ;;  %s993_s9 = smov %s864_s10 }
 0x10a   : > { %p9_p5 = scmp.ge.s32.totalorder %s12_s11, 6   ;;  %s994_s10 = smov %s996_s12 }
 0x10c   :  { %11 = sbr.rel (!%p9_p5) target bundleno = 2 (0x2), region = 61 }

// kernel: pairformer_block.20
= control target key start
LH: loop header
LB: loop body
LE: loop exit
PB: predicated region body
PF: predicated region fallthrough
CT: control target
= control target key end

     0   :  { %s890_s24 = smov 0   ;;  %s892_s25 = smov 0   ;;  %s984_s0 = inlined_call_operand.vmem [shape: bf16[2,16,64], index: 0, kind: input, shape index: {}]   ;;  %s985_s1 = inlined_call_operand.vmem [shape: f32[16,1], index: 1, kind: input, shape index: {}]   ;;  %s986_s2 = inlined_call_operand.vmem [shape: f32[16,1], index: 2, kind: input, shape index: {}]   ;;  %s987_s3 = inlined_call_operand.vmem [shape: bf16[2,64,32], index: 3, kind: input, shape index: {}]   ;;  %s988_s4 = inlined_call_operand.vmem [shape: f32[2,64,32], index: 4, kind: input, shape index: {}]   ;;  %s989_s5 = inlined_call_operand.vmem [shape: bf16[16,32], index: 5, kind: input, shape index: {}]   ;;  %s990_s6 = inlined_call_operand.vmem [shape: f32[1,32], index: 6, kind: input, shape index: {}]   ;;  %s991_s7 = inlined_call_operand.vmem [shape: f32[2,64,32], index: 7, kind: output, shape index: {}]  }
   0x1   :  { %s894_s26 = smov 0  }
   0x2 LB: > { %s29_s27 = sadd.s32 1, %s843_s25  ;;  %p734_p0 = scmp.ge.s32.totalorder %s847_s26, 1  ;;  %s847_s26 = sphi %s894_s26, %s17_s26   ;;  %s843_s25 = sphi %s892_s25, %s993_s25   ;;  %s839_s24 = sphi %s890_s24, %s992_s24  }
   0x3   : > { %p31_p1 = scmp.ge.s32.totalorder %s29_s27, 2  ;;  %p290_p2 = scmp.lt.s32.totalorder %s847_s26, 3 }
   0x5   : > { %s995_s27 = smov (%p31_p1, %s29_s27), 0  ;;  %p291_p3 = pnand %p734_p0, %p290_p2 }
   0x6   : > { %v434_v0 = vld [vmem:[%s986_s2] sm:$0xff] (!%p291_p3)  ;;  %v849_v2 = vmov (!%p291_p3), 0   ;;  %v435_v3 = vld [vmem:[%s986_s2 + $0x8] sm:$0xff] (!%p291_p3)  ;;  %p347_p4 = scmp.lt.s32.totalorder (!%p291_p3), %s839_s24, 1  ;;  %vm390_vm0 = vcmask (!%p291_p3), 523264   ;;  %vm480_vm1 = vcmask (!%p291_p3), 130048  }
   0x7   : > { %294 = sbr.rel (%p291_p3) target bundleno = 483 (0x1e3), region = 48  ;;  %v420_v1 = vld [vmem:[%s985_s1] sm:$0xff] (!%p291_p3)  ;;  %821 = vset.pattern.permute.xlu1 (!%p291_p3), %v849_v2  ;;  %820 = vset.pattern.permute.xlu0 (!%p291_p3), %v849_v2  ;;  %v421_v4 = vld [vmem:[%s985_s1 + $0x8] sm:$0xff] (!%p291_p3)  ;;  %vm598_vm2 = vcmask (!%p291_p3), 261120  }
   0x8   : > { %438 = vperm.xlu1 (!%p291_p3), %821, %v434_v0   ;;  %424 = vperm.xlu0 (!%p291_p3), %820, %v420_v1   ;;  %v822_v33 = vld [vmem:[%s989_s5] sm:$0xff] (!%p291_p3)  }
   0x9   : > { %783 = vmatprep.subr.bf16.mxu0 (!%p291_p3), %v822_v33  ;;  %793 = vmatprep.subr.bf16.mxu1 (!%p291_p3), %v822_v33  ;;  %v743_v52 = vld [vmem:[%s990_s6] ss:$0 sm:$0xff] (!%p291_p3) }
   0xa   : > { %784 = vmatpush3.bf16.msra.mxu0 (!%p291_p3), %v822_v33  ;;  %794 = vmatpush3.bf16.msra.mxu1 (!%p291_p3), %v822_v33 }
   0xc   : > { %443 = vperm.xlu1 (!%p291_p3), %821, %v435_v3   ;;  %429 = vperm.xlu0 (!%p291_p3), %820, %v421_v4  }
   0xe   : > { %s997_s24 = smov (!%p347_p4, %s839_s24), 1 }
   0xf   : > { %s751_s13 = sshll.u32 %s997_s24, 3  ;;  %s752_s19 = sshll.u32 %s997_s24, 5 }
  0x10   : > { %s354_s16 = scalar_lea.vmem %s984_s0, %s751_s13  ;;  %s363_s22 = scalar_lea.vmem %s987_s3, %s752_s19 }
  0x11   : > { %v756_v5 = vld [vmem:[%s354_s16] sm:$0xff]   ;;  %s753_s23 = sshll.u32 %s997_s24, 6  ;;  %v775_v50 = vld [vmem:[%s363_s22 + $0x8] sm:$0xff]  }
  0x12   : > { %v757_v6 = vunpack.c.l.bf16 %v756_v5  ;;  %v758_v7 = vunpack.c.h.bf16 %v756_v5  ;;  %v760_v51 = vld [vmem:[%s363_s22] sm:$0xff]   ;;  %s944_s9 = scalar_lea.vmem %s988_s4, %s753_s23  ;;  %v765_v53 = vunpack.c.l.bf16 %v775_v50  ;;  %v766_v58 = vunpack.c.h.bf16 %v775_v50  ;;  %s951_s11 = scalar_lea.vmem %s991_s7, %s753_s23 }
  0x13   : > { %v761_v55 = vunpack.c.l.bf16 %v760_v51  ;;  %v560_v59 = vld [vmem:[%s944_s9 + $0x10] sm:$0xff]  ;;  %v762_v62 = vunpack.c.h.bf16 %v760_v51  ;;  %v558_v0 = vld [vmem:[%s944_s9] sm:$0xff]  ;;  %v561_v4 = vld [vmem:[%s944_s9 + $0x18] sm:$0xff] }
  0x14   : > { %v391_v8 = vsel %vm390_vm0, %v757_v6, 0.0  ;;  %v392_v9 = vsel %vm390_vm0, %v758_v7, 0.0 }
  0x15   : > { %v393_v10 = vadd.f32 %v392_v9, %v391_v8  ;;  %v559_v9 = vld [vmem:[%s944_s9 + $0x8] sm:$0xff] }
  0x17   : > { %v394_v11 = vrot.slane %v393_v10, 4 }
  0x19   : > { %v395_v12 = vadd.f32 %v394_v11, %v393_v10  ;;  %v776_v10 = vld [vmem:[%s363_s22 + $0x10] sm:$0xff]  }
  0x1b   : > { %v396_v13 = vrot.slane %v395_v12, 2 }
  0x1d   : > { %v397_v14 = vadd.f32 %v396_v13, %v395_v12 }
  0x1f   : > { %v398_v15 = vrot.slane %v397_v14, 1 }
  0x21   : > { %v399_v16 = vadd.f32 %v398_v15, %v397_v14 }
  0x23   : > { %v401_v17 = vmul.f32 0.0625, %v399_v16 }
  0x25   : > { %v402_v18 = vsub.f32 %v757_v6, %v401_v17  ;;  %v403_v19 = vsub.f32 %v758_v7, %v401_v17  ;;  %v777_v6 = vld [vmem:[%s363_s22 + $0x18] sm:$0xff]   ;;  %v769_v17 = vunpack.c.l.bf16 %v776_v10 }
  0x26   : > { %v773_v14 = vunpack.c.l.bf16 %v777_v6 }
  0x27   : > { %v404_v20 = vmul.f32 %v402_v18, %v402_v18  ;;  %v405_v21 = vmul.f32 %v403_v19, %v403_v19 }
  0x29   : > { %v406_v22 = vsel %vm390_vm0, %v404_v20, 0.0  ;;  %v407_v23 = vsel %vm390_vm0, %v405_v21, 0.0  ;;  %v774_v20 = vunpack.c.h.bf16 %v777_v6  ;;  %v564_v21 = vld [vmem:[%s944_s9 + $0x30] sm:$0xff] }
  0x2a   : > { %v408_v24 = vadd.f32 %v407_v23, %v406_v22 }
  0x2c   : > { %v409_v25 = vrot.slane %v408_v24, 4 }
  0x2e   : > { %v410_v26 = vadd.f32 %v409_v25, %v408_v24  ;;  %v770_v24 = vunpack.c.h.bf16 %v776_v10 }
  0x30   : > { %v411_v27 = vrot.slane %v410_v26, 2 }
  0x32   : > { %v412_v28 = vadd.f32 %v411_v27, %v410_v26  ;;  %v562_v26 = vld [vmem:[%s944_s9 + $0x20] sm:$0xff] }
  0x34   : > { %v413_v29 = vrot.slane %v412_v28, 1 }
  0x36   : > { %v414_v30 = vadd.f32 %v413_v29, %v412_v28 }
  0x38   : > { %v415_v31 = vmul.f32 0.0625, %v414_v30  ;;  %v565_v30 = vld [vmem:[%s944_s9 + $0x38] sm:$0xff] }
  0x3a   : > { %v416_v32 = vadd.f32 1e-05, %v415_v31 }
  0x3c   : > { %823 = vrsqrt.f32 %v416_v32 }
  0x46   : > { %v824_v34 = vpop.eup %823 }
  0x47   : > { %v418_v35 = vmul.f32 %v824_v34, %v402_v18  ;;  %v419_v38 = vmul.f32 %v824_v34, %v403_v19  ;;  %v563_v34 = vld [vmem:[%s944_s9 + $0x28] sm:$0xff] }
  0x87   : > { %v439_v36 = vpop.permute.xlu1 %438  ;;  %v425_v37 = vpop.permute.xlu0 %424 }
  0x88   : > { %v432_v39 = vmul.f32 %v425_v37, %v418_v35 }
  0x8a   : > { %v446_v43 = vadd.f32 %v439_v36, %v432_v39 }
  0x8b   : > { %v430_v40 = vpop.permute.xlu0 %429  ;;  %v444_v42 = vpop.permute.xlu1 %443 }
  0x8c   : > { %v433_v41 = vmul.f32 %v430_v40, %v419_v38 }
  0x8e   : > { %v447_v44 = vadd.f32 %v444_v42, %v433_v41 }
  0x90   : > { %v448_v45 = vpack.c.bf16 %v447_v44, %v446_v43 }
  0x92   : > { %458 = vxpose.xlu0.c.b16.start.end [1/1] (short) (narrow) %v448_v45, 64 }
  0xf8   : > { %v466_v46 = vpop.trf.xlu0 }
  0xf9   : > { %785 = vmatprep.mubr.msk.bf16.mxu0 %vm480_vm1, %v466_v46 }
  0xfc   : > { %v467_v47 = vpop.trf.xlu0 }
  0xfd   : > { %786 = vmatmul.mubr.msk.bf16.vlgmr.msra.gmra.mrb[0].mxu0 %vm480_vm1, %v467_v47 }
 0x100   : > { %v468_v48 = vpop.trf.xlu0 }
 0x101   : > { %789 = vmatprep.mubr.msk.bf16.mxu1 %vm480_vm1, %v468_v48 }
 0x104   : > { %v469_v49 = vpop.trf.xlu0 }
 0x105   : > { %790 = vmatmul.mubr.msk.bf16.vlgmr.msra.gmra.mrb[0].mxu1 %vm480_vm1, %v469_v49 }
 0x1d0   : > { %v787_v54 = vpop.f32.mrb[0].mxu0 }
 0x1d1   : > { %v536_v56 = vadd.f32 %v787_v54, %v743_v52  ;;  %v527_v57 = vpop.f32.mrb[1].mxu0 }
 0x1d2   : > { %v528_v60 = vadd.f32 %v743_v52, %v527_v57  ;;  %v788_v61 = vpop.f32.mrb[2].mxu0 }
 0x1d3   : > { %v584_v63 = vmul.f32 %v765_v53, %v536_v56  ;;  %v539_v1 = vadd.f32 %v788_v61, %v743_v52  ;;  %v530_v2 = vpop.f32.mrb[3].mxu0 }
 0x1d4   : > { %v582_v3 = vmul.f32 %v761_v55, %v528_v60  ;;  %v531_v5 = vadd.f32 %v743_v52, %v530_v2 }
 0x1d5   : > { %v592_v7 = vadd.f32 %v584_v63, %v560_v59  ;;  %v585_v8 = vmul.f32 %v766_v58, %v539_v1 }
 0x1d6   : > { %v590_v11 = vadd.f32 %v582_v3, %v558_v0  ;;  %v583_v12 = vmul.f32 %v762_v62, %v531_v5 }
 0x1d7   : > { %601 = vst.msk [vmem:[%s951_s11 + $0x10] sm:$0xff] %vm598_vm2, %v592_v7  ;;  %v593_v13 = vadd.f32 %v585_v8, %v561_v4 }
 0x1d8   : > { %599 = vst.msk [vmem:[%s951_s11] sm:$0xff] %vm598_vm2, %v590_v11  ;;  %v591_v15 = vadd.f32 %v583_v12, %v559_v9  ;;  %v791_v16 = vpop.f32.mrb[0].mxu1 }
 0x1d9   : > { %602 = vst.msk [vmem:[%s951_s11 + $0x18] sm:$0xff] %vm598_vm2, %v593_v13  ;;  %v552_v18 = vadd.f32 %v791_v16, %v743_v52  ;;  %v543_v19 = vpop.f32.mrb[1].mxu1 }
 0x1da   : > { %600 = vst.msk [vmem:[%s951_s11 + $0x8] sm:$0xff] %vm598_vm2, %v591_v15  ;;  %v544_v22 = vadd.f32 %v743_v52, %v543_v19  ;;  %v792_v23 = vpop.f32.mrb[2].mxu1 }
 0x1db   : > { %v588_v25 = vmul.f32 %v773_v14, %v552_v18  ;;  %v555_v27 = vadd.f32 %v792_v23, %v743_v52  ;;  %v546_v28 = vpop.f32.mrb[3].mxu1 }
 0x1dc   : > { %v586_v29 = vmul.f32 %v769_v17, %v544_v22  ;;  %v547_v31 = vadd.f32 %v743_v52, %v546_v28 }
 0x1dd   : > { %v596_v32 = vadd.f32 %v588_v25, %v564_v21  ;;  %v589_v33 = vmul.f32 %v774_v20, %v555_v27 }
 0x1de   : > { %v594_v35 = vadd.f32 %v586_v29, %v562_v26  ;;  %v587_v36 = vmul.f32 %v770_v24, %v547_v31 }
 0x1df   : > { %605 = vst.msk [vmem:[%s951_s11 + $0x30] sm:$0xff] %vm598_vm2, %v596_v32  ;;  %v597_v37 = vadd.f32 %v589_v33, %v565_v30 }
 0x1e0   : > { %603 = vst.msk [vmem:[%s951_s11 + $0x20] sm:$0xff] %vm598_vm2, %v594_v35  ;;  %v595_v38 = vadd.f32 %v587_v36, %v563_v34 }
 0x1e1   : > { %606 = vst.msk [vmem:[%s951_s11 + $0x38] sm:$0xff] %vm598_vm2, %v597_v37 }
 0x1e2   : > { %604 = vst.msk [vmem:[%s951_s11 + $0x28] sm:$0xff] %vm598_vm2, %v595_v38 }
 0x1e3 PF: > { %s17_s26 = sadd.s32 1, %s847_s26   ;;  %s992_s24 = smov %s843_s25 }
 0x1e4   : > { %p14_p5 = scmp.ge.s32.totalorder %s17_s26, 4   ;;  %s993_s25 = smov %s995_s27 }
 0x1e6   :  { %16 = sbr.rel (!%p14_p5) target bundleno = 2 (0x2), region = 84 }

// kernel: pairformer_block.18
= control target key start
LH: loop header
LB: loop body
LE: loop exit
PB: predicated region body
PF: predicated region fallthrough
CT: control target
= control target key end

     0   :  { %s1505_s13 = smov 0   ;;  %s1507_s14 = smov 0   ;;  %s1701_s0 = inlined_call_operand.vmem [shape: f32[2,64,32], index: 0, kind: input, shape index: {}]   ;;  %s1702_s1 = inlined_call_operand.vmem [shape: f32[1,32], index: 1, kind: input, shape index: {}]   ;;  %s1703_s2 = inlined_call_operand.vmem [shape: f32[1,32], index: 2, kind: input, shape index: {}]   ;;  %s1704_s3 = inlined_call_operand.vmem [shape: f32[2,1,64], index: 3, kind: input, shape index: {}]   ;;  %s1705_s4 = inlined_call_operand.vmem [shape: bf16[64,32], index: 4, kind: input, shape index: {}]   ;;  %s1706_s5 = inlined_call_operand.vmem [shape: f32[64,1], index: 5, kind: input, shape index: {}]   ;;  %s1707_s6 = inlined_call_operand.vmem [shape: bf16[32,32], index: 6, kind: input, shape index: {}]   ;;  %s1708_s7 = inlined_call_operand.vmem [shape: f32[1,32], index: 7, kind: input, shape index: {}]   ;;  %s1709_s8 = inlined_call_operand.vmem [shape: bf16[2,16,64], index: 8, kind: output, shape index: {0}]   ;;  %s1710_s9 = inlined_call_operand.vmem [shape: bf16[2,16,64], index: 9, kind: output, shape index: {1}]   ;;  %s1711_s10 = inlined_call_operand.vmem [shape: bf16[2,64,32], index: 10, kind: output, shape index: {2}]  }
   0x1   :  { %s1509_s15 = smov 0  }
   0x2 LB: > { %s33_s16 = sadd.s32 1, %s1443_s14  ;;  %p1213_p0 = scmp.ge.s32.totalorder %s1447_s15, 1  ;;  %s1447_s15 = sphi %s1509_s15, %s21_s15   ;;  %s1443_s14 = sphi %s1507_s14, %s1713_s14   ;;  %s1439_s13 = sphi %s1505_s13, %s1712_s13  }
   0x3   : > { %p35_p1 = scmp.ge.s32.totalorder %s33_s16, 2  ;;  %p355_p2 = scmp.lt.s32.totalorder %s1447_s15, 3 }
   0x5   : > { %s1715_s16 = smov (%p35_p1, %s33_s16), 0  ;;  %p356_p3 = pnand %p1213_p0, %p355_p2 }
   0x6   : > { %p424_p4 = scmp.lt.s32.totalorder (!%p356_p3), %s1439_s13, 1  ;;  %vm476_vm0 = vcmask (!%p356_p3), 261120   ;;  %v1355_v56 = vld [vmem:[%s1707_s6] sm:$0xff] (!%p356_p3)   ;;  %v1356_v57 = vld [vmem:[%s1707_s6 + $0x8] sm:$0xff] (!%p356_p3)   ;;  %v1449_v60 = vmov (!%p356_p3), 0   ;;  %vm1007_vm1 = vcmask (!%p356_p3), 257024  }
   0x7   : > { %359 = sbr.rel (%p356_p3) target bundleno = 627 (0x273), region = 52  ;;  %1312 = vmatprep.subr.bf16.mxu1 (!%p356_p3), %v1355_v56  ;;  %v1357_v58 = vld [vmem:[%s1705_s4] sm:$0xff] (!%p356_p3)   ;;  %v623_v59 = vld [vmem:[%s1706_s5 + $0x8] sm:$0xff] (!%p356_p3)  ;;  %1354 = vset.pattern.permute.xlu1 (!%p356_p3), %v1449_v60  ;;  %vm810_vm2 = vcmask (!%p356_p3), 519168  }
   0x8   : > { %1313 = vmatpush3.bf16.msra.mxu1 (!%p356_p3), %v1355_v56  ;;  %1304 = vmatprep.mubr.msk.bf16.mxu0 (!%p356_p3), %vm476_vm0, %v1357_v58  ;;  %v622_v61 = vld [vmem:[%s1706_s5] sm:$0xff] (!%p356_p3)  ;;  %v627_v63 = vld [vmem:[%s1706_s5 + $0x28] sm:$0xff] (!%p356_p3) }
   0x9   : > { %1314 = vmatprep.subr.bf16.mxu1 (!%p356_p3), %v1356_v57  ;;  %1353 = vset.pattern.permute.xlu0 (!%p356_p3), %v1449_v60  ;;  %v626_v62 = vld [vmem:[%s1706_s5 + $0x20] sm:$0xff] (!%p356_p3) }
   0xc   : > { %1315 = vmatpush3.bf16.msra.mxu1 (!%p356_p3), %v1356_v57 }
   0xe   : > { %s1717_s13 = smov (!%p424_p4, %s1439_s13), 1 }
   0xf   : > { %s1266_s17 = sshll.u32 %s1717_s13, 6  ;;  %s1269_s23 = sshll.u32 %s1717_s13, 5 }
  0x10   : > { %s431_s20 = scalar_lea.vmem %s1701_s0, %s1266_s17  ;;  %s1656_s26 = scalar_lea.vmem %s1711_s10, %s1269_s23 }
  0x11   : > { %v466_v0 = vld [vmem:[%s431_s20] sm:$0xff]  ;;  %v468_v1 = vld [vmem:[%s431_s20 + $0x10] sm:$0xff]  ;;  %v467_v2 = vld [vmem:[%s431_s20 + $0x8] sm:$0xff]  ;;  %s438_s29 = scalar_lea.vmem %s1704_s3, %s1717_s13  ;;  %s1267_s30 = sshll.u32 %s1717_s13, 3 }
  0x12   : > { %v477_v3 = vsel %vm476_vm0, %v466_v0, 0.0  ;;  %v483_v4 = vsel %vm476_vm0, %v468_v1, 0.0  ;;  %v469_v5 = vld [vmem:[%s431_s20 + $0x18] sm:$0xff]  ;;  %v480_v6 = vsel %vm476_vm0, %v467_v2, 0.0  ;;  %v470_v8 = vld [vmem:[%s431_s20 + $0x20] sm:$0xff]  ;;  %v471_v9 = vld [vmem:[%s431_s20 + $0x28] sm:$0xff]  ;;  %s446_s17 = scalar_lea.vmem %s1709_s8, %s1267_s30  ;;  %s454_s19 = scalar_lea.vmem %s1710_s9, %s1267_s30 }
  0x13   : > { %478 = vadd.xlane.f32.xlu0 %v477_v3  ;;  %484 = vadd.xlane.f32.xlu1 %v483_v4  ;;  %v486_v7 = vsel %vm476_vm0, %v469_v5, 0.0  ;;  %v489_v10 = vsel %vm476_vm0, %v470_v8, 0.0  ;;  %v492_v11 = vsel %vm476_vm0, %v471_v9, 0.0  ;;  %v472_v12 = vld [vmem:[%s431_s20 + $0x30] sm:$0xff]  ;;  %v473_v13 = vld [vmem:[%s431_s20 + $0x38] sm:$0xff] }
  0x14   : > { %v495_v14 = vsel %vm476_vm0, %v472_v12, 0.0  ;;  %v498_v15 = vsel %vm476_vm0, %v473_v13, 0.0  ;;  %v629_v3 = vld [vmem:[%s1706_s5 + $0x38] sm:$0xff] }
  0x17   : > { %481 = vadd.xlane.f32.xlu0 %v480_v6  ;;  %487 = vadd.xlane.f32.xlu1 %v486_v7 }
  0x1b   : > { %490 = vadd.xlane.f32.xlu0 %v489_v10  ;;  %493 = vadd.xlane.f32.xlu1 %v492_v11 }
  0x1f   : > { %496 = vadd.xlane.f32.xlu0 %v495_v14  ;;  %499 = vadd.xlane.f32.xlu1 %v498_v15 }
  0xa0   : > { %v479_v16 = vpop.xlane.xlu0 %478  ;;  %v485_v17 = vpop.xlane.xlu1 %484 }
  0xa1   : > { %v502_v18 = vmul.f32 0.03125, %v479_v16  ;;  %v504_v19 = vmul.f32 0.03125, %v485_v17 }
  0xa3   : > { %v1537_v20 = vsub.f32 %v466_v0, %v502_v18  ;;  %v1539_v21 = vsub.f32 %v468_v1, %v504_v19  ;;  %v624_v0 = vld [vmem:[%s1706_s5 + $0x10] sm:$0xff]  ;;  %v625_v1 = vld [vmem:[%s1706_s5 + $0x18] sm:$0xff] }
  0xa4   : > { %v482_v22 = vpop.xlane.xlu0 %481  ;;  %v488_v23 = vpop.xlane.xlu1 %487 }
  0xa5   : > { %v503_v24 = vmul.f32 0.03125, %v482_v22  ;;  %v505_v25 = vmul.f32 0.03125, %v488_v23  ;;  %v518_v26 = vmul.f32 %v1537_v20, %v1537_v20  ;;  %v520_v27 = vmul.f32 %v1539_v21, %v1539_v21 }
  0xa7   : > { %v1545_v28 = vsub.f32 %v467_v2, %v503_v24  ;;  %v1547_v29 = vsub.f32 %v469_v5, %v505_v25  ;;  %v526_v30 = vsel %vm476_vm0, %v518_v26, 0.0  ;;  %v532_v33 = vsel %vm476_vm0, %v520_v27, 0.0  ;;  %v628_v2 = vld [vmem:[%s1706_s5 + $0x30] sm:$0xff] }
  0xa8   : > { %527 = vadd.xlane.f32.xlu0 %v526_v30  ;;  %v491_v31 = vpop.xlane.xlu0 %490  ;;  %v494_v32 = vpop.xlane.xlu1 %493 }
  0xa9   : > { %v506_v34 = vmul.f32 0.03125, %v491_v31  ;;  %v507_v35 = vmul.f32 0.03125, %v494_v32  ;;  %v519_v36 = vmul.f32 %v1545_v28, %v1545_v28  ;;  %v521_v37 = vmul.f32 %v1547_v29, %v1547_v29 }
  0xab   : > { %v1555_v38 = vsub.f32 %v470_v8, %v506_v34  ;;  %v1557_v39 = vsub.f32 %v471_v9, %v507_v35  ;;  %v529_v40 = vsel %vm476_vm0, %v519_v36, 0.0  ;;  %v535_v43 = vsel %vm476_vm0, %v521_v37, 0.0 }
  0xac   : > { %533 = vadd.xlane.f32.xlu0 %v532_v33  ;;  %530 = vadd.xlane.f32.xlu1 %v529_v40  ;;  %v497_v41 = vpop.xlane.xlu0 %496  ;;  %v500_v42 = vpop.xlane.xlu1 %499  ;;  %v1222_v33 = vld [vmem:[%s1702_s1] ss:$0 sm:$0xff] }
  0xad   : > { %v508_v44 = vmul.f32 0.03125, %v497_v41  ;;  %v509_v45 = vmul.f32 0.03125, %v500_v42  ;;  %v522_v46 = vmul.f32 %v1555_v38, %v1555_v38  ;;  %v523_v47 = vmul.f32 %v1557_v39, %v1557_v39 }
  0xaf   : > { %v1565_v48 = vsub.f32 %v472_v12, %v508_v44  ;;  %v1567_v49 = vsub.f32 %v473_v13, %v509_v45  ;;  %v538_v50 = vsel %vm476_vm0, %v522_v46, 0.0  ;;  %v541_v51 = vsel %vm476_vm0, %v523_v47, 0.0 }
  0xb0   : > { %536 = vadd.xlane.f32.xlu1 %v535_v43  ;;  %539 = vadd.xlane.f32.xlu0 %v538_v50 }
  0xb1   : > { %v524_v52 = vmul.f32 %v1565_v48, %v1565_v48  ;;  %v525_v53 = vmul.f32 %v1567_v49, %v1567_v49 }
  0xb3   : > { %v544_v54 = vsel %vm476_vm0, %v524_v52, 0.0  ;;  %v547_v55 = vsel %vm476_vm0, %v525_v53, 0.0 }
  0xb4   : > { %542 = vadd.xlane.f32.xlu1 %v541_v51  ;;  %545 = vadd.xlane.f32.xlu0 %v544_v54 }
  0xb8   : > { %548 = vadd.xlane.f32.xlu1 %v547_v55 }
  0xc9   : > { %637 = vperm.xlu1 %1354, %v623_v59  }
  0xca   : > { %632 = vperm.xlu0 %1353, %v622_v61  }
  0xcd   : > { %652 = vperm.xlu1 %1354, %v626_v62  }
  0xd1   : > { %657 = vperm.xlu1 %1354, %v627_v63  }
  0xd5   : > { %642 = vperm.xlu1 %1354, %v624_v0  }
  0xd9   : > { %647 = vperm.xlu1 %1354, %v625_v1  }
  0xdd   : > { %662 = vperm.xlu1 %1354, %v628_v2  }
  0xe1   : > { %667 = vperm.xlu1 %1354, %v629_v3  }
 0x135   : > { %v528_v4 = vpop.xlane.xlu0 %527 }
 0x136   : > { %v550_v5 = vmul.f32 0.03125, %v528_v4 }
 0x138   : > { %v558_v6 = vadd.f32 1e-05, %v550_v5 }
 0x139   : > { %v531_v7 = vpop.xlane.xlu1 %530  ;;  %v534_v8 = vpop.xlane.xlu0 %533 }
 0x13a   : > { %1361 = vrsqrt.f32 %v558_v6  ;;  %v551_v9 = vmul.f32 0.03125, %v531_v7  ;;  %v552_v10 = vmul.f32 0.03125, %v534_v8  ;;  %v1358_v6 = vld [vmem:[%s1705_s4 + $0x8] sm:$0xff]   ;;  %v1359_v7 = vld [vmem:[%s1705_s4 + $0x10] sm:$0xff]   ;;  %v1360_v8 = vld [vmem:[%s1705_s4 + $0x18] sm:$0xff]  }
 0x13c   : > { %v559_v11 = vadd.f32 1e-05, %v551_v9  ;;  %v560_v12 = vadd.f32 1e-05, %v552_v10  ;;  %v1241_v9 = vld [vmem:[%s1708_s7] ss:$0 sm:$0xff] }
 0x13d   : > { %v537_v13 = vpop.xlane.xlu1 %536  ;;  %v540_v14 = vpop.xlane.xlu0 %539 }
 0x13e   : > { %1363 = vrsqrt.f32 %v559_v11  ;;  %v553_v15 = vmul.f32 0.03125, %v537_v13  ;;  %v554_v16 = vmul.f32 0.03125, %v540_v14 }
 0x13f   : > { %1365 = vrsqrt.f32 %v560_v12 }
 0x140   : > { %v561_v17 = vadd.f32 1e-05, %v553_v15  ;;  %v562_v18 = vadd.f32 1e-05, %v554_v16 }
 0x141   : > { %v543_v19 = vpop.xlane.xlu1 %542  ;;  %v546_v22 = vpop.xlane.xlu0 %545 }
 0x142   : > { %1367 = vrsqrt.f32 %v561_v17  ;;  %v555_v23 = vmul.f32 0.03125, %v543_v19  ;;  %v556_v24 = vmul.f32 0.03125, %v546_v22 }
 0x143   : > { %1369 = vrsqrt.f32 %v562_v18 }
 0x144   : > { %v1362_v25 = vpop.eup %1361  ;;  %v563_v26 = vadd.f32 1e-05, %v555_v23  ;;  %v564_v27 = vadd.f32 1e-05, %v556_v24 }
 0x145   : > { %v549_v30 = vpop.xlane.xlu1 %548  ;;  %v574_v31 = vmul.f32 %v1362_v25, %v1537_v20  ;;  %v1223_v20 = vld [vmem:[%s1703_s2] ss:$0 sm:$0xff] }
 0x146   : > { %1371 = vrsqrt.f32 %v563_v26  ;;  %v557_v32 = vmul.f32 0.03125, %v549_v30 }
 0x147   : > { %1373 = vrsqrt.f32 %v564_v27  ;;  %v588_v40 = vmul.f32 %v1222_v33, %v574_v31 }
 0x148   : > { %v1364_v34 = vpop.eup %1363  ;;  %v565_v35 = vadd.f32 1e-05, %v557_v32 }
 0x149   : > { %v1366_v36 = vpop.eup %1365  ;;  %v575_v37 = vmul.f32 %v1364_v34, %v1545_v28  ;;  %v602_v46 = vadd.f32 %v1223_v20, %v588_v40 }
 0x14a   : > { %v576_v41 = vmul.f32 %v1366_v36, %v1539_v21  ;;  %1375 = vrsqrt.f32 %v565_v35 }
 0x14b   : > { %v589_v42 = vmul.f32 %v1222_v33, %v575_v37 }
 0x14c   : > { %v1368_v43 = vpop.eup %1367  ;;  %v590_v50 = vmul.f32 %v1222_v33, %v576_v41 }
 0x14d   : > { %v1370_v44 = vpop.eup %1369  ;;  %v577_v45 = vmul.f32 %v1368_v43, %v1547_v29  ;;  %v603_v47 = vadd.f32 %v1223_v20, %v589_v42 }
 0x14e   : > { %v578_v51 = vmul.f32 %v1370_v44, %v1555_v38  ;;  %v604_v57 = vadd.f32 %v1223_v20, %v590_v50 }
 0x14f   : > { %v610_v52 = vpack.c.bf16 %v603_v47, %v602_v46  ;;  %v591_v28 = vmul.f32 %v1222_v33, %v577_v45 }
 0x150   : > { %v1372_v53 = vpop.eup %1371  ;;  %v592_v54 = vmul.f32 %v1222_v33, %v578_v51 }
 0x151   : > { %v1374_v21 = vpop.eup %1373  ;;  %v579_v55 = vmul.f32 %v1372_v53, %v1557_v39  ;;  %1324 = vmatprep.subr.msk.bf16.mxu0 %vm476_vm0, %v610_v52  ;;  %1316 = vmatprep.mubr.msk.bf16.mxu1 %vm476_vm0, %v610_v52  ;;  %v703_v56 = vsel %vm476_vm0, %v610_v52, 0  ;;  %v605_v29 = vadd.f32 %v1223_v20, %v591_v28 }
 0x152   : > { %v580_v58 = vmul.f32 %v1374_v21, %v1565_v48  ;;  %1297 = vmatpush3.bf16.xpose.msra.mxu0 %v703_v56  ;;  %v606_v61 = vadd.f32 %v1223_v20, %v592_v54  ;;  %v638_v21 = vpop.permute.xlu1 %637  ;;  %v633_v56 = vpop.permute.xlu0 %632 }
 0x153   : > { %v611_v59 = vpack.c.bf16 %v605_v29, %v604_v57  ;;  %v593_v38 = vmul.f32 %v1222_v33, %v579_v55 }
 0x154   : > { %v1376_v60 = vpop.eup %1375  ;;  %v594_v63 = vmul.f32 %v1222_v33, %v580_v58 }
 0x155   : > { %v581_v62 = vmul.f32 %v1376_v60, %v1567_v49  ;;  %1325 = vmatprep.subr.msk.bf16.mxu0 %vm476_vm0, %v611_v59  ;;  %1317 = vmatmul.mubr.msk.bf16.vlgmr.msra.gmra.mrb[0].mxu1 %vm476_vm0, %v611_v59  ;;  %v607_v39 = vadd.f32 %v1223_v20, %v593_v38  ;;  %v706_v2 = vsel %vm476_vm0, %v611_v59, 0 }
 0x156   : > { %v608_v48 = vadd.f32 %v1223_v20, %v594_v63 }
 0x157   : > { %v612_v0 = vpack.c.bf16 %v607_v39, %v606_v61  ;;  %v595_v1 = vmul.f32 %v1222_v33, %v581_v62 }
 0x159   : > { %1320 = vmatprep.mubr.msk.bf16.mxu1 %vm476_vm0, %v612_v0  ;;  %v609_v3 = vadd.f32 %v1223_v20, %v595_v1  ;;  %v709_v49 = vsel %vm476_vm0, %v612_v0, 0 }
 0x15a   : > { %1299 = vmatpush3.bf16.xpose.msra.mxu0 %v706_v2 }
 0x15b   : > { %1326 = vmatprep.subr.msk.bf16.mxu0 %vm476_vm0, %v612_v0  ;;  %v613_v4 = vpack.c.bf16 %v609_v3, %v608_v48 }
 0x15d   : > { %1321 = vmatmul.mubr.msk.bf16.gmra.mrb[4].mxu1 %vm476_vm0, %v613_v4  ;;  %v712_v5 = vsel %vm476_vm0, %v613_v4, 0 }
 0x162   : > { %1301 = vmatpush3.bf16.xpose.msra.mxu0 %v709_v49 }
 0x163   : > { %1327 = vmatprep.subr.msk.bf16.mxu0 %vm476_vm0, %v613_v4  ;;  %v653_v4 = vpop.permute.xlu1 %652 }
 0x16a   : > { %1303 = vmatpush3.bf16.xpose.msra.mxu0 %v712_v5 }
 0x171   : > { %1305 = vmatmul.mubr.msk.bf16.vlgmr.msra.gmra.mrb[0].mxu0 %vm476_vm0, %v1358_v6 }
 0x172   : > { %1308 = vmatprep.mubr.msk.bf16.mxu0 %vm476_vm0, %v1359_v7 }
 0x179   : > { %1309 = vmatmul.mubr.msk.bf16.gmra.mrb[4].mxu0 %vm476_vm0, %v1360_v8 }
 0x228   : > { %v1318_v10 = vpop.f32.mrb[0].mxu1 }
 0x229   : > { %v905_v11 = vadd.f32 %v1318_v10, %v1241_v9  ;;  %v896_v12 = vpop.f32.mrb[1].mxu1 }
 0x22a   : > { %v897_v13 = vadd.f32 %v1241_v9, %v896_v12  ;;  %v1319_v14 = vpop.f32.mrb[2].mxu1 }
 0x22b   : > { %v1250_v15 = vmul.f32 -1.442695, %v905_v11  ;;  %v908_v16 = vadd.f32 %v1319_v14, %v1241_v9  ;;  %v899_v17 = vpop.f32.mrb[3].mxu1 }
 0x22c   : > { %v1248_v18 = vmul.f32 -1.442695, %v897_v13  ;;  %v900_v19 = vadd.f32 %v1241_v9, %v899_v17 }
 0x22d   : > { %1377 = vpow2.f32 %v1250_v15  ;;  %v1251_v22 = vmul.f32 -1.442695, %v908_v16  ;;  %v658_v16 = vpop.permute.xlu1 %657 }
 0x22e   : > { %1379 = vpow2.f32 %v1248_v18  ;;  %v1249_v23 = vmul.f32 -1.442695, %v900_v19 }
 0x22f   : > { %1381 = vpow2.f32 %v1251_v22 }
 0x230   : > { %1383 = vpow2.f32 %v1249_v23  ;;  %v1322_v24 = vpop.f32.mrb[4].mxu1 }
 0x231   : > { %v921_v25 = vadd.f32 %v1322_v24, %v1241_v9  ;;  %v912_v26 = vpop.f32.mrb[5].mxu1 }
 0x232   : > { %v913_v27 = vadd.f32 %v1241_v9, %v912_v26  ;;  %v1323_v30 = vpop.f32.mrb[6].mxu1 }
 0x233   : > { %v1254_v31 = vmul.f32 -1.442695, %v921_v25  ;;  %v924_v32 = vadd.f32 %v1323_v30, %v1241_v9  ;;  %v915_v33 = vpop.f32.mrb[7].mxu1  ;;  %v643_v30 = vpop.permute.xlu1 %642 }
 0x234   : > { %v1252_v34 = vmul.f32 -1.442695, %v913_v27  ;;  %v916_v35 = vadd.f32 %v1241_v9, %v915_v33 }
 0x235   : > { %1385 = vpow2.f32 %v1254_v31  ;;  %v1255_v36 = vmul.f32 -1.442695, %v924_v32 }
 0x236   : > { %1387 = vpow2.f32 %v1252_v34  ;;  %v1253_v37 = vmul.f32 -1.442695, %v916_v35  ;;  %v1234_v35 = vld [vmem:[%s438_s29] ss:$0 sm:$0xff] }
 0x237   : > { %v1378_v40 = vpop.eup %1377  ;;  %1389 = vpow2.f32 %v1255_v36  ;;  %v648_v34 = vpop.permute.xlu1 %647 }
 0x238   : > { %v1380_v41 = vpop.eup %1379  ;;  %v953_v20 = vadd.f32 1.0, %v1378_v40  ;;  %1391 = vpow2.f32 %v1253_v37 }
 0x239   : > { %v1382_v42 = vpop.eup %1381  ;;  %v951_v43 = vadd.f32 1.0, %v1380_v41 }
 0x23a   : > { %v1384_v44 = vpop.eup %1383  ;;  %1393 = vrcp.f32 %v953_v20  ;;  %v954_v45 = vadd.f32 1.0, %v1382_v42 }
 0x23b   : > { %1395 = vrcp.f32 %v951_v43  ;;  %v952_v46 = vadd.f32 1.0, %v1384_v44 }
 0x23c   : > { %1397 = vrcp.f32 %v954_v45  ;;  %v663_v45 = vpop.permute.xlu1 %662 }
 0x23d   : > { %1399 = vrcp.f32 %v952_v46 }
 0x23f   : > { %v1386_v47 = vpop.eup %1385 }
 0x240   : > { %v1388_v50 = vpop.eup %1387  ;;  %v957_v51 = vadd.f32 1.0, %v1386_v47 }
 0x241   : > { %v1390_v52 = vpop.eup %1389  ;;  %v955_v28 = vadd.f32 1.0, %v1388_v50 }
 0x242   : > { %v1392_v53 = vpop.eup %1391  ;;  %1401 = vrcp.f32 %v957_v51  ;;  %v958_v54 = vadd.f32 1.0, %v1390_v52 }
 0x243   : > { %1403 = vrcp.f32 %v955_v28  ;;  %v956_v55 = vadd.f32 1.0, %v1392_v53 }
 0x244   : > { %v1394_v57 = vpop.eup %1393  ;;  %1405 = vrcp.f32 %v958_v54  ;;  %v1658_v29 = vpop.f32.mrb[0].mxu0 }
 0x245   : > { %v1396_v58 = vpop.eup %1395  ;;  %v1276_v59 = vpack.c.bf16 %v1394_v57, %v1394_v57  ;;  %1407 = vrcp.f32 %v956_v55  ;;  %v748_v38 = vpop.f32.mrb[1].mxu0  ;;  %v757_v40 = vadd.f32 %v1658_v29, %v643_v30 }
 0x246   : > { %v1398_v60 = vpop.eup %1397  ;;  %v1274_v61 = vpack.c.bf16 %v1396_v58, %v1396_v58  ;;  %v749_v62 = vadd.f32 %v748_v38, %v633_v56  ;;  %v1307_v39 = vpop.f32.mrb[2].mxu0 }
 0x247   : > { %v1400_v63 = vpop.eup %1399  ;;  %1010 = vst.msk [vmem:[%s1656_s26 + $0x8] sm:$0xf] %vm1007_vm1, %v1276_v59  ;;  %v1277_v0 = vpack.c.bf16 %v1398_v60, %v1398_v60  ;;  %v751_v1 = vpop.f32.mrb[3].mxu0  ;;  %v760_v43 = vadd.f32 %v1307_v39, %v648_v34 }
 0x248   : > { %1008 = vst.msk [vmem:[%s1656_s26] sm:$0xf] %vm1007_vm1, %v1274_v61  ;;  %v1275_v2 = vpack.c.bf16 %v1400_v63, %v1400_v63  ;;  %v1232_v48 = vmul.f32 -1.442695, %v749_v62  ;;  %v752_v3 = vadd.f32 %v751_v1, %v638_v21  ;;  %v668_v54 = vpop.permute.xlu1 %667 }
 0x249   : > { %1011 = vst.msk [vmem:[%s1656_s26 + $0xc] sm:$0xf] %vm1007_vm1, %v1277_v0 }
 0x24a   : > { %1009 = vst.msk [vmem:[%s1656_s26 + $0x4] sm:$0xf] %vm1007_vm1, %v1275_v2  ;;  %1409 = vpow2.f32 %v1232_v48  ;;  %v1233_v49 = vmul.f32 -1.442695, %v752_v3 }
 0x24c   : > { %v1402_v5 = vpop.eup %1401  ;;  %1411 = vpow2.f32 %v1233_v49  ;;  %v1310_v6 = vpop.f32.mrb[4].mxu0 }
 0x24d   : > { %v1404_v7 = vpop.eup %1403  ;;  %v1280_v8 = vpack.c.bf16 %v1402_v5, %v1402_v5  ;;  %v764_v9 = vpop.f32.mrb[5].mxu0  ;;  %v773_v52 = vadd.f32 %v1310_v6, %v663_v45 }
 0x24e   : > { %v1406_v10 = vpop.eup %1405  ;;  %v1278_v11 = vpack.c.bf16 %v1404_v7, %v1404_v7  ;;  %v765_v12 = vadd.f32 %v764_v9, %v653_v4  ;;  %v1311_v13 = vpop.f32.mrb[6].mxu0 }
 0x24f   : > { %v1408_v14 = vpop.eup %1407  ;;  %1014 = vst.msk [vmem:[%s1656_s26 + $0x18] sm:$0xf] %vm1007_vm1, %v1280_v8  ;;  %v1281_v15 = vpack.c.bf16 %v1406_v10, %v1406_v10  ;;  %v767_v17 = vpop.f32.mrb[7].mxu0  ;;  %v776_v55 = vadd.f32 %v1311_v13, %v668_v54 }
 0x250   : > { %1012 = vst.msk [vmem:[%s1656_s26 + $0x10] sm:$0xf] %vm1007_vm1, %v1278_v11  ;;  %v1279_v18 = vpack.c.bf16 %v1408_v14, %v1408_v14  ;;  %v1237_v19 = vmul.f32 -1.442695, %v765_v12  ;;  %v768_v22 = vadd.f32 %v767_v17, %v658_v16 }
 0x251   : > { %1015 = vst.msk [vmem:[%s1656_s26 + $0x1c] sm:$0xf] %vm1007_vm1, %v1281_v15 }
 0x252   : > { %1013 = vst.msk [vmem:[%s1656_s26 + $0x14] sm:$0xf] %vm1007_vm1, %v1279_v18  ;;  %1413 = vpow2.f32 %v1237_v19  ;;  %v1238_v23 = vmul.f32 -1.442695, %v768_v22 }
 0x254   : > { %v1410_v24 = vpop.eup %1409  ;;  %1415 = vpow2.f32 %v1238_v23 }
 0x255   : > { %v786_v25 = vadd.f32 1.0, %v1410_v24 }
 0x256   : > { %v1412_v26 = vpop.eup %1411 }
 0x257   : > { %1417 = vrcp.f32 %v786_v25  ;;  %v787_v27 = vadd.f32 1.0, %v1412_v26 }
 0x259   : > { %1419 = vrcp.f32 %v787_v27 }
 0x25c   : > { %v1414_v31 = vpop.eup %1413 }
 0x25d   : > { %v819_v32 = vadd.f32 1.0, %v1414_v31 }
 0x25e   : > { %v1416_v33 = vpop.eup %1415 }
 0x25f   : > { %1421 = vrcp.f32 %v819_v32  ;;  %v820_v36 = vadd.f32 1.0, %v1416_v33 }
 0x261   : > { %v1418_v37 = vpop.eup %1417  ;;  %1423 = vrcp.f32 %v820_v36 }
 0x262   : > { %v798_v41 = vmul.f32 %v1418_v37, %v1234_v35 }
 0x263   : > { %v1420_v20 = vpop.eup %1419 }
 0x264   : > { %v800_v42 = vmul.f32 %v798_v41, %v757_v40  ;;  %v799_v44 = vmul.f32 %v1420_v20, %v1234_v35 }
 0x266   : > { %v1270_v46 = vpack.c.bf16 %v800_v42, %v800_v42  ;;  %v801_v47 = vmul.f32 %v799_v44, %v760_v43 }
 0x268   : > { %811 = vst.msk [vmem:[%s446_s17] sm:$0xf] %vm810_vm2, %v1270_v46  ;;  %v1271_v50 = vpack.c.bf16 %v801_v47, %v801_v47 }
 0x269   : > { %v1422_v51 = vpop.eup %1421 }
 0x26a   : > { %812 = vst.msk [vmem:[%s446_s17 + $0x4] sm:$0xf] %vm810_vm2, %v1271_v50  ;;  %v825_v28 = vmul.f32 %v1422_v51, %v1234_v35 }
 0x26b   : > { %v1424_v53 = vpop.eup %1423 }
 0x26c   : > { %v827_v21 = vmul.f32 %v825_v28, %v773_v52  ;;  %v826_v56 = vmul.f32 %v1424_v53, %v1234_v35 }
 0x26e   : > { %v1272_v57 = vpack.c.bf16 %v827_v21, %v827_v21  ;;  %v828_v29 = vmul.f32 %v826_v56, %v776_v55 }
 0x270   : > { %837 = vst.msk [vmem:[%s454_s19] sm:$0xf] %vm810_vm2, %v1272_v57  ;;  %v1273_v58 = vpack.c.bf16 %v828_v29, %v828_v29 }
 0x272   : > { %838 = vst.msk [vmem:[%s454_s19 + $0x4] sm:$0xf] %vm810_vm2, %v1273_v58 }
 0x273 PF: > { %s21_s15 = sadd.s32 1, %s1447_s15   ;;  %s1712_s13 = smov %s1443_s14 }
 0x274   : > { %p18_p5 = scmp.ge.s32.totalorder %s21_s15, 4   ;;  %s1713_s14 = smov %s1715_s16 }
 0x276   :  { %20 = sbr.rel (!%p18_p5) target bundleno = 2 (0x2), region = 109 }

// kernel: pairformer_block.22
= control target key start
LH: loop header
LB: loop body
LE: loop exit
PB: predicated region body
PF: predicated region fallthrough
CT: control target
= control target key end

     0   :  { %s1017_s9 = smov 0   ;;  %s1019_s10 = smov 0   ;;  %s1126_s0 = inlined_call_operand.vmem [shape: bf16[32,8,8], index: 0, kind: input, shape index: {}]   ;;  %s1127_s1 = inlined_call_operand.vmem [shape: bf16[32,8,8], index: 1, kind: input, shape index: {}]   ;;  %s1128_s2 = inlined_call_operand.vmem [shape: bf16[32,8,8], index: 2, kind: output, shape index: {}]  }
   0x1   :  { %s1021_s11 = smov 0  }
   0x2 LB: > { %s31_s12 = sadd.s32 1, %s994_s10  ;;  %p868_p0 = scmp.ge.s32.totalorder %s998_s11, 1  ;;  %s998_s11 = sphi %s1021_s11, %s12_s11   ;;  %s994_s10 = sphi %s1019_s10, %s1130_s10   ;;  %s990_s9 = sphi %s1017_s9, %s1129_s9  }
   0x3   : > { %p33_p1 = scmp.ge.s32.totalorder %s31_s12, 4  ;;  %p157_p2 = scmp.lt.s32.totalorder %s998_s11, 5 }
   0x5   : > { %s1132_s12 = smov (%p33_p1, %s31_s12), 0  ;;  %p158_p3 = pnand %p868_p0, %p157_p2 }
   0x6   : > { %s869_s13 = sshll.u32 (!%p158_p3), %s990_s9, 3  ;;  %v1000_v0 = vmov (!%p158_p3), 0.0   ;;  %vm1001_vm0 = vmmov (!%p158_p3), 0   ;;  %vm263_vm1 = vcmask (!%p158_p3), 1043456   ;;  %vm259_vm2 = vcmask (!%p158_p3), 64512  }
   0x7   : > { %161 = sbr.rel (%p158_p3) target bundleno = 364 (0x16c), region = 28  ;;  %p197_p4 = scmp.lt.s32.totalorder (!%p158_p3), %s869_s13, 31  ;;  %901 = vmatprep.subr.bf16.mxu0 (!%p158_p3), %v1000_v0  ;;  %903 = vmatprep.mubr.msk.bf16.mxu0 (!%p158_p3), %vm1001_vm0, %v1000_v0  ;;  %vm749_vm3 = vcmask (!%p158_p3), 60416  }
   0x8   : > { %907 = vmatprep.subr.bf16.mxu1 (!%p158_p3), %v1000_v0  ;;  %909 = vmatprep.mubr.msk.bf16.mxu1 (!%p158_p3), %vm1001_vm0, %v1000_v0 }
   0xe   : > { %s1134_s13 = smov (!%p197_p4, %s869_s13), 31 }
   0xf   : > { %s1041_s14 = sshll.u32 %s1134_s13, 2 }
  0x10   : > { %s1047_s17 = scalar_lea.vmem %s1126_s0, %s1041_s14  ;;  %s212_s20 = scalar_lea.vmem %s1127_s1, %s1041_s14 }
  0x11   : > { %v227_v1 = vld [vmem:[%s1047_s17] sm:$0xf]  ;;  %v229_v2 = vld [vmem:[%s1047_s17 + $0x8] sm:$0xf]  ;;  %v228_v3 = vld [vmem:[%s1047_s17 + $0x4] sm:$0xf]  ;;  %s1099_s23 = scalar_lea.vmem %s1128_s2, %s1041_s14 }
  0x12   : > { %243 = vxpose.xlu0.c.b16.start.end [1/1] (short) (narrow) %v227_v1, 16  ;;  %369 = vxpose.xlu1.c.b16.start.end [1/1] (short) (narrow) %v229_v2, 16  ;;  %v230_v4 = vld [vmem:[%s1047_s17 + $0xc] sm:$0xf]  ;;  %v235_v5 = vld [vmem:[%s212_s20] sm:$0xf] }
  0x13   : > { %v236_v6 = vld [vmem:[%s212_s20 + $0x4] sm:$0xf]  ;;  %v237_v7 = vld [vmem:[%s212_s20 + $0x8] sm:$0xf]  ;;  %v231_v8 = vld [vmem:[%s1047_s17 + $0x10] sm:$0xf] }
  0x14   : > { %v232_v9 = vld [vmem:[%s1047_s17 + $0x14] sm:$0xf]  ;;  %v265_v10 = vsel %vm263_vm1, %v235_v5, 0  ;;  %v327_v11 = vsel %vm263_vm1, %v236_v6, 0  ;;  %v389_v12 = vsel %vm263_vm1, %v237_v7, 0 }
  0x15   : > { %v238_v13 = vld [vmem:[%s212_s20 + $0xc] sm:$0xf]  ;;  %v239_v15 = vld [vmem:[%s212_s20 + $0x10] sm:$0xf]  ;;  %902 = vmatpush3.bf16.msra.mxu0 %v265_v10  ;;  %908 = vmatpush3.bf16.msra.mxu1 %v327_v11  ;;  %v240_v17 = vld [vmem:[%s212_s20 + $0x14] sm:$0xf] }
  0x16   : > { %307 = vxpose.xlu0.c.b16.start.end [1/1] (short) (narrow) %v228_v3, 16  ;;  %431 = vxpose.xlu1.c.b16.start.end [1/1] (short) (narrow) %v230_v4, 16  ;;  %v451_v14 = vsel %vm263_vm1, %v238_v13, 0  ;;  %v513_v16 = vsel %vm263_vm1, %v239_v15, 0  ;;  %v241_v18 = vld [vmem:[%s212_s20 + $0x18] sm:$0xf] }
  0x17   : > { %913 = vmatprep.subr.bf16.mxu0 %v1000_v0  ;;  %919 = vmatprep.subr.bf16.mxu1 %v1000_v0  ;;  %v575_v19 = vsel %vm263_vm1, %v240_v17, 0  ;;  %v637_v20 = vsel %vm263_vm1, %v241_v18, 0  ;;  %v242_v21 = vld [vmem:[%s212_s20 + $0x1c] sm:$0xf]  ;;  %v233_v23 = vld [vmem:[%s1047_s17 + $0x18] sm:$0xf] }
  0x18   : > { %v699_v22 = vsel %vm263_vm1, %v242_v21, 0  ;;  %v234_v24 = vld [vmem:[%s1047_s17 + $0x1c] sm:$0xf] }
  0x1a   : > { %493 = vxpose.xlu0.c.b16.start.end [1/1] (short) (narrow) %v231_v8, 16  ;;  %555 = vxpose.xlu1.c.b16.start.end [1/1] (short) (narrow) %v232_v9, 16 }
  0x1e   : > { %617 = vxpose.xlu0.c.b16.start.end [1/1] (short) (narrow) %v233_v23, 16  ;;  %679 = vxpose.xlu1.c.b16.start.end [1/1] (short) (narrow) %v234_v24, 16 }
  0x78   : > { %v251_v25 = vpop.trf.xlu0  ;;  %v377_v27 = vpop.trf.xlu1 }
  0x79   : > { %904 = vmatmul.mubr.msk.bf16.vlgmr.msra.gmra.mrb[0].mxu0 %vm259_vm2, %v251_v25 }
  0x7a   : > { %914 = vmatpush3.bf16.msra.mxu0 %v389_v12  ;;  %915 = vmatprep.mubr.msk.bf16.mxu0 %vm1001_vm0, %v1000_v0 }
  0x7b   : > { %925 = vmatprep.subr.bf16.mxu0 %v1000_v0 }
  0x7c   : > { %v315_v26 = vpop.trf.xlu0  ;;  %v439_v28 = vpop.trf.xlu1 }
  0x7d   : > { %910 = vmatmul.mubr.msk.bf16.vlgmr.msra.gmra.mrb[0].mxu1 %vm259_vm2, %v315_v26 }
  0x7e   : > { %920 = vmatpush3.bf16.msra.mxu1 %v451_v14  ;;  %921 = vmatprep.mubr.msk.bf16.mxu1 %vm1001_vm0, %v1000_v0 }
  0x7f   : > { %931 = vmatprep.subr.bf16.mxu1 %v1000_v0 }
  0x80   : > { %v501_v29 = vpop.trf.xlu0  ;;  %v563_v30 = vpop.trf.xlu1 }
  0x81   : > { %916 = vmatmul.mubr.msk.bf16.vlgmr.msra.gmra.mrb[4].mxu0 %vm259_vm2, %v377_v27 }
  0x82   : > { %926 = vmatpush3.bf16.msra.mxu0 %v513_v16  ;;  %927 = vmatprep.mubr.msk.bf16.mxu0 %vm1001_vm0, %v1000_v0 }
  0x83   : > { %937 = vmatprep.subr.bf16.mxu0 %v1000_v0 }
  0x84   : > { %v625_v31 = vpop.trf.xlu0  ;;  %v687_v32 = vpop.trf.xlu1 }
  0x85   : > { %922 = vmatmul.mubr.msk.bf16.vlgmr.msra.gmra.mrb[4].mxu1 %vm259_vm2, %v439_v28 }
  0x86   : > { %932 = vmatpush3.bf16.msra.mxu1 %v575_v19  ;;  %933 = vmatprep.mubr.msk.bf16.mxu1 %vm1001_vm0, %v1000_v0 }
  0x87   : > { %943 = vmatprep.subr.bf16.mxu1 %v1000_v0 }
  0x89   : > { %928 = vmatmul.mubr.msk.bf16.vlgmr.msra.gmra.mrb[8].mxu0 %vm259_vm2, %v501_v29 }
  0x8a   : > { %938 = vmatpush3.bf16.msra.mxu0 %v637_v20  ;;  %939 = vmatprep.mubr.msk.bf16.mxu0 %vm1001_vm0, %v1000_v0 }
  0x8d   : > { %934 = vmatmul.mubr.msk.bf16.vlgmr.msra.gmra.mrb[8].mxu1 %vm259_vm2, %v563_v30 }
  0x8e   : > { %944 = vmatpush3.bf16.msra.mxu1 %v699_v22  ;;  %945 = vmatprep.mubr.msk.bf16.mxu1 %vm1001_vm0, %v1000_v0 }
  0x91   : > { %940 = vmatmul.mubr.msk.bf16.vlgmr.msra.gmra.mrb[12].mxu0 %vm259_vm2, %v625_v31 }
  0x95   : > { %946 = vmatmul.mubr.msk.bf16.vlgmr.msra.gmra.mrb[12].mxu1 %vm259_vm2, %v687_v32 }
 0x14c   : > { %v301_v33 = vpop.f32.mrb[0].mxu0 }
 0x14d   : > { %v741_v34 = vpack.c.bf16 %v301_v33, %v301_v33  ;;  %v905_v35 = vpop.f32.mrb[1].mxu0 }
 0x14e   : > { %v304_v36 = vpop.f32.mrb[2].mxu0 }
 0x14f   : > { %750 = vst.msk [vmem:[%s1099_s23] sm:$0xf] %vm749_vm3, %v741_v34  ;;  %v906_v37 = vpop.f32.mrb[3].mxu0 }
 0x150   : > { %v363_v38 = vpop.f32.mrb[0].mxu1 }
 0x151   : > { %v742_v39 = vpack.c.bf16 %v363_v38, %v363_v38  ;;  %v911_v40 = vpop.f32.mrb[1].mxu1 }
 0x152   : > { %v366_v41 = vpop.f32.mrb[2].mxu1 }
 0x153   : > { %751 = vst.msk [vmem:[%s1099_s23 + $0x4] sm:$0xf] %vm749_vm3, %v742_v39  ;;  %v912_v42 = vpop.f32.mrb[3].mxu1 }
 0x154   : > { %v425_v43 = vpop.f32.mrb[4].mxu0 }
 0x155   : > { %v743_v44 = vpack.c.bf16 %v425_v43, %v425_v43  ;;  %v917_v45 = vpop.f32.mrb[5].mxu0 }
 0x156   : > { %v428_v46 = vpop.f32.mrb[6].mxu0 }
 0x157   : > { %752 = vst.msk [vmem:[%s1099_s23 + $0x8] sm:$0xf] %vm749_vm3, %v743_v44  ;;  %v918_v47 = vpop.f32.mrb[7].mxu0 }
 0x158   : > { %v487_v48 = vpop.f32.mrb[4].mxu1 }
 0x159   : > { %v744_v49 = vpack.c.bf16 %v487_v48, %v487_v48  ;;  %v923_v50 = vpop.f32.mrb[5].mxu1 }
 0x15a   : > { %v490_v51 = vpop.f32.mrb[6].mxu1 }
 0x15b   : > { %753 = vst.msk [vmem:[%s1099_s23 + $0xc] sm:$0xf] %vm749_vm3, %v744_v49  ;;  %v924_v52 = vpop.f32.mrb[7].mxu1 }
 0x15c   : > { %v549_v53 = vpop.f32.mrb[8].mxu0 }
 0x15d   : > { %v745_v54 = vpack.c.bf16 %v549_v53, %v549_v53  ;;  %v929_v55 = vpop.f32.mrb[9].mxu0 }
 0x15e   : > { %v552_v56 = vpop.f32.mrb[10].mxu0 }
 0x15f   : > { %754 = vst.msk [vmem:[%s1099_s23 + $0x10] sm:$0xf] %vm749_vm3, %v745_v54  ;;  %v930_v57 = vpop.f32.mrb[11].mxu0 }
 0x160   : > { %v611_v58 = vpop.f32.mrb[8].mxu1 }
 0x161   : > { %v746_v59 = vpack.c.bf16 %v611_v58, %v611_v58  ;;  %v935_v60 = vpop.f32.mrb[9].mxu1 }
 0x162   : > { %v614_v61 = vpop.f32.mrb[10].mxu1 }
 0x163   : > { %755 = vst.msk [vmem:[%s1099_s23 + $0x14] sm:$0xf] %vm749_vm3, %v746_v59  ;;  %v936_v62 = vpop.f32.mrb[11].mxu1 }
 0x164   : > { %v673_v63 = vpop.f32.mrb[12].mxu0 }
 0x165   : > { %v747_v0 = vpack.c.bf16 %v673_v63, %v673_v63  ;;  %v941_v1 = vpop.f32.mrb[13].mxu0 }
 0x166   : > { %v676_v2 = vpop.f32.mrb[14].mxu0 }
 0x167   : > { %756 = vst.msk [vmem:[%s1099_s23 + $0x18] sm:$0xf] %vm749_vm3, %v747_v0  ;;  %v942_v3 = vpop.f32.mrb[15].mxu0 }
 0x168   : > { %v735_v4 = vpop.f32.mrb[12].mxu1 }
 0x169   : > { %v748_v5 = vpack.c.bf16 %v735_v4, %v735_v4  ;;  %v947_v6 = vpop.f32.mrb[13].mxu1 }
 0x16a   : > { %v738_v7 = vpop.f32.mrb[14].mxu1 }
 0x16b   : > { %757 = vst.msk [vmem:[%s1099_s23 + $0x1c] sm:$0xf] %vm749_vm3, %v748_v5  ;;  %v948_v8 = vpop.f32.mrb[15].mxu1 }
 0x16c PF: > { %s12_s11 = sadd.s32 1, %s998_s11   ;;  %s1129_s9 = smov %s994_s10 }
 0x16d   : > { %p9_p5 = scmp.ge.s32.totalorder %s12_s11, 6   ;;  %s1130_s10 = smov %s1132_s12 }
 0x16f   :  { %11 = sbr.rel (!%p9_p5) target bundleno = 2 (0x2), region = 61 }

// kernel: pairformer_block.24
= control target key start
LH: loop header
LB: loop body
LE: loop exit
PB: predicated region body
PF: predicated region fallthrough
CT: control target
= control target key end

     0   :  { %s1281_s30 = smov 0   ;;  %s1283_s10 = smov 0   ;;  %s1447_s0 = inlined_call_operand.vmem [shape: f32[2,64,32], index: 0, kind: input, shape index: {}]   ;;  %s1448_s1 = inlined_call_operand.vmem [shape: f32[1,32], index: 1, kind: input, shape index: {}]   ;;  %s1449_s2 = inlined_call_operand.vmem [shape: f32[1,32], index: 2, kind: input, shape index: {}]   ;;  %s1450_s3 = inlined_call_operand.vmem [shape: bf16[32,32], index: 3, kind: input, shape index: {}]   ;;  %s1451_s4 = inlined_call_operand.vmem [shape: f32[1,32], index: 4, kind: input, shape index: {}]   ;;  %s1452_s5 = inlined_call_operand.vmem [shape: bf16[32,32], index: 5, kind: input, shape index: {}]   ;;  %s1453_s6 = inlined_call_operand.vmem [shape: bf16[2,32], index: 6, kind: input, shape index: {}]   ;;  %s1454_s7 = inlined_call_operand.vmem [shape: bf16[2,64,32], index: 7, kind: output, shape index: {0}]   ;;  %s1455_s8 = inlined_call_operand.vmem [shape: bf16[2,64,32], index: 8, kind: output, shape index: {1}]   ;;  %s1456_s9 = inlined_call_operand.vmem [shape: bf16[2,2,64], index: 9, kind: output, shape index: {2}]  }
   0x1   :  { %s1285_s11 = smov 0  }
   0x2 LB: > { %s32_s12 = sadd.s32 1, %s1223_s10  ;;  %p1046_p0 = scmp.ge.s32.totalorder %s1227_s11, 1  ;;  %s1227_s11 = sphi %s1285_s11, %s20_s11   ;;  %s1223_s10 = sphi %s1283_s10, %s1458_s10   ;;  %s1219_s30 = sphi %s1281_s30, %s1457_s30  }
   0x3   : > { %p34_p1 = scmp.ge.s32.totalorder %s32_s12, 2  ;;  %p317_p2 = scmp.lt.s32.totalorder %s1227_s11, 3 }
   0x5   : > { %s1460_s12 = smov (%p34_p1, %s32_s12), 0  ;;  %p318_p3 = pnand %p1046_p0, %p317_p2 }
   0x6   : > { %p377_p4 = scmp.lt.s32.totalorder (!%p318_p3), %s1219_s30, 1  ;;  %vm423_vm0 = vcmask (!%p318_p3), 261120   ;;  %v1185_v56 = vld [vmem:[%s1450_s3] sm:$0xff] (!%p318_p3)   ;;  %v1186_v57 = vld [vmem:[%s1450_s3 + $0x8] sm:$0xff] (!%p318_p3)   ;;  %v1229_v58 = vmov (!%p318_p3), 0.0   ;;  %vm1230_vm1 = vmmov (!%p318_p3), 0  }
   0x7   : > { %321 = sbr.rel (%p318_p3) target bundleno = 584 (0x248), region = 48  ;;  %1123 = vmatprep.subr.bf16.mxu1 (!%p318_p3), %v1185_v56  ;;  %1147 = vmatprep.subr.bf16.mxu0 (!%p318_p3), %v1229_v58  ;;  %v1363_v59 = vld [vmem:[%s1452_s5] sm:$0xff] (!%p318_p3)   ;;  %vm693_vm2 = vcmask (!%p318_p3), 257024   ;;  %vm868_vm3 = vcmask (!%p318_p3), 516096  }
   0x8   : > { %1124 = vmatpush3.bf16.msra.mxu1 (!%p318_p3), %v1185_v56  ;;  %1155 = vmatprep.mubr.msk.bf16.mxu0 (!%p318_p3), %vm1230_vm1, %v1229_v58 }
   0x9   : > { %1125 = vmatprep.subr.bf16.mxu1 (!%p318_p3), %v1186_v57 }
   0xc   : > { %1126 = vmatpush3.bf16.msra.mxu1 (!%p318_p3), %v1186_v57 }
   0xd   : > { %1135 = vmatprep.subr.bf16.mxu1 (!%p318_p3), %v1363_v59 }
   0xe   : > { %s1462_s30 = smov (!%p377_p4, %s1219_s30), 1 }
   0xf   : > { %s1087_s13 = sshll.u32 %s1462_s30, 6  ;;  %s411_s25 = scalar_lea.vmem %s1456_s9, %s1462_s30 }
  0x10   : > { %s384_s16 = scalar_lea.vmem %s1447_s0, %s1087_s13 }
  0x11   : > { %v413_v0 = vld [vmem:[%s384_s16] sm:$0xff]  ;;  %v415_v1 = vld [vmem:[%s384_s16 + $0x10] sm:$0xff]  ;;  %v414_v2 = vld [vmem:[%s384_s16 + $0x8] sm:$0xff] }
  0x12   : > { %v424_v3 = vsel %vm423_vm0, %v413_v0, 0.0  ;;  %v430_v4 = vsel %vm423_vm0, %v415_v1, 0.0  ;;  %v416_v5 = vld [vmem:[%s384_s16 + $0x18] sm:$0xff]  ;;  %v427_v6 = vsel %vm423_vm0, %v414_v2, 0.0  ;;  %v417_v8 = vld [vmem:[%s384_s16 + $0x20] sm:$0xff]  ;;  %v418_v9 = vld [vmem:[%s384_s16 + $0x28] sm:$0xff] }
  0x13   : > { %425 = vadd.xlane.f32.xlu0 %v424_v3  ;;  %431 = vadd.xlane.f32.xlu1 %v430_v4  ;;  %v433_v7 = vsel %vm423_vm0, %v416_v5, 0.0  ;;  %v436_v10 = vsel %vm423_vm0, %v417_v8, 0.0  ;;  %v439_v11 = vsel %vm423_vm0, %v418_v9, 0.0  ;;  %v419_v12 = vld [vmem:[%s384_s16 + $0x30] sm:$0xff]  ;;  %v420_v13 = vld [vmem:[%s384_s16 + $0x38] sm:$0xff]  ;;  %s1088_s16 = sshll.u32 %s1462_s30, 5 }
  0x14   : > { %v442_v14 = vsel %vm423_vm0, %v419_v12, 0.0  ;;  %v445_v15 = vsel %vm423_vm0, %v420_v13, 0.0  ;;  %s394_s19 = scalar_lea.vmem %s1454_s7, %s1088_s16  ;;  %s404_s22 = scalar_lea.vmem %s1455_s8, %s1088_s16 }
  0x17   : > { %428 = vadd.xlane.f32.xlu0 %v427_v6  ;;  %434 = vadd.xlane.f32.xlu1 %v433_v7 }
  0x1b   : > { %437 = vadd.xlane.f32.xlu0 %v436_v10  ;;  %440 = vadd.xlane.f32.xlu1 %v439_v11 }
  0x1f   : > { %443 = vadd.xlane.f32.xlu0 %v442_v14  ;;  %446 = vadd.xlane.f32.xlu1 %v445_v15 }
  0xa0   : > { %v426_v16 = vpop.xlane.xlu0 %425  ;;  %v432_v17 = vpop.xlane.xlu1 %431 }
  0xa1   : > { %v449_v18 = vmul.f32 0.03125, %v426_v16  ;;  %v451_v19 = vmul.f32 0.03125, %v432_v17 }
  0xa3   : > { %v1313_v20 = vsub.f32 %v413_v0, %v449_v18  ;;  %v1315_v21 = vsub.f32 %v415_v1, %v451_v19 }
  0xa4   : > { %v429_v22 = vpop.xlane.xlu0 %428  ;;  %v435_v23 = vpop.xlane.xlu1 %434 }
  0xa5   : > { %v450_v24 = vmul.f32 0.03125, %v429_v22  ;;  %v452_v25 = vmul.f32 0.03125, %v435_v23  ;;  %v465_v26 = vmul.f32 %v1313_v20, %v1313_v20  ;;  %v467_v27 = vmul.f32 %v1315_v21, %v1315_v21  ;;  %v1053_v23 = vld [vmem:[%s1448_s1] ss:$0 sm:$0xff] }
  0xa7   : > { %v1321_v28 = vsub.f32 %v414_v2, %v450_v24  ;;  %v1323_v29 = vsub.f32 %v416_v5, %v452_v25  ;;  %v473_v30 = vsel %vm423_vm0, %v465_v26, 0.0  ;;  %v479_v33 = vsel %vm423_vm0, %v467_v27, 0.0 }
  0xa8   : > { %474 = vadd.xlane.f32.xlu0 %v473_v30  ;;  %v438_v31 = vpop.xlane.xlu0 %437  ;;  %v441_v32 = vpop.xlane.xlu1 %440 }
  0xa9   : > { %v453_v34 = vmul.f32 0.03125, %v438_v31  ;;  %v454_v35 = vmul.f32 0.03125, %v441_v32  ;;  %v466_v36 = vmul.f32 %v1321_v28, %v1321_v28  ;;  %v468_v37 = vmul.f32 %v1323_v29, %v1323_v29 }
  0xab   : > { %v1331_v38 = vsub.f32 %v417_v8, %v453_v34  ;;  %v1333_v39 = vsub.f32 %v418_v9, %v454_v35  ;;  %v476_v40 = vsel %vm423_vm0, %v466_v36, 0.0  ;;  %v482_v43 = vsel %vm423_vm0, %v468_v37, 0.0 }
  0xac   : > { %480 = vadd.xlane.f32.xlu0 %v479_v33  ;;  %477 = vadd.xlane.f32.xlu1 %v476_v40  ;;  %v444_v41 = vpop.xlane.xlu0 %443  ;;  %v447_v42 = vpop.xlane.xlu1 %446 }
  0xad   : > { %v455_v44 = vmul.f32 0.03125, %v444_v41  ;;  %v456_v45 = vmul.f32 0.03125, %v447_v42  ;;  %v469_v46 = vmul.f32 %v1331_v38, %v1331_v38  ;;  %v470_v47 = vmul.f32 %v1333_v39, %v1333_v39 }
  0xaf   : > { %v1341_v48 = vsub.f32 %v419_v12, %v455_v44  ;;  %v1343_v49 = vsub.f32 %v420_v13, %v456_v45  ;;  %v485_v50 = vsel %vm423_vm0, %v469_v46, 0.0  ;;  %v488_v51 = vsel %vm423_vm0, %v470_v47, 0.0 }
  0xb0   : > { %483 = vadd.xlane.f32.xlu1 %v482_v43  ;;  %486 = vadd.xlane.f32.xlu0 %v485_v50 }
  0xb1   : > { %v471_v52 = vmul.f32 %v1341_v48, %v1341_v48  ;;  %v472_v53 = vmul.f32 %v1343_v49, %v1343_v49 }
  0xb3   : > { %v491_v54 = vsel %vm423_vm0, %v471_v52, 0.0  ;;  %v494_v55 = vsel %vm423_vm0, %v472_v53, 0.0 }
  0xb4   : > { %489 = vadd.xlane.f32.xlu1 %v488_v51  ;;  %492 = vadd.xlane.f32.xlu0 %v491_v54 }
  0xb8   : > { %495 = vadd.xlane.f32.xlu1 %v494_v55 }
 0x135   : > { %v475_v60 = vpop.xlane.xlu0 %474 }
 0x136   : > { %v497_v61 = vmul.f32 0.03125, %v475_v60 }
 0x138   : > { %v505_v62 = vadd.f32 1e-05, %v497_v61 }
 0x139   : > { %v478_v63 = vpop.xlane.xlu1 %477  ;;  %v481_v0 = vpop.xlane.xlu0 %480 }
 0x13a   : > { %1189 = vrsqrt.f32 %v505_v62  ;;  %v498_v1 = vmul.f32 0.03125, %v478_v63  ;;  %v499_v2 = vmul.f32 0.03125, %v481_v0  ;;  %v823_v0 = vld [vmem:[%s1453_s6] sm:$0x1] }
 0x13c   : > { %v506_v3 = vadd.f32 1e-05, %v498_v1  ;;  %v507_v4 = vadd.f32 1e-05, %v499_v2  ;;  %v1055_v1 = vld [vmem:[%s1451_s4] ss:$0 sm:$0xff] }
 0x13d   : > { %v484_v5 = vpop.xlane.xlu1 %483  ;;  %v487_v6 = vpop.xlane.xlu0 %486 }
 0x13e   : > { %1191 = vrsqrt.f32 %v506_v3  ;;  %v500_v7 = vmul.f32 0.03125, %v484_v5  ;;  %v501_v8 = vmul.f32 0.03125, %v487_v6 }
 0x13f   : > { %1193 = vrsqrt.f32 %v507_v4 }
 0x140   : > { %v508_v9 = vadd.f32 1e-05, %v500_v7  ;;  %v509_v10 = vadd.f32 1e-05, %v501_v8 }
 0x141   : > { %v490_v11 = vpop.xlane.xlu1 %489  ;;  %v493_v12 = vpop.xlane.xlu0 %492 }
 0x142   : > { %1195 = vrsqrt.f32 %v508_v9  ;;  %v502_v13 = vmul.f32 0.03125, %v490_v11  ;;  %v503_v14 = vmul.f32 0.03125, %v493_v12 }
 0x143   : > { %1197 = vrsqrt.f32 %v509_v10 }
 0x144   : > { %v1190_v15 = vpop.eup %1189  ;;  %v510_v16 = vadd.f32 1e-05, %v502_v13  ;;  %v511_v17 = vadd.f32 1e-05, %v503_v14 }
 0x145   : > { %v496_v18 = vpop.xlane.xlu1 %495  ;;  %v521_v19 = vmul.f32 %v1190_v15, %v1313_v20  ;;  %v1054_v20 = vld [vmem:[%s1449_s2] ss:$0 sm:$0xff] }
 0x146   : > { %1199 = vrsqrt.f32 %v510_v16  ;;  %v504_v22 = vmul.f32 0.03125, %v496_v18 }
 0x147   : > { %1201 = vrsqrt.f32 %v511_v17  ;;  %v535_v30 = vmul.f32 %v1053_v23, %v521_v19 }
 0x148   : > { %v1192_v24 = vpop.eup %1191  ;;  %v512_v25 = vadd.f32 1e-05, %v504_v22 }
 0x149   : > { %v1194_v26 = vpop.eup %1193  ;;  %v522_v27 = vmul.f32 %v1192_v24, %v1321_v28  ;;  %v549_v37 = vadd.f32 %v1054_v20, %v535_v30 }
 0x14a   : > { %v523_v31 = vmul.f32 %v1194_v26, %v1315_v21  ;;  %1203 = vrsqrt.f32 %v512_v25 }
 0x14b   : > { %v536_v32 = vmul.f32 %v1053_v23, %v522_v27 }
 0x14c   : > { %v1196_v33 = vpop.eup %1195  ;;  %v537_v34 = vmul.f32 %v1053_v23, %v523_v31 }
 0x14d   : > { %v1198_v35 = vpop.eup %1197  ;;  %v524_v36 = vmul.f32 %v1196_v33, %v1323_v29  ;;  %v550_v40 = vadd.f32 %v1054_v20, %v536_v32 }
 0x14e   : > { %v525_v41 = vmul.f32 %v1198_v35, %v1331_v38  ;;  %v551_v44 = vadd.f32 %v1054_v20, %v537_v34  ;;  %v1188_v38 = vld [vmem:[%s1452_s5 + $0x8] sm:$0xff]  }
 0x14f   : > { %v557_v42 = vpack.c.bf16 %v550_v40, %v549_v37  ;;  %v538_v28 = vmul.f32 %v1053_v23, %v524_v36 }
 0x150   : > { %v1200_v43 = vpop.eup %1199  ;;  %v539_v50 = vmul.f32 %v1053_v23, %v525_v41 }
 0x151   : > { %v1202_v21 = vpop.eup %1201  ;;  %v526_v45 = vmul.f32 %v1200_v43, %v1333_v39  ;;  %1127 = vmatprep.mubr.msk.bf16.mxu1 %vm423_vm0, %v557_v42  ;;  %v585_v46 = vsel %vm423_vm0, %v557_v42, 0  ;;  %v552_v47 = vadd.f32 %v1054_v20, %v538_v28 }
 0x152   : > { %v527_v51 = vmul.f32 %v1202_v21, %v1341_v48  ;;  %1148 = vmatpush3.bf16.xpose.msra.mxu0 %v585_v46  ;;  %v553_v54 = vadd.f32 %v1054_v20, %v539_v50 }
 0x153   : > { %v558_v29 = vpack.c.bf16 %v552_v47, %v551_v44  ;;  %v540_v52 = vmul.f32 %v1053_v23, %v526_v45  ;;  %1149 = vmatprep.subr.bf16.mxu0 %v1229_v58 }
 0x154   : > { %v1204_v53 = vpop.eup %1203  ;;  %v541_v56 = vmul.f32 %v1053_v23, %v527_v51 }
 0x155   : > { %v528_v39 = vmul.f32 %v1204_v53, %v1343_v49  ;;  %1128 = vmatmul.mubr.msk.bf16.vlgmr.msra.gmra.mrb[0].mxu1 %vm423_vm0, %v558_v29  ;;  %v554_v55 = vadd.f32 %v1054_v20, %v540_v52  ;;  %v588_v60 = vsel %vm423_vm0, %v558_v29, 0 }
 0x156   : > { %1136 = vmatpush3.bf16.msra.mxu1 %v1363_v59  ;;  %v555_v61 = vadd.f32 %v1054_v20, %v541_v56 }
 0x157   : > { %v559_v48 = vpack.c.bf16 %v554_v55, %v553_v54  ;;  %v542_v57 = vmul.f32 %v1053_v23, %v528_v39  ;;  %1137 = vmatprep.subr.bf16.mxu1 %v1188_v38 }
 0x159   : > { %1131 = vmatprep.mubr.msk.bf16.mxu1 %vm423_vm0, %v559_v48  ;;  %v556_v62 = vadd.f32 %v1054_v20, %v542_v57  ;;  %v591_v59 = vsel %vm423_vm0, %v559_v48, 0 }
 0x15a   : > { %1150 = vmatpush3.bf16.xpose.msra.mxu0 %v588_v60  ;;  %1138 = vmatpush3.bf16.msra.mxu1 %v1188_v38 }
 0x15b   : > { %v560_v49 = vpack.c.bf16 %v556_v62, %v555_v61  ;;  %1151 = vmatprep.subr.bf16.mxu0 %v1229_v58 }
 0x15d   : > { %1132 = vmatmul.mubr.msk.bf16.gmra.mrb[4].mxu1 %vm423_vm0, %v560_v49  ;;  %v594_v63 = vsel %vm423_vm0, %v560_v49, 0 }
 0x15e   : > { %1139 = vmatprep.mubr.msk.bf16.mxu1 %vm423_vm0, %v557_v42 }
 0x162   : > { %1152 = vmatpush3.bf16.xpose.msra.mxu0 %v591_v59 }
 0x163   : > { %1153 = vmatprep.subr.bf16.mxu0 %v1229_v58 }
 0x165   : > { %1140 = vmatmul.mubr.msk.bf16.vlgmr.msra.gmra.mrb[8].mxu1 %vm423_vm0, %v558_v29 }
 0x166   : > { %1143 = vmatprep.mubr.msk.bf16.mxu1 %vm423_vm0, %v559_v48 }
 0x16a   : > { %1154 = vmatpush3.bf16.xpose.msra.mxu0 %v594_v63 }
 0x16d   : > { %1144 = vmatmul.mubr.msk.bf16.gmra.mrb[12].mxu1 %vm423_vm0, %v560_v49 }
 0x171   : > { %1156 = vmatmul.mubr.msk.bf16.vlgmr.msra.gmra.mrb[0].mxu0 %vm423_vm0, %v823_v0 }
 0x228   : > { %v1129_v58 = vpop.f32.mrb[0].mxu1 }
 0x229   : > { %v639_v2 = vadd.f32 %v1129_v58, %v1055_v1  ;;  %v630_v3 = vpop.f32.mrb[1].mxu1 }
 0x22a   : > { %v631_v4 = vadd.f32 %v1055_v1, %v630_v3  ;;  %v1130_v5 = vpop.f32.mrb[2].mxu1 }
 0x22b   : > { %v1092_v6 = vpack.c.bf16 %v639_v2, %v639_v2  ;;  %v642_v7 = vadd.f32 %v1130_v5, %v1055_v1  ;;  %v633_v8 = vpop.f32.mrb[3].mxu1 }
 0x22c   : > { %v1090_v9 = vpack.c.bf16 %v631_v4, %v631_v4  ;;  %v634_v10 = vadd.f32 %v1055_v1, %v633_v8 }
 0x22d   : > { %696 = vst.msk [vmem:[%s394_s19 + $0x8] sm:$0xf] %vm693_vm2, %v1092_v6  ;;  %v1093_v11 = vpack.c.bf16 %v642_v7, %v642_v7 }
 0x22e   : > { %694 = vst.msk [vmem:[%s394_s19] sm:$0xf] %vm693_vm2, %v1090_v9  ;;  %v1091_v12 = vpack.c.bf16 %v634_v10, %v634_v10 }
 0x22f   : > { %697 = vst.msk [vmem:[%s394_s19 + $0xc] sm:$0xf] %vm693_vm2, %v1093_v11 }
 0x230   : > { %695 = vst.msk [vmem:[%s394_s19 + $0x4] sm:$0xf] %vm693_vm2, %v1091_v12  ;;  %v1133_v13 = vpop.f32.mrb[4].mxu1 }
 0x231   : > { %v655_v14 = vadd.f32 %v1133_v13, %v1055_v1  ;;  %v646_v15 = vpop.f32.mrb[5].mxu1 }
 0x232   : > { %v647_v16 = vadd.f32 %v1055_v1, %v646_v15  ;;  %v1134_v17 = vpop.f32.mrb[6].mxu1 }
 0x233   : > { %v1096_v18 = vpack.c.bf16 %v655_v14, %v655_v14  ;;  %v658_v19 = vadd.f32 %v1134_v17, %v1055_v1  ;;  %v649_v22 = vpop.f32.mrb[7].mxu1 }
 0x234   : > { %v1094_v23 = vpack.c.bf16 %v647_v16, %v647_v16  ;;  %v650_v24 = vadd.f32 %v1055_v1, %v649_v22 }
 0x235   : > { %700 = vst.msk [vmem:[%s394_s19 + $0x18] sm:$0xf] %vm693_vm2, %v1096_v18  ;;  %v1097_v25 = vpack.c.bf16 %v658_v19, %v658_v19 }
 0x236   : > { %698 = vst.msk [vmem:[%s394_s19 + $0x10] sm:$0xf] %vm693_vm2, %v1094_v23  ;;  %v1095_v26 = vpack.c.bf16 %v650_v24, %v650_v24 }
 0x237   : > { %701 = vst.msk [vmem:[%s394_s19 + $0x1c] sm:$0xf] %vm693_vm2, %v1097_v25 }
 0x238   : > { %699 = vst.msk [vmem:[%s394_s19 + $0x14] sm:$0xf] %vm693_vm2, %v1095_v26  ;;  %v1141_v27 = vpop.f32.mrb[8].mxu1 }
 0x239   : > { %v1100_v30 = vpack.c.bf16 %v1141_v27, %v1141_v27  ;;  %v752_v31 = vpop.f32.mrb[9].mxu1 }
 0x23a   : > { %v1098_v20 = vpack.c.bf16 %v752_v31, %v752_v31  ;;  %v1142_v32 = vpop.f32.mrb[10].mxu1 }
 0x23b   : > { %817 = vst.msk [vmem:[%s404_s22 + $0x8] sm:$0xf] %vm693_vm2, %v1100_v30  ;;  %v1101_v33 = vpack.c.bf16 %v1142_v32, %v1142_v32  ;;  %v755_v34 = vpop.f32.mrb[11].mxu1 }
 0x23c   : > { %815 = vst.msk [vmem:[%s404_s22] sm:$0xf] %vm693_vm2, %v1098_v20  ;;  %v1099_v35 = vpack.c.bf16 %v755_v34, %v755_v34 }
 0x23d   : > { %818 = vst.msk [vmem:[%s404_s22 + $0xc] sm:$0xf] %vm693_vm2, %v1101_v33 }
 0x23e   : > { %816 = vst.msk [vmem:[%s404_s22 + $0x4] sm:$0xf] %vm693_vm2, %v1099_v35 }
 0x240   : > { %v1145_v36 = vpop.f32.mrb[12].mxu1 }
 0x241   : > { %v1104_v37 = vpack.c.bf16 %v1145_v36, %v1145_v36  ;;  %v768_v40 = vpop.f32.mrb[13].mxu1 }
 0x242   : > { %v1102_v41 = vpack.c.bf16 %v768_v40, %v768_v40  ;;  %v1146_v42 = vpop.f32.mrb[14].mxu1 }
 0x243   : > { %821 = vst.msk [vmem:[%s404_s22 + $0x18] sm:$0xf] %vm693_vm2, %v1104_v37  ;;  %v1105_v28 = vpack.c.bf16 %v1146_v42, %v1146_v42  ;;  %v771_v43 = vpop.f32.mrb[15].mxu1 }
 0x244   : > { %819 = vst.msk [vmem:[%s404_s22 + $0x10] sm:$0xf] %vm693_vm2, %v1102_v41  ;;  %v1103_v44 = vpack.c.bf16 %v771_v43, %v771_v43  ;;  %v861_v21 = vpop.f32.mrb[0].mxu0 }
 0x245   : > { %822 = vst.msk [vmem:[%s404_s22 + $0x1c] sm:$0xf] %vm693_vm2, %v1105_v28  ;;  %v867_v45 = vpack.c.bf16 %v861_v21, %v861_v21  ;;  %v1157_v46 = vpop.f32.mrb[1].mxu0 }
 0x246   : > { %820 = vst.msk [vmem:[%s404_s22 + $0x14] sm:$0xf] %vm693_vm2, %v1103_v44  ;;  %v864_v47 = vpop.f32.mrb[2].mxu0 }
 0x247   : > { %869 = vst.msk [vmem:[%s411_s25] sm:$0x1] %vm868_vm3, %v867_v45  ;;  %v1158_v50 = vpop.f32.mrb[3].mxu0 }
 0x248 PF: > { %s20_s11 = sadd.s32 1, %s1227_s11   ;;  %s1457_s30 = smov %s1223_s10 }
 0x249   : > { %p17_p5 = scmp.ge.s32.totalorder %s20_s11, 4   ;;  %s1458_s10 = smov %s1460_s12 }
 0x24b   :  { %19 = sbr.rel (!%p17_p5) target bundleno = 2 (0x2), region = 102 }

// kernel: pairformer_block.26
= control target key start
LH: loop header
LB: loop body
LE: loop exit
PB: predicated region body
PF: predicated region fallthrough
CT: control target
= control target key end

     0   :  { %vm98_vm0 = vcmask 130048   ;;  %vm259_vm1 = vcmask 261120   ;;  %s529_s2 = inlined_call_operand.vmem [shape: bf16[16,32], index: 2, kind: input, shape index: {}]   ;;  %s530_s0 = inlined_call_operand.vmem [shape: bf16[128,16], index: 0, kind: input, shape index: {}]   ;;  %s531_s1 = inlined_call_operand.vmem [shape: f32[128,32], index: 1, kind: input, shape index: {}]   ;;  %s532_s3 = inlined_call_operand.vmem [shape: f32[1,32], index: 3, kind: input, shape index: {}]   ;;  %s533_s4 = inlined_call_operand.vmem [shape: f32[128,32], index: 4, kind: output, shape index: {}]  }
   0x1   :  { %v327_v0 = vld [vmem:[%s529_s2] sm:$0xff]   ;;  %v330_v3 = vld [vmem:[%s530_s0 + $0x8] sm:$0xff]   ;;  %v332_v5 = vld [vmem:[%s530_s0 + $0x10] sm:$0xff]  }
   0x2   :  { %v328_v1 = vld [vmem:[%s530_s0] sm:$0xff]   ;;  %307 = vmatprep.subr.bf16.mxu0 %v327_v0  ;;  %325 = vmatprep.subr.bf16.mxu1 %v327_v0  ;;  %v331_v4 = vld [vmem:[%s530_s0 + $0x28] sm:$0xff]   ;;  %v333_v6 = vld [vmem:[%s530_s0 + $0x30] sm:$0xff]  }
   0x3   :  { %v329_v2 = vld [vmem:[%s530_s0 + $0x20] sm:$0xff]   ;;  %308 = vmatpush3.bf16.msra.mxu0 %v327_v0  ;;  %326 = vmatpush3.bf16.msra.mxu1 %v327_v0  ;;  %v334_v7 = vld [vmem:[%s530_s0 + $0x18] sm:$0xff]   ;;  %v20_v9 = vld [vmem:[%s531_s1 + $0x10] sm:$0xff] }
   0x4   :  { %309 = vmatprep.mubr.msk.bf16.mxu0 %vm98_vm0, %v328_v1  ;;  %317 = vmatprep.mubr.msk.bf16.mxu1 %vm98_vm0, %v329_v2  ;;  %v335_v8 = vld [vmem:[%s530_s0 + $0x38] sm:$0xff]   ;;  %v28_v10 = vld [vmem:[%s531_s1 + $0x50] sm:$0xff]  ;;  %v18_v11 = vld [vmem:[%s531_s1] sm:$0xff] }
   0x5   :  { %v26_v12 = vld [vmem:[%s531_s1 + $0x40] sm:$0xff]  ;;  %v21_v16 = vld [vmem:[%s531_s1 + $0x18] sm:$0xff]  ;;  %v19_v22 = vld [vmem:[%s531_s1 + $0x8] sm:$0xff] }
   0x6   :  { %310 = vmatmul.mubr.msk.bf16.vlgmr.msra.gmra.mrb[0].mxu0 %vm98_vm0, %v330_v3  ;;  %318 = vmatmul.mubr.msk.bf16.vlgmr.msra.gmra.mrb[0].mxu1 %vm98_vm0, %v331_v4  ;;  %v411_v14 = vld [vmem:[%s532_s3] ss:$0 sm:$0xff]  ;;  %v29_v17 = vld [vmem:[%s531_s1 + $0x58] sm:$0xff]  ;;  %v27_v23 = vld [vmem:[%s531_s1 + $0x48] sm:$0xff] }
   0x7   :  { %313 = vmatprep.mubr.msk.bf16.mxu0 %vm98_vm0, %v332_v5  ;;  %321 = vmatprep.mubr.msk.bf16.mxu1 %vm98_vm0, %v333_v6  ;;  %v24_v42 = vld [vmem:[%s531_s1 + $0x30] sm:$0xff]  ;;  %v22_v44 = vld [vmem:[%s531_s1 + $0x20] sm:$0xff]  ;;  %v25_v48 = vld [vmem:[%s531_s1 + $0x38] sm:$0xff] }
   0x8   :  { %v32_v43 = vld [vmem:[%s531_s1 + $0x70] sm:$0xff]  ;;  %v30_v45 = vld [vmem:[%s531_s1 + $0x60] sm:$0xff]  ;;  %v33_v49 = vld [vmem:[%s531_s1 + $0x78] sm:$0xff] }
   0x9   :  { %v23_v54 = vld [vmem:[%s531_s1 + $0x28] sm:$0xff] }
   0xa   :  { %v31_v55 = vld [vmem:[%s531_s1 + $0x68] sm:$0xff] }
   0xe   :  { %314 = vmatmul.mubr.msk.bf16.gmra.mrb[4].mxu0 %vm98_vm0, %v334_v7  ;;  %322 = vmatmul.mubr.msk.bf16.gmra.mrb[4].mxu1 %vm98_vm0, %v335_v8 }
  0xd9   :  { %v311_v13 = vpop.f32.mrb[0].mxu0  ;;  %v319_v15 = vpop.f32.mrb[0].mxu1 }
  0xda   :  { %v222_v18 = vadd.f32 %v311_v13, %v20_v9  ;;  %v230_v19 = vadd.f32 %v319_v15, %v28_v10  ;;  %v157_v20 = vpop.f32.mrb[1].mxu0  ;;  %v189_v21 = vpop.f32.mrb[1].mxu1 }
  0xdb   :  { %v220_v24 = vadd.f32 %v157_v20, %v18_v11  ;;  %v228_v25 = vadd.f32 %v189_v21, %v26_v12  ;;  %v312_v26 = vpop.f32.mrb[2].mxu0  ;;  %v320_v27 = vpop.f32.mrb[2].mxu1 }
  0xdc   :  { %v245_v28 = vadd.f32 %v411_v14, %v222_v18  ;;  %v253_v29 = vadd.f32 %v411_v14, %v230_v19  ;;  %v223_v30 = vadd.f32 %v312_v26, %v21_v16  ;;  %v231_v31 = vadd.f32 %v320_v27, %v29_v17  ;;  %v160_v32 = vpop.f32.mrb[3].mxu0  ;;  %v192_v33 = vpop.f32.mrb[3].mxu1 }
  0xdd   :  { %v243_v34 = vadd.f32 %v411_v14, %v220_v24  ;;  %v251_v35 = vadd.f32 %v411_v14, %v228_v25  ;;  %v221_v36 = vadd.f32 %v160_v32, %v19_v22  ;;  %v229_v37 = vadd.f32 %v192_v33, %v27_v23 }
  0xde   :  { %262 = vst.msk [vmem:[%s533_s4 + $0x10] sm:$0xff] %vm259_vm1, %v245_v28  ;;  %270 = vst.msk [vmem:[%s533_s4 + $0x50] sm:$0xff] %vm259_vm1, %v253_v29  ;;  %v246_v38 = vadd.f32 %v411_v14, %v223_v30  ;;  %v254_v39 = vadd.f32 %v411_v14, %v231_v31 }
  0xdf   :  { %260 = vst.msk [vmem:[%s533_s4] sm:$0xff] %vm259_vm1, %v243_v34  ;;  %268 = vst.msk [vmem:[%s533_s4 + $0x40] sm:$0xff] %vm259_vm1, %v251_v35  ;;  %v244_v40 = vadd.f32 %v411_v14, %v221_v36  ;;  %v252_v41 = vadd.f32 %v411_v14, %v229_v37 }
  0xe0   :  { %263 = vst.msk [vmem:[%s533_s4 + $0x18] sm:$0xff] %vm259_vm1, %v246_v38  ;;  %271 = vst.msk [vmem:[%s533_s4 + $0x58] sm:$0xff] %vm259_vm1, %v254_v39 }
  0xe1   :  { %261 = vst.msk [vmem:[%s533_s4 + $0x8] sm:$0xff] %vm259_vm1, %v244_v40  ;;  %269 = vst.msk [vmem:[%s533_s4 + $0x48] sm:$0xff] %vm259_vm1, %v252_v41  ;;  %v315_v46 = vpop.f32.mrb[4].mxu0  ;;  %v323_v47 = vpop.f32.mrb[4].mxu1 }
  0xe2   :  { %v226_v50 = vadd.f32 %v315_v46, %v24_v42  ;;  %v234_v51 = vadd.f32 %v323_v47, %v32_v43  ;;  %v173_v52 = vpop.f32.mrb[5].mxu0  ;;  %v205_v53 = vpop.f32.mrb[5].mxu1 }
  0xe3   :  { %v224_v56 = vadd.f32 %v173_v52, %v22_v44  ;;  %v232_v57 = vadd.f32 %v205_v53, %v30_v45  ;;  %v316_v58 = vpop.f32.mrb[6].mxu0  ;;  %v324_v59 = vpop.f32.mrb[6].mxu1 }
  0xe4   :  { %v249_v60 = vadd.f32 %v411_v14, %v226_v50  ;;  %v257_v61 = vadd.f32 %v411_v14, %v234_v51  ;;  %v227_v62 = vadd.f32 %v316_v58, %v25_v48  ;;  %v235_v63 = vadd.f32 %v324_v59, %v33_v49  ;;  %v176_v0 = vpop.f32.mrb[7].mxu0  ;;  %v208_v1 = vpop.f32.mrb[7].mxu1 }
  0xe5   :  { %v247_v2 = vadd.f32 %v411_v14, %v224_v56  ;;  %v255_v3 = vadd.f32 %v411_v14, %v232_v57  ;;  %v225_v4 = vadd.f32 %v176_v0, %v23_v54  ;;  %v233_v5 = vadd.f32 %v208_v1, %v31_v55 }
  0xe6   :  { %266 = vst.msk [vmem:[%s533_s4 + $0x30] sm:$0xff] %vm259_vm1, %v249_v60  ;;  %274 = vst.msk [vmem:[%s533_s4 + $0x70] sm:$0xff] %vm259_vm1, %v257_v61  ;;  %v250_v6 = vadd.f32 %v411_v14, %v227_v62  ;;  %v258_v7 = vadd.f32 %v411_v14, %v235_v63 }
  0xe7   :  { %264 = vst.msk [vmem:[%s533_s4 + $0x20] sm:$0xff] %vm259_vm1, %v247_v2  ;;  %272 = vst.msk [vmem:[%s533_s4 + $0x60] sm:$0xff] %vm259_vm1, %v255_v3  ;;  %v248_v8 = vadd.f32 %v411_v14, %v225_v4  ;;  %v256_v9 = vadd.f32 %v411_v14, %v233_v5 }
  0xe8   :  { %267 = vst.msk [vmem:[%s533_s4 + $0x38] sm:$0xff] %vm259_vm1, %v250_v6  ;;  %275 = vst.msk [vmem:[%s533_s4 + $0x78] sm:$0xff] %vm259_vm1, %v258_v7 }
  0xe9   :  { %265 = vst.msk [vmem:[%s533_s4 + $0x28] sm:$0xff] %vm259_vm1, %v248_v8  ;;  %273 = vst.msk [vmem:[%s533_s4 + $0x68] sm:$0xff] %vm259_vm1, %v256_v9 }

// kernel: pairformer_block.25
= control target key start
LH: loop header
LB: loop body
LE: loop exit
PB: predicated region body
PF: predicated region fallthrough
CT: control target
= control target key end

     0   :  { %s3149_s15 = smov 0   ;;  %s3151_s16 = smov 0   ;;  %s3806_s0 = inlined_call_operand.vmem [shape: bf16[2,8,8,32], index: 0, kind: input, shape index: {}]   ;;  %s3807_s1 = inlined_call_operand.vmem [shape: bf16[2,8,8,32], index: 1, kind: input, shape index: {}]   ;;  %s3808_s2 = inlined_call_operand.vmem [shape: bf16[2,2,8,8], index: 2, kind: input, shape index: {}]   ;;  %s3809_s3 = inlined_call_operand.vmem [shape: f32[2,8,8], index: 3, kind: input, shape index: {}]   ;;  %s3810_s4 = inlined_call_operand.vmem [shape: bf16[2,8,8,16], index: 4, kind: output, shape index: {}]  }
   0x1   :  { %s3153_s17 = smov 0  }
   0x2 LB: > { %s33_s18 = sadd.s32 1, %s3111_s16  ;;  %p2609_p0 = scmp.ge.s32.totalorder %s3115_s17, 1  ;;  %s3115_s17 = sphi %s3153_s17, %s14_s17   ;;  %s3111_s16 = sphi %s3151_s16, %s3812_s16   ;;  %s3107_s15 = sphi %s3149_s15, %s3811_s15  }
   0x3   : > { %p35_p1 = scmp.ge.s32.totalorder %s33_s18, 2  ;;  %p243_p2 = scmp.lt.s32.totalorder %s3115_s17, 3 }
   0x5   : > { %s3814_s18 = smov (%p35_p1, %s33_s18), 0  ;;  %p244_p3 = pnand %p2609_p0, %p243_p2 }
   0x6   : > { %p308_p4 = scmp.lt.s32.totalorder (!%p244_p3), %s3107_s15, 1  ;;  %v3117_v0 = vmov (!%p244_p3), 0.0   ;;  %vm3118_vm0 = vmmov (!%p244_p3), 0   ;;  %vm380_vm1 = vcmask (!%p244_p3), 64512   ;;  %s3119_s26 = smov (!%p244_p3), 112   ;;  %v771_v33 = vlaneseq (!%p244_p3) }
   0x7   : > { %247 = sbr.rel (%p244_p3) target bundleno = 1629 (0x65d), region = 36  ;;  %2750 = vmatprep.subr.bf16.mxu0 (!%p244_p3), %v3117_v0  ;;  %2756 = vmatprep.subr.bf16.mxu1 (!%p244_p3), %v3117_v0  ;;  %v3120_v31 = vmov (!%p244_p3), 1966171168   ;;  %vm968_vm2 = vcmask (!%p244_p3), 1043456   ;;  %s3121_s8 = smov (!%p244_p3), 120   ;;  %vm2442_vm3 = vcmask (!%p244_p3), 125952  }
   0x8   : > { %2752 = vmatprep.mubr.msk.bf16.mxu0 (!%p244_p3), %vm3118_vm0, %v3117_v0  ;;  %2758 = vmatprep.mubr.msk.bf16.mxu1 (!%p244_p3), %vm3118_vm0, %v3117_v0  ;;  %v769_v32 = vunpack.c.l.s4 (!%p244_p3), %v3120_v31  ;;  %v772_v36 = vshrl.u32 (!%p244_p3), %v771_v33, 7  ;;  %s3122_s9 = smov (!%p244_p3), 104   ;;  %s3123_s10 = smov (!%p244_p3), 8  }
   0xa   : > { %v770_v35 = vunpack.c.0.s8 (!%p244_p3), %v769_v32  ;;  %v3304_v42 = vsub.s32 (!%p244_p3), 0, %v772_v36 }
   0xc   : > { %v773_v38 = vsub.s32 (!%p244_p3), %v770_v35, %v772_v36 }
   0xe   : > { %s3816_s15 = smov (!%p308_p4, %s3107_s15), 1 }
   0xf   : > { %s3176_s19 = sshll.u32 %s3816_s15, 5  ;;  %s2680_s27 = sshll.u32 %s3816_s15, 3 }
  0x10   : > { %s3182_s22 = scalar_lea.vmem %s3807_s1, %s3176_s19  ;;  %s3196_s25 = scalar_lea.vmem %s3806_s0, %s3176_s19 }
  0x11   : > { %v367_v1 = vld [vmem:[%s3182_s22] sm:$0xf]  ;;  %v368_v2 = vld [vmem:[%s3182_s22 + $0x4] sm:$0xf]  ;;  %v369_v7 = vld [vmem:[%s3182_s22 + $0x8] sm:$0xf]  ;;  %s344_s30 = scalar_lea.vmem %s3809_s3, %s2680_s27  ;;  %s337_s7 = scalar_lea.vmem %s3808_s2, %s2680_s27 }
  0x12   : > { %v385_v3 = vsel %vm380_vm1, %v367_v1, 0  ;;  %v3187_v4 = vcombine.low %v367_v1, %v367_v1  ;;  %v431_v5 = vsel %vm380_vm1, %v368_v2, 0  ;;  %v3190_v6 = vcombine.low %v368_v2, %v368_v2  ;;  %v370_v8 = vld [vmem:[%s3182_s22 + $0xc] sm:$0xf]  ;;  %v3209_v10 = vld [vmem:[%s3196_s25] sm:$0xf]  ;;  %s3763_s13 = scalar_lea.vmem %s3810_s4, %s3176_s19 }
  0x13   : > { %2751 = vmatpush3.bf16.xpose.msra.mxu0 %v385_v3  ;;  %2757 = vmatpush3.bf16.xpose.msra.mxu1 %v431_v5  ;;  %v3204_v9 = vcombine.low %v369_v7, %v369_v7  ;;  %v3212_v11 = vld [vmem:[%s3196_s25 + $0x4] sm:$0xf]  ;;  %v477_v12 = vsel %vm380_vm1, %v369_v7, 0  ;;  %v523_v13 = vsel %vm380_vm1, %v370_v8, 0  ;;  %v3222_v14 = vcombine.low %v370_v8, %v370_v8  ;;  %v3231_v15 = vld [vmem:[%s3182_s22 + $0x10] sm:$0xf] }
  0x14   : > { %2762 = vmatprep.subr.bf16.mxu0 %v3117_v0  ;;  %2768 = vmatprep.subr.bf16.mxu1 %v3117_v0  ;;  %v3234_v16 = vld [vmem:[%s3182_s22 + $0x14] sm:$0xf]  ;;  %v3239_v17 = vld [vmem:[%s3196_s25 + $0x8] sm:$0xf]  ;;  %v3242_v18 = vld [vmem:[%s3196_s25 + $0xc] sm:$0xf] }
  0x15   : > { %1015 = vrot.lane.b32.xlu1 %v3190_v6, %s3119_s26  ;;  %963 = vrot.lane.b32.xlu0 %v3187_v4, %s3119_s26  ;;  %v569_v19 = vsel %vm380_vm1, %v3231_v15, 0  ;;  %v615_v20 = vsel %vm380_vm1, %v3234_v16, 0  ;;  %v3258_v21 = vld [vmem:[%s3182_s22 + $0x18] sm:$0xf]  ;;  %v3262_v22 = vld [vmem:[%s3182_s22 + $0x1c] sm:$0xf] }
  0x16   : > { %v3265_v23 = vld [vmem:[%s3196_s25 + $0x10] sm:$0xf]  ;;  %v3268_v24 = vld [vmem:[%s3196_s25 + $0x14] sm:$0xf]  ;;  %v661_v25 = vsel %vm380_vm1, %v3258_v21, 0  ;;  %v707_v26 = vsel %vm380_vm1, %v3262_v22, 0 }
  0x17   : > { %v3285_v27 = vld [vmem:[%s3196_s25 + $0x18] sm:$0xf]  ;;  %v3288_v28 = vld [vmem:[%s3196_s25 + $0x1c] sm:$0xf]  ;;  %v377_v29 = vld [vmem:[%s344_s30] sm:$0xff] }
  0x18   : > { %v2619_v30 = vadd.f32 -1.0, %v377_v29  ;;  %v3318_v51 = vld [vmem:[%s337_s7] sm:$0xff]  }
  0x19   : > { %1066 = vrot.lane.b32.xlu1 %v3204_v9, %s3119_s26  ;;  %v3321_v54 = vunpack.c.l.bf16 %v3318_v51 }
  0x1a   : > { %2753 = vmatmul.mubr.msk.bf16.vlgmr.msra.gmra.mrb[0].mxu0 %vm380_vm1, %v3209_v10  ;;  %2759 = vmatmul.mubr.msk.bf16.vlgmr.msra.gmra.mrb[0].mxu1 %vm380_vm1, %v3212_v11  ;;  %v379_v34 = vmul.f32 1e+09, %v2619_v30 }
  0x1b   : > { %2763 = vmatpush3.bf16.xpose.msra.mxu0 %v477_v12  ;;  %2769 = vmatpush3.bf16.xpose.msra.mxu1 %v523_v13 }
  0x1c   : > { %2764 = vmatprep.mubr.msk.bf16.mxu0 %vm3118_vm0, %v3117_v0  ;;  %2770 = vmatprep.mubr.msk.bf16.mxu1 %vm3118_vm0, %v3117_v0  ;;  %v767_v37 = vcombine.high %v379_v34, %v379_v34  ;;  %v774_v49 = vrot.slane %v379_v34, %v773_v38 }
  0x1d   : > { %2774 = vmatprep.subr.bf16.mxu0 %v3117_v0  ;;  %2780 = vmatprep.subr.bf16.mxu1 %v3117_v0 }
  0x1e   : > { %1117 = vrot.lane.b32.xlu1 %v3222_v14, %s3119_s26  ;;  %v781_v39 = vrot.slane %v767_v37, %v773_v38  ;;  %v782_v50 = vcombine.high %v774_v49, %v774_v49  ;;  %v790_v52 = vrot.slane %v774_v49, %v773_v38 }
  0x20   : > { %v783_v40 = vcombine.high %v781_v39, %v781_v39  ;;  %v804_v53 = vrot.slane %v782_v50, %v773_v38  ;;  %v3324_v61 = vrot.slane %v790_v52, %v3304_v42  ;;  %v812_v13 = vcombine.high %v790_v52, %v790_v52 }
  0x21   : > { %v797_v49 = vrot.slane %v781_v39, %v773_v38 }
  0x22   : > { %2765 = vmatmul.mubr.msk.bf16.vlgmr.msra.gmra.mrb[4].mxu0 %vm380_vm1, %v3239_v17  ;;  %2771 = vmatmul.mubr.msk.bf16.vlgmr.msra.gmra.mrb[4].mxu1 %vm380_vm1, %v3242_v18  ;;  %v3302_v41 = vrot.slane %v783_v40, %v773_v38  ;;  %v3327_v62 = vrot.slane %v804_v53, %v3304_v42  ;;  %v3342_v34 = vrot.slane %v812_v13, %v3304_v42 }
  0x23   : > { %2775 = vmatpush3.bf16.xpose.msra.mxu0 %v569_v19  ;;  %2781 = vmatpush3.bf16.xpose.msra.mxu1 %v615_v20  ;;  %v814_v19 = vcombine.high %v804_v53, %v804_v53 }
  0x24   : > { %2776 = vmatprep.mubr.msk.bf16.mxu0 %vm3118_vm0, %v3117_v0  ;;  %2782 = vmatprep.mubr.msk.bf16.mxu1 %vm3118_vm0, %v3117_v0  ;;  %v815_v43 = vcombine.high %v3302_v41, %v3302_v41 }
  0x25   : > { %2786 = vmatprep.subr.bf16.mxu0 %v3117_v0  ;;  %2792 = vmatprep.subr.bf16.mxu1 %v3117_v0  ;;  %v3345_v35 = vrot.slane %v814_v19, %v3304_v42 }
  0x26   : > { %v3309_v44 = vrot.slane %v815_v43, %v3304_v42 }
  0x2a   : > { %2777 = vmatmul.mubr.msk.bf16.vlgmr.msra.gmra.mrb[8].mxu0 %vm380_vm1, %v3265_v23  ;;  %2783 = vmatmul.mubr.msk.bf16.vlgmr.msra.gmra.mrb[8].mxu1 %vm380_vm1, %v3268_v24 }
  0x2b   : > { %2787 = vmatpush3.bf16.xpose.msra.mxu0 %v661_v25  ;;  %2788 = vmatprep.mubr.msk.bf16.mxu0 %vm3118_vm0, %v3117_v0 }
  0x2c   : > { %2793 = vmatpush3.bf16.xpose.msra.mxu1 %v707_v26  ;;  %2794 = vmatprep.mubr.msk.bf16.mxu1 %vm3118_vm0, %v3117_v0 }
  0x2d   : > { %2804 = vmatprep.subr.bf16.mxu1 %v3117_v0  ;;  %2798 = vmatprep.subr.bf16.mxu0 %v3117_v0 }
  0x32   : > { %2789 = vmatmul.mubr.msk.bf16.vlgmr.msra.gmra.mrb[12].mxu0 %vm380_vm1, %v3285_v27 }
  0x33   : > { %2795 = vmatmul.mubr.msk.bf16.vlgmr.msra.gmra.mrb[12].mxu1 %vm380_vm1, %v3288_v28  ;;  %2800 = vmatprep.mubr.msk.bf16.mxu0 %vm3118_vm0, %v3117_v0 }
  0x34   : > { %2806 = vmatprep.mubr.msk.bf16.mxu1 %vm3118_vm0, %v3117_v0 }
  0x87   : > { %v1016_v45 = vpop.permute.xlu1 %1015  ;;  %v964_v46 = vpop.permute.xlu0 %963 }
  0x88   : > { %v1021_v47 = vsel %vm968_vm2, %v1016_v45, 0  ;;  %v970_v48 = vsel %vm968_vm2, %v964_v46, 0 }
  0x89   : > { %2805 = vmatpush3.bf16.msra.mxu1 %v1021_v47  ;;  %2799 = vmatpush3.bf16.msra.mxu0 %v970_v48 }
  0x8a   : > { %2810 = vmatprep.subr.bf16.mxu0 %v3117_v0  ;;  %2816 = vmatprep.subr.bf16.mxu1 %v3117_v0 }
  0xed   : > { %v421_v55 = vpop.f32.mrb[0].mxu0  ;;  %v467_v56 = vpop.f32.mrb[0].mxu1 }
  0xee   : > { %v749_v57 = vmul.f32 0.35355338, %v421_v55  ;;  %v2754_v58 = vpop.f32.mrb[1].mxu0  ;;  %v750_v59 = vmul.f32 0.35355338, %v467_v56  ;;  %v2760_v60 = vpop.f32.mrb[1].mxu1 }
  0xef   : > { %v424_v63 = vpop.f32.mrb[2].mxu0  ;;  %v470_v1 = vpop.f32.mrb[2].mxu1  ;;  %v3364_v60 = vrot.slane %v797_v49, %v3304_v42 }
  0xf0   : > { %v758_v2 = vadd.f32 %v3321_v54, %v749_v57  ;;  %v759_v3 = vadd.f32 %v3321_v54, %v750_v59  ;;  %v2755_v5 = vpop.f32.mrb[3].mxu0  ;;  %v2761_v7 = vpop.f32.mrb[3].mxu1  ;;  %v3361_v59 = vrot.slane %v3302_v41, %v3304_v42  ;;  %v813_v41 = vcombine.high %v797_v49, %v797_v49 }
  0xf2   : > { %v3332_v8 = vadd.f32 %v3324_v61, %v758_v2  ;;  %v3335_v12 = vadd.f32 %v3327_v62, %v759_v3 }
  0xf4   : > { %v864_v20 = vsel %vm380_vm1, %v3332_v8, -inf  ;;  %v867_v29 = vsel %vm380_vm1, %v3335_v12, -inf }
  0xf5   : > { %865 = vmax.xlane.f32.xlu0 %v864_v20  ;;  %v513_v25 = vpop.f32.mrb[4].mxu0  ;;  %v559_v26 = vpop.f32.mrb[4].mxu1 }
  0xf6   : > { %v751_v30 = vmul.f32 0.35355338, %v513_v25  ;;  %v2766_v31 = vpop.f32.mrb[5].mxu0  ;;  %v752_v32 = vmul.f32 0.35355338, %v559_v26  ;;  %v2772_v33 = vpop.f32.mrb[5].mxu1 }
  0xf7   : > { %v516_v36 = vpop.f32.mrb[6].mxu0  ;;  %v562_v37 = vpop.f32.mrb[6].mxu1 }
  0xf8   : > { %v760_v40 = vadd.f32 %v3321_v54, %v751_v30  ;;  %v761_v43 = vadd.f32 %v3321_v54, %v752_v32  ;;  %v2767_v45 = vpop.f32.mrb[7].mxu0  ;;  %v2773_v46 = vpop.f32.mrb[7].mxu1 }
  0xf9   : > { %868 = vmax.xlane.f32.xlu0 %v867_v29  ;;  %v3376_v29 = vrot.slane %v813_v41, %v3304_v42  ;;  %v3384_v42 = vcombine.low %v3234_v16, %v3234_v16 }
  0xfa   : > { %v3350_v47 = vadd.f32 %v3342_v34, %v760_v40  ;;  %v3353_v48 = vadd.f32 %v3345_v35, %v761_v43 }
  0xfc   : > { %v870_v50 = vsel %vm380_vm1, %v3350_v47, -inf  ;;  %v873_v55 = vsel %vm380_vm1, %v3353_v48, -inf }
  0xfd   : > { %v651_v52 = vpop.f32.mrb[8].mxu1  ;;  %871 = vmax.xlane.f32.xlu1 %v870_v50  ;;  %v605_v53 = vpop.f32.mrb[8].mxu0 }
  0xfe   : > { %v754_v56 = vmul.f32 0.35355338, %v651_v52  ;;  %v753_v57 = vmul.f32 0.35355338, %v605_v53  ;;  %v2778_v58 = vpop.f32.mrb[9].mxu0  ;;  %v2784_v38 = vpop.f32.mrb[9].mxu1  ;;  %v3390_v52 = vcombine.low %v3231_v15, %v3231_v15 }
  0xff   : > { %v608_v39 = vpop.f32.mrb[10].mxu0  ;;  %v654_v63 = vpop.f32.mrb[10].mxu1 }
 0x100   : > { %v763_v1 = vadd.f32 %v3321_v54, %v754_v56  ;;  %v762_v2 = vadd.f32 %v3321_v54, %v753_v57  ;;  %v2779_v3 = vpop.f32.mrb[11].mxu0  ;;  %v2785_v5 = vpop.f32.mrb[11].mxu1 }
 0x101   : > { %874 = vmax.xlane.f32.xlu1 %v873_v55  ;;  %v3399_v55 = vpop.permute.xlu1 %1066 }
 0x102   : > { %v3369_v7 = vadd.f32 %v3361_v59, %v763_v1  ;;  %v860_v13 = vadd.f32 %v3364_v60, %v762_v2 }
 0x104   : > { %v879_v19 = vsel %vm380_vm1, %v3369_v7, -inf  ;;  %v876_v20 = vsel %vm380_vm1, %v860_v13, -inf }
 0x105   : > { %880 = vmax.xlane.f32.xlu1 %v879_v19  ;;  %877 = vmax.xlane.f32.xlu0 %v876_v20  ;;  %v697_v25 = vpop.f32.mrb[12].mxu0  ;;  %v3402_v58 = vpop.permute.xlu1 %1117 }
 0x106   : > { %v755_v26 = vmul.f32 0.35355338, %v697_v25  ;;  %v743_v30 = vpop.f32.mrb[12].mxu1  ;;  %v2790_v31 = vpop.f32.mrb[13].mxu0 }
 0x107   : > { %v756_v32 = vmul.f32 0.35355338, %v743_v30  ;;  %v2796_v33 = vpop.f32.mrb[13].mxu1  ;;  %v700_v36 = vpop.f32.mrb[14].mxu0 }
 0x108   : > { %v764_v37 = vadd.f32 %v3321_v54, %v755_v26  ;;  %v746_v40 = vpop.f32.mrb[14].mxu1  ;;  %v2791_v43 = vpop.f32.mrb[15].mxu0  ;;  %v3429_v36 = vcombine.low %v3262_v22, %v3262_v22 }
 0x109   : > { %v765_v45 = vadd.f32 %v3321_v54, %v756_v32  ;;  %v2797_v46 = vpop.f32.mrb[15].mxu1 }
 0x10a   : > { %v862_v49 = vadd.f32 %v3376_v29, %v764_v37  ;;  %v3435_v37 = vcombine.low %v3258_v21, %v3258_v21 }
 0x10b   : > { %v3395_v54 = vadd.f32 %v3309_v44, %v765_v45 }
 0x10c   : > { %v882_v50 = vsel %vm380_vm1, %v862_v49, -inf }
 0x10d   : > { %883 = vmax.xlane.f32.xlu0 %v882_v50  ;;  %v885_v53 = vsel %vm380_vm1, %v3395_v54, -inf }
 0x116   : > { %1219 = vrot.lane.b32.xlu1 %v3384_v42, %s3119_s26 }
 0x123   : > { %1168 = vrot.lane.b32.xlu0 %v3390_v52, %s3119_s26 }
 0x13a   : > { %886 = vmax.xlane.f32.xlu1 %v885_v53 }
 0x182   : > { %v866_v16 = vpop.xlane.xlu0 %865 }
 0x183   : > { %v888_v56 = vsub.f32 %v3332_v8, %v866_v16 }
 0x185   : > { %v896_v57 = vmul.f32 1.442695, %v888_v56 }
 0x186   : > { %v869_v15 = vpop.xlane.xlu0 %868 }
 0x187   : > { %2989 = vpow2.f32 %v896_v57  ;;  %v889_v38 = vsub.f32 %v3335_v12, %v869_v15 }
 0x189   : > { %v898_v39 = vmul.f32 1.442695, %v889_v38 }
 0x18a   : > { %v872_v63 = vpop.xlane.xlu1 %871 }
 0x18b   : > { %2991 = vpow2.f32 %v898_v39  ;;  %v890_v1 = vsub.f32 %v3350_v47, %v872_v63  ;;  %v2648_v39 = vcombine.low %v3239_v17, %v3239_v17  ;;  %v2656_v63 = vcombine.low %v3285_v27, %v3285_v27 }
 0x18d   : > { %v900_v2 = vmul.f32 1.442695, %v890_v1  ;;  %v2646_v1 = vcombine.low %v3212_v11, %v3212_v11  ;;  %v2654_v11 = vcombine.low %v3268_v24, %v3268_v24  ;;  %v1072_v24 = vsel %vm968_vm2, %v3399_v55, 0 }
 0x18e   : > { %v875_v3 = vpop.xlane.xlu1 %874 }
 0x18f   : > { %2993 = vpow2.f32 %v900_v2  ;;  %v891_v5 = vsub.f32 %v3353_v48, %v875_v3  ;;  %v2650_v2 = vcombine.low %v3242_v18, %v3242_v18 }
 0x191   : > { %v3407_v41 = vpop.eup %2989  ;;  %v902_v8 = vmul.f32 1.442695, %v891_v5 }
 0x192   : > { %v878_v19 = vpop.xlane.xlu0 %877  ;;  %v912_v20 = vsel %vm380_vm1, %v3407_v41, 0.0  ;;  %v881_v40 = vpop.xlane.xlu1 %880 }
 0x193   : > { %2995 = vpow2.f32 %v902_v8  ;;  %v892_v25 = vsub.f32 %v860_v13, %v878_v19  ;;  %913 = vadd.xlane.f32.xlu0 %v912_v20  ;;  %v893_v43 = vsub.f32 %v3369_v7, %v881_v40 }
 0x195   : > { %v3411_v12 = vpop.eup %2991  ;;  %v904_v26 = vmul.f32 1.442695, %v892_v25  ;;  %v906_v46 = vmul.f32 1.442695, %v893_v43  ;;  %v2658_v25 = vcombine.low %v3288_v28, %v3288_v28 }
 0x196   : > { %v915_v47 = vsel %vm380_vm1, %v3411_v12, 0.0  ;;  %v3450_v7 = vpop.permute.xlu1 %1219 }
 0x197   : > { %916 = vadd.xlane.f32.xlu1 %v915_v47  ;;  %2997 = vpow2.f32 %v904_v26 }
 0x198   : > { %2999 = vpow2.f32 %v906_v46 }
 0x199   : > { %v3415_v30 = vpop.eup %2993 }
 0x19a   : > { %v918_v48 = vsel %vm380_vm1, %v3415_v30, 0.0  ;;  %v884_v45 = vpop.xlane.xlu0 %883 }
 0x19b   : > { %919 = vadd.xlane.f32.xlu0 %v918_v48  ;;  %v894_v50 = vsub.f32 %v862_v49, %v884_v45  ;;  %v2644_v49 = vcombine.low %v3209_v10, %v3209_v10  ;;  %v2652_v10 = vcombine.low %v3265_v23, %v3265_v23  ;;  %v1225_v45 = vsel %vm968_vm2, %v3450_v7, 0 }
 0x19d   : > { %v3419_v31 = vpop.eup %2995  ;;  %v908_v53 = vmul.f32 1.442695, %v894_v50 }
 0x19e   : > { %v921_v13 = vsel %vm380_vm1, %v3419_v31, 0.0  ;;  %v1169_v23 = vpop.permute.xlu0 %1168 }
 0x19f   : > { %922 = vadd.xlane.f32.xlu1 %v921_v13  ;;  %3001 = vpow2.f32 %v908_v53  ;;  %v1123_v13 = vsel %vm968_vm2, %v3402_v58, 0  ;;  %v1174_v40 = vsel %vm968_vm2, %v1169_v23, 0 }
 0x1a1   : > { %v3423_v32 = vpop.eup %2997 }
 0x1a2   : > { %v924_v33 = vsel %vm380_vm1, %v3423_v32, 0.0  ;;  %v3440_v22 = vpop.eup %2999 }
 0x1a3   : > { %925 = vadd.xlane.f32.xlu0 %v924_v33  ;;  %v927_v16 = vsel %vm380_vm1, %v3440_v22, 0.0 }
 0x1a9   : > { %v3444_v21 = vpop.eup %3001 }
 0x1aa   : > { %v930_v56 = vsel %vm380_vm1, %v3444_v21, 0.0 }
 0x1b0   : > { %1321 = vrot.lane.b32.xlu1 %v3429_v36, %s3119_s26 }
 0x1b9   : > { %1270 = vrot.lane.b32.xlu0 %v3435_v37, %s3119_s26 }
 0x1c7   : > { %v887_v57 = vpop.xlane.xlu1 %886 }
 0x1c8   : > { %v895_v15 = vsub.f32 %v3395_v54, %v887_v57 }
 0x1ca   : > { %v910_v38 = vmul.f32 1.442695, %v895_v15 }
 0x1cc   : > { %3003 = vpow2.f32 %v910_v38 }
 0x1d4   : > { %928 = vadd.xlane.f32.xlu1 %v927_v16 }
 0x1d6   : > { %v3468_v54 = vpop.eup %3003 }
 0x1d7   : > { %v933_v17 = vsel %vm380_vm1, %v3468_v54, 0.0 }
 0x1d8   : > { %931 = vadd.xlane.f32.xlu0 %v930_v56 }
 0x1e5   : > { %1427 = vrot.lane.b32.xlu1 %v3190_v6, %s3121_s8 }
 0x1ee   : > { %1374 = vrot.lane.b32.xlu0 %v3187_v4, %s3121_s8 }
 0x1f2   : > { %1372 = vrot.lane.b32.xlu0 %v2644_v49, %s3121_s8 }
 0x1f6   : > { %1480 = vrot.lane.b32.xlu0 %v3204_v9, %s3121_s8 }
 0x1fa   : > { %1478 = vrot.lane.b32.xlu0 %v2648_v39, %s3121_s8 }
 0x1fe   : > { %1586 = vrot.lane.b32.xlu0 %v3390_v52, %s3121_s8 }
 0x202   : > { %1584 = vrot.lane.b32.xlu0 %v2652_v10, %s3121_s8 }
 0x206   : > { %1692 = vrot.lane.b32.xlu0 %v3435_v37, %s3121_s8 }
 0x209   : > { %934 = vadd.xlane.f32.xlu1 %v933_v17 }
 0x20a   : > { %1690 = vrot.lane.b32.xlu0 %v2656_v63, %s3121_s8 }
 0x21a   : > { %1425 = vrot.lane.b32.xlu1 %v2646_v1, %s3121_s8 }
 0x21e   : > { %1533 = vrot.lane.b32.xlu1 %v3222_v14, %s3121_s8 }
 0x220   : > { %v914_v3 = vpop.xlane.xlu0 %913 }
 0x221   : > { %3005 = vrcp.f32 %v914_v3 }
 0x222   : > { %1531 = vrot.lane.b32.xlu1 %v2650_v2, %s3121_s8 }
 0x224   : > { %v917_v27 = vpop.xlane.xlu1 %916 }
 0x225   : > { %3007 = vrcp.f32 %v917_v27 }
 0x226   : > { %1639 = vrot.lane.b32.xlu1 %v3384_v42, %s3121_s8 }
 0x228   : > { %v920_v5 = vpop.xlane.xlu0 %919 }
 0x229   : > { %3009 = vrcp.f32 %v920_v5 }
 0x22a   : > { %1637 = vrot.lane.b32.xlu1 %v2654_v11, %s3121_s8 }
 0x22b   : > { %v3006_v8 = vpop.eup %3005 }
 0x22c   : > { %v944_v19 = vmul.f32 %v3006_v8, %v3407_v41  ;;  %v923_v18 = vpop.xlane.xlu1 %922 }
 0x22d   : > { %3011 = vrcp.f32 %v923_v18 }
 0x22e   : > { %v952_v20 = vpack.c.bf16 %v944_v19, %v944_v19  ;;  %1745 = vrot.lane.b32.xlu1 %v3429_v36, %s3121_s8 }
 0x22f   : > { %v3008_v26 = vpop.eup %3007 }
 0x230   : > { %v945_v47 = vmul.f32 %v3008_v26, %v3411_v12  ;;  %2801 = vmatmul.mubr.msk.bf16.vlgmr.msra.gmra.mrb[16].mxu0 %vm380_vm1, %v952_v20  ;;  %v926_v48 = vpop.xlane.xlu0 %925  ;;  %v1322_v16 = vpop.permute.xlu1 %1321 }
 0x231   : > { %2811 = vmatpush3.bf16.msra.mxu0 %v1072_v24  ;;  %2812 = vmatprep.mubr.msk.bf16.mxu0 %vm3118_vm0, %v3117_v0  ;;  %3013 = vrcp.f32 %v926_v48  ;;  %v1327_v10 = vsel %vm968_vm2, %v1322_v16, 0 }
 0x232   : > { %v953_v41 = vpack.c.bf16 %v945_v47, %v945_v47  ;;  %2822 = vmatprep.subr.bf16.mxu0 %v3117_v0  ;;  %1743 = vrot.lane.b32.xlu1 %v2658_v25, %s3121_s8 }
 0x233   : > { %v3010_v28 = vpop.eup %3009 }
 0x234   : > { %v946_v55 = vmul.f32 %v3010_v28, %v3415_v30  ;;  %2807 = vmatmul.mubr.msk.bf16.vlgmr.msra.gmra.mrb[16].mxu1 %vm380_vm1, %v953_v41  ;;  %v1271_v46 = vpop.permute.xlu0 %1270 }
 0x235   : > { %2817 = vmatpush3.bf16.msra.mxu1 %v1123_v13  ;;  %2818 = vmatprep.mubr.msk.bf16.mxu1 %vm3118_vm0, %v3117_v0  ;;  %v1276_v53 = vsel %vm968_vm2, %v1271_v46, 0 }
 0x236   : > { %v954_v12 = vpack.c.bf16 %v946_v55, %v946_v55  ;;  %2828 = vmatprep.subr.bf16.mxu1 %v3117_v0 }
 0x237   : > { %v3012_v33 = vpop.eup %3011 }
 0x238   : > { %v947_v43 = vmul.f32 %v3012_v33, %v3419_v31  ;;  %2813 = vmatmul.mubr.msk.bf16.vlgmr.msra.gmra.mrb[20].mxu0 %vm380_vm1, %v954_v12 }
 0x239   : > { %2823 = vmatpush3.bf16.msra.mxu0 %v1174_v40  ;;  %2824 = vmatprep.mubr.msk.bf16.mxu0 %vm3118_vm0, %v3117_v0 }
 0x23a   : > { %v955_v58 = vpack.c.bf16 %v947_v43, %v947_v43  ;;  %2834 = vmatprep.subr.bf16.mxu0 %v3117_v0 }
 0x23b   : > { %v3014_v30 = vpop.eup %3013 }
 0x23c   : > { %2819 = vmatmul.mubr.msk.bf16.vlgmr.msra.gmra.mrb[20].mxu1 %vm380_vm1, %v955_v58  ;;  %v948_v50 = vmul.f32 %v3014_v30, %v3423_v32 }
 0x23d   : > { %2829 = vmatpush3.bf16.msra.mxu1 %v1225_v45  ;;  %2830 = vmatprep.mubr.msk.bf16.mxu1 %vm3118_vm0, %v3117_v0 }
 0x23e   : > { %2840 = vmatprep.subr.bf16.mxu1 %v3117_v0  ;;  %v956_v31 = vpack.c.bf16 %v948_v50, %v948_v50 }
 0x240   : > { %2825 = vmatmul.mubr.msk.bf16.vlgmr.msra.gmra.mrb[24].mxu0 %vm380_vm1, %v956_v31 }
 0x241   : > { %2835 = vmatpush3.bf16.msra.mxu0 %v1276_v53  ;;  %2836 = vmatprep.mubr.msk.bf16.mxu0 %vm3118_vm0, %v3117_v0 }
 0x242   : > { %2846 = vmatprep.subr.bf16.mxu0 %v3117_v0 }
 0x261   : > { %v929_v56 = vpop.xlane.xlu1 %928 }
 0x262   : > { %3015 = vrcp.f32 %v929_v56 }
 0x265   : > { %v932_v32 = vpop.xlane.xlu0 %931  ;;  %v1428_v8 = vpop.permute.xlu1 %1427 }
 0x266   : > { %3017 = vrcp.f32 %v932_v32  ;;  %v1433_v48 = vsel %vm380_vm1, %v1428_v8, 0 }
 0x269   : > { %v1375_v7 = vpop.permute.xlu0 %1374 }
 0x26a   : > { %v1380_v17 = vsel %vm380_vm1, %v1375_v7, 0 }
 0x26c   : > { %v3016_v49 = vpop.eup %3015 }
 0x26d   : > { %v949_v57 = vmul.f32 %v3016_v49, %v3440_v22  ;;  %v1373_v38 = vpop.permute.xlu0 %1372 }
 0x26f   : > { %v957_v15 = vpack.c.bf16 %v949_v57, %v949_v57 }
 0x270   : > { %v3018_v39 = vpop.eup %3017 }
 0x271   : > { %2831 = vmatmul.mubr.msk.bf16.vlgmr.msra.gmra.mrb[24].mxu1 %vm380_vm1, %v957_v15  ;;  %v950_v63 = vmul.f32 %v3018_v39, %v3444_v21  ;;  %v1481_v23 = vpop.permute.xlu0 %1480 }
 0x272   : > { %2841 = vmatpush3.bf16.msra.mxu1 %v1327_v10  ;;  %2842 = vmatprep.mubr.msk.bf16.mxu1 %vm3118_vm0, %v3117_v0  ;;  %v1486_v21 = vsel %vm380_vm1, %v1481_v23, 0 }
 0x273   : > { %2852 = vmatprep.subr.bf16.mxu1 %v3117_v0  ;;  %v958_v1 = vpack.c.bf16 %v950_v63, %v950_v63 }
 0x275   : > { %2837 = vmatmul.mubr.msk.bf16.vlgmr.msra.gmra.mrb[28].mxu0 %vm380_vm1, %v958_v1  ;;  %v1479_v22 = vpop.permute.xlu0 %1478 }
 0x276   : > { %2847 = vmatpush3.bf16.xpose.msra.mxu0 %v1380_v17  ;;  %2848 = vmatprep.mubr.msk.bf16.mxu0 %vm3118_vm0, %v3117_v0 }
 0x277   : > { %2858 = vmatprep.subr.bf16.mxu0 %v3117_v0 }
 0x279   : > { %v1587_v2 = vpop.permute.xlu0 %1586 }
 0x27a   : > { %v1592_v27 = vsel %vm380_vm1, %v1587_v2, 0 }
 0x27d   : > { %2849 = vmatmul.mubr.msk.bf16.vlgmr.msra.gmra.mrb[32].mxu0 %vm380_vm1, %v1373_v38  ;;  %v1585_v3 = vpop.permute.xlu0 %1584 }
 0x27e   : > { %2859 = vmatpush3.bf16.xpose.msra.mxu0 %v1486_v21  ;;  %2860 = vmatprep.mubr.msk.bf16.mxu0 %vm3118_vm0, %v3117_v0 }
 0x27f   : > { %2870 = vmatprep.subr.bf16.mxu0 %v3117_v0 }
 0x281   : > { %v1693_v11 = vpop.permute.xlu0 %1692 }
 0x282   : > { %v1698_v5 = vsel %vm380_vm1, %v1693_v11, 0 }
 0x285   : > { %2861 = vmatmul.mubr.msk.bf16.vlgmr.msra.gmra.mrb[36].mxu0 %vm380_vm1, %v1479_v22  ;;  %v1691_v19 = vpop.permute.xlu0 %1690 }
 0x286   : > { %2871 = vmatpush3.bf16.xpose.msra.mxu0 %v1592_v27  ;;  %2872 = vmatprep.mubr.msk.bf16.mxu0 %vm3118_vm0, %v3117_v0 }
 0x287   : > { %2882 = vmatprep.subr.bf16.mxu0 %v3117_v0 }
 0x28d   : > { %2873 = vmatmul.mubr.msk.bf16.vlgmr.msra.gmra.mrb[40].mxu0 %vm380_vm1, %v1585_v3 }
 0x28e   : > { %2883 = vmatpush3.bf16.xpose.msra.mxu0 %v1698_v5  ;;  %2884 = vmatprep.mubr.msk.bf16.mxu0 %vm3118_vm0, %v3117_v0  ;;  %v3597_v5 = vunpack.c.h.bf16 %v3318_v51 }
 0x28f   : > { %2894 = vmatprep.subr.bf16.mxu0 %v3117_v0 }
 0x295   : > { %2885 = vmatmul.mubr.msk.bf16.vlgmr.msra.gmra.mrb[44].mxu0 %vm380_vm1, %v1691_v19 }
 0x296   : > { %v935_v18 = vpop.xlane.xlu1 %934  ;;  %2896 = vmatprep.mubr.msk.bf16.mxu0 %vm3118_vm0, %v3117_v0 }
 0x297   : > { %3019 = vrcp.f32 %v935_v18 }
 0x29a   : > { %v1426_v20 = vpop.permute.xlu1 %1425 }
 0x29e   : > { %v1534_v47 = vpop.permute.xlu1 %1533 }
 0x29f   : > { %v1539_v28 = vsel %vm380_vm1, %v1534_v47, 0 }
 0x2a1   : > { %v3020_v25 = vpop.eup %3019 }
 0x2a2   : > { %v951_v26 = vmul.f32 %v3020_v25, %v3468_v54  ;;  %v1532_v41 = vpop.permute.xlu1 %1531 }
 0x2a4   : > { %v959_v24 = vpack.c.bf16 %v951_v26, %v951_v26 }
 0x2a6   : > { %2843 = vmatmul.mubr.msk.bf16.vlgmr.msra.gmra.mrb[28].mxu1 %vm380_vm1, %v959_v24  ;;  %v1640_v54 = vpop.permute.xlu1 %1639 }
 0x2a7   : > { %2853 = vmatpush3.bf16.xpose.msra.mxu1 %v1433_v48  ;;  %2854 = vmatprep.mubr.msk.bf16.mxu1 %vm3118_vm0, %v3117_v0  ;;  %v1645_v13 = vsel %vm380_vm1, %v1640_v54, 0 }
 0x2a8   : > { %2864 = vmatprep.subr.bf16.mxu1 %v3117_v0 }
 0x2aa   : > { %v1638_v55 = vpop.permute.xlu1 %1637 }
 0x2ae   : > { %2855 = vmatmul.mubr.msk.bf16.vlgmr.msra.gmra.mrb[32].mxu1 %vm380_vm1, %v1426_v20  ;;  %v1746_v12 = vpop.permute.xlu1 %1745 }
 0x2af   : > { %2865 = vmatpush3.bf16.xpose.msra.mxu1 %v1539_v28  ;;  %2866 = vmatprep.mubr.msk.bf16.mxu1 %vm3118_vm0, %v3117_v0  ;;  %v1751_v33 = vsel %vm380_vm1, %v1746_v12, 0 }
 0x2b0   : > { %2876 = vmatprep.subr.bf16.mxu1 %v3117_v0 }
 0x2b2   : > { %v1744_v40 = vpop.permute.xlu1 %1743 }
 0x2b6   : > { %2867 = vmatmul.mubr.msk.bf16.vlgmr.msra.gmra.mrb[36].mxu1 %vm380_vm1, %v1532_v41 }
 0x2b7   : > { %2877 = vmatpush3.bf16.xpose.msra.mxu1 %v1645_v13  ;;  %2878 = vmatprep.mubr.msk.bf16.mxu1 %vm3118_vm0, %v3117_v0 }
 0x2b8   : > { %2888 = vmatprep.subr.bf16.mxu1 %v3117_v0 }
 0x2be   : > { %2879 = vmatmul.mubr.msk.bf16.vlgmr.msra.gmra.mrb[40].mxu1 %vm380_vm1, %v1638_v55 }
 0x2bf   : > { %2889 = vmatpush3.bf16.xpose.msra.mxu1 %v1751_v33  ;;  %2890 = vmatprep.mubr.msk.bf16.mxu1 %vm3118_vm0, %v3117_v0 }
 0x2c0   : > { %2900 = vmatprep.subr.bf16.mxu1 %v3117_v0 }
 0x2c6   : > { %2891 = vmatmul.mubr.msk.bf16.vlgmr.msra.gmra.mrb[44].mxu1 %vm380_vm1, %v1744_v40 }
 0x2c7   : > { %2902 = vmatprep.mubr.msk.bf16.mxu1 %vm3118_vm0, %v3117_v0 }
 0x303   : > { %v3582_v43 = vpop.f32.mrb[16].mxu0 }
 0x304   : > { %v2802_v58 = vpop.f32.mrb[17].mxu0 }
 0x305   : > { %v1009_v30 = vpop.f32.mrb[18].mxu0 }
 0x306   : > { %v2803_v45 = vpop.f32.mrb[19].mxu0 }
 0x307   : > { %v3584_v46 = vpop.f32.mrb[16].mxu1 }
 0x308   : > { %v2808_v50 = vpop.f32.mrb[17].mxu1 }
 0x309   : > { %v1060_v31 = vpop.f32.mrb[18].mxu1 }
 0x30a   : > { %v2809_v53 = vpop.f32.mrb[19].mxu1 }
 0x30b   : > { %v3586_v16 = vpop.f32.mrb[20].mxu0 }
 0x30c   : > { %v2814_v56 = vpop.f32.mrb[21].mxu0 }
 0x30d   : > { %v1111_v32 = vpop.f32.mrb[22].mxu0 }
 0x30e   : > { %v2815_v7 = vpop.f32.mrb[23].mxu0 }
 0x30f   : > { %v3588_v49 = vpop.f32.mrb[20].mxu1 }
 0x310   : > { %v2820_v57 = vpop.f32.mrb[21].mxu1 }
 0x311   : > { %v1162_v15 = vpop.f32.mrb[22].mxu1 }
 0x312   : > { %v2821_v38 = vpop.f32.mrb[23].mxu1 }
 0x313   : > { %v3590_v39 = vpop.f32.mrb[24].mxu0 }
 0x314   : > { %v2826_v10 = vpop.f32.mrb[25].mxu0 }
 0x315   : > { %v1213_v63 = vpop.f32.mrb[26].mxu0 }
 0x316   : > { %v2827_v17 = vpop.f32.mrb[27].mxu0 }
 0x344   : > { %v3592_v1 = vpop.f32.mrb[24].mxu1 }
 0x345   : > { %v2832_v23 = vpop.f32.mrb[25].mxu1 }
 0x346   : > { %v1264_v22 = vpop.f32.mrb[26].mxu1 }
 0x347   : > { %v2833_v21 = vpop.f32.mrb[27].mxu1 }
 0x348   : > { %v3594_v2 = vpop.f32.mrb[28].mxu0 }
 0x349   : > { %v2838_v3 = vpop.f32.mrb[29].mxu0 }
 0x34a   : > { %v1315_v27 = vpop.f32.mrb[30].mxu0 }
 0x34b   : > { %v2839_v11 = vpop.f32.mrb[31].mxu0 }
 0x350   : > { %v1416_v8 = vpop.f32.mrb[32].mxu0 }
 0x351   : > { %v1793_v19 = vmul.f32 0.35355338, %v1416_v8  ;;  %v2850_v18 = vpop.f32.mrb[33].mxu0 }
 0x352   : > { %v1419_v20 = vpop.f32.mrb[34].mxu0 }
 0x353   : > { %v1802_v25 = vadd.f32 %v3597_v5, %v1793_v19  ;;  %v2851_v26 = vpop.f32.mrb[35].mxu0 }
 0x355   : > { %v3601_v24 = vadd.f32 %v1802_v25, %v3324_v61 }
 0x357   : > { %v1818_v47 = vsel %vm380_vm1, %v3601_v24, -inf }
 0x358   : > { %1819 = vmax.xlane.f32.xlu0 %v1818_v47  ;;  %v1522_v48 = vpop.f32.mrb[36].mxu0 }
 0x359   : > { %v1795_v41 = vmul.f32 0.35355338, %v1522_v48  ;;  %v2862_v28 = vpop.f32.mrb[37].mxu0 }
 0x35a   : > { %v1525_v54 = vpop.f32.mrb[38].mxu0 }
 0x35b   : > { %v1804_v51 = vadd.f32 %v3597_v5, %v1795_v41  ;;  %v2863_v13 = vpop.f32.mrb[39].mxu0 }
 0x35d   : > { %v3607_v55 = vadd.f32 %v1804_v51, %v3342_v34 }
 0x35f   : > { %v1824_v12 = vsel %vm380_vm1, %v3607_v55, -inf }
 0x360   : > { %1825 = vmax.xlane.f32.xlu0 %v1824_v12  ;;  %v1628_v61 = vpop.f32.mrb[40].mxu0 }
 0x361   : > { %v2874_v33 = vpop.f32.mrb[41].mxu0  ;;  %v1797_v23 = vmul.f32 0.35355338, %v1628_v61 }
 0x362   : > { %v1631_v40 = vpop.f32.mrb[42].mxu0 }
 0x363   : > { %v2875_v58 = vpop.f32.mrb[43].mxu0  ;;  %v1806_v11 = vadd.f32 %v3597_v5, %v1797_v23 }
 0x368   : > { %v1734_v30 = vpop.f32.mrb[44].mxu0 }
 0x369   : > { %v2886_v45 = vpop.f32.mrb[45].mxu0  ;;  %v1799_v8 = vmul.f32 0.35355338, %v1734_v30 }
 0x36a   : > { %v1737_v50 = vpop.f32.mrb[46].mxu0 }
 0x36b   : > { %v2887_v31 = vpop.f32.mrb[47].mxu0  ;;  %v1808_v26 = vadd.f32 %v3597_v5, %v1799_v8 }
 0x36d   : > { %v1816_v51 = vadd.f32 %v1808_v26, %v3376_v29 }
 0x379   : > { %v3611_v53 = vpop.f32.mrb[28].mxu1 }
 0x37a   : > { %v2844_v56 = vpop.f32.mrb[29].mxu1 }
 0x37b   : > { %v1366_v32 = vpop.f32.mrb[30].mxu1 }
 0x37c   : > { %v2845_v7 = vpop.f32.mrb[31].mxu1 }
 0x381   : > { %v1469_v57 = vpop.f32.mrb[32].mxu1 }
 0x382   : > { %v1794_v34 = vmul.f32 0.35355338, %v1469_v57  ;;  %v2856_v15 = vpop.f32.mrb[33].mxu1 }
 0x383   : > { %v1472_v38 = vpop.f32.mrb[34].mxu1 }
 0x384   : > { %v1803_v10 = vadd.f32 %v3597_v5, %v1794_v34  ;;  %v2857_v63 = vpop.f32.mrb[35].mxu1 }
 0x386   : > { %v1811_v17 = vadd.f32 %v1803_v10, %v3327_v62  ;;  %v1814_v62 = vadd.f32 %v1806_v11, %v3364_v60  ;;  %v1836_v60 = vsel %vm380_vm1, %v1816_v51, -inf }
 0x388   : > { %v1821_v22 = vsel %vm380_vm1, %v1811_v17, -inf  ;;  %v1830_v54 = vsel %vm380_vm1, %v1814_v62, -inf }
 0x389   : > { %1822 = vmax.xlane.f32.xlu1 %v1821_v22  ;;  %v1575_v21 = vpop.f32.mrb[36].mxu1 }
 0x38a   : > { %v1796_v3 = vmul.f32 0.35355338, %v1575_v21  ;;  %v2868_v27 = vpop.f32.mrb[37].mxu1 }
 0x38b   : > { %v1578_v19 = vpop.f32.mrb[38].mxu1 }
 0x38c   : > { %v1805_v18 = vadd.f32 %v3597_v5, %v1796_v3  ;;  %v2869_v20 = vpop.f32.mrb[39].mxu1 }
 0x38e   : > { %v3619_v25 = vadd.f32 %v1805_v18, %v3345_v35  ;;  %v3085_v18 = vld [vmem:[%s3196_s25] sm:$0xf] }
 0x38f   : > { %v2338_v20 = vunpack.c.l.bf16 %v3085_v18 }
 0x390   : > { %v1827_v47 = vsel %vm380_vm1, %v3619_v25, -inf }
 0x391   : > { %v1681_v48 = vpop.f32.mrb[40].mxu1  ;;  %1828 = vmax.xlane.f32.xlu0 %v1827_v47  ;;  %v2668_v26 = vmul.f32 -1.442695, %v2338_v20 }
 0x392   : > { %v1798_v41 = vmul.f32 0.35355338, %v1681_v48  ;;  %v2880_v28 = vpop.f32.mrb[41].mxu1 }
 0x393   : > { %v1684_v13 = vpop.f32.mrb[42].mxu1 }
 0x394   : > { %v1807_v12 = vadd.f32 %v3597_v5, %v1798_v41  ;;  %v2881_v35 = vpop.f32.mrb[43].mxu1 }
 0x395   : > { %1831 = vmax.xlane.f32.xlu0 %v1830_v54  ;;  %v3087_v54 = vld [vmem:[%s3196_s25 + $0x10] sm:$0xf] }
 0x396   : > { %v3629_v61 = vadd.f32 %v1807_v12, %v3361_v59 }
 0x398   : > { %v1833_v33 = vsel %vm380_vm1, %v3629_v61, -inf }
 0x399   : > { %1834 = vmax.xlane.f32.xlu1 %v1833_v33  ;;  %1837 = vmax.xlane.f32.xlu0 %v1836_v60  ;;  %v1787_v40 = vpop.f32.mrb[44].mxu1 }
 0x39a   : > { %v2892_v58 = vpop.f32.mrb[45].mxu1  ;;  %v1800_v59 = vmul.f32 0.35355338, %v1787_v40 }
 0x39b   : > { %v1790_v30 = vpop.f32.mrb[46].mxu1 }
 0x39c   : > { %v2893_v45 = vpop.f32.mrb[47].mxu1  ;;  %v1809_v29 = vadd.f32 %v3597_v5, %v1800_v59 }
 0x39e   : > { %v3642_v50 = vadd.f32 %v1809_v29, %v3309_v44 }
 0x3a0   : > { %v1839_v31 = vsel %vm380_vm1, %v3642_v50, -inf }
 0x3aa   : > { %1962 = vrot.lane.b32.xlu1 %v3190_v6, %s3122_s9 }
 0x3ae   : > { %2010 = vrot.lane.b32.xlu1 %v3204_v9, %s3122_s9 }
 0x3af   : > { %1914 = vrot.lane.b32.xlu0 %v3187_v4, %s3122_s9 }
 0x3d2   : > { %1840 = vmax.xlane.f32.xlu1 %v1839_v31 }
 0x3e3   : > { %2058 = vrot.lane.b32.xlu1 %v3222_v14, %s3122_s9 }
 0x3e5   : > { %v1820_v6 = vpop.xlane.xlu0 %1819 }
 0x3e6   : > { %v1842_v56 = vsub.f32 %v3601_v24, %v1820_v6 }
 0x3e8   : > { %v1850_v9 = vmul.f32 1.442695, %v1842_v56 }
 0x3ea   : > { %3021 = vpow2.f32 %v1850_v9 }
 0x3ed   : > { %v1826_v32 = vpop.xlane.xlu0 %1825 }
 0x3ee   : > { %v1844_v4 = vsub.f32 %v3607_v55, %v1826_v32 }
 0x3f0   : > { %v1854_v7 = vmul.f32 1.442695, %v1844_v4 }
 0x3f2   : > { %3023 = vpow2.f32 %v1854_v7 }
 0x3f4   : > { %v3650_v5 = vpop.eup %3021 }
 0x3f5   : > { %v1866_v44 = vsel %vm380_vm1, %v3650_v5, 0.0 }
 0x3f6   : > { %1867 = vadd.xlane.f32.xlu0 %v1866_v44 }
 0x3fc   : > { %v3654_v57 = vpop.eup %3023 }
 0x3fd   : > { %v1872_v14 = vsel %vm380_vm1, %v3654_v57, 0.0 }
 0x3fe   : > { %1873 = vadd.xlane.f32.xlu0 %v1872_v14 }
 0x414   : > { %2106 = vrot.lane.b32.xlu0 %v3390_v52, %s3122_s9 }
 0x416   : > { %v1823_v24 = vpop.xlane.xlu1 %1822 }
 0x417   : > { %v1843_v34 = vsub.f32 %v1811_v17, %v1823_v24 }
 0x419   : > { %v1852_v55 = vmul.f32 1.442695, %v1843_v34 }
 0x41b   : > { %3025 = vpow2.f32 %v1852_v55 }
 0x41e   : > { %v1829_v15 = vpop.xlane.xlu0 %1828 }
 0x41f   : > { %v1845_v45 = vsub.f32 %v3619_v25, %v1829_v15  ;;  %v3089_v15 = vld [vmem:[%s3196_s25 + $0xc] sm:$0xf] }
 0x421   : > { %v1856_v29 = vmul.f32 1.442695, %v1845_v45 }
 0x422   : > { %v1832_v38 = vpop.xlane.xlu0 %1831 }
 0x423   : > { %v1846_v10 = vsub.f32 %v1814_v62, %v1832_v38  ;;  %v3086_v62 = vld [vmem:[%s3196_s25 + $0x8] sm:$0xf]  ;;  %v2341_v38 = vunpack.c.l.bf16 %v3089_v15 }
 0x424   : > { %v2340_v47 = vunpack.c.l.bf16 %v3086_v62 }
 0x425   : > { %v3660_v63 = vpop.eup %3025  ;;  %v1858_v23 = vmul.f32 1.442695, %v1846_v10  ;;  %v2671_v10 = vmul.f32 -1.442695, %v2341_v38 }
 0x426   : > { %v1835_v22 = vpop.xlane.xlu1 %1834  ;;  %v1838_v21 = vpop.xlane.xlu0 %1837  ;;  %v1869_v3 = vsel %vm380_vm1, %v3660_v63, 0.0  ;;  %v2670_v28 = vmul.f32 -1.442695, %v2340_v47 }
 0x427   : > { %3027 = vpow2.f32 %v1858_v23  ;;  %v1848_v27 = vsub.f32 %v1816_v51, %v1838_v21  ;;  %1870 = vadd.xlane.f32.xlu1 %v1869_v3  ;;  %v2342_v51 = vunpack.c.l.bf16 %v3087_v54  ;;  %v1847_v31 = vsub.f32 %v3629_v61, %v1835_v22  ;;  %v3090_v23 = vld [vmem:[%s3196_s25 + $0x14] sm:$0xf] }
 0x428   : > { %v2343_v22 = vunpack.c.l.bf16 %v3090_v23 }
 0x429   : > { %v1862_v52 = vmul.f32 1.442695, %v1848_v27  ;;  %v2672_v35 = vmul.f32 -1.442695, %v2342_v51  ;;  %v1860_v6 = vmul.f32 1.442695, %v1847_v31 }
 0x42a   : > { %v1963_v17 = vpop.permute.xlu1 %1962  ;;  %v1915_v11 = vpop.permute.xlu0 %1914  ;;  %v2673_v21 = vmul.f32 -1.442695, %v2343_v22 }
 0x42b   : > { %v1968_v8 = vsel %vm968_vm2, %v1963_v17, 0  ;;  %v1920_v19 = vsel %vm968_vm2, %v1915_v11, 0  ;;  %3029 = vpow2.f32 %v1862_v52 }
 0x42c   : > { %2901 = vmatpush3.bf16.msra.mxu1 %v1968_v8  ;;  %2895 = vmatpush3.bf16.msra.mxu0 %v1920_v19  ;;  %3031 = vpow2.f32 %v2668_v26 }
 0x42d   : > { %2906 = vmatprep.subr.bf16.mxu0 %v3117_v0  ;;  %2912 = vmatprep.subr.bf16.mxu1 %v3117_v0  ;;  %3033 = vpow2.f32 %v2670_v28 }
 0x42e   : > { %3035 = vpow2.f32 %v2672_v35  ;;  %v2011_v61 = vpop.permute.xlu1 %2010 }
 0x42f   : > { %v2016_v51 = vsel %vm968_vm2, %v2011_v61, 0 }
 0x431   : > { %v3670_v48 = vpop.eup %3027 }
 0x432   : > { %v1878_v41 = vsel %vm380_vm1, %v3670_v48, 0.0 }
 0x433   : > { %1879 = vadd.xlane.f32.xlu0 %v1878_v41 }
 0x435   : > { %v3675_v13 = vpop.eup %3029 }
 0x436   : > { %v1884_v12 = vsel %vm380_vm1, %v3675_v13, 0.0  ;;  %v3032_v60 = vpop.eup %3031 }
 0x437   : > { %1885 = vadd.xlane.f32.xlu0 %v1884_v12  ;;  %v2370_v33 = vadd.f32 1.0, %v3032_v60  ;;  %v3034_v40 = vpop.eup %3033 }
 0x438   : > { %2154 = vrot.lane.b32.xlu1 %v3384_v42, %s3122_s9  ;;  %v2372_v58 = vadd.f32 1.0, %v3034_v40  ;;  %v3036_v30 = vpop.eup %3035 }
 0x439   : > { %3037 = vrcp.f32 %v2370_v33  ;;  %v2374_v59 = vadd.f32 1.0, %v3036_v30 }
 0x43a   : > { %3039 = vrcp.f32 %v2372_v58 }
 0x43b   : > { %3041 = vrcp.f32 %v2374_v59 }
 0x43c   : > { %3043 = vpow2.f32 %v1856_v29 }
 0x43d   : > { %3045 = vpow2.f32 %v1860_v6 }
 0x443   : > { %v3038_v42 = vpop.eup %3037 }
 0x444   : > { %v3040_v56 = vpop.eup %3039 }
 0x445   : > { %v3042_v25 = vpop.eup %3041 }
 0x446   : > { %v3687_v9 = vpop.eup %3043 }
 0x447   : > { %v1875_v32 = vsel %vm380_vm1, %v3687_v9, 0.0  ;;  %v3692_v4 = vpop.eup %3045 }
 0x448   : > { %v1881_v14 = vsel %vm380_vm1, %v3692_v4, 0.0 }
 0x44d   : > { %2202 = vrot.lane.b32.xlu0 %v3435_v37, %s3122_s9  ;;  %v3088_v37 = vld [vmem:[%s3196_s25 + $0x4] sm:$0xf] }
 0x44e   : > { %v2339_v7 = vunpack.c.l.bf16 %v3088_v37 }
 0x450   : > { %v2669_v55 = vmul.f32 -1.442695, %v2339_v7 }
 0x451   : > { %2402 = vrot.lane.b32.xlu0 %v3038_v42, %s3119_s26 }
 0x455   : > { %2406 = vrot.lane.b32.xlu0 %v3040_v56, %s3119_s26 }
 0x459   : > { %2410 = vrot.lane.b32.xlu0 %v3042_v25, %s3119_s26 }
 0x45c   : > { %1876 = vadd.xlane.f32.xlu1 %v1875_v32 }
 0x45f   : > { %v1841_v44 = vpop.xlane.xlu1 %1840 }
 0x460   : > { %v1849_v24 = vsub.f32 %v3642_v50, %v1841_v44  ;;  %1882 = vadd.xlane.f32.xlu1 %v1881_v14 }
 0x462   : > { %v1864_v34 = vmul.f32 1.442695, %v1849_v24 }
 0x464   : > { %3047 = vpow2.f32 %v1864_v34 }
 0x465   : > { %3049 = vpow2.f32 %v2669_v55 }
 0x466   : > { %3051 = vpow2.f32 %v2671_v10 }
 0x467   : > { %3053 = vpow2.f32 %v2673_v21 }
 0x46e   : > { %v3700_v3 = vpop.eup %3047 }
 0x46f   : > { %v1887_v27 = vsel %vm380_vm1, %v3700_v3, 0.0  ;;  %v3050_v50 = vpop.eup %3049 }
 0x470   : > { %1888 = vadd.xlane.f32.xlu1 %v1887_v27  ;;  %v2371_v52 = vadd.f32 1.0, %v3050_v50  ;;  %v3052_v17 = vpop.eup %3051 }
 0x471   : > { %v2373_v11 = vadd.f32 1.0, %v3052_v17  ;;  %v3054_v8 = vpop.eup %3053 }
 0x472   : > { %3055 = vrcp.f32 %v2371_v52  ;;  %v2375_v19 = vadd.f32 1.0, %v3054_v8 }
 0x473   : > { %3057 = vrcp.f32 %v2373_v11 }
 0x474   : > { %3059 = vrcp.f32 %v2375_v19  ;;  %v3091_v19 = vld [vmem:[%s3196_s25 + $0x18] sm:$0xf] }
 0x47c   : > { %v3056_v18 = vpop.eup %3055 }
 0x47d   : > { %v3058_v26 = vpop.eup %3057 }
 0x47e   : > { %v3060_v62 = vpop.eup %3059 }
 0x481   : > { %2250 = vrot.lane.b32.xlu1 %v3429_v36, %s3122_s9 }
 0x483   : > { %v1868_v20 = vpop.xlane.xlu0 %1867 }
 0x484   : > { %3061 = vrcp.f32 %v1868_v20 }
 0x485   : > { %2404 = vrot.lane.b32.xlu1 %v3056_v18, %s3119_s26  ;;  %v2344_v18 = vunpack.c.l.bf16 %v3091_v19 }
 0x487   : > { %v2674_v20 = vmul.f32 -1.442695, %v2344_v18 }
 0x489   : > { %2408 = vrot.lane.b32.xlu1 %v3058_v26, %s3119_s26 }
 0x48b   : > { %v1874_v47 = vpop.xlane.xlu0 %1873 }
 0x48c   : > { %3063 = vrcp.f32 %v1874_v47 }
 0x48d   : > { %2412 = vrot.lane.b32.xlu1 %v3060_v62, %s3119_s26 }
 0x48e   : > { %v3062_v41 = vpop.eup %3061 }
 0x48f   : > { %v1898_v28 = vmul.f32 %v3062_v41, %v3650_v5  ;;  %v2107_v12 = vpop.permute.xlu0 %2106  ;;  %v2059_v5 = vpop.permute.xlu1 %2058 }
 0x490   : > { %v2112_v33 = vsel %vm968_vm2, %v2107_v12, 0  ;;  %v2064_v59 = vsel %vm968_vm2, %v2059_v5, 0 }
 0x491   : > { %v1906_v54 = vpack.c.bf16 %v1898_v28, %v1898_v28 }
 0x493   : > { %2897 = vmatmul.mubr.msk.bf16.vlgmr.msra.gmra.mrb[48].mxu0 %vm380_vm1, %v1906_v54 }
 0x494   : > { %2907 = vmatpush3.bf16.msra.mxu0 %v2016_v51  ;;  %2908 = vmatprep.mubr.msk.bf16.mxu0 %vm3118_vm0, %v3117_v0 }
 0x495   : > { %2918 = vmatprep.subr.bf16.mxu0 %v3117_v0 }
 0x496   : > { %v3064_v36 = vpop.eup %3063 }
 0x497   : > { %v1900_v35 = vmul.f32 %v3064_v36, %v3654_v57 }
 0x499   : > { %v1908_v60 = vpack.c.bf16 %v1900_v35, %v1900_v35 }
 0x49b   : > { %2909 = vmatmul.mubr.msk.bf16.vlgmr.msra.gmra.mrb[52].mxu0 %vm380_vm1, %v1908_v60 }
 0x49c   : > { %2919 = vmatpush3.bf16.msra.mxu0 %v2112_v33  ;;  %2920 = vmatprep.mubr.msk.bf16.mxu0 %vm3118_vm0, %v3117_v0 }
 0x49d   : > { %2930 = vmatprep.subr.bf16.mxu0 %v3117_v0 }
 0x4b4   : > { %v1871_v40 = vpop.xlane.xlu1 %1870 }
 0x4b5   : > { %3065 = vrcp.f32 %v1871_v40 }
 0x4b8   : > { %v2155_v37 = vpop.permute.xlu1 %2154 }
 0x4b9   : > { %v2160_v55 = vsel %vm968_vm2, %v2155_v37, 0 }
 0x4bf   : > { %v3066_v58 = vpop.eup %3065 }
 0x4c0   : > { %v1899_v30 = vmul.f32 %v3066_v58, %v3660_v63  ;;  %v1880_v45 = vpop.xlane.xlu0 %1879  ;;  %v3092_v58 = vld [vmem:[%s3196_s25 + $0x1c] sm:$0xf] }
 0x4c1   : > { %3067 = vrcp.f32 %v1880_v45 }
 0x4c2   : > { %v1907_v57 = vpack.c.bf16 %v1899_v30, %v1899_v30  ;;  %v2345_v30 = vunpack.c.l.bf16 %v3092_v58 }
 0x4c4   : > { %2903 = vmatmul.mubr.msk.bf16.vlgmr.msra.gmra.mrb[48].mxu1 %vm380_vm1, %v1907_v57  ;;  %v1886_v29 = vpop.xlane.xlu0 %1885  ;;  %v2675_v45 = vmul.f32 -1.442695, %v2345_v30 }
 0x4c5   : > { %2913 = vmatpush3.bf16.msra.mxu1 %v2064_v59  ;;  %2914 = vmatprep.mubr.msk.bf16.mxu1 %vm3118_vm0, %v3117_v0  ;;  %3069 = vrcp.f32 %v1886_v29 }
 0x4c6   : > { %2924 = vmatprep.subr.bf16.mxu1 %v3117_v0 }
 0x4c8   : > { %v2203_v6 = vpop.permute.xlu0 %2202 }
 0x4c9   : > { %v2208_v56 = vsel %vm968_vm2, %v2203_v6, 0 }
 0x4cb   : > { %v3068_v31 = vpop.eup %3067 }
 0x4cc   : > { %v1902_v42 = vmul.f32 %v3068_v31, %v3670_v48  ;;  %v2403_v57 = vpop.permute.xlu0 %2402 }
 0x4ce   : > { %v1910_v63 = vpack.c.bf16 %v1902_v42, %v1902_v42 }
 0x4cf   : > { %v3070_v25 = vpop.eup %3069 }
 0x4d0   : > { %2921 = vmatmul.mubr.msk.bf16.vlgmr.msra.gmra.mrb[56].mxu0 %vm380_vm1, %v1910_v63  ;;  %v1904_v61 = vmul.f32 %v3070_v25, %v3675_v13  ;;  %v2407_v6 = vpop.permute.xlu0 %2406 }
 0x4d1   : > { %2931 = vmatpush3.bf16.msra.mxu0 %v2208_v56  ;;  %2932 = vmatprep.mubr.msk.bf16.mxu0 %vm3118_vm0, %v3117_v0 }
 0x4d2   : > { %v1912_v32 = vpack.c.bf16 %v1904_v61, %v1904_v61 }
 0x4d4   : > { %v2411_v61 = vpop.permute.xlu0 %2410 }
 0x4d8   : > { %2933 = vmatmul.mubr.msk.bf16.vlgmr.msra.gmra.mrb[60].mxu0 %vm380_vm1, %v1912_v32 }
 0x4e9   : > { %v1877_v7 = vpop.xlane.xlu1 %1876 }
 0x4ea   : > { %3071 = vrcp.f32 %v1877_v7 }
 0x4ed   : > { %v1883_v44 = vpop.xlane.xlu1 %1882 }
 0x4ee   : > { %3073 = vrcp.f32 %v1883_v44 }
 0x4f4   : > { %v3072_v48 = vpop.eup %3071 }
 0x4f5   : > { %v1901_v14 = vmul.f32 %v3072_v48, %v3687_v9 }
 0x4f7   : > { %v1909_v24 = vpack.c.bf16 %v1901_v14, %v1901_v14 }
 0x4f8   : > { %v3074_v34 = vpop.eup %3073 }
 0x4f9   : > { %2915 = vmatmul.mubr.msk.bf16.vlgmr.msra.gmra.mrb[52].mxu1 %vm380_vm1, %v1909_v24  ;;  %v1903_v13 = vmul.f32 %v3074_v34, %v3692_v4 }
 0x4fa   : > { %2925 = vmatpush3.bf16.msra.mxu1 %v2160_v55  ;;  %2926 = vmatprep.mubr.msk.bf16.mxu1 %vm3118_vm0, %v3117_v0 }
 0x4fb   : > { %2936 = vmatprep.subr.bf16.mxu1 %v3117_v0  ;;  %v1911_v38 = vpack.c.bf16 %v1903_v13, %v1903_v13 }
 0x4fd   : > { %v1889_v15 = vpop.xlane.xlu1 %1888 }
 0x4fe   : > { %3075 = vrcp.f32 %v1889_v15 }
 0x4ff   : > { %3077 = vpow2.f32 %v2674_v20 }
 0x501   : > { %2927 = vmatmul.mubr.msk.bf16.vlgmr.msra.gmra.mrb[56].mxu1 %vm380_vm1, %v1911_v38  ;;  %v2251_v9 = vpop.permute.xlu1 %2250 }
 0x502   : > { %v2256_v10 = vsel %vm968_vm2, %v2251_v9, 0  ;;  %2938 = vmatprep.mubr.msk.bf16.mxu1 %vm3118_vm0, %v3117_v0 }
 0x503   : > { %2937 = vmatpush3.bf16.msra.mxu1 %v2256_v10 }
 0x508   : > { %v3076_v23 = vpop.eup %3075 }
 0x509   : > { %v1905_v22 = vmul.f32 %v3076_v23, %v3700_v3  ;;  %v3078_v41 = vpop.eup %3077 }
 0x50a   : > { %v2376_v28 = vadd.f32 1.0, %v3078_v41 }
 0x50b   : > { %v1913_v21 = vpack.c.bf16 %v1905_v22, %v1905_v22  ;;  %v2405_v22 = vpop.permute.xlu1 %2404 }
 0x50c   : > { %3079 = vrcp.f32 %v2376_v28 }
 0x50d   : > { %2939 = vmatmul.mubr.msk.bf16.vlgmr.msra.gmra.mrb[60].mxu1 %vm380_vm1, %v1913_v21  ;;  %3081 = vpow2.f32 %v2675_v45 }
 0x50f   : > { %v2409_v21 = vpop.permute.xlu1 %2408 }
 0x516   : > { %v3080_v33 = vpop.eup %3079 }
 0x517   : > { %v3082_v63 = vpop.eup %3081 }
 0x518   : > { %v2377_v56 = vadd.f32 1.0, %v3082_v63 }
 0x51a   : > { %3083 = vrcp.f32 %v2377_v56 }
 0x524   : > { %v3084_v13 = vpop.eup %3083 }
 0x566   : > { %v1956_v4 = vpop.f32.mrb[48].mxu0 }
 0x567   : > { %2306 = vrot.lane.b32.xlu0 %v1956_v4, %s3123_s10  ;;  %v2898_v27 = vpop.f32.mrb[49].mxu0  ;;  %v2413_v4 = vpop.permute.xlu1 %2412 }
 0x568   : > { %v1959_v50 = vpop.f32.mrb[50].mxu0 }
 0x569   : > { %v2899_v52 = vpop.f32.mrb[51].mxu0 }
 0x56e   : > { %v2052_v17 = vpop.f32.mrb[52].mxu0 }
 0x56f   : > { %2310 = vrot.lane.b32.xlu0 %v2052_v17, %s3123_s10  ;;  %v2910_v11 = vpop.f32.mrb[53].mxu0 }
 0x570   : > { %v2055_v0 = vpop.f32.mrb[54].mxu0 }
 0x571   : > { %v2911_v8 = vpop.f32.mrb[55].mxu0 }
 0x597   : > { %v2004_v3 = vpop.f32.mrb[48].mxu1 }
 0x598   : > { %v2904_v26 = vpop.f32.mrb[49].mxu1  ;;  %2308 = vrot.lane.b32.xlu1 %v2004_v3, %s3123_s10 }
 0x599   : > { %v2007_v62 = vpop.f32.mrb[50].mxu1 }
 0x59a   : > { %v2905_v47 = vpop.f32.mrb[51].mxu1 }
 0x5a3   : > { %v2148_v54 = vpop.f32.mrb[56].mxu0 }
 0x5a4   : > { %2314 = vrot.lane.b32.xlu0 %v2148_v54, %s3123_s10  ;;  %v2922_v51 = vpop.f32.mrb[57].mxu0 }
 0x5a5   : > { %v2151_v36 = vpop.f32.mrb[58].mxu0 }
 0x5a6   : > { %v2923_v12 = vpop.f32.mrb[59].mxu0 }
 0x5ab   : > { %v2244_v35 = vpop.f32.mrb[60].mxu0 }
 0x5ac   : > { %2318 = vrot.lane.b32.xlu0 %v2244_v35, %s3123_s10  ;;  %v2934_v60 = vpop.f32.mrb[61].mxu0 }
 0x5ad   : > { %v2247_v5 = vpop.f32.mrb[62].mxu0 }
 0x5ae   : > { %v2935_v40 = vpop.f32.mrb[63].mxu0 }
 0x5b0   : > { %2414 = vrot.lane.b32.xlu0 %v3080_v33, %s3119_s26 }
 0x5cc   : > { %v2100_v59 = vpop.f32.mrb[52].mxu1 }
 0x5cd   : > { %2312 = vrot.lane.b32.xlu1 %v2100_v59, %s3123_s10  ;;  %v2916_v29 = vpop.f32.mrb[53].mxu1 }
 0x5ce   : > { %v2103_v31 = vpop.f32.mrb[54].mxu1 }
 0x5cf   : > { %v2917_v42 = vpop.f32.mrb[55].mxu1 }
 0x5d4   : > { %v2196_v25 = vpop.f32.mrb[56].mxu1 }
 0x5d5   : > { %2316 = vrot.lane.b32.xlu1 %v2196_v25, %s3123_s10  ;;  %v2928_v32 = vpop.f32.mrb[57].mxu1 }
 0x5d6   : > { %v2199_v37 = vpop.f32.mrb[58].mxu1 }
 0x5d7   : > { %v2929_v7 = vpop.f32.mrb[59].mxu1 }
 0x5d9   : > { %v2307_v44 = vpop.permute.xlu0 %2306 }
 0x5da   : > { %v2330_v48 = vsel %vm380_vm1, %v3582_v43, %v2307_v44 }
 0x5db   : > { %v2426_v14 = vmul.f32 %v2403_v57, %v2330_v48 }
 0x5dd   : > { %v2434_v24 = vpack.c.bf16 %v2426_v14, %v2426_v14 }
 0x5df   : > { %2443 = vst.msk [vmem:[%s3763_s13] sm:$0xf] %vm2442_vm3, %v2434_v24 }
 0x5e0   : > { %v2292_v34 = vpop.f32.mrb[60].mxu1 }
 0x5e1   : > { %2320 = vrot.lane.b32.xlu1 %v2292_v34, %s3123_s10  ;;  %v2940_v55 = vpop.f32.mrb[61].mxu1  ;;  %v2311_v15 = vpop.permute.xlu0 %2310 }
 0x5e2   : > { %v2295_v43 = vpop.f32.mrb[62].mxu1  ;;  %v2332_v38 = vsel %vm380_vm1, %v3586_v16, %v2311_v15 }
 0x5e3   : > { %v2941_v9 = vpop.f32.mrb[63].mxu1  ;;  %v2428_v10 = vmul.f32 %v2407_v6, %v2332_v38 }
 0x5e5   : > { %2416 = vrot.lane.b32.xlu1 %v3084_v13, %s3119_s26  ;;  %v2436_v23 = vpack.c.bf16 %v2428_v10, %v2428_v10 }
 0x5e7   : > { %2445 = vst.msk [vmem:[%s3763_s13 + $0x8] sm:$0xf] %vm2442_vm3, %v2436_v23 }
 0x60a   : > { %v2309_v27 = vpop.permute.xlu1 %2308 }
 0x60b   : > { %v2331_v50 = vsel %vm380_vm1, %v3584_v46, %v2309_v27 }
 0x60c   : > { %v2427_v52 = vmul.f32 %v2405_v22, %v2331_v50 }
 0x60e   : > { %v2435_v17 = vpack.c.bf16 %v2427_v52, %v2427_v52 }
 0x610   : > { %2444 = vst.msk [vmem:[%s3763_s13 + $0x4] sm:$0xf] %vm2442_vm3, %v2435_v17 }
 0x616   : > { %v2315_v16 = vpop.permute.xlu0 %2314 }
 0x617   : > { %v2334_v11 = vsel %vm380_vm1, %v3590_v39, %v2315_v16 }
 0x618   : > { %v2430_v0 = vmul.f32 %v2411_v61, %v2334_v11 }
 0x61a   : > { %v2438_v8 = vpack.c.bf16 %v2430_v0, %v2430_v0 }
 0x61c   : > { %2447 = vst.msk [vmem:[%s3763_s13 + $0x10] sm:$0xf] %vm2442_vm3, %v2438_v8 }
 0x61e   : > { %v2319_v19 = vpop.permute.xlu0 %2318 }
 0x61f   : > { %v2336_v18 = vsel %vm380_vm1, %v3594_v2, %v2319_v19 }
 0x622   : > { %v2415_v20 = vpop.permute.xlu0 %2414 }
 0x623   : > { %v2432_v46 = vmul.f32 %v2415_v20, %v2336_v18 }
 0x625   : > { %v2440_v3 = vpack.c.bf16 %v2432_v46, %v2432_v46 }
 0x627   : > { %2449 = vst.msk [vmem:[%s3763_s13 + $0x18] sm:$0xf] %vm2442_vm3, %v2440_v3 }
 0x63f   : > { %v2313_v26 = vpop.permute.xlu1 %2312 }
 0x640   : > { %v2333_v62 = vsel %vm380_vm1, %v3588_v49, %v2313_v26 }
 0x641   : > { %v2429_v39 = vmul.f32 %v2409_v21, %v2333_v62 }
 0x643   : > { %v2437_v47 = vpack.c.bf16 %v2429_v39, %v2429_v39 }
 0x645   : > { %2446 = vst.msk [vmem:[%s3763_s13 + $0xc] sm:$0xf] %vm2442_vm3, %v2437_v47 }
 0x647   : > { %v2317_v41 = vpop.permute.xlu1 %2316 }
 0x648   : > { %v2335_v28 = vsel %vm380_vm1, %v3592_v1, %v2317_v41 }
 0x649   : > { %v2431_v54 = vmul.f32 %v2413_v4, %v2335_v28 }
 0x64b   : > { %v2439_v2 = vpack.c.bf16 %v2431_v54, %v2431_v54 }
 0x64d   : > { %2448 = vst.msk [vmem:[%s3763_s13 + $0x14] sm:$0xf] %vm2442_vm3, %v2439_v2 }
 0x653   : > { %v2321_v51 = vpop.permute.xlu1 %2320 }
 0x654   : > { %v2337_v36 = vsel %vm380_vm1, %v3611_v53, %v2321_v51 }
 0x657   : > { %v2417_v12 = vpop.permute.xlu1 %2416 }
 0x658   : > { %v2433_v35 = vmul.f32 %v2417_v12, %v2337_v36 }
 0x65a   : > { %v2441_v60 = vpack.c.bf16 %v2433_v35, %v2433_v35 }
 0x65c   : > { %2450 = vst.msk [vmem:[%s3763_s13 + $0x1c] sm:$0xf] %vm2442_vm3, %v2441_v60 }
 0x65d PF: > { %s14_s17 = sadd.s32 1, %s3115_s17   ;;  %s3811_s15 = smov %s3111_s16 }
 0x65e   : > { %p11_p5 = scmp.ge.s32.totalorder %s14_s17, 4   ;;  %s3812_s16 = smov %s3814_s18 }
 0x660   :  { %13 = sbr.rel (!%p11_p5) target bundleno = 2 (0x2), region = 75 }

// kernel: pairformer_block.32
= control target key start
LH: loop header
LB: loop body
LE: loop exit
PB: predicated region body
PF: predicated region fallthrough
CT: control target
= control target key end

     0   :  { %s641_s15 = smov 0   ;;  %s643_s16 = smov 0   ;;  %s753_s0 = inlined_call_operand.vmem [shape: f32[2,64,32], index: 0, kind: input, shape index: {}]   ;;  %s754_s1 = inlined_call_operand.vmem [shape: f32[1,32], index: 1, kind: input, shape index: {}]   ;;  %s755_s2 = inlined_call_operand.vmem [shape: f32[1,32], index: 2, kind: input, shape index: {}]   ;;  %s756_s3 = inlined_call_operand.vmem [shape: bf16[4,32], index: 3, kind: input, shape index: {}]   ;;  %s757_s4 = inlined_call_operand.vmem [shape: bf16[2,4,64], index: 4, kind: output, shape index: {}]  }
   0x1   :  { %s645_s17 = smov 0  }
   0x2 LB: > { %s26_s18 = sadd.s32 1, %s608_s16  ;;  %p521_p0 = scmp.ge.s32.totalorder %s612_s17, 1  ;;  %s612_s17 = sphi %s645_s17, %s14_s17   ;;  %s608_s16 = sphi %s643_s16, %s759_s16   ;;  %s604_s15 = sphi %s641_s15, %s758_s15  }
   0x3   : > { %p28_p1 = scmp.ge.s32.totalorder %s26_s18, 2  ;;  %p183_p2 = scmp.lt.s32.totalorder %s612_s17, 3 }
   0x5   : > { %s761_s18 = smov (%p28_p1, %s26_s18), 0  ;;  %p184_p3 = pnand %p521_p0, %p183_p2 }
   0x6   : > { %p216_p4 = scmp.lt.s32.totalorder (!%p184_p3), %s604_s15, 1  ;;  %vm243_vm0 = vcmask (!%p184_p3), 261120   ;;  %v614_v56 = vmov (!%p184_p3), 0.0   ;;  %vm615_vm1 = vmmov (!%p184_p3), 0   ;;  %vm438_vm2 = vcmask (!%p184_p3), 517120  }
   0x7   : > { %187 = sbr.rel (%p184_p3) target bundleno = 584 (0x248), region = 36  ;;  %536 = vmatprep.subr.bf16.mxu0 (!%p184_p3), %v614_v56  ;;  %544 = vmatprep.mubr.msk.bf16.mxu0 (!%p184_p3), %vm615_vm1, %v614_v56 }
   0xe   : > { %s763_s15 = smov (!%p216_p4, %s604_s15), 1 }
   0xf   : > { %s530_s19 = sshll.u32 %s763_s15, 6  ;;  %s524_s29 = sshll.u32 %s763_s15, 1 }
  0x10   : > { %s223_s22 = scalar_lea.vmem %s753_s0, %s530_s19  ;;  %s231_s6 = scalar_lea.vmem %s757_s4, %s524_s29 }
  0x11   : > { %v233_v0 = vld [vmem:[%s223_s22] sm:$0xff]  ;;  %v235_v1 = vld [vmem:[%s223_s22 + $0x10] sm:$0xff]  ;;  %v234_v2 = vld [vmem:[%s223_s22 + $0x8] sm:$0xff] }
  0x12   : > { %v244_v3 = vsel %vm243_vm0, %v233_v0, 0.0  ;;  %v250_v4 = vsel %vm243_vm0, %v235_v1, 0.0  ;;  %v236_v5 = vld [vmem:[%s223_s22 + $0x18] sm:$0xff]  ;;  %v247_v6 = vsel %vm243_vm0, %v234_v2, 0.0  ;;  %v237_v8 = vld [vmem:[%s223_s22 + $0x20] sm:$0xff]  ;;  %v238_v9 = vld [vmem:[%s223_s22 + $0x28] sm:$0xff] }
  0x13   : > { %245 = vadd.xlane.f32.xlu0 %v244_v3  ;;  %251 = vadd.xlane.f32.xlu1 %v250_v4  ;;  %v253_v7 = vsel %vm243_vm0, %v236_v5, 0.0  ;;  %v256_v10 = vsel %vm243_vm0, %v237_v8, 0.0  ;;  %v259_v11 = vsel %vm243_vm0, %v238_v9, 0.0  ;;  %v239_v12 = vld [vmem:[%s223_s22 + $0x30] sm:$0xff]  ;;  %v240_v13 = vld [vmem:[%s223_s22 + $0x38] sm:$0xff] }
  0x14   : > { %v262_v14 = vsel %vm243_vm0, %v239_v12, 0.0  ;;  %v265_v15 = vsel %vm243_vm0, %v240_v13, 0.0 }
  0x17   : > { %248 = vadd.xlane.f32.xlu0 %v247_v6  ;;  %254 = vadd.xlane.f32.xlu1 %v253_v7 }
  0x1b   : > { %257 = vadd.xlane.f32.xlu0 %v256_v10  ;;  %260 = vadd.xlane.f32.xlu1 %v259_v11 }
  0x1f   : > { %263 = vadd.xlane.f32.xlu0 %v262_v14  ;;  %266 = vadd.xlane.f32.xlu1 %v265_v15 }
  0xa0   : > { %v246_v16 = vpop.xlane.xlu0 %245  ;;  %v252_v17 = vpop.xlane.xlu1 %251 }
  0xa1   : > { %v269_v18 = vmul.f32 0.03125, %v246_v16  ;;  %v271_v19 = vmul.f32 0.03125, %v252_v17  ;;  %v525_v17 = vld [vmem:[%s754_s1] ss:$0 sm:$0xff] }
  0xa3   : > { %v673_v20 = vsub.f32 %v233_v0, %v269_v18  ;;  %v675_v21 = vsub.f32 %v235_v1, %v271_v19 }
  0xa4   : > { %v249_v22 = vpop.xlane.xlu0 %248  ;;  %v255_v23 = vpop.xlane.xlu1 %254 }
  0xa5   : > { %v270_v24 = vmul.f32 0.03125, %v249_v22  ;;  %v272_v25 = vmul.f32 0.03125, %v255_v23  ;;  %v285_v26 = vmul.f32 %v673_v20, %v673_v20  ;;  %v287_v27 = vmul.f32 %v675_v21, %v675_v21 }
  0xa7   : > { %v681_v28 = vsub.f32 %v234_v2, %v270_v24  ;;  %v683_v29 = vsub.f32 %v236_v5, %v272_v25  ;;  %v293_v30 = vsel %vm243_vm0, %v285_v26, 0.0  ;;  %v299_v33 = vsel %vm243_vm0, %v287_v27, 0.0  ;;  %v526_v26 = vld [vmem:[%s755_s2] ss:$0 sm:$0xff] }
  0xa8   : > { %294 = vadd.xlane.f32.xlu0 %v293_v30  ;;  %v258_v31 = vpop.xlane.xlu0 %257  ;;  %v261_v32 = vpop.xlane.xlu1 %260 }
  0xa9   : > { %v273_v34 = vmul.f32 0.03125, %v258_v31  ;;  %v274_v35 = vmul.f32 0.03125, %v261_v32  ;;  %v286_v36 = vmul.f32 %v681_v28, %v681_v28  ;;  %v288_v37 = vmul.f32 %v683_v29, %v683_v29 }
  0xab   : > { %v691_v38 = vsub.f32 %v237_v8, %v273_v34  ;;  %v693_v39 = vsub.f32 %v238_v9, %v274_v35  ;;  %v296_v40 = vsel %vm243_vm0, %v286_v36, 0.0  ;;  %v302_v43 = vsel %vm243_vm0, %v288_v37, 0.0 }
  0xac   : > { %300 = vadd.xlane.f32.xlu0 %v299_v33  ;;  %297 = vadd.xlane.f32.xlu1 %v296_v40  ;;  %v264_v41 = vpop.xlane.xlu0 %263  ;;  %v267_v42 = vpop.xlane.xlu1 %266 }
  0xad   : > { %v275_v44 = vmul.f32 0.03125, %v264_v41  ;;  %v276_v45 = vmul.f32 0.03125, %v267_v42  ;;  %v289_v46 = vmul.f32 %v691_v38, %v691_v38  ;;  %v290_v47 = vmul.f32 %v693_v39, %v693_v39 }
  0xaf   : > { %v701_v48 = vsub.f32 %v239_v12, %v275_v44  ;;  %v703_v49 = vsub.f32 %v240_v13, %v276_v45  ;;  %v305_v50 = vsel %vm243_vm0, %v289_v46, 0.0  ;;  %v308_v51 = vsel %vm243_vm0, %v290_v47, 0.0 }
  0xb0   : > { %303 = vadd.xlane.f32.xlu1 %v302_v43  ;;  %306 = vadd.xlane.f32.xlu0 %v305_v50 }
  0xb1   : > { %v291_v52 = vmul.f32 %v701_v48, %v701_v48  ;;  %v292_v53 = vmul.f32 %v703_v49, %v703_v49 }
  0xb3   : > { %v311_v54 = vsel %vm243_vm0, %v291_v52, 0.0  ;;  %v314_v55 = vsel %vm243_vm0, %v292_v53, 0.0 }
  0xb4   : > { %309 = vadd.xlane.f32.xlu1 %v308_v51  ;;  %312 = vadd.xlane.f32.xlu0 %v311_v54 }
  0xb8   : > { %315 = vadd.xlane.f32.xlu1 %v314_v55 }
 0x135   : > { %v295_v57 = vpop.xlane.xlu0 %294 }
 0x136   : > { %v317_v58 = vmul.f32 0.03125, %v295_v57 }
 0x138   : > { %v325_v59 = vadd.f32 1e-05, %v317_v58 }
 0x139   : > { %v298_v60 = vpop.xlane.xlu1 %297  ;;  %v301_v61 = vpop.xlane.xlu0 %300 }
 0x13a   : > { %574 = vrsqrt.f32 %v325_v59  ;;  %v318_v62 = vmul.f32 0.03125, %v298_v60  ;;  %v319_v63 = vmul.f32 0.03125, %v301_v61  ;;  %v377_v61 = vld [vmem:[%s756_s3] sm:$0x3] }
 0x13c   : > { %v326_v0 = vadd.f32 1e-05, %v318_v62  ;;  %v327_v1 = vadd.f32 1e-05, %v319_v63 }
 0x13d   : > { %v304_v2 = vpop.xlane.xlu1 %303  ;;  %v307_v3 = vpop.xlane.xlu0 %306 }
 0x13e   : > { %576 = vrsqrt.f32 %v326_v0  ;;  %v320_v4 = vmul.f32 0.03125, %v304_v2  ;;  %v321_v5 = vmul.f32 0.03125, %v307_v3 }
 0x13f   : > { %578 = vrsqrt.f32 %v327_v1 }
 0x140   : > { %v328_v6 = vadd.f32 1e-05, %v320_v4  ;;  %v329_v7 = vadd.f32 1e-05, %v321_v5 }
 0x141   : > { %v310_v8 = vpop.xlane.xlu1 %309  ;;  %v313_v10 = vpop.xlane.xlu0 %312 }
 0x142   : > { %580 = vrsqrt.f32 %v328_v6  ;;  %v322_v9 = vmul.f32 0.03125, %v310_v8  ;;  %v323_v15 = vmul.f32 0.03125, %v313_v10 }
 0x143   : > { %582 = vrsqrt.f32 %v329_v7 }
 0x144   : > { %v575_v11 = vpop.eup %574  ;;  %v330_v12 = vadd.f32 1e-05, %v322_v9  ;;  %v331_v25 = vadd.f32 1e-05, %v323_v15 }
 0x145   : > { %v316_v13 = vpop.xlane.xlu1 %315  ;;  %v341_v14 = vmul.f32 %v575_v11, %v673_v20 }
 0x146   : > { %584 = vrsqrt.f32 %v330_v12  ;;  %v324_v16 = vmul.f32 0.03125, %v316_v13 }
 0x147   : > { %v355_v24 = vmul.f32 %v525_v17, %v341_v14 }
 0x148   : > { %v577_v18 = vpop.eup %576  ;;  %v332_v19 = vadd.f32 1e-05, %v324_v16 }
 0x149   : > { %v579_v22 = vpop.eup %578  ;;  %v342_v23 = vmul.f32 %v577_v18, %v681_v28  ;;  %v369_v31 = vadd.f32 %v526_v26, %v355_v24 }
 0x14a   : > { %v343_v20 = vmul.f32 %v579_v22, %v675_v21  ;;  %586 = vrsqrt.f32 %v332_v19 }
 0x14b   : > { %v356_v27 = vmul.f32 %v525_v17, %v342_v23  ;;  %588 = vrsqrt.f32 %v331_v25 }
 0x14c   : > { %v581_v30 = vpop.eup %580  ;;  %v357_v36 = vmul.f32 %v525_v17, %v343_v20 }
 0x14d   : > { %v370_v32 = vadd.f32 %v526_v26, %v356_v27  ;;  %v344_v33 = vmul.f32 %v581_v30, %v683_v29  ;;  %v583_v34 = vpop.eup %582 }
 0x14e   : > { %v371_v21 = vadd.f32 %v526_v26, %v357_v36  ;;  %v345_v43 = vmul.f32 %v583_v34, %v691_v38 }
 0x14f   : > { %v378_v35 = vpack.c.bf16 %v370_v32, %v369_v31  ;;  %v358_v28 = vmul.f32 %v525_v17, %v344_v33 }
 0x150   : > { %v585_v37 = vpop.eup %584  ;;  %v359_v46 = vmul.f32 %v525_v17, %v345_v43 }
 0x151   : > { %v386_v40 = vsel %vm243_vm0, %v378_v35, 0  ;;  %v372_v41 = vadd.f32 %v526_v26, %v358_v28  ;;  %v346_v42 = vmul.f32 %v585_v37, %v693_v39 }
 0x152   : > { %537 = vmatpush3.bf16.xpose.msra.mxu0 %v386_v40  ;;  %v373_v39 = vadd.f32 %v526_v26, %v359_v46 }
 0x153   : > { %538 = vmatprep.subr.bf16.mxu0 %v614_v56  ;;  %v379_v44 = vpack.c.bf16 %v372_v41, %v371_v21  ;;  %v360_v45 = vmul.f32 %v525_v17, %v346_v42 }
 0x154   : > { %v587_v29 = vpop.eup %586 }
 0x155   : > { %v589_v47 = vpop.eup %588  ;;  %v389_v50 = vsel %vm243_vm0, %v379_v44, 0  ;;  %v374_v51 = vadd.f32 %v526_v26, %v360_v45  ;;  %v348_v52 = vmul.f32 %v587_v29, %v703_v49 }
 0x156   : > { %v347_v53 = vmul.f32 %v589_v47, %v701_v48 }
 0x157   : > { %v380_v54 = vpack.c.bf16 %v374_v51, %v373_v39  ;;  %v362_v55 = vmul.f32 %v525_v17, %v348_v52 }
 0x158   : > { %v361_v38 = vmul.f32 %v525_v17, %v347_v53 }
 0x159   : > { %v392_v57 = vsel %vm243_vm0, %v380_v54, 0  ;;  %v376_v58 = vadd.f32 %v526_v26, %v362_v55 }
 0x15a   : > { %539 = vmatpush3.bf16.xpose.msra.mxu0 %v389_v50  ;;  %v375_v59 = vadd.f32 %v526_v26, %v361_v38 }
 0x15b   : > { %540 = vmatprep.subr.bf16.mxu0 %v614_v56 }
 0x15c   : > { %v381_v60 = vpack.c.bf16 %v376_v58, %v375_v59 }
 0x15e   : > { %v395_v49 = vsel %vm243_vm0, %v381_v60, 0 }
 0x162   : > { %541 = vmatpush3.bf16.xpose.msra.mxu0 %v392_v57 }
 0x163   : > { %542 = vmatprep.subr.bf16.mxu0 %v614_v56 }
 0x16a   : > { %543 = vmatpush3.bf16.xpose.msra.mxu0 %v395_v49 }
 0x171   : > { %545 = vmatmul.mubr.msk.bf16.vlgmr.msra.gmra.mrb[0].mxu0 %vm243_vm0, %v377_v61 }
 0x244   : > { %v431_v48 = vpop.f32.mrb[0].mxu0 }
 0x245   : > { %v437_v62 = vpack.c.bf16 %v431_v48, %v431_v48  ;;  %v546_v56 = vpop.f32.mrb[1].mxu0 }
 0x246   : > { %v434_v63 = vpop.f32.mrb[2].mxu0 }
 0x247   : > { %439 = vst.msk [vmem:[%s231_s6] sm:$0x3] %vm438_vm2, %v437_v62  ;;  %v547_v0 = vpop.f32.mrb[3].mxu0 }
 0x248 PF: > { %s14_s17 = sadd.s32 1, %s612_s17   ;;  %s758_s15 = smov %s608_s16 }
 0x249   : > { %p11_p5 = scmp.ge.s32.totalorder %s14_s17, 4   ;;  %s759_s16 = smov %s761_s18 }
 0x24b   :  { %13 = sbr.rel (!%p11_p5) target bundleno = 2 (0x2), region = 66 }

// kernel: pairformer_block.31
= control target key start
LH: loop header
LB: loop body
LE: loop exit
PB: predicated region body
PF: predicated region fallthrough
CT: control target
= control target key end

     0   :  { %vm25_vm0 = vcmask 261120   ;;  %v185_v15 = vmov 0.0   ;;  %vm186_vm1 = vmmov 0   ;;  %s246_s0 = inlined_call_operand.vmem [shape: f32[16,32], index: 0, kind: input, shape index: {}]   ;;  %s247_s3 = inlined_call_operand.vmem [shape: bf16[32,128], index: 3, kind: input, shape index: {}]   ;;  %s248_s1 = inlined_call_operand.vmem [shape: f32[1,32], index: 1, kind: input, shape index: {}]   ;;  %s249_s2 = inlined_call_operand.vmem [shape: f32[1,32], index: 2, kind: input, shape index: {}]   ;;  %s250_s4 = inlined_call_operand.vmem [shape: f32[1,128], index: 4, kind: input, shape index: {}]   ;;  %s251_s5 = inlined_call_operand.vmem [shape: bf16[16,128], index: 5, kind: output, shape index: {}]  }
   0x1   :  { %v21_v0 = vld [vmem:[%s246_s0] sm:$0xff]  ;;  %v22_v1 = vld [vmem:[%s246_s0 + $0x8] sm:$0xff]  ;;  %169 = vmatprep.subr.bf16.mxu0 %v185_v15  ;;  %173 = vmatprep.mubr.msk.bf16.mxu0 %vm186_vm1, %v185_v15 }
   0x2   :  { %v26_v2 = vsel %vm25_vm0, %v21_v0, 0.0  ;;  %v29_v3 = vsel %vm25_vm0, %v22_v1, 0.0  ;;  %v179_v14 = vld [vmem:[%s247_s3] sm:$0xff]   ;;  %v180_v16 = vld [vmem:[%s247_s3 + $0x8] sm:$0xff]  }
   0x3   :  { %27 = vadd.xlane.f32.xlu0 %v26_v2  ;;  %170 = vmatpush3.bf16.msra.mxu0 %v179_v14  ;;  %v151_v25 = vld [vmem:[%s248_s1] ss:$0 sm:$0xff] }
   0x4   :  { %171 = vmatprep.subr.bf16.mxu0 %v185_v15  ;;  %v152_v29 = vld [vmem:[%s249_s2] ss:$0 sm:$0xff] }
   0x5   :  { %v153_v34 = vld [vmem:[%s250_s4] ss:$0 sm:$0xff] }
   0x7   :  { %30 = vadd.xlane.f32.xlu0 %v29_v3  ;;  %172 = vmatpush3.bf16.msra.mxu0 %v180_v16 }
  0x90   :  { %v28_v4 = vpop.xlane.xlu0 %27 }
  0x91   :  { %v33_v5 = vmul.f32 0.03125, %v28_v4 }
  0x93   :  { %v35_v6 = vsub.f32 %v21_v0, %v33_v5 }
  0x94   :  { %v31_v7 = vpop.xlane.xlu0 %30 }
  0x95   :  { %v34_v8 = vmul.f32 0.03125, %v31_v7  ;;  %v37_v9 = vmul.f32 %v35_v6, %v35_v6 }
  0x97   :  { %v36_v10 = vsub.f32 %v22_v1, %v34_v8  ;;  %v39_v11 = vsel %vm25_vm0, %v37_v9, 0.0 }
  0x98   :  { %40 = vadd.xlane.f32.xlu1 %v39_v11 }
  0x99   :  { %v38_v12 = vmul.f32 %v36_v10, %v36_v10 }
  0x9b   :  { %v42_v13 = vsel %vm25_vm0, %v38_v12, 0.0 }
  0x9c   :  { %43 = vadd.xlane.f32.xlu1 %v42_v13 }
 0x125   :  { %v41_v17 = vpop.xlane.xlu1 %40 }
 0x126   :  { %v45_v18 = vmul.f32 0.03125, %v41_v17 }
 0x128   :  { %v47_v19 = vadd.f32 1e-05, %v45_v18 }
 0x129   :  { %v44_v20 = vpop.xlane.xlu1 %43 }
 0x12a   :  { %181 = vrsqrt.f32 %v47_v19  ;;  %v46_v21 = vmul.f32 0.03125, %v44_v20 }
 0x12c   :  { %v48_v22 = vadd.f32 1e-05, %v46_v21 }
 0x12e   :  { %183 = vrsqrt.f32 %v48_v22 }
 0x134   :  { %v182_v23 = vpop.eup %181 }
 0x135   :  { %v51_v24 = vmul.f32 %v182_v23, %v35_v6 }
 0x137   :  { %v59_v28 = vmul.f32 %v151_v25, %v51_v24 }
 0x138   :  { %v184_v26 = vpop.eup %183 }
 0x139   :  { %v52_v27 = vmul.f32 %v184_v26, %v36_v10  ;;  %v67_v31 = vadd.f32 %v152_v29, %v59_v28 }
 0x13b   :  { %v60_v30 = vmul.f32 %v151_v25, %v52_v27 }
 0x13d   :  { %v68_v32 = vadd.f32 %v152_v29, %v60_v30 }
 0x13f   :  { %v69_v33 = vpack.c.bf16 %v68_v32, %v67_v31 }
 0x141   :  { %174 = vmatmul.mubr.msk.bf16.vlgmr.msra.gmra.mrb[0].mxu0 %vm25_vm0, %v69_v33 }
 0x214   :  { %v130_v35 = vpop.f32.mrb[0].mxu0 }
 0x215   :  { %v175_v36 = vpop.f32.mrb[1].mxu0  ;;  %v131_v38 = vadd.f32 %v153_v34, %v130_v35 }
 0x216   :  { %v133_v37 = vpop.f32.mrb[2].mxu0 }
 0x217   :  { %v134_v39 = vadd.f32 %v153_v34, %v133_v37  ;;  %v176_v40 = vpop.f32.mrb[3].mxu0 }
 0x219   :  { %v164_v41 = vpack.c.bf16 %v134_v39, %v131_v38 }
 0x21b   :  { %165 = vst [vmem:[%s251_s5] sm:$0xff] %v164_v41  }

// kernel: pairformer_block.30
= control target key start
LH: loop header
LB: loop body
LE: loop exit
PB: predicated region body
PF: predicated region fallthrough
CT: control target
= control target key end

     0   :  { %vm39_vm0 = vcmask 261120   ;;  %s1501_s0 = inlined_call_operand.vmem [shape: f32[128,32], index: 0, kind: input, shape index: {}]   ;;  %s1502_s3 = inlined_call_operand.vmem [shape: bf16[32,256], index: 3, kind: input, shape index: {}]   ;;  %s1503_s1 = inlined_call_operand.vmem [shape: f32[1,32], index: 1, kind: input, shape index: {}]   ;;  %s1504_s2 = inlined_call_operand.vmem [shape: f32[1,32], index: 2, kind: input, shape index: {}]   ;;  %s1505_s4 = inlined_call_operand.vmem [shape: bf16[128,32], index: 4, kind: input, shape index: {}]   ;;  %s1506_s5 = inlined_call_operand.vmem [shape: f32[128,32], index: 5, kind: output, shape index: {}]  }
   0x1   :  { %v21_v0 = vld [vmem:[%s1501_s0] sm:$0xff]  ;;  %v23_v1 = vld [vmem:[%s1501_s0 + $0x10] sm:$0xff]  ;;  %v22_v2 = vld [vmem:[%s1501_s0 + $0x8] sm:$0xff] }
   0x2   :  { %v40_v3 = vsel %vm39_vm0, %v21_v0, 0.0  ;;  %v46_v4 = vsel %vm39_vm0, %v23_v1, 0.0  ;;  %v24_v5 = vld [vmem:[%s1501_s0 + $0x18] sm:$0xff]  ;;  %v43_v6 = vsel %vm39_vm0, %v22_v2, 0.0  ;;  %v25_v8 = vld [vmem:[%s1501_s0 + $0x20] sm:$0xff]  ;;  %v26_v9 = vld [vmem:[%s1501_s0 + $0x28] sm:$0xff] }
   0x3   :  { %41 = vadd.xlane.f32.xlu0 %v40_v3  ;;  %47 = vadd.xlane.f32.xlu1 %v46_v4  ;;  %v49_v7 = vsel %vm39_vm0, %v24_v5, 0.0  ;;  %v52_v10 = vsel %vm39_vm0, %v25_v8, 0.0  ;;  %v55_v11 = vsel %vm39_vm0, %v26_v9, 0.0  ;;  %v1066_v12 = vld [vmem:[%s1501_s0 + $0x30] sm:$0xff]  ;;  %v1071_v13 = vld [vmem:[%s1501_s0 + $0x38] sm:$0xff]  ;;  %v1080_v16 = vld [vmem:[%s1501_s0 + $0x40] sm:$0xff] }
   0x4   :  { %v58_v14 = vsel %vm39_vm0, %v1066_v12, 0.0  ;;  %v61_v15 = vsel %vm39_vm0, %v1071_v13, 0.0  ;;  %v1085_v17 = vld [vmem:[%s1501_s0 + $0x48] sm:$0xff]  ;;  %v64_v18 = vsel %vm39_vm0, %v1080_v16, 0.0  ;;  %v1094_v20 = vld [vmem:[%s1501_s0 + $0x50] sm:$0xff]  ;;  %v1099_v21 = vld [vmem:[%s1501_s0 + $0x58] sm:$0xff] }
   0x5   :  { %v67_v19 = vsel %vm39_vm0, %v1085_v17, 0.0  ;;  %v70_v22 = vsel %vm39_vm0, %v1094_v20, 0.0  ;;  %v73_v23 = vsel %vm39_vm0, %v1099_v21, 0.0  ;;  %v1108_v24 = vld [vmem:[%s1501_s0 + $0x60] sm:$0xff]  ;;  %v1113_v25 = vld [vmem:[%s1501_s0 + $0x68] sm:$0xff]  ;;  %v1122_v28 = vld [vmem:[%s1501_s0 + $0x70] sm:$0xff] }
   0x6   :  { %v76_v26 = vsel %vm39_vm0, %v1108_v24, 0.0  ;;  %v79_v27 = vsel %vm39_vm0, %v1113_v25, 0.0  ;;  %v1127_v29 = vld [vmem:[%s1501_s0 + $0x78] sm:$0xff]  ;;  %v82_v30 = vsel %vm39_vm0, %v1122_v28, 0.0 }
   0x7   :  { %44 = vadd.xlane.f32.xlu0 %v43_v6  ;;  %50 = vadd.xlane.f32.xlu1 %v49_v7  ;;  %v85_v31 = vsel %vm39_vm0, %v1127_v29, 0.0 }
   0xb   :  { %53 = vadd.xlane.f32.xlu0 %v52_v10  ;;  %56 = vadd.xlane.f32.xlu1 %v55_v11 }
   0xf   :  { %59 = vadd.xlane.f32.xlu0 %v58_v14  ;;  %62 = vadd.xlane.f32.xlu1 %v61_v15 }
  0x13   :  { %65 = vadd.xlane.f32.xlu0 %v64_v18  ;;  %68 = vadd.xlane.f32.xlu1 %v67_v19 }
  0x17   :  { %71 = vadd.xlane.f32.xlu0 %v70_v22  ;;  %74 = vadd.xlane.f32.xlu1 %v73_v23 }
  0x1b   :  { %77 = vadd.xlane.f32.xlu0 %v76_v26  ;;  %80 = vadd.xlane.f32.xlu1 %v79_v27 }
  0x1f   :  { %83 = vadd.xlane.f32.xlu0 %v82_v30  ;;  %86 = vadd.xlane.f32.xlu1 %v85_v31 }
  0x90   :  { %v42_v32 = vpop.xlane.xlu0 %41  ;;  %v48_v33 = vpop.xlane.xlu1 %47 }
  0x91   :  { %v89_v34 = vmul.f32 0.03125, %v42_v32  ;;  %v91_v35 = vmul.f32 0.03125, %v48_v33 }
  0x93   :  { %v1133_v36 = vsub.f32 %v21_v0, %v89_v34  ;;  %v1135_v37 = vsub.f32 %v23_v1, %v91_v35 }
  0x94   :  { %v45_v38 = vpop.xlane.xlu0 %44  ;;  %v51_v39 = vpop.xlane.xlu1 %50 }
  0x95   :  { %v90_v40 = vmul.f32 0.03125, %v45_v38  ;;  %v92_v41 = vmul.f32 0.03125, %v51_v39  ;;  %v121_v42 = vmul.f32 %v1133_v36, %v1133_v36  ;;  %v123_v43 = vmul.f32 %v1135_v37, %v1135_v37 }
  0x97   :  { %v1141_v44 = vsub.f32 %v22_v2, %v90_v40  ;;  %v1143_v45 = vsub.f32 %v24_v5, %v92_v41  ;;  %v137_v46 = vsel %vm39_vm0, %v121_v42, 0.0  ;;  %v143_v49 = vsel %vm39_vm0, %v123_v43, 0.0 }
  0x98   :  { %138 = vadd.xlane.f32.xlu0 %v137_v46  ;;  %v54_v47 = vpop.xlane.xlu0 %53  ;;  %v57_v48 = vpop.xlane.xlu1 %56 }
  0x99   :  { %v93_v50 = vmul.f32 0.03125, %v54_v47  ;;  %v94_v51 = vmul.f32 0.03125, %v57_v48  ;;  %v122_v52 = vmul.f32 %v1141_v44, %v1141_v44  ;;  %v124_v53 = vmul.f32 %v1143_v45, %v1143_v45 }
  0x9b   :  { %v1151_v54 = vsub.f32 %v25_v8, %v93_v50  ;;  %v1153_v55 = vsub.f32 %v26_v9, %v94_v51  ;;  %v140_v56 = vsel %vm39_vm0, %v122_v52, 0.0  ;;  %v146_v59 = vsel %vm39_vm0, %v124_v53, 0.0  ;;  %v884_v53 = vld [vmem:[%s1502_s3] ss:$8 sps:$4 sm:$0xff]  }
  0x9c   :  { %144 = vadd.xlane.f32.xlu0 %v143_v49  ;;  %141 = vadd.xlane.f32.xlu1 %v140_v56  ;;  %v60_v57 = vpop.xlane.xlu0 %59  ;;  %v63_v58 = vpop.xlane.xlu1 %62  ;;  %v885_v56 = vld [vmem:[%s1502_s3 + $0x14] ss:$8 sps:$4 sm:$0xff]  }
  0x9d   :  { %v95_v60 = vmul.f32 0.03125, %v60_v57  ;;  %v96_v61 = vmul.f32 0.03125, %v63_v58  ;;  %v125_v62 = vmul.f32 %v1151_v54, %v1151_v54  ;;  %v126_v63 = vmul.f32 %v1153_v55, %v1153_v55  ;;  %v887_v57 = vld [vmem:[%s1502_s3 + $0x10] ss:$8 sps:$4 sm:$0xff]  }
  0x9e   :  { %v1008_v58 = vmov 0  }
  0x9f   :  { %v1162_v0 = vsub.f32 %v1066_v12, %v95_v60  ;;  %v1165_v1 = vsub.f32 %v1071_v13, %v96_v61  ;;  %v149_v2 = vsel %vm39_vm0, %v125_v62, 0.0  ;;  %v152_v5 = vsel %vm39_vm0, %v126_v63, 0.0  ;;  %381 = vmatprep.mubr.bf16.mxu0 %v1008_v58 }
  0xa0   :  { %147 = vadd.xlane.f32.xlu1 %v146_v59  ;;  %150 = vadd.xlane.f32.xlu0 %v149_v2  ;;  %v66_v3 = vpop.xlane.xlu0 %65  ;;  %v69_v4 = vpop.xlane.xlu1 %68 }
  0xa1   :  { %v97_v6 = vmul.f32 0.03125, %v66_v3  ;;  %v98_v7 = vmul.f32 0.03125, %v69_v4  ;;  %v127_v8 = vmul.f32 %v1162_v0, %v1162_v0  ;;  %v128_v9 = vmul.f32 %v1165_v1, %v1165_v1 }
  0xa3   :  { %v1174_v10 = vsub.f32 %v1080_v16, %v97_v6  ;;  %v1177_v11 = vsub.f32 %v1085_v17, %v98_v7  ;;  %v155_v12 = vsel %vm39_vm0, %v127_v8, 0.0  ;;  %v158_v15 = vsel %vm39_vm0, %v128_v9, 0.0 }
  0xa4   :  { %153 = vadd.xlane.f32.xlu1 %v152_v5  ;;  %156 = vadd.xlane.f32.xlu0 %v155_v12  ;;  %v72_v13 = vpop.xlane.xlu0 %71  ;;  %v75_v14 = vpop.xlane.xlu1 %74 }
  0xa5   :  { %v99_v18 = vmul.f32 0.03125, %v72_v13  ;;  %v100_v19 = vmul.f32 0.03125, %v75_v14  ;;  %v129_v22 = vmul.f32 %v1174_v10, %v1174_v10  ;;  %v130_v16 = vmul.f32 %v1177_v11, %v1177_v11 }
  0xa7   :  { %v1186_v23 = vsub.f32 %v1094_v20, %v99_v18  ;;  %v1189_v17 = vsub.f32 %v1099_v21, %v100_v19  ;;  %v161_v26 = vsel %vm39_vm0, %v129_v22, 0.0  ;;  %v164_v31 = vsel %vm39_vm0, %v130_v16, 0.0 }
  0xa8   :  { %159 = vadd.xlane.f32.xlu1 %v158_v15  ;;  %162 = vadd.xlane.f32.xlu0 %v161_v26  ;;  %v78_v27 = vpop.xlane.xlu0 %77  ;;  %v81_v30 = vpop.xlane.xlu1 %80 }
  0xa9   :  { %v101_v32 = vmul.f32 0.03125, %v78_v27  ;;  %v102_v33 = vmul.f32 0.03125, %v81_v30  ;;  %v131_v34 = vmul.f32 %v1186_v23, %v1186_v23  ;;  %v132_v20 = vmul.f32 %v1189_v17, %v1189_v17  ;;  %v1240_v30 = vld [vmem:[%s1503_s1] ss:$0 sm:$0xff] }
  0xab   :  { %v1198_v35 = vsub.f32 %v1108_v24, %v101_v32  ;;  %v1201_v21 = vsub.f32 %v1113_v25, %v102_v33  ;;  %v167_v38 = vsel %vm39_vm0, %v131_v34, 0.0  ;;  %v170_v41 = vsel %vm39_vm0, %v132_v20, 0.0 }
  0xac   :  { %165 = vadd.xlane.f32.xlu1 %v164_v31  ;;  %168 = vadd.xlane.f32.xlu0 %v167_v38  ;;  %v84_v39 = vpop.xlane.xlu0 %83  ;;  %v87_v40 = vpop.xlane.xlu1 %86 }
  0xad   :  { %v103_v42 = vmul.f32 0.03125, %v84_v39  ;;  %v104_v43 = vmul.f32 0.03125, %v87_v40  ;;  %v133_v46 = vmul.f32 %v1198_v35, %v1198_v35  ;;  %v134_v24 = vmul.f32 %v1201_v21, %v1201_v21 }
  0xaf   :  { %v1210_v47 = vsub.f32 %v1122_v28, %v103_v42  ;;  %v1213_v25 = vsub.f32 %v1127_v29, %v104_v43  ;;  %v173_v48 = vsel %vm39_vm0, %v133_v46, 0.0  ;;  %v176_v49 = vsel %vm39_vm0, %v134_v24, 0.0  ;;  %v882_v29 = vld [vmem:[%s1502_s3 + $0x4] ss:$8 sps:$4 sm:$0xff]  }
  0xb0   :  { %171 = vadd.xlane.f32.xlu1 %v170_v41  ;;  %174 = vadd.xlane.f32.xlu0 %v173_v48 }
  0xb1   :  { %v135_v50 = vmul.f32 %v1210_v47, %v1210_v47  ;;  %v136_v51 = vmul.f32 %v1213_v25, %v1213_v25  ;;  %349 = vmatprep.subr.bf16.mxu0 %v882_v29 }
  0xb2   :  { %350 = vmatpush1.bf16.msra.mxu0 %v884_v53 }
  0xb3   :  { %v179_v52 = vsel %vm39_vm0, %v135_v50, 0.0  ;;  %v182_v28 = vsel %vm39_vm0, %v136_v51, 0.0  ;;  %351 = vmatprep.subr.bf16.mxu0 %v885_v56 }
  0xb4   :  { %177 = vadd.xlane.f32.xlu1 %v176_v49  ;;  %180 = vadd.xlane.f32.xlu0 %v179_v52 }
  0xb6   :  { %352 = vmatpush1.bf16.msra.mxu0 %v887_v57 }
  0xb8   :  { %183 = vadd.xlane.f32.xlu1 %v182_v28 }
 0x125   :  { %v139_v59 = vpop.xlane.xlu0 %138 }
 0x126   :  { %v185_v60 = vmul.f32 0.03125, %v139_v59 }
 0x128   :  { %v201_v61 = vadd.f32 1e-05, %v185_v60 }
 0x129   :  { %v142_v62 = vpop.xlane.xlu1 %141  ;;  %v145_v63 = vpop.xlane.xlu0 %144 }
 0x12a   :  { %896 = vrsqrt.f32 %v201_v61  ;;  %v186_v2 = vmul.f32 0.03125, %v142_v62  ;;  %v187_v3 = vmul.f32 0.03125, %v145_v63 }
 0x12c   :  { %v202_v4 = vadd.f32 1e-05, %v186_v2  ;;  %v203_v5 = vadd.f32 1e-05, %v187_v3 }
 0x12d   :  { %v148_v6 = vpop.xlane.xlu1 %147  ;;  %v151_v7 = vpop.xlane.xlu0 %150 }
 0x12e   :  { %898 = vrsqrt.f32 %v202_v4  ;;  %v188_v8 = vmul.f32 0.03125, %v148_v6  ;;  %v189_v12 = vmul.f32 0.03125, %v151_v7 }
 0x12f   :  { %900 = vrsqrt.f32 %v203_v5 }
 0x130   :  { %v204_v9 = vadd.f32 1e-05, %v188_v8  ;;  %v205_v18 = vadd.f32 1e-05, %v189_v12 }
 0x131   :  { %v154_v13 = vpop.xlane.xlu1 %153  ;;  %v157_v16 = vpop.xlane.xlu0 %156 }
 0x132   :  { %902 = vrsqrt.f32 %v204_v9  ;;  %v190_v14 = vmul.f32 0.03125, %v154_v13  ;;  %v191_v32 = vmul.f32 0.03125, %v157_v16 }
 0x134   :  { %v897_v15 = vpop.eup %896  ;;  %v206_v19 = vadd.f32 1e-05, %v190_v14  ;;  %v207_v42 = vadd.f32 1e-05, %v191_v32 }
 0x135   :  { %v233_v22 = vmul.f32 %v897_v15, %v1133_v36  ;;  %v160_v26 = vpop.xlane.xlu1 %159  ;;  %v1247_v36 = vld [vmem:[%s1504_s2] ss:$0 sm:$0xff]  ;;  %v163_v24 = vpop.xlane.xlu0 %162 }
 0x136   :  { %904 = vrsqrt.f32 %v206_v19  ;;  %v192_v27 = vmul.f32 0.03125, %v160_v26  ;;  %v193_v28 = vmul.f32 0.03125, %v163_v24 }
 0x137   :  { %906 = vrsqrt.f32 %v205_v18  ;;  %v255_v34 = vmul.f32 %v1240_v30, %v233_v22 }
 0x138   :  { %v899_v31 = vpop.eup %898  ;;  %v208_v38 = vadd.f32 1e-05, %v192_v27  ;;  %v209_v59 = vadd.f32 1e-05, %v193_v28 }
 0x139   :  { %v234_v33 = vmul.f32 %v899_v31, %v1141_v44  ;;  %v901_v20 = vpop.eup %900  ;;  %v166_v39 = vpop.xlane.xlu1 %165  ;;  %v277_v44 = vadd.f32 %v1247_v36, %v255_v34 }
 0x13a   :  { %v235_v43 = vmul.f32 %v901_v20, %v1135_v37  ;;  %908 = vrsqrt.f32 %v208_v38  ;;  %v194_v49 = vmul.f32 0.03125, %v166_v39  ;;  %v169_v61 = vpop.xlane.xlu0 %168 }
 0x13b   :  { %v256_v40 = vmul.f32 %v1240_v30, %v234_v33  ;;  %910 = vrsqrt.f32 %v207_v42  ;;  %v195_v5 = vmul.f32 0.03125, %v169_v61 }
 0x13c   :  { %v903_v41 = vpop.eup %902  ;;  %v257_v29 = vmul.f32 %v1240_v30, %v235_v43  ;;  %v210_v53 = vadd.f32 1e-05, %v194_v49 }
 0x13d   :  { %v236_v46 = vmul.f32 %v903_v41, %v1143_v45  ;;  %v278_v48 = vadd.f32 %v1247_v36, %v256_v40  ;;  %v172_v56 = vpop.xlane.xlu1 %171  ;;  %v211_v12 = vadd.f32 1e-05, %v195_v5 }
 0x13e   :  { %v279_v62 = vadd.f32 %v1247_v36, %v257_v29  ;;  %912 = vrsqrt.f32 %v210_v53  ;;  %v196_v63 = vmul.f32 0.03125, %v172_v56  ;;  %v175_v14 = vpop.xlane.xlu0 %174 }
 0x13f   :  { %v293_v50 = vpack.c.bf16 %v278_v48, %v277_v44  ;;  %v258_v51 = vmul.f32 %v1240_v30, %v236_v46  ;;  %914 = vrsqrt.f32 %v209_v59  ;;  %v197_v26 = vmul.f32 0.03125, %v175_v14 }
 0x140   :  { %v905_v52 = vpop.eup %904  ;;  %v212_v7 = vadd.f32 1e-05, %v196_v63 }
 0x141   :  { %801 = vmatmul.mubr.msk.bf16.vlgmr.msra.gmra.mrb[0].mxu0 %vm39_vm0, %v293_v50  ;;  %v907_v37 = vpop.eup %906  ;;  %v238_v45 = vmul.f32 %v905_v52, %v1153_v55  ;;  %v280_v57 = vadd.f32 %v1247_v36, %v258_v51  ;;  %v178_v8 = vpop.xlane.xlu1 %177  ;;  %v213_v34 = vadd.f32 1e-05, %v197_v26 }
 0x142   :  { %391 = vmatprep.mubr.bf16.mxu0 %v1008_v58  ;;  %v237_v60 = vmul.f32 %v907_v37, %v1151_v54  ;;  %916 = vrsqrt.f32 %v212_v7  ;;  %v198_v18 = vmul.f32 0.03125, %v178_v8  ;;  %v181_v38 = vpop.xlane.xlu0 %180  ;;  %v889_v7 = vld [vmem:[%s1505_s4 + $0x8] sm:$0xff]   ;;  %v894_v8 = vld [vmem:[%s1505_s4 + $0x30] sm:$0xff]  }
 0x143   :  { %v294_v2 = vpack.c.bf16 %v280_v57, %v279_v62  ;;  %v260_v3 = vmul.f32 %v1240_v30, %v238_v45  ;;  %918 = vrsqrt.f32 %v211_v12  ;;  %v199_v46 = vmul.f32 0.03125, %v181_v38 }
 0x144   :  { %v909_v4 = vpop.eup %908  ;;  %v259_v55 = vmul.f32 %v1240_v30, %v237_v60  ;;  %v214_v31 = vadd.f32 1e-05, %v198_v18 }
 0x145   :  { %v911_v6 = vpop.eup %910  ;;  %v240_v54 = vmul.f32 %v909_v4, %v1165_v1  ;;  %v282_v9 = vadd.f32 %v1247_v36, %v260_v3  ;;  %v184_v32 = vpop.xlane.xlu1 %183  ;;  %v215_v49 = vadd.f32 1e-05, %v199_v46 }
 0x146   :  { %v239_v13 = vmul.f32 %v911_v6, %v1162_v0  ;;  %v281_v15 = vadd.f32 %v1247_v36, %v259_v55  ;;  %920 = vrsqrt.f32 %v214_v31  ;;  %v200_v40 = vmul.f32 0.03125, %v184_v32 }
 0x147   :  { %v262_v22 = vmul.f32 %v1240_v30, %v240_v54  ;;  %922 = vrsqrt.f32 %v213_v34  ;;  %v893_v54 = vld [vmem:[%s1505_s4 + $0x28] sm:$0xff]  }
 0x148   :  { %v295_v19 = vpack.c.bf16 %v282_v9, %v281_v15  ;;  %v913_v16 = vpop.eup %912  ;;  %v261_v1 = vmul.f32 %v1240_v30, %v239_v13  ;;  %v216_v44 = vadd.f32 1e-05, %v200_v40  ;;  %v895_v9 = vld [vmem:[%s1505_s4 + $0x38] sm:$0xff]  }
 0x149   :  { %802 = vmatmul.mubr.msk.bf16.gmra.mrb[4].mxu0 %vm39_vm0, %v294_v2  ;;  %v915_v27 = vpop.eup %914  ;;  %v242_v0 = vmul.f32 %v913_v16, %v1177_v11  ;;  %v284_v33 = vadd.f32 %v1247_v36, %v262_v22 }
 0x14a   :  { %401 = vmatprep.mubr.bf16.mxu0 %v1008_v58  ;;  %v241_v20 = vmul.f32 %v915_v27, %v1174_v10  ;;  %v283_v39 = vadd.f32 %v1247_v36, %v261_v1  ;;  %924 = vrsqrt.f32 %v216_v44 }
 0x14b   :  { %v264_v42 = vmul.f32 %v1240_v30, %v242_v0  ;;  %926 = vrsqrt.f32 %v215_v49 }
 0x14c   :  { %v296_v41 = vpack.c.bf16 %v284_v33, %v283_v39  ;;  %v917_v43 = vpop.eup %916  ;;  %v263_v11 = vmul.f32 %v1240_v30, %v241_v20 }
 0x14d   :  { %v919_v24 = vpop.eup %918  ;;  %v244_v10 = vmul.f32 %v917_v43, %v1189_v17  ;;  %v286_v48 = vadd.f32 %v1247_v36, %v264_v42 }
 0x14e   :  { %v243_v50 = vmul.f32 %v919_v24, %v1186_v23  ;;  %v285_v51 = vadd.f32 %v1247_v36, %v263_v11 }
 0x14f   :  { %v266_v28 = vmul.f32 %v1240_v30, %v244_v10 }
 0x150   :  { %v297_v52 = vpack.c.bf16 %v286_v48, %v285_v51  ;;  %v921_v29 = vpop.eup %920  ;;  %v265_v37 = vmul.f32 %v1240_v30, %v243_v50 }
 0x151   :  { %803 = vmatmul.mubr.msk.bf16.gmra.mrb[8].mxu0 %vm39_vm0, %v295_v19  ;;  %v923_v53 = vpop.eup %922  ;;  %v246_v17 = vmul.f32 %v921_v29, %v1201_v21  ;;  %v288_v45 = vadd.f32 %v1247_v36, %v266_v28 }
 0x152   :  { %411 = vmatprep.mubr.bf16.mxu0 %v1008_v58  ;;  %v245_v23 = vmul.f32 %v923_v53, %v1198_v35  ;;  %v287_v56 = vadd.f32 %v1247_v36, %v265_v37 }
 0x153   :  { %v268_v59 = vmul.f32 %v1240_v30, %v246_v17 }
 0x154   :  { %v298_v57 = vpack.c.bf16 %v288_v45, %v287_v56  ;;  %v925_v60 = vpop.eup %924  ;;  %v267_v61 = vmul.f32 %v1240_v30, %v245_v23 }
 0x155   :  { %v927_v62 = vpop.eup %926  ;;  %v248_v63 = vmul.f32 %v925_v60, %v1213_v25  ;;  %v290_v21 = vadd.f32 %v1247_v36, %v268_v59 }
 0x156   :  { %v247_v2 = vmul.f32 %v927_v62, %v1210_v47  ;;  %v289_v35 = vadd.f32 %v1247_v36, %v267_v61  ;;  %v888_v47 = vld [vmem:[%s1505_s4] sm:$0xff]  }
 0x157   :  { %v270_v4 = vmul.f32 %v1240_v30, %v248_v63  ;;  %849 = vmatprep.subr.bf16.mxu1 %v888_v47 }
 0x158   :  { %v299_v3 = vpack.c.bf16 %v290_v21, %v289_v35  ;;  %v269_v5 = vmul.f32 %v1240_v30, %v247_v2  ;;  %850 = vmatpush3.bf16.msra.mxu1 %v888_v47  ;;  %v891_v30 = vld [vmem:[%s1505_s4 + $0x18] sm:$0xff]  }
 0x159   :  { %804 = vmatmul.mubr.msk.bf16.gmra.mrb[12].mxu0 %vm39_vm0, %v296_v41  ;;  %v292_v55 = vadd.f32 %v1247_v36, %v270_v4  ;;  %851 = vmatprep.subr.bf16.mxu1 %v889_v7 }
 0x15a   :  { %421 = vmatprep.mubr.bf16.mxu0 %v1008_v58  ;;  %v291_v6 = vadd.f32 %v1247_v36, %v269_v5  ;;  %v892_v36 = vld [vmem:[%s1505_s4 + $0x20] sm:$0xff]  }
 0x15c   :  { %v300_v25 = vpack.c.bf16 %v292_v55, %v291_v6  ;;  %852 = vmatpush3.bf16.msra.mxu1 %v889_v7 }
 0x161   :  { %805 = vmatmul.mubr.msk.bf16.gmra.mrb[16].mxu0 %vm39_vm0, %v297_v52 }
 0x162   :  { %431 = vmatprep.mubr.bf16.mxu0 %v1008_v58 }
 0x169   :  { %806 = vmatmul.mubr.msk.bf16.gmra.mrb[20].mxu0 %vm39_vm0, %v298_v57 }
 0x16a   :  { %441 = vmatprep.mubr.bf16.mxu0 %v1008_v58 }
 0x171   :  { %807 = vmatmul.mubr.msk.bf16.gmra.mrb[24].mxu0 %vm39_vm0, %v299_v3 }
 0x172   :  { %451 = vmatprep.mubr.bf16.mxu0 %v1008_v58  ;;  %v890_v58 = vld [vmem:[%s1505_s4 + $0x10] sm:$0xff]  }
 0x173   :  { %853 = vmatprep.subr.bf16.mxu1 %v890_v58 }
 0x174   :  { %854 = vmatpush3.bf16.msra.mxu1 %v890_v58 }
 0x175   :  { %855 = vmatprep.subr.bf16.mxu1 %v891_v30 }
 0x178   :  { %856 = vmatpush3.bf16.msra.mxu1 %v891_v30 }
 0x179   :  { %808 = vmatmul.mubr.msk.bf16.gmra.mrb[28].mxu0 %vm39_vm0, %v300_v25  ;;  %857 = vmatprep.subr.bf16.mxu1 %v892_v36 }
 0x17c   :  { %858 = vmatpush3.bf16.msra.mxu1 %v892_v36 }
 0x17d   :  { %859 = vmatprep.subr.bf16.mxu1 %v893_v54 }
 0x180   :  { %860 = vmatpush3.bf16.msra.mxu1 %v893_v54 }
 0x181   :  { %861 = vmatprep.subr.bf16.mxu1 %v894_v8 }
 0x184   :  { %862 = vmatpush3.bf16.msra.mxu1 %v894_v8 }
 0x185   :  { %863 = vmatprep.subr.bf16.mxu1 %v895_v9 }
 0x188   :  { %864 = vmatpush3.bf16.msra.mxu1 %v895_v9 }
 0x214   :  { %v383_v12 = vpop.f32.mrb[0].mxu0 }
 0x215   :  { %v809_v13 = vmul.f32 -1.442695, %v383_v12  ;;  %v385_v14 = vpop.f32.mrb[1].mxu0 }
 0x216   :  { %v387_v15 = vpop.f32.mrb[2].mxu0 }
 0x217   :  { %928 = vpow2.f32 %v809_v13  ;;  %v810_v18 = vmul.f32 -1.442695, %v387_v15  ;;  %v389_v19 = vpop.f32.mrb[3].mxu0 }
 0x219   :  { %930 = vpow2.f32 %v810_v18 }
 0x21c   :  { %v393_v22 = vpop.f32.mrb[4].mxu0 }
 0x21d   :  { %v811_v16 = vmul.f32 -1.442695, %v393_v22  ;;  %v395_v26 = vpop.f32.mrb[5].mxu0 }
 0x21e   :  { %v397_v1 = vpop.f32.mrb[6].mxu0 }
 0x21f   :  { %932 = vpow2.f32 %v811_v16  ;;  %v812_v27 = vmul.f32 -1.442695, %v397_v1  ;;  %v399_v31 = vpop.f32.mrb[7].mxu0 }
 0x221   :  { %v929_v0 = vpop.eup %928  ;;  %934 = vpow2.f32 %v812_v27 }
 0x222   :  { %v510_v32 = vadd.f32 1.0, %v929_v0 }
 0x223   :  { %v931_v33 = vpop.eup %930 }
 0x224   :  { %936 = vrcp.f32 %v510_v32  ;;  %v511_v34 = vadd.f32 1.0, %v931_v33  ;;  %v1333_v20 = vpop.f32.mrb[8].mxu0 }
 0x225   :  { %v813_v38 = vmul.f32 -1.442695, %v1333_v20  ;;  %v1336_v39 = vpop.f32.mrb[9].mxu0 }
 0x226   :  { %938 = vrcp.f32 %v511_v34  ;;  %v1338_v40 = vpop.f32.mrb[10].mxu0 }
 0x227   :  { %940 = vpow2.f32 %v813_v38  ;;  %v814_v41 = vmul.f32 -1.442695, %v1338_v40  ;;  %v1341_v42 = vpop.f32.mrb[11].mxu0 }
 0x229   :  { %v933_v43 = vpop.eup %932  ;;  %942 = vpow2.f32 %v814_v41 }
 0x22a   :  { %v512_v46 = vadd.f32 1.0, %v933_v43 }
 0x22b   :  { %v935_v11 = vpop.eup %934 }
 0x22c   :  { %944 = vrcp.f32 %v512_v46  ;;  %v513_v24 = vadd.f32 1.0, %v935_v11  ;;  %v1343_v44 = vpop.f32.mrb[12].mxu0 }
 0x22d   :  { %v815_v10 = vmul.f32 -1.442695, %v1343_v44  ;;  %v1346_v48 = vpop.f32.mrb[13].mxu0 }
 0x22e   :  { %v937_v49 = vpop.eup %936  ;;  %946 = vrcp.f32 %v513_v24  ;;  %v1348_v50 = vpop.f32.mrb[14].mxu0 }
 0x22f   :  { %v558_v51 = vmul.f32 %v937_v49, %v383_v12  ;;  %948 = vpow2.f32 %v815_v10  ;;  %v816_v52 = vmul.f32 -1.442695, %v1348_v50  ;;  %v1351_v28 = vpop.f32.mrb[15].mxu0 }
 0x230   :  { %v939_v29 = vpop.eup %938 }
 0x231   :  { %v941_v37 = vpop.eup %940  ;;  %v574_v53 = vmul.f32 %v558_v51, %v385_v14  ;;  %v559_v17 = vmul.f32 %v939_v29, %v387_v15  ;;  %950 = vpow2.f32 %v816_v52 }
 0x232   :  { %v514_v45 = vadd.f32 1.0, %v941_v37 }
 0x233   :  { %v943_v23 = vpop.eup %942  ;;  %v575_v56 = vmul.f32 %v559_v17, %v389_v19 }
 0x234   :  { %952 = vrcp.f32 %v514_v45  ;;  %v515_v57 = vadd.f32 1.0, %v943_v23  ;;  %v1353_v59 = vpop.f32.mrb[16].mxu0 }
 0x235   :  { %v817_v60 = vmul.f32 -1.442695, %v1353_v59  ;;  %v1356_v61 = vpop.f32.mrb[17].mxu0  ;;  %v590_v62 = vpack.c.bf16 %v575_v56, %v574_v53 }
 0x236   :  { %v945_v63 = vpop.eup %944  ;;  %954 = vrcp.f32 %v515_v57  ;;  %v1358_v21 = vpop.f32.mrb[18].mxu0 }
 0x237   :  { %v560_v2 = vmul.f32 %v945_v63, %v393_v22  ;;  %956 = vpow2.f32 %v817_v60  ;;  %v818_v35 = vmul.f32 -1.442695, %v1358_v21  ;;  %v1361_v3 = vpop.f32.mrb[19].mxu0  ;;  %865 = vmatprep.mubr.bf16.mxu1 %v590_v62 }
 0x238   :  { %v947_v4 = vpop.eup %946 }
 0x239   :  { %v949_v5 = vpop.eup %948  ;;  %v576_v55 = vmul.f32 %v560_v2, %v395_v26  ;;  %v561_v6 = vmul.f32 %v947_v4, %v397_v1  ;;  %958 = vpow2.f32 %v818_v35 }
 0x23a   :  { %v516_v25 = vadd.f32 1.0, %v949_v5 }
 0x23b   :  { %v951_v47 = vpop.eup %950  ;;  %v577_v7 = vmul.f32 %v561_v6, %v399_v31 }
 0x23c   :  { %960 = vrcp.f32 %v516_v25  ;;  %v517_v58 = vadd.f32 1.0, %v951_v47  ;;  %v1363_v30 = vpop.f32.mrb[20].mxu0 }
 0x23d   :  { %v591_v36 = vpack.c.bf16 %v577_v7, %v576_v55  ;;  %v819_v54 = vmul.f32 -1.442695, %v1363_v30  ;;  %v1366_v8 = vpop.f32.mrb[21].mxu0 }
 0x23e   :  { %v953_v9 = vpop.eup %952  ;;  %962 = vrcp.f32 %v517_v58  ;;  %v1368_v12 = vpop.f32.mrb[22].mxu0 }
 0x23f   :  { %v562_v13 = vmul.f32 %v953_v9, %v1333_v20  ;;  %964 = vpow2.f32 %v819_v54  ;;  %v820_v14 = vmul.f32 -1.442695, %v1368_v12  ;;  %v1372_v15 = vpop.f32.mrb[23].mxu0  ;;  %866 = vmatmul.mubr.bf16.vlgmr.msra.gmra.mrb[0].mxu1 %v591_v36 }
 0x240   :  { %v955_v18 = vpop.eup %954 }
 0x241   :  { %v957_v19 = vpop.eup %956  ;;  %v578_v22 = vmul.f32 %v562_v13, %v1336_v39  ;;  %v563_v16 = vmul.f32 %v955_v18, %v1338_v40  ;;  %966 = vpow2.f32 %v820_v14 }
 0x242   :  { %v518_v26 = vadd.f32 1.0, %v957_v19 }
 0x243   :  { %v959_v1 = vpop.eup %958  ;;  %v579_v27 = vmul.f32 %v563_v16, %v1341_v42 }
 0x244   :  { %968 = vrcp.f32 %v518_v26  ;;  %v519_v31 = vadd.f32 1.0, %v959_v1  ;;  %v443_v0 = vpop.f32.mrb[24].mxu0  ;;  %v992_v1 = vld [vmem:[%s1501_s0 + $0x10] sm:$0xff] }
 0x245   :  { %v592_v32 = vpack.c.bf16 %v579_v27, %v578_v22  ;;  %v821_v33 = vmul.f32 -1.442695, %v443_v0  ;;  %v445_v34 = vpop.f32.mrb[25].mxu0 }
 0x246   :  { %v961_v20 = vpop.eup %960  ;;  %970 = vrcp.f32 %v519_v31  ;;  %v447_v38 = vpop.f32.mrb[26].mxu0 }
 0x247   :  { %v564_v41 = vmul.f32 %v961_v20, %v1343_v44  ;;  %972 = vpow2.f32 %v821_v33  ;;  %v822_v39 = vmul.f32 -1.442695, %v447_v38  ;;  %v449_v43 = vpop.f32.mrb[27].mxu0  ;;  %869 = vmatprep.mubr.bf16.mxu1 %v592_v32 }
 0x248   :  { %v963_v40 = vpop.eup %962 }
 0x249   :  { %v965_v46 = vpop.eup %964  ;;  %v580_v11 = vmul.f32 %v564_v41, %v1346_v48  ;;  %v565_v42 = vmul.f32 %v963_v40, %v1348_v50  ;;  %974 = vpow2.f32 %v822_v39  ;;  %v995_v41 = vld [vmem:[%s1501_s0 + $0x8] sm:$0xff]  ;;  %v996_v40 = vld [vmem:[%s1501_s0 + $0x30] sm:$0xff] }
 0x24a   :  { %v520_v24 = vadd.f32 1.0, %v965_v46 }
 0x24b   :  { %v967_v10 = vpop.eup %966  ;;  %v581_v49 = vmul.f32 %v565_v42, %v1351_v28  ;;  %v997_v42 = vld [vmem:[%s1501_s0 + $0x20] sm:$0xff] }
 0x24c   :  { %976 = vrcp.f32 %v520_v24  ;;  %v521_v51 = vadd.f32 1.0, %v967_v10  ;;  %v453_v52 = vpop.f32.mrb[28].mxu0 }
 0x24d   :  { %v593_v29 = vpack.c.bf16 %v581_v49, %v580_v11  ;;  %v823_v44 = vmul.f32 -1.442695, %v453_v52  ;;  %v455_v37 = vpop.f32.mrb[29].mxu0  ;;  %v998_v49 = vld [vmem:[%s1501_s0 + $0x38] sm:$0xff] }
 0x24e   :  { %v969_v53 = vpop.eup %968  ;;  %978 = vrcp.f32 %v521_v51  ;;  %v457_v17 = vpop.f32.mrb[30].mxu0 }
 0x24f   :  { %v566_v45 = vmul.f32 %v969_v53, %v1353_v59  ;;  %980 = vpow2.f32 %v823_v44  ;;  %v824_v48 = vmul.f32 -1.442695, %v457_v17  ;;  %v459_v23 = vpop.f32.mrb[31].mxu0  ;;  %870 = vmatmul.mubr.bf16.gmra.mrb[4].mxu1 %v593_v29  ;;  %v999_v29 = vld [vmem:[%s1501_s0 + $0x28] sm:$0xff]  ;;  %v1000_v53 = vld [vmem:[%s1501_s0 + $0x50] sm:$0xff] }
 0x250   :  { %v971_v50 = vpop.eup %970 }
 0x251   :  { %v973_v56 = vpop.eup %972  ;;  %v582_v57 = vmul.f32 %v566_v45, %v1356_v61  ;;  %v567_v28 = vmul.f32 %v971_v50, %v1358_v21  ;;  %982 = vpow2.f32 %v824_v48  ;;  %v1001_v48 = vld [vmem:[%s1501_s0 + $0x40] sm:$0xff] }
 0x252   :  { %v522_v60 = vadd.f32 1.0, %v973_v56  ;;  %v1002_v56 = vld [vmem:[%s1501_s0 + $0x58] sm:$0xff] }
 0x253   :  { %v975_v62 = vpop.eup %974  ;;  %v583_v63 = vmul.f32 %v567_v28, %v1361_v3 }
 0x254   :  { %984 = vrcp.f32 %v522_v60  ;;  %v523_v2 = vadd.f32 1.0, %v975_v62  ;;  %v1003_v60 = vld [vmem:[%s1501_s0 + $0x48] sm:$0xff] }
 0x255   :  { %v594_v35 = vpack.c.bf16 %v583_v63, %v582_v57 }
 0x256   :  { %v977_v4 = vpop.eup %976  ;;  %986 = vrcp.f32 %v523_v2  ;;  %v1004_v2 = vld [vmem:[%s1501_s0 + $0x70] sm:$0xff] }
 0x257   :  { %v568_v59 = vmul.f32 %v977_v4, %v1363_v30  ;;  %873 = vmatprep.mubr.bf16.mxu1 %v594_v35 }
 0x258   :  { %v979_v5 = vpop.eup %978 }
 0x259   :  { %v981_v55 = vpop.eup %980  ;;  %v584_v6 = vmul.f32 %v568_v59, %v1366_v8  ;;  %v569_v61 = vmul.f32 %v979_v5, %v1368_v12  ;;  %v1005_v59 = vld [vmem:[%s1501_s0 + $0x60] sm:$0xff] }
 0x25a   :  { %v524_v21 = vadd.f32 1.0, %v981_v55 }
 0x25b   :  { %v983_v25 = vpop.eup %982  ;;  %v585_v47 = vmul.f32 %v569_v61, %v1372_v15 }
 0x25c   :  { %988 = vrcp.f32 %v524_v21  ;;  %v525_v3 = vadd.f32 1.0, %v983_v25  ;;  %v1007_v25 = vld [vmem:[%s1501_s0 + $0x68] sm:$0xff] }
 0x25d   :  { %v595_v7 = vpack.c.bf16 %v585_v47, %v584_v6  ;;  %v1006_v6 = vld [vmem:[%s1501_s0 + $0x78] sm:$0xff] }
 0x25e   :  { %v985_v58 = vpop.eup %984  ;;  %990 = vrcp.f32 %v525_v3 }
 0x25f   :  { %v570_v36 = vmul.f32 %v985_v58, %v443_v0  ;;  %874 = vmatmul.mubr.bf16.gmra.mrb[8].mxu1 %v595_v7  ;;  %v993_v0 = vld [vmem:[%s1501_s0] sm:$0xff] }
 0x260   :  { %v987_v54 = vpop.eup %986 }
 0x261   :  { %v586_v30 = vmul.f32 %v570_v36, %v445_v34  ;;  %v571_v9 = vmul.f32 %v987_v54, %v447_v38  ;;  %v994_v34 = vld [vmem:[%s1501_s0 + $0x18] sm:$0xff] }
 0x263   :  { %v587_v13 = vmul.f32 %v571_v9, %v449_v43 }
 0x265   :  { %v596_v14 = vpack.c.bf16 %v587_v13, %v586_v30 }
 0x266   :  { %v989_v18 = vpop.eup %988 }
 0x267   :  { %v572_v8 = vmul.f32 %v989_v18, %v453_v52  ;;  %877 = vmatprep.mubr.bf16.mxu1 %v596_v14 }
 0x268   :  { %v991_v12 = vpop.eup %990 }
 0x269   :  { %v588_v19 = vmul.f32 %v572_v8, %v455_v37  ;;  %v573_v22 = vmul.f32 %v991_v12, %v457_v17 }
 0x26b   :  { %v589_v16 = vmul.f32 %v573_v22, %v459_v23 }
 0x26d   :  { %v597_v15 = vpack.c.bf16 %v589_v16, %v588_v19 }
 0x26f   :  { %878 = vmatmul.mubr.bf16.gmra.mrb[12].mxu1 %v597_v15 }
 0x312   :  { %v867_v26 = vpop.f32.mrb[0].mxu1 }
 0x313   :  { %v761_v27 = vadd.f32 %v992_v1, %v867_v26  ;;  %v696_v31 = vpop.f32.mrb[1].mxu1 }
 0x314   :  { %v759_v32 = vadd.f32 %v993_v0, %v696_v31  ;;  %v868_v33 = vpop.f32.mrb[2].mxu1 }
 0x315   :  { %777 = vst.msk [vmem:[%s1506_s5 + $0x10] sm:$0xff] %vm39_vm0, %v761_v27  ;;  %v762_v20 = vadd.f32 %v994_v34, %v868_v33  ;;  %v699_v38 = vpop.f32.mrb[3].mxu1 }
 0x316   :  { %775 = vst.msk [vmem:[%s1506_s5] sm:$0xff] %vm39_vm0, %v759_v32  ;;  %v760_v39 = vadd.f32 %v995_v41, %v699_v38 }
 0x317   :  { %778 = vst.msk [vmem:[%s1506_s5 + $0x18] sm:$0xff] %vm39_vm0, %v762_v20 }
 0x318   :  { %776 = vst.msk [vmem:[%s1506_s5 + $0x8] sm:$0xff] %vm39_vm0, %v760_v39 }
 0x322   :  { %v871_v43 = vpop.f32.mrb[4].mxu1 }
 0x323   :  { %v765_v46 = vadd.f32 %v996_v40, %v871_v43  ;;  %v712_v11 = vpop.f32.mrb[5].mxu1 }
 0x324   :  { %v763_v24 = vadd.f32 %v997_v42, %v712_v11  ;;  %v872_v10 = vpop.f32.mrb[6].mxu1 }
 0x325   :  { %781 = vst.msk [vmem:[%s1506_s5 + $0x30] sm:$0xff] %vm39_vm0, %v765_v46  ;;  %v766_v51 = vadd.f32 %v998_v49, %v872_v10  ;;  %v715_v52 = vpop.f32.mrb[7].mxu1 }
 0x326   :  { %779 = vst.msk [vmem:[%s1506_s5 + $0x20] sm:$0xff] %vm39_vm0, %v763_v24  ;;  %v764_v44 = vadd.f32 %v999_v29, %v715_v52 }
 0x327   :  { %782 = vst.msk [vmem:[%s1506_s5 + $0x38] sm:$0xff] %vm39_vm0, %v766_v51 }
 0x328   :  { %780 = vst.msk [vmem:[%s1506_s5 + $0x28] sm:$0xff] %vm39_vm0, %v764_v44 }
 0x332   :  { %v875_v37 = vpop.f32.mrb[8].mxu1 }
 0x333   :  { %v769_v17 = vadd.f32 %v1000_v53, %v875_v37  ;;  %v728_v45 = vpop.f32.mrb[9].mxu1 }
 0x334   :  { %v767_v23 = vadd.f32 %v1001_v48, %v728_v45  ;;  %v876_v50 = vpop.f32.mrb[10].mxu1 }
 0x335   :  { %785 = vst.msk [vmem:[%s1506_s5 + $0x50] sm:$0xff] %vm39_vm0, %v769_v17  ;;  %v770_v57 = vadd.f32 %v1002_v56, %v876_v50  ;;  %v731_v28 = vpop.f32.mrb[11].mxu1 }
 0x336   :  { %783 = vst.msk [vmem:[%s1506_s5 + $0x40] sm:$0xff] %vm39_vm0, %v767_v23  ;;  %v768_v62 = vadd.f32 %v1003_v60, %v731_v28 }
 0x337   :  { %786 = vst.msk [vmem:[%s1506_s5 + $0x58] sm:$0xff] %vm39_vm0, %v770_v57 }
 0x338   :  { %784 = vst.msk [vmem:[%s1506_s5 + $0x48] sm:$0xff] %vm39_vm0, %v768_v62 }
 0x342   :  { %v879_v63 = vpop.f32.mrb[12].mxu1 }
 0x343   :  { %v773_v35 = vadd.f32 %v1004_v2, %v879_v63  ;;  %v744_v4 = vpop.f32.mrb[13].mxu1 }
 0x344   :  { %v771_v5 = vadd.f32 %v1005_v59, %v744_v4  ;;  %v880_v55 = vpop.f32.mrb[14].mxu1 }
 0x345   :  { %789 = vst.msk [vmem:[%s1506_s5 + $0x70] sm:$0xff] %vm39_vm0, %v773_v35  ;;  %v774_v61 = vadd.f32 %v1006_v6, %v880_v55  ;;  %v747_v21 = vpop.f32.mrb[15].mxu1 }
 0x346   :  { %787 = vst.msk [vmem:[%s1506_s5 + $0x60] sm:$0xff] %vm39_vm0, %v771_v5  ;;  %v772_v47 = vadd.f32 %v1007_v25, %v747_v21 }
 0x347   :  { %790 = vst.msk [vmem:[%s1506_s5 + $0x78] sm:$0xff] %vm39_vm0, %v774_v61 }
 0x348   :  { %788 = vst.msk [vmem:[%s1506_s5 + $0x68] sm:$0xff] %vm39_vm0, %v772_v47 }

// kernel: pairformer_block.35
= control target key start
LH: loop header
LB: loop body
LE: loop exit
PB: predicated region body
PF: predicated region fallthrough
CT: control target
= control target key end

     0   :  { %vm26_vm0 = vcmask 261120   ;;  %s498_s0 = inlined_call_operand.vmem [shape: f32[16,32], index: 0, kind: input, shape index: {}]   ;;  %s499_s1 = inlined_call_operand.vmem [shape: f32[1,32], index: 1, kind: input, shape index: {}]   ;;  %s500_s2 = inlined_call_operand.vmem [shape: f32[1,32], index: 2, kind: input, shape index: {}]   ;;  %s501_s3 = inlined_call_operand.vmem [shape: bf16[32,256], index: 3, kind: input, shape index: {}]   ;;  %s502_s4 = inlined_call_operand.vmem [shape: bf16[128,32], index: 4, kind: input, shape index: {}]   ;;  %s503_s5 = inlined_call_operand.hbm [shape: f32[16,32], index: 5, kind: output, shape index: {}]  }
   0x1   :  { %v424_v0 = vld [vmem:[%s498_s0] sm:$0xff]  ;;  %v429_v1 = vld [vmem:[%s498_s0 + $0x8] sm:$0xff] }
   0x2   :  { %v27_v2 = vsel %vm26_vm0, %v424_v0, 0.0  ;;  %v30_v3 = vsel %vm26_vm0, %v429_v1, 0.0 }
   0x3   :  { %28 = vadd.xlane.f32.xlu0 %v27_v2 }
   0x7   :  { %31 = vadd.xlane.f32.xlu0 %v30_v3 }
   0x8   :  { %10 = vsyncpa [#allocation3], 0  ;;  %v335_v14 = vld [vmem:[%s501_s3 + $0x4] ss:$8 sps:$4 sm:$0xff]   ;;  %v337_v15 = vld [vmem:[%s501_s3] ss:$8 sps:$4 sm:$0xff]  }
   0x9   :  { %98 = vmatprep.subr.bf16.mxu0 %v335_v14  ;;  %v338_v16 = vld [vmem:[%s501_s3 + $0x14] ss:$8 sps:$4 sm:$0xff]   ;;  %v340_v17 = vld [vmem:[%s501_s3 + $0x10] ss:$8 sps:$4 sm:$0xff]   ;;  %v385_v18 = vmov 0   ;;  %v341_v36 = vld [vmem:[%s502_s4] sm:$0xff]  }
   0xa   :  { %99 = vmatpush1.bf16.msra.mxu0 %v337_v15  ;;  %130 = vmatprep.mubr.bf16.mxu0 %v385_v18  ;;  %v283_v27 = vld [vmem:[%s499_s1] ss:$0 sm:$0xff]  ;;  %v386_v37 = vmov 0.0   ;;  %v342_v38 = vld [vmem:[%s502_s4 + $0x8] sm:$0xff]   ;;  %v343_v39 = vld [vmem:[%s502_s4 + $0x10] sm:$0xff]   ;;  %vm387_vm1 = vmmov 0  }
   0xb   :  { %100 = vmatprep.subr.bf16.mxu0 %v338_v16  ;;  %v284_v31 = vld [vmem:[%s500_s2] ss:$0 sm:$0xff]  ;;  %309 = vmatprep.subr.bf16.mxu1 %v386_v37  ;;  %v344_v40 = vld [vmem:[%s502_s4 + $0x18] sm:$0xff]   ;;  %v346_v42 = vld [vmem:[%s502_s4 + $0x28] sm:$0xff]  }
   0xc   :  { %310 = vmatpush3.bf16.msra.mxu1 %v341_v36  ;;  %v345_v41 = vld [vmem:[%s502_s4 + $0x20] sm:$0xff]   ;;  %v347_v43 = vld [vmem:[%s502_s4 + $0x30] sm:$0xff]   ;;  %v348_v44 = vld [vmem:[%s502_s4 + $0x38] sm:$0xff]   ;;  %325 = vmatprep.mubr.msk.bf16.mxu1 %vm387_vm1, %v386_v37  ;;  %s388_s4 = smov [#allocation2]  }
   0xd   :  { %311 = vmatprep.subr.bf16.mxu1 %v386_v37  ;;  %s272_s21 = sshll.u32 %s388_s4, 4  ;;  %s273_s21 = int_to_ptr.vmem [resolvable:$true] %s272_s21 }
   0xe   :  { %101 = vmatpush1.bf16.msra.mxu0 %v340_v17  ;;  %s361_s0 = scalar_lea.vmem %s273_s21, 256  ;;  %p366_p1 = scmp.lt.s32.totalorder %s273_s21, %s273_s21 }
   0xf   :  { %p362_p0 = scmp.ne.s32.totalorder %s273_s21, %s361_s0  ;;  %p367_p2 = scmp.lt.s32.totalorder %s361_s0, %s361_s0 }
  0x10   :  { %312 = vmatpush3.bf16.msra.mxu1 %v342_v38 }
  0x11   :  { %313 = vmatprep.subr.bf16.mxu1 %v386_v37  ;;  %p368_p3 = por %p367_p2, %p366_p1 }
  0x13   :  { %p369_p4 = pnand %p368_p3, %p362_p0 }
  0x14   :  { %314 = vmatpush3.bf16.msra.mxu1 %v343_v39 }
  0x15   :  { %315 = vmatprep.subr.bf16.mxu1 %v386_v37 }
  0x18   :  { %316 = vmatpush3.bf16.msra.mxu1 %v344_v40 }
  0x19   :  { %317 = vmatprep.subr.bf16.mxu1 %v386_v37 }
  0x1c   :  { %318 = vmatpush3.bf16.msra.mxu1 %v345_v41 }
  0x1d   :  { %319 = vmatprep.subr.bf16.mxu1 %v386_v37 }
  0x20   :  { %320 = vmatpush3.bf16.msra.mxu1 %v346_v42 }
  0x21   :  { %321 = vmatprep.subr.bf16.mxu1 %v386_v37 }
  0x24   :  { %322 = vmatpush3.bf16.msra.mxu1 %v347_v43 }
  0x25   :  { %323 = vmatprep.subr.bf16.mxu1 %v386_v37 }
  0x28   :  { %324 = vmatpush3.bf16.msra.mxu1 %v348_v44 }
  0x90   :  { %v29_v4 = vpop.xlane.xlu0 %28 }
  0x91   :  { %v34_v5 = vmul.f32 0.03125, %v29_v4 }
  0x93   :  { %v36_v6 = vsub.f32 %v424_v0, %v34_v5 }
  0x94   :  { %v32_v7 = vpop.xlane.xlu0 %31 }
  0x95   :  { %v35_v8 = vmul.f32 0.03125, %v32_v7  ;;  %v38_v9 = vmul.f32 %v36_v6, %v36_v6 }
  0x97   :  { %v37_v10 = vsub.f32 %v429_v1, %v35_v8  ;;  %v40_v11 = vsel %vm26_vm0, %v38_v9, 0.0 }
  0x98   :  { %41 = vadd.xlane.f32.xlu1 %v40_v11 }
  0x99   :  { %v39_v12 = vmul.f32 %v37_v10, %v37_v10 }
  0x9b   :  { %v43_v13 = vsel %vm26_vm0, %v39_v12, 0.0 }
  0x9c   :  { %44 = vadd.xlane.f32.xlu1 %v43_v13 }
 0x125   :  { %v42_v19 = vpop.xlane.xlu1 %41 }
 0x126   :  { %v46_v20 = vmul.f32 0.03125, %v42_v19 }
 0x128   :  { %v48_v21 = vadd.f32 1e-05, %v46_v20 }
 0x129   :  { %v45_v22 = vpop.xlane.xlu1 %44 }
 0x12a   :  { %349 = vrsqrt.f32 %v48_v21  ;;  %v47_v23 = vmul.f32 0.03125, %v45_v22 }
 0x12c   :  { %v49_v24 = vadd.f32 1e-05, %v47_v23 }
 0x12e   :  { %351 = vrsqrt.f32 %v49_v24 }
 0x134   :  { %v350_v25 = vpop.eup %349 }
 0x135   :  { %v52_v26 = vmul.f32 %v350_v25, %v36_v6 }
 0x137   :  { %v60_v30 = vmul.f32 %v283_v27, %v52_v26 }
 0x138   :  { %v352_v28 = vpop.eup %351 }
 0x139   :  { %v53_v29 = vmul.f32 %v352_v28, %v37_v10  ;;  %v68_v33 = vadd.f32 %v284_v31, %v60_v30 }
 0x13b   :  { %v61_v32 = vmul.f32 %v283_v27, %v53_v29 }
 0x13d   :  { %v69_v34 = vadd.f32 %v284_v31, %v61_v32 }
 0x13f   :  { %v70_v35 = vpack.c.bf16 %v69_v34, %v68_v33 }
 0x141   :  { %289 = vmatmul.mubr.msk.bf16.vlgmr.msra.gmra.mrb[0].mxu0 %vm26_vm0, %v70_v35 }
 0x214   :  { %v132_v45 = vpop.f32.mrb[0].mxu0 }
 0x215   :  { %v290_v46 = vmul.f32 -1.442695, %v132_v45  ;;  %v134_v47 = vpop.f32.mrb[1].mxu0 }
 0x216   :  { %v136_v48 = vpop.f32.mrb[2].mxu0 }
 0x217   :  { %353 = vpow2.f32 %v290_v46  ;;  %v291_v49 = vmul.f32 -1.442695, %v136_v48  ;;  %v138_v50 = vpop.f32.mrb[3].mxu0 }
 0x219   :  { %355 = vpow2.f32 %v291_v49 }
 0x221   :  { %v354_v51 = vpop.eup %353 }
 0x222   :  { %v147_v52 = vadd.f32 1.0, %v354_v51 }
 0x223   :  { %v356_v53 = vpop.eup %355 }
 0x224   :  { %357 = vrcp.f32 %v147_v52  ;;  %v148_v54 = vadd.f32 1.0, %v356_v53 }
 0x226   :  { %359 = vrcp.f32 %v148_v54 }
 0x22e   :  { %v358_v55 = vpop.eup %357 }
 0x22f   :  { %v153_v56 = vmul.f32 %v358_v55, %v132_v45 }
 0x230   :  { %v360_v57 = vpop.eup %359 }
 0x231   :  { %v155_v58 = vmul.f32 %v153_v56, %v134_v47  ;;  %v154_v59 = vmul.f32 %v360_v57, %v136_v48 }
 0x233   :  { %v156_v60 = vmul.f32 %v154_v59, %v138_v50 }
 0x235   :  { %v157_v61 = vpack.c.bf16 %v156_v60, %v155_v58 }
 0x237   :  { %326 = vmatmul.mubr.bf16.vlgmr.msra.gmra.mrb[0].mxu1 %v157_v61 }
 0x30a   :  { %v256_v62 = vpop.f32.mrb[0].mxu1 }
 0x30b   :  { %v263_v63 = vadd.f32 %v256_v62, %v424_v0  ;;  %v327_v2 = vpop.f32.mrb[1].mxu1 }
 0x30c   :  { %v259_v3 = vpop.f32.mrb[2].mxu1 }
 0x30d   :  { %265 = vst.msk [vmem:[#allocation2] sm:$0xff] %vm26_vm0, %v263_v63  ;;  %v264_v4 = vadd.f32 %v259_v3, %v429_v1  ;;  %v328_v5 = vpop.f32.mrb[3].mxu1 }
 0x30f   :  { %266 = vst.msk [vmem:[#allocation2 + $0x8] sm:$0xff] %vm26_vm0, %v264_v4 }
 0x310   :  { %372 = shalt.err (!%p369_p4)
}
 0x311   :  { %s373_s24 = scalar_lea.hbm %s503_s5, 256 }
 0x312   :  { %p374_p5 = scmp.ne.s32.totalorder %s503_s5, %s373_s24  ;;  %p377_p6 = scmp.lt.u32.totalorder %s373_s24, %s503_s5 }
 0x314   :  { %p379_p7 = pnand %p377_p6, %p374_p5 }
 0x316   :  { %382 = shalt.err (!%p379_p7)
}
 0x317   :  { %s389_s29 = smov 128   ;;  %s390_s30 = smov 8  }
 0x318   :  { %278 = dma.vmem_to_hbm [thread:$0]  %s273_s21, 256, %s503_s5, [#allocation3], %s389_s29, %s389_s29, %s390_s30  }
 0x319   :  { %383 = dma.done.wait [#allocation3], 256  }
 0x31a   :  { %384 = vsyncadd [#allocation3], 4294967040 }
 0x31b   :  { %282 = vsyncpa [#allocation3], 1 }

// kernel: pairformer_block.34
= control target key start
LH: loop header
LB: loop body
LE: loop exit
PB: predicated region body
PF: predicated region fallthrough
CT: control target
= control target key end

     0   :  { %v126_v0 = vmov 0.0   ;;  %vm127_vm0 = vmmov 0   ;;  %vm43_vm1 = vcmask 261120   ;;  %s180_s2 = inlined_call_operand.vmem [shape: bf16[32,32], index: 2, kind: input, shape index: {}]   ;;  %s181_s0 = inlined_call_operand.vmem [shape: bf16[16,32], index: 0, kind: input, shape index: {}]   ;;  %s182_s1 = inlined_call_operand.vmem [shape: f32[16,32], index: 1, kind: input, shape index: {}]   ;;  %s183_s3 = inlined_call_operand.vmem [shape: f32[1,32], index: 3, kind: input, shape index: {}]   ;;  %s184_s4 = inlined_call_operand.vmem [shape: f32[16,32], index: 4, kind: output, shape index: {}]  }
   0x1   :  { %113 = vmatprep.subr.bf16.mxu0 %v126_v0  ;;  %v123_v1 = vld [vmem:[%s180_s2] sm:$0xff]   ;;  %117 = vmatprep.mubr.msk.bf16.mxu0 %vm127_vm0, %v126_v0  ;;  %v124_v2 = vld [vmem:[%s180_s2 + $0x8] sm:$0xff]  }
   0x2   :  { %114 = vmatpush3.bf16.msra.mxu0 %v123_v1  ;;  %v125_v3 = vld [vmem:[%s181_s0] sm:$0xff]   ;;  %v19_v7 = vld [vmem:[%s182_s1 + $0x8] sm:$0xff] }
   0x3   :  { %115 = vmatprep.subr.bf16.mxu0 %v126_v0  ;;  %v18_v4 = vld [vmem:[%s182_s1] sm:$0xff] }
   0x4   :  { %v109_v6 = vld [vmem:[%s183_s3] ss:$0 sm:$0xff] }
   0x6   :  { %116 = vmatpush3.bf16.msra.mxu0 %v124_v2 }
   0x9   :  { %118 = vmatmul.mubr.msk.bf16.vlgmr.msra.gmra.mrb[0].mxu0 %vm43_vm1, %v125_v3 }
  0xdc   :  { %v81_v5 = vpop.f32.mrb[0].mxu0 }
  0xdd   :  { %v88_v8 = vadd.f32 %v81_v5, %v18_v4  ;;  %v119_v9 = vpop.f32.mrb[1].mxu0 }
  0xde   :  { %v84_v10 = vpop.f32.mrb[2].mxu0 }
  0xdf   :  { %v97_v11 = vadd.f32 %v109_v6, %v88_v8  ;;  %v89_v12 = vadd.f32 %v84_v10, %v19_v7  ;;  %v120_v13 = vpop.f32.mrb[3].mxu0 }
  0xe1   :  { %99 = vst.msk [vmem:[%s184_s4] sm:$0xff] %vm43_vm1, %v97_v11  ;;  %v98_v14 = vadd.f32 %v109_v6, %v89_v12 }
  0xe3   :  { %100 = vst.msk [vmem:[%s184_s4 + $0x8] sm:$0xff] %vm43_vm1, %v98_v14 }

// kernel: pairformer_block.33
= control target key start
LH: loop header
LB: loop body
LE: loop exit
PB: predicated region body
PF: predicated region fallthrough
CT: control target
= control target key end

     0   :  { %s1255_s21 = smov 0   ;;  %s1257_s22 = smov 0   ;;  %s1390_s0 = inlined_call_operand.vmem [shape: bf16[2,8,32], index: 0, kind: input, shape index: {}]   ;;  %s1391_s1 = inlined_call_operand.vmem [shape: bf16[2,8,32], index: 1, kind: input, shape index: {}]   ;;  %s1392_s2 = inlined_call_operand.vmem [shape: bf16[2,8,32], index: 2, kind: input, shape index: {}]   ;;  %s1393_s3 = inlined_call_operand.vmem [shape: bf16[2,8,32], index: 3, kind: input, shape index: {}]   ;;  %s1394_s4 = inlined_call_operand.vmem [shape: bf16[2,4,8,8], index: 4, kind: input, shape index: {}]   ;;  %s1395_s5 = inlined_call_operand.vmem [shape: f32[2,1,8], index: 5, kind: input, shape index: {}]   ;;  %s1396_s6 = inlined_call_operand.vmem [shape: bf16[2,8,32], index: 6, kind: output, shape index: {}]  }
   0x1   :  { %s1259_s23 = smov 0  }
   0x2 LB: > { %s28_s24 = sadd.s32 1, %s1206_s22  ;;  %p1036_p0 = scmp.ge.s32.totalorder %s1210_s23, 1  ;;  %s1210_s23 = sphi %s1259_s23, %s16_s23   ;;  %s1206_s22 = sphi %s1257_s22, %s1398_s22   ;;  %s1202_s21 = sphi %s1255_s21, %s1397_s21  }
   0x3   : > { %p30_p1 = scmp.ge.s32.totalorder %s28_s24, 2  ;;  %p285_p2 = scmp.lt.s32.totalorder %s1210_s23, 3 }
   0x5   : > { %s1400_s24 = smov (%p30_p1, %s28_s24), 0  ;;  %p286_p3 = pnand %p1036_p0, %p285_p2 }
   0x6   : > { %p345_p4 = scmp.lt.s32.totalorder (!%p286_p3), %s1202_s21, 1  ;;  %v1212_v0 = vmov (!%p286_p3), 0.0   ;;  %vm1213_vm0 = vmmov (!%p286_p3), 0   ;;  %vm396_vm1 = vcmask (!%p286_p3), 64512   ;;  %v447_v4 = vlaneseq (!%p286_p3)  ;;  %s1214_s15 = smov (!%p286_p3), 120  }
   0x7   : > { %289 = sbr.rel (%p286_p3) target bundleno = 1488 (0x5d0), region = 44  ;;  %1085 = vmatprep.subr.bf16.mxu0 (!%p286_p3), %v1212_v0  ;;  %1087 = vmatprep.mubr.msk.bf16.mxu0 (!%p286_p3), %vm1213_vm0, %v1212_v0  ;;  %s1215_s16 = smov (!%p286_p3), 112   ;;  %vm468_vm2 = vcmask (!%p286_p3), 1043456   ;;  %vm876_vm3 = vcmask (!%p286_p3), 130048   ;;  %vm878_vm4 = vcmask (!%p286_p3), 195584   ;;  %vm890_vm5 = vcmask (!%p286_p3), 257024  }
   0x8   : > { %1091 = vmatprep.subr.bf16.mxu1 (!%p286_p3), %v1212_v0  ;;  %1093 = vmatprep.mubr.msk.bf16.mxu1 (!%p286_p3), %vm1213_vm0, %v1212_v0  ;;  %v448_v7 = vshrl.u32 (!%p286_p3), %v447_v4, 7  ;;  %s1216_s17 = smov (!%p286_p3), 104   ;;  %s1218_s26 = smov (!%p286_p3), 16  }
   0x9   : > { %s1219_s27 = smov (!%p286_p3), 24  }
   0xa   : > { %v449_v10 = vsub.s32 (!%p286_p3), 0, %v448_v7 }
   0xe   : > { %s1402_s21 = smov (!%p345_p4, %s1202_s21), 1 }
   0xf   : > { %s1279_s25 = sshll.u32 %s1402_s21, 2  ;;  %s377_s10 = scalar_lea.vmem %s1395_s5, %s1402_s21 }
  0x10   : > { %s355_s28 = scalar_lea.vmem %s1391_s1, %s1279_s25  ;;  %s351_s7 = scalar_lea.vmem %s1390_s0, %s1279_s25  ;;  %v393_v5 = vld [vmem:[%s377_s10] sm:$0x1] }
  0x11   : > { %v387_v1 = vld [vmem:[%s355_s28] sm:$0xf]  ;;  %s1059_s11 = sshll.u32 %s1402_s21, 4  ;;  %v1044_v6 = vadd.f32 -1.0, %v393_v5  ;;  %s359_s20 = scalar_lea.vmem %s1392_s2, %s1279_s25 }
  0x12   : > { %v401_v2 = vsel %vm396_vm1, %v387_v1, 0  ;;  %v386_v3 = vld [vmem:[%s351_s7] sm:$0xf]  ;;  %s1300_s14 = scalar_lea.vmem %s1394_s4, %s1059_s11  ;;  %v1048_v21 = vcombine.low %v387_v1, %v387_v1  ;;  %s1217_s21 = smov 8  }
  0x13   : > { %1086 = vmatpush3.bf16.xpose.msra.mxu0 %v401_v2  ;;  %v1303_v8 = vld [vmem:[%s1300_s14] sm:$0xff]   ;;  %v395_v9 = vmul.f32 1e+09, %v1044_v6  ;;  %v1047_v22 = vcombine.low %v386_v3, %v386_v3  ;;  %v1068_v54 = vld [vmem:[%s1300_s14 + $0x8] sm:$0xff]   ;;  %s366_s30 = scalar_lea.vmem %s1393_s3, %s1279_s25  ;;  %s384_s9 = scalar_lea.vmem %s1396_s6, %s1279_s25 }
  0x14   : > { %1103 = vmatprep.subr.bf16.mxu0 %v1212_v0  ;;  %v1062_v11 = vunpack.c.l.bf16 %v1303_v8  ;;  %520 = vrot.lane.b32.xlu1 %v1048_v21, %s1214_s15  ;;  %v1320_v28 = vld [vmem:[%s359_s20] sm:$0xf]  ;;  %v1063_v47 = vunpack.c.h.bf16 %v1303_v8  ;;  %v1066_v57 = vunpack.c.l.bf16 %v1068_v54 }
  0x15   : > { %v1306_v15 = vrot.slane %v395_v9, %v449_v10  ;;  %v470_v29 = vsel %vm468_vm2, %v1320_v28, 0 }
  0x16   : > { %1092 = vmatpush3.bf16.msra.mxu1 %v470_v29 }
  0x17   : > { %1097 = vmatprep.subr.bf16.mxu1 %v1212_v0 }
  0x18   : > { %515 = vrot.lane.b32.xlu1 %v1047_v22, %s1214_s15 }
  0x1a   : > { %1088 = vmatmul.mubr.msk.bf16.vlgmr.msra.gmra.mrb[0].mxu0 %vm396_vm1, %v386_v3  ;;  %v1067_v3 = vunpack.c.h.bf16 %v1068_v54 }
  0x1b   : > { %1105 = vmatprep.mubr.msk.bf16.mxu0 %vm1213_vm0, %v1212_v0 }
  0x1c   : > { %635 = vrot.lane.b32.xlu1 %v1047_v22, %s1215_s16 }
  0x20   : > { %751 = vrot.lane.b32.xlu1 %v1048_v21, %s1216_s17 }
  0x24   : > { %749 = vrot.lane.b32.xlu1 %v1047_v22, %s1216_s17 }
  0x86   : > { %v521_v32 = vpop.permute.xlu1 %520 }
  0x87   : > { %v526_v34 = vsel %vm396_vm1, %v521_v32, 0 }
  0x8a   : > { %v516_v36 = vpop.permute.xlu1 %515 }
  0x8e   : > { %v636_v38 = vpop.permute.xlu1 %635 }
  0x92   : > { %v752_v40 = vpop.permute.xlu1 %751 }
  0x93   : > { %v757_v41 = vsel %vm396_vm1, %v752_v40, 0 }
  0x96   : > { %v750_v42 = vpop.permute.xlu1 %749 }
  0xed   : > { %v437_v12 = vpop.f32.mrb[0].mxu0 }
  0xee   : > { %v443_v13 = vmul.f32 0.35355338, %v437_v12  ;;  %v1089_v14 = vpop.f32.mrb[1].mxu0 }
  0xef   : > { %v440_v16 = vpop.f32.mrb[2].mxu0 }
  0xf0   : > { %v445_v17 = vadd.f32 %v1062_v11, %v443_v13  ;;  %v1090_v18 = vpop.f32.mrb[3].mxu0 }
  0xf2   : > { %v452_v19 = vadd.f32 %v1306_v15, %v445_v17 }
  0xf4   : > { %v453_v20 = vsel %vm396_vm1, %v452_v19, -inf }
  0xf5   : > { %454 = vmax.xlane.f32.xlu0 %v453_v20 }
 0x182   : > { %v455_v23 = vpop.xlane.xlu0 %454 }
 0x183   : > { %v456_v24 = vsub.f32 %v452_v19, %v455_v23 }
 0x185   : > { %v457_v25 = vmul.f32 1.442695, %v456_v24 }
 0x187   : > { %1168 = vpow2.f32 %v457_v25 }
 0x191   : > { %v1169_v26 = vpop.eup %1168 }
 0x192   : > { %v459_v27 = vsel %vm396_vm1, %v1169_v26, 0.0 }
 0x193   : > { %460 = vadd.xlane.f32.xlu0 %v459_v27 }
 0x1a9   : > { %637 = vrot.lane.b32.xlu0 %v1048_v21, %s1215_s16 }
 0x220   : > { %v461_v30 = vpop.xlane.xlu0 %460 }
 0x221   : > { %1170 = vrcp.f32 %v461_v30 }
 0x224   : > { %v638_v37 = vpop.permute.xlu0 %637 }
 0x225   : > { %v643_v39 = vsel %vm396_vm1, %v638_v37, 0 }
 0x22b   : > { %v1171_v31 = vpop.eup %1170 }
 0x22c   : > { %v463_v33 = vmul.f32 %v1171_v31, %v1169_v26 }
 0x22e   : > { %v464_v35 = vpack.c.bf16 %v463_v33, %v463_v33 }
 0x230   : > { %1094 = vmatmul.mubr.msk.bf16.vlgmr.msra.gmra.mrb[0].mxu1 %vm396_vm1, %v464_v35 }
 0x231   : > { %1098 = vmatpush3.bf16.xpose.msra.mxu1 %v526_v34  ;;  %1099 = vmatprep.mubr.msk.bf16.mxu1 %vm1213_vm0, %v1212_v0 }
 0x232   : > { %1109 = vmatprep.subr.bf16.mxu1 %v1212_v0 }
 0x238   : > { %1100 = vmatmul.mubr.msk.bf16.vlgmr.msra.gmra.mrb[4].mxu1 %vm396_vm1, %v516_v36 }
 0x239   : > { %1110 = vmatpush3.bf16.xpose.msra.mxu1 %v643_v39  ;;  %1111 = vmatprep.mubr.msk.bf16.mxu1 %vm1213_vm0, %v1212_v0 }
 0x23a   : > { %1121 = vmatprep.subr.bf16.mxu1 %v1212_v0 }
 0x240   : > { %1112 = vmatmul.mubr.msk.bf16.vlgmr.msra.gmra.mrb[8].mxu1 %vm396_vm1, %v636_v38 }
 0x241   : > { %1122 = vmatpush3.bf16.xpose.msra.mxu1 %v757_v41  ;;  %1123 = vmatprep.mubr.msk.bf16.mxu1 %vm1213_vm0, %v1212_v0 }
 0x248   : > { %1124 = vmatmul.mubr.msk.bf16.vlgmr.msra.gmra.mrb[12].mxu1 %vm396_vm1, %v750_v42 }
 0x303   : > { %v1341_v43 = vpop.f32.mrb[0].mxu1 }
 0x304   : > { %v1095_v44 = vpop.f32.mrb[1].mxu1 }
 0x305   : > { %v509_v45 = vpop.f32.mrb[2].mxu1 }
 0x306   : > { %v1096_v46 = vpop.f32.mrb[3].mxu1 }
 0x30b   : > { %v562_v48 = vpop.f32.mrb[4].mxu1 }
 0x30c   : > { %v568_v49 = vmul.f32 0.35355338, %v562_v48  ;;  %v1101_v50 = vpop.f32.mrb[5].mxu1 }
 0x30d   : > { %v565_v51 = vpop.f32.mrb[6].mxu1 }
 0x30e   : > { %v570_v52 = vadd.f32 %v1063_v47, %v568_v49  ;;  %v1102_v53 = vpop.f32.mrb[7].mxu1 }
 0x310   : > { %v571_v55 = vadd.f32 %v570_v52, %v1306_v15 }
 0x312   : > { %v572_v56 = vsel %vm396_vm1, %v571_v55, -inf }
 0x313   : > { %573 = vmax.xlane.f32.xlu1 %v572_v56  ;;  %v679_v58 = vpop.f32.mrb[8].mxu1 }
 0x314   : > { %v685_v59 = vmul.f32 0.35355338, %v679_v58  ;;  %v1113_v60 = vpop.f32.mrb[9].mxu1  ;;  %v880_v58 = vld [vmem:[%s366_s30] sm:$0xf] }
 0x315   : > { %v682_v61 = vpop.f32.mrb[10].mxu1 }
 0x316   : > { %v687_v62 = vadd.f32 %v1066_v57, %v685_v59  ;;  %v1114_v63 = vpop.f32.mrb[11].mxu1  ;;  %v881_v59 = vunpack.c.l.bf16 %v880_v58 }
 0x318   : > { %v688_v1 = vadd.f32 %v687_v62, %v1306_v15  ;;  %v1056_v60 = vmul.f32 -1.442695, %v881_v59 }
 0x31a   : > { %v689_v2 = vsel %vm396_vm1, %v688_v1, -inf }
 0x31b   : > { %690 = vmax.xlane.f32.xlu0 %v689_v2  ;;  %v793_v4 = vpop.f32.mrb[12].mxu1 }
 0x31c   : > { %v799_v5 = vmul.f32 0.35355338, %v793_v4  ;;  %v1125_v6 = vpop.f32.mrb[13].mxu1 }
 0x31d   : > { %v796_v7 = vpop.f32.mrb[14].mxu1 }
 0x31e   : > { %v801_v8 = vadd.f32 %v1067_v3, %v799_v5  ;;  %v1126_v9 = vpop.f32.mrb[15].mxu1 }
 0x320   : > { %v802_v10 = vadd.f32 %v801_v8, %v1306_v15  ;;  %v1050_v15 = vcombine.low %v1320_v28, %v1320_v28 }
 0x322   : > { %v803_v11 = vsel %vm396_vm1, %v802_v10, -inf }
 0x323   : > { %804 = vmax.xlane.f32.xlu1 %v803_v11 }
 0x3a0   : > { %v574_v12 = vpop.xlane.xlu1 %573 }
 0x3a1   : > { %v575_v13 = vsub.f32 %v571_v55, %v574_v12 }
 0x3a3   : > { %v576_v14 = vmul.f32 1.442695, %v575_v13 }
 0x3a5   : > { %1172 = vpow2.f32 %v576_v14 }
 0x3a8   : > { %v691_v16 = vpop.xlane.xlu0 %690 }
 0x3a9   : > { %v692_v17 = vsub.f32 %v688_v1, %v691_v16 }
 0x3ab   : > { %v693_v18 = vmul.f32 1.442695, %v692_v17 }
 0x3ad   : > { %1174 = vpow2.f32 %v693_v18 }
 0x3af   : > { %v1173_v19 = vpop.eup %1172 }
 0x3b0   : > { %v578_v20 = vsel %vm396_vm1, %v1173_v19, 0.0  ;;  %v805_v23 = vpop.xlane.xlu1 %804 }
 0x3b1   : > { %579 = vadd.xlane.f32.xlu1 %v578_v20  ;;  %v806_v24 = vsub.f32 %v802_v10, %v805_v23 }
 0x3b3   : > { %v807_v25 = vmul.f32 1.442695, %v806_v24 }
 0x3b5   : > { %1176 = vpow2.f32 %v807_v25 }
 0x3b7   : > { %v1175_v21 = vpop.eup %1174 }
 0x3b8   : > { %v695_v22 = vsel %vm396_vm1, %v1175_v21, 0.0 }
 0x3b9   : > { %696 = vadd.xlane.f32.xlu0 %v695_v22 }
 0x3bf   : > { %v1177_v26 = vpop.eup %1176 }
 0x3c0   : > { %v809_v27 = vsel %vm396_vm1, %v1177_v26, 0.0 }
 0x3c2   : > { %701 = vrot.lane.b32.xlu1 %v1050_v15, %s1215_s16 }
 0x3cf   : > { %587 = vrot.lane.b32.xlu0 %v1050_v15, %s1214_s15 }
 0x3e6   : > { %810 = vadd.xlane.f32.xlu1 %v809_v27 }
 0x3f7   : > { %815 = vrot.lane.b32.xlu1 %v1050_v15, %s1216_s17 }
 0x43e   : > { %v580_v29 = vpop.xlane.xlu1 %579 }
 0x43f   : > { %1178 = vrcp.f32 %v580_v29 }
 0x442   : > { %v702_v34 = vpop.permute.xlu1 %701 }
 0x443   : > { %v707_v36 = vsel %vm468_vm2, %v702_v34, 0 }
 0x446   : > { %v697_v30 = vpop.xlane.xlu0 %696 }
 0x447   : > { %1180 = vrcp.f32 %v697_v30 }
 0x449   : > { %v1179_v31 = vpop.eup %1178 }
 0x44a   : > { %v582_v28 = vmul.f32 %v1179_v31, %v1173_v19  ;;  %v588_v32 = vpop.permute.xlu0 %587 }
 0x44b   : > { %v593_v33 = vsel %vm468_vm2, %v588_v32, 0 }
 0x44c   : > { %1104 = vmatpush3.bf16.msra.mxu0 %v593_v33  ;;  %v583_v35 = vpack.c.bf16 %v582_v28, %v582_v28 }
 0x44d   : > { %1115 = vmatprep.subr.bf16.mxu0 %v1212_v0 }
 0x44f   : > { %1106 = vmatmul.mubr.msk.bf16.vlgmr.msra.gmra.mrb[4].mxu0 %vm396_vm1, %v583_v35 }
 0x450   : > { %1116 = vmatpush3.bf16.msra.mxu0 %v707_v36  ;;  %1117 = vmatprep.mubr.msk.bf16.mxu0 %vm1213_vm0, %v1212_v0 }
 0x451   : > { %v1181_v37 = vpop.eup %1180  ;;  %1127 = vmatprep.subr.bf16.mxu0 %v1212_v0 }
 0x452   : > { %v699_v38 = vmul.f32 %v1181_v37, %v1175_v21 }
 0x454   : > { %v700_v39 = vpack.c.bf16 %v699_v38, %v699_v38 }
 0x457   : > { %1118 = vmatmul.mubr.msk.bf16.vlgmr.msra.gmra.mrb[8].mxu0 %vm396_vm1, %v700_v39 }
 0x458   : > { %1129 = vmatprep.mubr.msk.bf16.mxu0 %vm1213_vm0, %v1212_v0 }
 0x473   : > { %v811_v40 = vpop.xlane.xlu1 %810 }
 0x474   : > { %1182 = vrcp.f32 %v811_v40 }
 0x475   : > { %1184 = vpow2.f32 %v1056_v60 }
 0x477   : > { %v816_v41 = vpop.permute.xlu1 %815 }
 0x478   : > { %v821_v42 = vsel %vm468_vm2, %v816_v41, 0 }
 0x479   : > { %1128 = vmatpush3.bf16.msra.mxu0 %v821_v42 }
 0x47e   : > { %v1183_v44 = vpop.eup %1182 }
 0x47f   : > { %v813_v45 = vmul.f32 %v1183_v44, %v1177_v26  ;;  %v1185_v61 = vpop.eup %1184 }
 0x480   : > { %v885_v62 = vadd.f32 1.0, %v1185_v61 }
 0x481   : > { %v814_v46 = vpack.c.bf16 %v813_v45, %v813_v45 }
 0x482   : > { %1186 = vrcp.f32 %v885_v62 }
 0x483   : > { %1130 = vmatmul.mubr.msk.bf16.vlgmr.msra.gmra.mrb[12].mxu0 %vm396_vm1, %v814_v46 }
 0x48c   : > { %v1187_v2 = vpop.eup %1186 }
 0x522   : > { %v629_v47 = vpop.f32.mrb[4].mxu0 }
 0x523   : > { %864 = vrot.lane.b32.xlu0 %v629_v47, %s1217_s21  ;;  %v1107_v48 = vpop.f32.mrb[5].mxu0 }
 0x524   : > { %v632_v49 = vpop.f32.mrb[6].mxu0 }
 0x525   : > { %v1108_v50 = vpop.f32.mrb[7].mxu0 }
 0x52a   : > { %v743_v51 = vpop.f32.mrb[8].mxu0 }
 0x52b   : > { %868 = vrot.lane.b32.xlu1 %v743_v51, %s1218_s26  ;;  %v1119_v0 = vpop.f32.mrb[9].mxu0 }
 0x52c   : > { %v746_v52 = vpop.f32.mrb[10].mxu0 }
 0x52d   : > { %v1120_v53 = vpop.f32.mrb[11].mxu0 }
 0x556   : > { %v857_v54 = vpop.f32.mrb[12].mxu0 }
 0x557   : > { %872 = vrot.lane.b32.xlu0 %v857_v54, %s1219_s27  ;;  %v1131_v55 = vpop.f32.mrb[13].mxu0 }
 0x558   : > { %v860_v56 = vpop.f32.mrb[14].mxu0 }
 0x559   : > { %v1132_v57 = vpop.f32.mrb[15].mxu0 }
 0x595   : > { %v865_v63 = vpop.permute.xlu0 %864 }
 0x596   : > { %v875_v3 = vsel %vm396_vm1, %v1341_v43, %v865_v63 }
 0x59d   : > { %v869_v1 = vpop.permute.xlu1 %868 }
 0x59e   : > { %v877_v4 = vsel %vm876_vm3, %v875_v3, %v869_v1 }
 0x5c9   : > { %v873_v5 = vpop.permute.xlu0 %872 }
 0x5ca   : > { %v879_v6 = vsel %vm878_vm4, %v877_v4, %v873_v5 }
 0x5cb   : > { %v888_v7 = vmul.f32 %v1187_v2, %v879_v6 }
 0x5cd   : > { %v889_v8 = vpack.c.bf16 %v888_v7, %v888_v7 }
 0x5cf   : > { %891 = vst.msk [vmem:[%s384_s9] sm:$0xf] %vm890_vm5, %v889_v8 }
 0x5d0 PF: > { %s16_s23 = sadd.s32 1, %s1210_s23   ;;  %s1397_s21 = smov %s1206_s22 }
 0x5d1   : > { %p13_p5 = scmp.ge.s32.totalorder %s16_s23, 4   ;;  %s1398_s22 = smov %s1400_s24 }
 0x5d3   :  { %15 = sbr.rel (!%p13_p5) target bundleno = 2 (0x2), region = 89 }

</bundles_post_ra>
